<compile_context>
chip_gen: v7x
topology: tpu7x:2x2x1
jax: 0.10.0
libtpu: 0.0.40
codegen_flags: <defaults>
</compile_context>

<pallas_src>
import jax
import jax.numpy as jnp
from jax import lax
from jax.experimental import pallas as pl
from jax.experimental.pallas import tpu as pltpu

LANES = 128
TILE_M = 1024

CONV_DEFS = (  # name, cin, cout, kernel, stride
    ("conv1", 3, 24, 5, 2),
    ("conv2", 24, 36, 5, 2),
    ("conv3", 36, 48, 5, 2),
    ("conv4", 48, 64, 3, 1),
    ("conv5", 64, 64, 3, 1),
)
FC_PAD_DEFS = (("fc2", 100, 50), ("fc3", 50, 10), ("fc4", 10, 1))


# ------------------------- conv1..conv3: im2col matmul ----------------------- #

def _conv_mm_kernel(x_ref, w_ref, b_ref, o_ref):
    """(TM, K) @ (K, cout) + bias + ReLU; f32 accumulation, bf16 store."""
    acc = jnp.dot(x_ref[...], w_ref[...], preferred_element_type=jnp.float32)
    acc = acc + b_ref[...]                        # (1, cout) broadcast over rows
    o_ref[...] = jnp.maximum(acc, 0.0).astype(o_ref.dtype)


def conv_matmul_relu(patches, w, b):
    """patches: (M, K) bf16, w: (K, cout) bf16, b: (1, cout) f32 -> (M, cout) bf16."""
    m, k = patches.shape
    cout = w.shape[1]
    tile_m = TILE_M if m > TILE_M else m          # full-extent block when M small
    return pl.pallas_call(
        _conv_mm_kernel,
        out_shape=jax.ShapeDtypeStruct((m, cout), jnp.bfloat16),
        grid=(pl.cdiv(m, tile_m),),
        in_specs=[
            pl.BlockSpec((tile_m, k), lambda i: (i, 0)),
            pl.BlockSpec((k, cout), lambda i: (0, 0)),   # weights resident
            pl.BlockSpec((1, cout), lambda i: (0, 0)),   # bias resident
        ],
        out_specs=pl.BlockSpec((tile_m, cout), lambda i: (i, 0)),
        compiler_params=pltpu.CompilerParams(
            dimension_semantics=("parallel",)),
    )(patches, w, b)


def _im2col(x_nhwc, kh, kw, stride):
    """(N, H, W, C) -> (N*OH*OW, kh*kw*C) patches, no K padding, no channel pad."""
    n, h, w, c = x_nhwc.shape
    oh = (h - kh) // stride + 1
    ow = (w - kw) // stride + 1
    cols = []
    for i in range(kh):
        for j in range(kw):
            cols.append(x_nhwc[:, i:i + (oh - 1) * stride + 1:stride,
                                  j:j + (ow - 1) * stride + 1:stride, :])
    patches = jnp.concatenate(cols, axis=-1)      # (N, OH, OW, kh*kw*C)
    return patches.reshape(n * oh * ow, kh * kw * c), oh, ow


# ----------------- fused tail: conv4 + conv5 + fc1..fc4, per image ----------- #

def _tail_kernel(x3_ref, w4_ref, b4_ref, w5_ref, b5_ref,
                 w1_ref, b1_ref, w2_ref, b2_ref, w3_ref, b3_ref,
                 wh_ref, bh_ref, o_ref):
    """x3_ref: (1, 110, 48) bf16 = one image's (5, 22, 48) conv3 activation."""
    OW3, OW4, OW5 = 22, 20, 18

    # ---- conv4: (5, 22, 48) -> (3, 20, 64), ReLU; 9 shifted dots per row ----
    rows4 = []
    for oh in range(3):
        acc = jnp.zeros((OW4, 64), jnp.float32) + b4_ref[...]
        for i in range(3):
            base = (oh + i) * OW3
            for j in range(3):
                lhs = x3_ref[0, base + j:base + j + OW4, :]      # (20, 48)
                acc = acc + jnp.dot(lhs, w4_ref[i * 3 + j],
                                    preferred_element_type=jnp.float32)
        rows4.append(jnp.maximum(acc, 0.0).astype(jnp.bfloat16))

    # ---- conv5: (3, 20, 64) -> (1, 18, 64), ReLU ----
    acc5 = jnp.zeros((OW5, 64), jnp.float32) + b5_ref[...]
    for i in range(3):
        for j in range(3):
            acc5 = acc5 + jnp.dot(rows4[i][j:j + OW5, :], w5_ref[i * 3 + j],
                                  preferred_element_type=jnp.float32)
    act5 = jnp.maximum(acc5, 0.0).astype(jnp.bfloat16)           # (18, 64)

    # ---- fc1: flatten permutation folded into weight order (w, c, out) ----
    h = jnp.zeros((1, LANES), jnp.float32) + b1_ref[...]
    for wpos in range(OW5):
        h = h + jnp.dot(act5[wpos:wpos + 1, :], w1_ref[wpos],
                        preferred_element_type=jnp.float32)
    h = jnp.maximum(h, 0.0).astype(jnp.bfloat16)

    # ---- fc2..fc4 (zero-padded 128-wide; padded rows/cols are exactly 0) ----
    h = jnp.dot(h, w2_ref[...], preferred_element_type=jnp.float32) + b2_ref[...]
    h = jnp.maximum(h, 0.0).astype(jnp.bfloat16)
    h = jnp.dot(h, w3_ref[...], preferred_element_type=jnp.float32) + b3_ref[...]
    h = jnp.maximum(h, 0.0).astype(jnp.bfloat16)
    h = jnp.dot(h, wh_ref[...], preferred_element_type=jnp.float32) + bh_ref[...]
    o_ref[...] = h.reshape(1, 1, LANES)


def _full_spec(a):
    shp = a.shape
    return pl.BlockSpec(shp, lambda i: (0,) * len(shp))   # resident (constant map)


def tail_fused(x3, packed):
    """x3: (N, 110, 48) bf16 -> (N, 1, 128) f32 (head output in column 0)."""
    n = x3.shape[0]
    w4, b4 = packed["conv4"]
    w5, b5 = packed["conv5"]
    w1, b1 = packed["fc1"]
    w2, b2 = packed["fc2"]
    w3, b3 = packed["fc3"]
    wh, bh = packed["fc4"]
    return pl.pallas_call(
        _tail_kernel,
        out_shape=jax.ShapeDtypeStruct((n, 1, LANES), jnp.float32),
        grid=(n,),
        in_specs=[pl.BlockSpec((1, 110, 48), lambda i: (i, 0, 0)),
                  _full_spec(w4), _full_spec(b4),
                  _full_spec(w5), _full_spec(b5),
                  _full_spec(w1), _full_spec(b1),
                  _full_spec(w2), _full_spec(b2),
                  _full_spec(w3), _full_spec(b3),
                  _full_spec(wh), _full_spec(bh)],
        out_specs=pl.BlockSpec((1, 1, LANES), lambda i: (i, 0, 0)),
        compiler_params=pltpu.CompilerParams(
            dimension_semantics=("parallel",)),       # 2 TCs on v7x share batch
    )(x3, w4, b4, w5, b5, w1, b1, w2, b2, w3, b3, wh, bh)


# --------------------------------- parameters -------------------------------- #

def init_params(key):
    """PyTorch-default init and layouts (OIHW conv, (out, in) linear)."""
    def conv_p(k, cout, cin, kh, kw):
        k1, k2 = jax.random.split(k)
        s = 1.0 / (cin * kh * kw) ** 0.5
        return (jax.random.uniform(k1, (cout, cin, kh, kw), jnp.float32, -s, s),
                jax.random.uniform(k2, (cout,), jnp.float32, -s, s))

    def fc_p(k, nout, nin):
        k1, k2 = jax.random.split(k)
        s = 1.0 / nin ** 0.5
        return (jax.random.uniform(k1, (nout, nin), jnp.float32, -s, s),
                jax.random.uniform(k2, (nout,), jnp.float32, -s, s))

    ks = jax.random.split(key, 9)
    return {
        "conv1": conv_p(ks[0], 24, 3, 5, 5),
        "conv2": conv_p(ks[1], 36, 24, 5, 5),
        "conv3": conv_p(ks[2], 48, 36, 5, 5),
        "conv4": conv_p(ks[3], 64, 48, 3, 3),
        "conv5": conv_p(ks[4], 64, 64, 3, 3),
        "fc1": fc_p(ks[5], 100, 64 * 1 * 18),
        "fc2": fc_p(ks[6], 50, 100),
        "fc3": fc_p(ks[7], 10, 50),
        "fc4": fc_p(ks[8], 1, 10),
    }


def prepare_params(params):
    """One-time repack: bf16 weights, im2col / shifted-dot / folded-flatten layouts."""
    packed = {}
    # conv1..conv3: im2col matmul form (kh*kw*cin, cout) — NO zero padding.
    for name, cin, cout, k, _ in CONV_DEFS[:3]:
        w, b = params[name]
        w_mat = jnp.transpose(w, (2, 3, 1, 0)).reshape(k * k * cin, cout)
        packed[name] = (w_mat.astype(jnp.bfloat16),
                        b.reshape(1, cout).astype(jnp.float32))
    # conv4 / conv5: shifted-dot form (kh*kw, cin, cout) for the fused tail.
    for name, cin, cout, k, _ in CONV_DEFS[3:]:
        w, b = params[name]
        w_off = jnp.transpose(w, (2, 3, 1, 0)).reshape(k * k, cin, cout)
        packed[name] = (w_off.astype(jnp.bfloat16),
                        b.reshape(1, cout).astype(jnp.float32))
    # fc1: fold the NCHW flatten (index = c*18 + w) into the weight order
    # (w, c, out); pad out-dim 100 -> 128 with zeros.
    w, b = params["fc1"]
    w1 = w.reshape(100, 64, 18).transpose(2, 1, 0)            # (w, c, out)
    w1 = jnp.pad(w1, ((0, 0), (0, 0), (0, LANES - 100)))
    b1 = jnp.pad(b, (0, LANES - 100)).reshape(1, LANES)
    packed["fc1"] = (w1.astype(jnp.bfloat16), b1.astype(jnp.float32))
    # fc2..fc4: (128, 128) zero-padded (padded rows/cols/bias are exactly 0,
    # and ReLU(0)=0, so padded lanes stay 0 through the whole FC chain).
    for name, nin, nout in FC_PAD_DEFS:
        w, b = params[name]
        wp = jnp.pad(w.T, ((0, LANES - nin), (0, LANES - nout)))
        bp = jnp.pad(b, (0, LANES - nout)).reshape(1, LANES)
        packed[name] = (wp.astype(jnp.bfloat16), bp.astype(jnp.float32))
    return packed


# --------------------------------- forward ----------------------------------- #

def pilotnet_forward(x_nchw, packed):
    """x_nchw: (N, 3, 66, 200) float32 -> (N, 1) float32."""
    n = x_nchw.shape[0]
    assert x_nchw.shape[1:] == (3, 66, 200), x_nchw.shape
    x = jnp.transpose(x_nchw, (0, 2, 3, 1)).astype(jnp.bfloat16)   # NHWC bf16
    # conv1..conv3: JAX-level im2col (no padding) + Pallas matmul, real-channel
    # bf16 outputs between layers.
    for name, _, cout, k, stride in CONV_DEFS[:3]:
        w, b = packed[name]
        patches, oh, ow = _im2col(x, k, k, stride)
        y = conv_matmul_relu(patches, w, b)              # (n*oh*ow, cout) bf16
        x = y.reshape(n, oh, ow, cout)
    # x: (N, 5, 22, 48) — the whole remaining network runs in one fused kernel.
    assert x.shape == (n, 5, 22, 48), x.shape
    x3 = x.reshape(n, 5 * 22, 48)
    out = tail_fused(x3, packed)                         # (N, 1, 128) f32
    return out[:, 0, :1]


# --------------------------- pure-JAX reference check ------------------------ #

def ref_forward(x_nchw, params):
    def conv(x, w, b, s, relu=True):
        y = lax.conv_general_dilated(
            x, w, (s, s), "VALID",
            dimension_numbers=("NCHW", "OIHW", "NCHW"))
        y = y + b.reshape(1, -1, 1, 1)
        return jnp.maximum(y, 0.0) if relu else y

    def fc(x, w, b, relu=True):
        y = x @ w.T + b
        return jnp.maximum(y, 0.0) if relu else y

    x = conv(x_nchw, *params["conv1"], 2)
    x = conv(x, *params["conv2"], 2)
    x = conv(x, *params["conv3"], 2)
    x = conv(x, *params["conv4"], 1)
    x = conv(x, *params["conv5"], 1)
    x = x.reshape(x.shape[0], -1)
    x = fc(x, *params["fc1"])
    x = fc(x, *params["fc2"])
    x = fc(x, *params["fc3"])
    x = fc(x, *params["fc4"], relu=False)
    return x


if __name__ == "__main__":
    key = jax.random.PRNGKey(0)
    pkey, xkey = jax.random.split(key)
    params = init_params(pkey)
    packed = prepare_params(params)

    # PilotNet's Linear(64*1*18, 100) implies a 3x66x200 NCHW input.
    x = jax.random.normal(xkey, (2, 3, 66, 200), jnp.float32)

    fwd = jax.jit(pilotnet_forward)
    out = jax.block_until_ready(fwd(x, packed))
    assert out.shape == (2, 1), out.shape

    ref = jax.block_until_ready(ref_forward(x, params))
    # bf16 MXU operands / bf16 inter-layer activations vs. the f32 reference.
    assert jnp.allclose(out, ref, atol=5e-2, rtol=5e-2), (out, ref)

    print("KERNEL_OK")
</pallas_src>

<mosaic_0001>
module attributes {stable_mosaic.version = 11 : i64} {
  func.func @_conv_mm_kernel(%arg0: i32, %arg1: memref<1024x75xbf16, #tpu.memory_space<vmem>>, %arg2: memref<75x24xbf16, #tpu.memory_space<vmem>>, %arg3: memref<1x24xf32, #tpu.memory_space<vmem>>, %arg4: memref<1024x24xbf16, #tpu.memory_space<vmem>>) attributes {dimension_semantics = [#tpu.dimension_semantics<parallel>], iteration_bounds = array<i64: 6>, scalar_prefetch = 0 : i64, scratch_operands = 0 : i64, tpu.core_type = #tpu.core_type<tc>, window_params = [{transform_indices = @transform_0, window_bounds = array<i64: 1024, 75>}, {pipeline_mode = #tpu.pipeline_mode<synchronous>, transform_indices = @transform_1, window_bounds = array<i64: 75, 24>}, {pipeline_mode = #tpu.pipeline_mode<synchronous>, transform_indices = @transform_2, window_bounds = array<i64: 1, 24>}, {transform_indices = @transform_3, window_bounds = array<i64: 1024, 24>}]} {
    %c0 = arith.constant 0 : index
    %c0_0 = arith.constant 0 : index
    %0 = vector.load %arg1[%c0, %c0_0] : memref<1024x75xbf16, #tpu.memory_space<vmem>>, vector<1024x75xbf16>
    %c0_1 = arith.constant 0 : index
    %c0_2 = arith.constant 0 : index
    %1 = vector.load %arg2[%c0_1, %c0_2] : memref<75x24xbf16, #tpu.memory_space<vmem>>, vector<75x24xbf16>
    %cst = arith.constant dense<0.000000e+00> : vector<1024x24xf32>
    %2 = tpu.matmul %0, %1, %cst {dimension_numbers = #tpu.dot_dimension_numbers<[1], [0], [0], [1], [0, 0, 1, 1], [], []>} : vector<1024x75xbf16>, vector<75x24xbf16>, vector<1024x24xf32> -> vector<1024x24xf32>
    %c0_3 = arith.constant 0 : index
    %c0_4 = arith.constant 0 : index
    %3 = vector.load %arg3[%c0_3, %c0_4] : memref<1x24xf32, #tpu.memory_space<vmem>>, vector<1x24xf32>
    %4 = vector.broadcast %3 : vector<1x24xf32> to vector<1024x24xf32>
    %5 = arith.addf %2, %4 : vector<1024x24xf32>
    %cst_5 = arith.constant 0.000000e+00 : f32
    %6 = vector.broadcast %cst_5 : f32 to vector<1024x24xf32>
    %7 = arith.maximumf %5, %6 : vector<1024x24xf32>
    %8 = arith.truncf %7 : vector<1024x24xf32> to vector<1024x24xbf16>
    %c0_6 = arith.constant 0 : index
    %c0_7 = arith.constant 0 : index
    %9 = vector.load %arg4[%c0_6, %c0_7] : memref<1024x24xbf16, #tpu.memory_space<vmem>>, vector<1024x24xbf16>
    tpu.vector_store %arg4[%c0_6, %c0_7], %8 {strides = array<i32>} : memref<1024x24xbf16, #tpu.memory_space<vmem>>, vector<1024x24xbf16>,
    return
  }
  func.func @transform_0(%arg0: i32) -> (i32, i32) {
    %c0_i32 = arith.constant 0 : i32
    %c0_i32_0 = arith.constant 0 : i32
    return %arg0, %c0_i32 : i32, i32
  }
  func.func @transform_1(%arg0: i32) -> (i32, i32) {
    %c0_i32 = arith.constant 0 : i32
    %c0_i32_0 = arith.constant 0 : i32
    %c0_i32_1 = arith.constant 0 : i32
    return %c0_i32, %c0_i32_0 : i32, i32
  }
  func.func @transform_2(%arg0: i32) -> (i32, i32) {
    %c0_i32 = arith.constant 0 : i32
    %c0_i32_0 = arith.constant 0 : i32
    %c0_i32_1 = arith.constant 0 : i32
    return %c0_i32, %c0_i32_0 : i32, i32
  }
  func.func @transform_3(%arg0: i32) -> (i32, i32) {
    %c0_i32 = arith.constant 0 : i32
    %c0_i32_0 = arith.constant 0 : i32
    return %arg0, %c0_i32 : i32, i32
  }
}

module attributes {stable_mosaic.version = 11 : i64} {
  func.func @_conv_mm_kernel(%arg0: i32, %arg1: memref<1024x600xbf16, #tpu.memory_space<vmem>>, %arg2: memref<600x36xbf16, #tpu.memory_space<vmem>>, %arg3: memref<1x36xf32, #tpu.memory_space<vmem>>, %arg4: memref<1024x36xbf16, #tpu.memory_space<vmem>>) attributes {dimension_semantics = [#tpu.dimension_semantics<parallel>], iteration_bounds = array<i64: 2>, scalar_prefetch = 0 : i64, scratch_operands = 0 : i64, tpu.core_type = #tpu.core_type<tc>, window_params = [{transform_indices = @transform_0, window_bounds = array<i64: 1024, 600>}, {pipeline_mode = #tpu.pipeline_mode<synchronous>, transform_indices = @transform_1, window_bounds = array<i64: 600, 36>}, {pipeline_mode = #tpu.pipeline_mode<synchronous>, transform_indices = @transform_2, window_bounds = array<i64: 1, 36>}, {transform_indices = @transform_3, window_bounds = array<i64: 1024, 36>}]} {
    %c0 = arith.constant 0 : index
    %c0_0 = arith.constant 0 : index
    %0 = vector.load %arg1[%c0, %c0_0] : memref<1024x600xbf16, #tpu.memory_space<vmem>>, vector<1024x600xbf16>
    %c0_1 = arith.constant 0 : index
    %c0_2 = arith.constant 0 : index
    %1 = vector.load %arg2[%c0_1, %c0_2] : memref<600x36xbf16, #tpu.memory_space<vmem>>, vector<600x36xbf16>
    %cst = arith.constant dense<0.000000e+00> : vector<1024x36xf32>
    %2 = tpu.matmul %0, %1, %cst {dimension_numbers = #tpu.dot_dimension_numbers<[1], [0], [0], [1], [0, 0, 1, 1], [], []>} : vector<1024x600xbf16>, vector<600x36xbf16>, vector<1024x36xf32> -> vector<1024x36xf32>
    %c0_3 = arith.constant 0 : index
    %c0_4 = arith.constant 0 : index
    %3 = vector.load %arg3[%c0_3, %c0_4] : memref<1x36xf32, #tpu.memory_space<vmem>>, vector<1x36xf32>
    %4 = vector.broadcast %3 : vector<1x36xf32> to vector<1024x36xf32>
    %5 = arith.addf %2, %4 : vector<1024x36xf32>
    %cst_5 = arith.constant 0.000000e+00 : f32
    %6 = vector.broadcast %cst_5 : f32 to vector<1024x36xf32>
    %7 = arith.maximumf %5, %6 : vector<1024x36xf32>
    %8 = arith.truncf %7 : vector<1024x36xf32> to vector<1024x36xbf16>
    %c0_6 = arith.constant 0 : index
    %c0_7 = arith.constant 0 : index
    %9 = vector.load %arg4[%c0_6, %c0_7] : memref<1024x36xbf16, #tpu.memory_space<vmem>>, vector<1024x36xbf16>
    tpu.vector_store %arg4[%c0_6, %c0_7], %8 {strides = array<i32>} : memref<1024x36xbf16, #tpu.memory_space<vmem>>, vector<1024x36xbf16>,
    return
  }
  func.func @transform_0(%arg0: i32) -> (i32, i32) {
    %c0_i32 = arith.constant 0 : i32
    %c0_i32_0 = arith.constant 0 : i32
    return %arg0, %c0_i32 : i32, i32
  }
  func.func @transform_1(%arg0: i32) -> (i32, i32) {
    %c0_i32 = arith.constant 0 : i32
    %c0_i32_0 = arith.constant 0 : i32
    %c0_i32_1 = arith.constant 0 : i32
    return %c0_i32, %c0_i32_0 : i32, i32
  }
  func.func @transform_2(%arg0: i32) -> (i32, i32) {
    %c0_i32 = arith.constant 0 : i32
    %c0_i32_0 = arith.constant 0 : i32
    %c0_i32_1 = arith.constant 0 : i32
    return %c0_i32, %c0_i32_0 : i32, i32
  }
  func.func @transform_3(%arg0: i32) -> (i32, i32) {
    %c0_i32 = arith.constant 0 : i32
    %c0_i32_0 = arith.constant 0 : i32
    return %arg0, %c0_i32 : i32, i32
  }
}

module attributes {stable_mosaic.version = 11 : i64} {
  func.func @_conv_mm_kernel(%arg0: i32, %arg1: memref<220x900xbf16, #tpu.memory_space<vmem>>, %arg2: memref<900x48xbf16, #tpu.memory_space<vmem>>, %arg3: memref<1x48xf32, #tpu.memory_space<vmem>>, %arg4: memref<220x48xbf16, #tpu.memory_space<vmem>>) attributes {dimension_semantics = [#tpu.dimension_semantics<parallel>], iteration_bounds = array<i64: 1>, scalar_prefetch = 0 : i64, scratch_operands = 0 : i64, tpu.core_type = #tpu.core_type<tc>, window_params = [{transform_indices = @transform_0, window_bounds = array<i64: 220, 900>}, {pipeline_mode = #tpu.pipeline_mode<synchronous>, transform_indices = @transform_1, window_bounds = array<i64: 900, 48>}, {pipeline_mode = #tpu.pipeline_mode<synchronous>, transform_indices = @transform_2, window_bounds = array<i64: 1, 48>}, {transform_indices = @transform_3, window_bounds = array<i64: 220, 48>}]} {
    %c0 = arith.constant 0 : index
    %c0_0 = arith.constant 0 : index
    %0 = vector.load %arg1[%c0, %c0_0] : memref<220x900xbf16, #tpu.memory_space<vmem>>, vector<220x900xbf16>
    %c0_1 = arith.constant 0 : index
    %c0_2 = arith.constant 0 : index
    %1 = vector.load %arg2[%c0_1, %c0_2] : memref<900x48xbf16, #tpu.memory_space<vmem>>, vector<900x48xbf16>
    %cst = arith.constant dense<0.000000e+00> : vector<220x48xf32>
    %2 = tpu.matmul %0, %1, %cst {dimension_numbers = #tpu.dot_dimension_numbers<[1], [0], [0], [1], [0, 0, 1, 1], [], []>} : vector<220x900xbf16>, vector<900x48xbf16>, vector<220x48xf32> -> vector<220x48xf32>
    %c0_3 = arith.constant 0 : index
    %c0_4 = arith.constant 0 : index
    %3 = vector.load %arg3[%c0_3, %c0_4] : memref<1x48xf32, #tpu.memory_space<vmem>>, vector<1x48xf32>
    %4 = vector.broadcast %3 : vector<1x48xf32> to vector<220x48xf32>
    %5 = arith.addf %2, %4 : vector<220x48xf32>
    %cst_5 = arith.constant 0.000000e+00 : f32
    %6 = vector.broadcast %cst_5 : f32 to vector<220x48xf32>
    %7 = arith.maximumf %5, %6 : vector<220x48xf32>
    %8 = arith.truncf %7 : vector<220x48xf32> to vector<220x48xbf16>
    %c0_6 = arith.constant 0 : index
    %c0_7 = arith.constant 0 : index
    %9 = vector.load %arg4[%c0_6, %c0_7] : memref<220x48xbf16, #tpu.memory_space<vmem>>, vector<220x48xbf16>
    tpu.vector_store %arg4[%c0_6, %c0_7], %8 {strides = array<i32>} : memref<220x48xbf16, #tpu.memory_space<vmem>>, vector<220x48xbf16>,
    return
  }
  func.func @transform_0(%arg0: i32) -> (i32, i32) {
    %c0_i32 = arith.constant 0 : i32
    %c0_i32_0 = arith.constant 0 : i32
    return %arg0, %c0_i32 : i32, i32
  }
  func.func @transform_1(%arg0: i32) -> (i32, i32) {
    %c0_i32 = arith.constant 0 : i32
    %c0_i32_0 = arith.constant 0 : i32
    %c0_i32_1 = arith.constant 0 : i32
    return %c0_i32, %c0_i32_0 : i32, i32
  }
  func.func @transform_2(%arg0: i32) -> (i32, i32) {
    %c0_i32 = arith.constant 0 : i32
    %c0_i32_0 = arith.constant 0 : i32
    %c0_i32_1 = arith.constant 0 : i32
    return %c0_i32, %c0_i32_0 : i32, i32
  }
  func.func @transform_3(%arg0: i32) -> (i32, i32) {
    %c0_i32 = arith.constant 0 : i32
    %c0_i32_0 = arith.constant 0 : i32
    return %arg0, %c0_i32 : i32, i32
  }
}

module attributes {stable_mosaic.version = 11 : i64} {
  func.func @_tail_kernel(%arg0: i32, %arg1: memref<1x110x48xbf16, #tpu.memory_space<vmem>>, %arg2: memref<9x48x64xbf16, #tpu.memory_space<vmem>>, %arg3: memref<1x64xf32, #tpu.memory_space<vmem>>, %arg4: memref<9x64x64xbf16, #tpu.memory_space<vmem>>, %arg5: memref<1x64xf32, #tpu.memory_space<vmem>>, %arg6: memref<18x64x128xbf16, #tpu.memory_space<vmem>>, %arg7: memref<1x128xf32, #tpu.memory_space<vmem>>, %arg8: memref<128x128xbf16, #tpu.memory_space<vmem>>, %arg9: memref<1x128xf32, #tpu.memory_space<vmem>>, %arg10: memref<128x128xbf16, #tpu.memory_space<vmem>>, %arg11: memref<1x128xf32, #tpu.memory_space<vmem>>, %arg12: memref<128x128xbf16, #tpu.memory_space<vmem>>, %arg13: memref<1x128xf32, #tpu.memory_space<vmem>>, %arg14: memref<1x1x128xf32, #tpu.memory_space<vmem>>) attributes {dimension_semantics = [#tpu.dimension_semantics<parallel>], iteration_bounds = array<i64: 2>, scalar_prefetch = 0 : i64, scratch_operands = 0 : i64, tpu.core_type = #tpu.core_type<tc>, window_params = [{transform_indices = @transform_0, window_bounds = array<i64: 1, 110, 48>}, {pipeline_mode = #tpu.pipeline_mode<synchronous>, transform_indices = @transform_1, window_bounds = array<i64: 9, 48, 64>}, {pipeline_mode = #tpu.pipeline_mode<synchronous>, transform_indices = @transform_2, window_bounds = array<i64: 1, 64>}, {pipeline_mode = #tpu.pipeline_mode<synchronous>, transform_indices = @transform_3, window_bounds = array<i64: 9, 64, 64>}, {pipeline_mode = #tpu.pipeline_mode<synchronous>, transform_indices = @transform_4, window_bounds = array<i64: 1, 64>}, {pipeline_mode = #tpu.pipeline_mode<synchronous>, transform_indices = @transform_5, window_bounds = array<i64: 18, 64, 128>}, {pipeline_mode = #tpu.pipeline_mode<synchronous>, transform_indices = @transform_6, window_bounds = array<i64: 1, 128>}, {pipeline_mode = #tpu.pipeline_mode<synchronous>, transform_indices = @transform_7, window_bounds = array<i64: 128, 128>}, {pipeline_mode = #tpu.pipeline_mode<synchronous>, transform_indices = @transform_8, window_bounds = array<i64: 1, 128>}, {pipeline_mode = #tpu.pipeline_mode<synchronous>, transform_indices = @transform_9, window_bounds = array<i64: 128, 128>}, {pipeline_mode = #tpu.pipeline_mode<synchronous>, transform_indices = @transform_10, window_bounds = array<i64: 1, 128>}, {pipeline_mode = #tpu.pipeline_mode<synchronous>, transform_indices = @transform_11, window_bounds = array<i64: 128, 128>}, {pipeline_mode = #tpu.pipeline_mode<synchronous>, transform_indices = @transform_12, window_bounds = array<i64: 1, 128>}, {transform_indices = @transform_13, window_bounds = array<i64: 1, 1, 128>}]} {
    %cst = arith.constant 0.000000e+00 : f32
    %0 = vector.broadcast %cst : f32 to vector<20x64xf32>
    %c0 = arith.constant 0 : index
    %c0_0 = arith.constant 0 : index
    %1 = vector.load %arg3[%c0, %c0_0] : memref<1x64xf32, #tpu.memory_space<vmem>>, vector<1x64xf32>
    %2 = vector.broadcast %1 : vector<1x64xf32> to vector<20x64xf32>
    %3 = arith.addf %0, %2 : vector<20x64xf32>
    %c0_1 = arith.constant 0 : index
    %c0_2 = arith.constant 0 : index
    %c0_3 = arith.constant 0 : index
    %4 = vector.load %arg1[%c0_1, %c0_2, %c0_3] : memref<1x110x48xbf16, #tpu.memory_space<vmem>>, vector<1x20x48xbf16>
    %5 = vector.shape_cast %4 : vector<1x20x48xbf16> to vector<20x48xbf16>
    %c0_4 = arith.constant 0 : index
    %c0_5 = arith.constant 0 : index
    %c0_6 = arith.constant 0 : index
    %6 = vector.load %arg2[%c0_4, %c0_5, %c0_6] : memref<9x48x64xbf16, #tpu.memory_space<vmem>>, vector<1x48x64xbf16>
    %7 = vector.shape_cast %6 : vector<1x48x64xbf16> to vector<48x64xbf16>
    %cst_7 = arith.constant dense<0.000000e+00> : vector<20x64xf32>
    %8 = tpu.matmul %5, %7, %cst_7 {dimension_numbers = #tpu.dot_dimension_numbers<[1], [0], [0], [1], [0, 0, 1, 1], [], []>} : vector<20x48xbf16>, vector<48x64xbf16>, vector<20x64xf32> -> vector<20x64xf32>
    %9 = arith.addf %3, %8 : vector<20x64xf32>
    %c0_8 = arith.constant 0 : index
    %c1 = arith.constant 1 : index
    %c0_9 = arith.constant 0 : index
    %10 = vector.load %arg1[%c0_8, %c1, %c0_9] : memref<1x110x48xbf16, #tpu.memory_space<vmem>>, vector<1x20x48xbf16>
    %11 = vector.shape_cast %10 : vector<1x20x48xbf16> to vector<20x48xbf16>
    %c1_10 = arith.constant 1 : index
    %c0_11 = arith.constant 0 : index
    %c0_12 = arith.constant 0 : index
    %12 = vector.load %arg2[%c1_10, %c0_11, %c0_12] : memref<9x48x64xbf16, #tpu.memory_space<vmem>>, vector<1x48x64xbf16>
    %13 = vector.shape_cast %12 : vector<1x48x64xbf16> to vector<48x64xbf16>
    %cst_13 = arith.constant dense<0.000000e+00> : vector<20x64xf32>
    %14 = tpu.matmul %11, %13, %cst_13 {dimension_numbers = #tpu.dot_dimension_numbers<[1], [0], [0], [1], [0, 0, 1, 1], [], []>} : vector<20x48xbf16>, vector<48x64xbf16>, vector<20x64xf32> -> vector<20x64xf32>
    %15 = arith.addf %9, %14 : vector<20x64xf32>
    %c0_14 = arith.constant 0 : index
    %c2 = arith.constant 2 : index
    %c0_15 = arith.constant 0 : index
    %16 = vector.load %arg1[%c0_14, %c2, %c0_15] : memref<1x110x48xbf16, #tpu.memory_space<vmem>>, vector<1x20x48xbf16>
    %17 = vector.shape_cast %16 : vector<1x20x48xbf16> to vector<20x48xbf16>
    %c2_16 = arith.constant 2 : index
    %c0_17 = arith.constant 0 : index
    %c0_18 = arith.constant 0 : index
    %18 = vector.load %arg2[%c2_16, %c0_17, %c0_18] : memref<9x48x64xbf16, #tpu.memory_space<vmem>>, vector<1x48x64xbf16>
    %19 = vector.shape_cast %18 : vector<1x48x64xbf16> to vector<48x64xbf16>
    %cst_19 = arith.constant dense<0.000000e+00> : vector<20x64xf32>
    %20 = tpu.matmul %17, %19, %cst_19 {dimension_numbers = #tpu.dot_dimension_numbers<[1], [0], [0], [1], [0, 0, 1, 1], [], []>} : vector<20x48xbf16>, vector<48x64xbf16>, vector<20x64xf32> -> vector<20x64xf32>
    %21 = arith.addf %15, %20 : vector<20x64xf32>
    %c0_20 = arith.constant 0 : index
    %c22 = arith.constant 22 : index
    %c0_21 = arith.constant 0 : index
    %22 = vector.load %arg1[%c0_20, %c22, %c0_21] : memref<1x110x48xbf16, #tpu.memory_space<vmem>>, vector<1x20x48xbf16>
    %23 = vector.shape_cast %22 : vector<1x20x48xbf16> to vector<20x48xbf16>
    %c3 = arith.constant 3 : index
    %c0_22 = arith.constant 0 : index
    %c0_23 = arith.constant 0 : index
    %24 = vector.load %arg2[%c3, %c0_22, %c0_23] : memref<9x48x64xbf16, #tpu.memory_space<vmem>>, vector<1x48x64xbf16>
    %25 = vector.shape_cast %24 : vector<1x48x64xbf16> to vector<48x64xbf16>
    %cst_24 = arith.constant dense<0.000000e+00> : vector<20x64xf32>
    %26 = tpu.matmul %23, %25, %cst_24 {dimension_numbers = #tpu.dot_dimension_numbers<[1], [0], [0], [1], [0, 0, 1, 1], [], []>} : vector<20x48xbf16>, vector<48x64xbf16>, vector<20x64xf32> -> vector<20x64xf32>
    %27 = arith.addf %21, %26 : vector<20x64xf32>
    %c0_25 = arith.constant 0 : index
    %c23 = arith.constant 23 : index
    %c0_26 = arith.constant 0 : index
    %28 = vector.load %arg1[%c0_25, %c23, %c0_26] : memref<1x110x48xbf16, #tpu.memory_space<vmem>>, vector<1x20x48xbf16>
    %29 = vector.shape_cast %28 : vector<1x20x48xbf16> to vector<20x48xbf16>
    %c4 = arith.constant 4 : index
    %c0_27 = arith.constant 0 : index
    %c0_28 = arith.constant 0 : index
    %30 = vector.load %arg2[%c4, %c0_27, %c0_28] : memref<9x48x64xbf16, #tpu.memory_space<vmem>>, vector<1x48x64xbf16>
    %31 = vector.shape_cast %30 : vector<1x48x64xbf16> to vector<48x64xbf16>
    %cst_29 = arith.constant dense<0.000000e+00> : vector<20x64xf32>
    %32 = tpu.matmul %29, %31, %cst_29 {dimension_numbers = #tpu.dot_dimension_numbers<[1], [0], [0], [1], [0, 0, 1, 1], [], []>} : vector<20x48xbf16>, vector<48x64xbf16>, vector<20x64xf32> -> vector<20x64xf32>
    %33 = arith.addf %27, %32 : vector<20x64xf32>
    %c0_30 = arith.constant 0 : index
    %c24 = arith.constant 24 : index
    %c0_31 = arith.constant 0 : index
    %34 = vector.load %arg1[%c0_30, %c24, %c0_31] : memref<1x110x48xbf16, #tpu.memory_space<vmem>>, vector<1x20x48xbf16>
    %35 = vector.shape_cast %34 : vector<1x20x48xbf16> to vector<20x48xbf16>
    %c5 = arith.constant 5 : index
    %c0_32 = arith.constant 0 : index
    %c0_33 = arith.constant 0 : index
    %36 = vector.load %arg2[%c5, %c0_32, %c0_33] : memref<9x48x64xbf16, #tpu.memory_space<vmem>>, vector<1x48x64xbf16>
    %37 = vector.shape_cast %36 : vector<1x48x64xbf16> to vector<48x64xbf16>
    %cst_34 = arith.constant dense<0.000000e+00> : vector<20x64xf32>
    %38 = tpu.matmul %35, %37, %cst_34 {dimension_numbers = #tpu.dot_dimension_numbers<[1], [0], [0], [1], [0, 0, 1, 1], [], []>} : vector<20x48xbf16>, vector<48x64xbf16>, vector<20x64xf32> -> vector<20x64xf32>
    %39 = arith.addf %33, %38 : vector<20x64xf32>
    %c0_35 = arith.constant 0 : index
    %c44 = arith.constant 44 : index
    %c0_36 = arith.constant 0 : index
    %40 = vector.load %arg1[%c0_35, %c44, %c0_36] : memref<1x110x48xbf16, #tpu.memory_space<vmem>>, vector<1x20x48xbf16>
    %41 = vector.shape_cast %40 : vector<1x20x48xbf16> to vector<20x48xbf16>
    %c6 = arith.constant 6 : index
    %c0_37 = arith.constant 0 : index
    %c0_38 = arith.constant 0 : index
    %42 = vector.load %arg2[%c6, %c0_37, %c0_38] : memref<9x48x64xbf16, #tpu.memory_space<vmem>>, vector<1x48x64xbf16>
    %43 = vector.shape_cast %42 : vector<1x48x64xbf16> to vector<48x64xbf16>
    %cst_39 = arith.constant dense<0.000000e+00> : vector<20x64xf32>
    %44 = tpu.matmul %41, %43, %cst_39 {dimension_numbers = #tpu.dot_dimension_numbers<[1], [0], [0], [1], [0, 0, 1, 1], [], []>} : vector<20x48xbf16>, vector<48x64xbf16>, vector<20x64xf32> -> vector<20x64xf32>
    %45 = arith.addf %39, %44 : vector<20x64xf32>
    %c0_40 = arith.constant 0 : index
    %c45 = arith.constant 45 : index
    %c0_41 = arith.constant 0 : index
    %46 = vector.load %arg1[%c0_40, %c45, %c0_41] : memref<1x110x48xbf16, #tpu.memory_space<vmem>>, vector<1x20x48xbf16>
    %47 = vector.shape_cast %46 : vector<1x20x48xbf16> to vector<20x48xbf16>
    %c7 = arith.constant 7 : index
    %c0_42 = arith.constant 0 : index
    %c0_43 = arith.constant 0 : index
    %48 = vector.load %arg2[%c7, %c0_42, %c0_43] : memref<9x48x64xbf16, #tpu.memory_space<vmem>>, vector<1x48x64xbf16>
    %49 = vector.shape_cast %48 : vector<1x48x64xbf16> to vector<48x64xbf16>
    %cst_44 = arith.constant dense<0.000000e+00> : vector<20x64xf32>
    %50 = tpu.matmul %47, %49, %cst_44 {dimension_numbers = #tpu.dot_dimension_numbers<[1], [0], [0], [1], [0, 0, 1, 1], [], []>} : vector<20x48xbf16>, vector<48x64xbf16>, vector<20x64xf32> -> vector<20x64xf32>
    %51 = arith.addf %45, %50 : vector<20x64xf32>
    %c0_45 = arith.constant 0 : index
    %c46 = arith.constant 46 : index
    %c0_46 = arith.constant 0 : index
    %52 = vector.load %arg1[%c0_45, %c46, %c0_46] : memref<1x110x48xbf16, #tpu.memory_space<vmem>>, vector<1x20x48xbf16>
    %53 = vector.shape_cast %52 : vector<1x20x48xbf16> to vector<20x48xbf16>
    %c8 = arith.constant 8 : index
    %c0_47 = arith.constant 0 : index
    %c0_48 = arith.constant 0 : index
    %54 = vector.load %arg2[%c8, %c0_47, %c0_48] : memref<9x48x64xbf16, #tpu.memory_space<vmem>>, vector<1x48x64xbf16>
    %55 = vector.shape_cast %54 : vector<1x48x64xbf16> to vector<48x64xbf16>
    %cst_49 = arith.constant dense<0.000000e+00> : vector<20x64xf32>
    %56 = tpu.matmul %53, %55, %cst_49 {dimension_numbers = #tpu.dot_dimension_numbers<[1], [0], [0], [1], [0, 0, 1, 1], [], []>} : vector<20x48xbf16>, vector<48x64xbf16>, vector<20x64xf32> -> vector<20x64xf32>
    %57 = arith.addf %51, %56 : vector<20x64xf32>
    %cst_50 = arith.constant 0.000000e+00 : f32
    %58 = vector.broadcast %cst_50 : f32 to vector<20x64xf32>
    %59 = arith.maximumf %57, %58 : vector<20x64xf32>
    %60 = arith.truncf %59 : vector<20x64xf32> to vector<20x64xbf16>
    %cst_51 = arith.constant 0.000000e+00 : f32
    %61 = vector.broadcast %cst_51 : f32 to vector<20x64xf32>
    %c0_52 = arith.constant 0 : index
    %c0_53 = arith.constant 0 : index
    %62 = vector.load %arg3[%c0_52, %c0_53] : memref<1x64xf32, #tpu.memory_space<vmem>>, vector<1x64xf32>
    %63 = vector.broadcast %62 : vector<1x64xf32> to vector<20x64xf32>
    %64 = arith.addf %61, %63 : vector<20x64xf32>
    %c0_54 = arith.constant 0 : index
    %c22_55 = arith.constant 22 : index
    %c0_56 = arith.constant 0 : index
    %65 = vector.load %arg1[%c0_54, %c22_55, %c0_56] : memref<1x110x48xbf16, #tpu.memory_space<vmem>>, vector<1x20x48xbf16>
    %66 = vector.shape_cast %65 : vector<1x20x48xbf16> to vector<20x48xbf16>
    %c0_57 = arith.constant 0 : index
    %c0_58 = arith.constant 0 : index
    %c0_59 = arith.constant 0 : index
    %67 = vector.load %arg2[%c0_57, %c0_58, %c0_59] : memref<9x48x64xbf16, #tpu.memory_space<vmem>>, vector<1x48x64xbf16>
    %68 = vector.shape_cast %67 : vector<1x48x64xbf16> to vector<48x64xbf16>
    %cst_60 = arith.constant dense<0.000000e+00> : vector<20x64xf32>
    %69 = tpu.matmul %66, %68, %cst_60 {dimension_numbers = #tpu.dot_dimension_numbers<[1], [0], [0], [1], [0, 0, 1, 1], [], []>} : vector<20x48xbf16>, vector<48x64xbf16>, vector<20x64xf32> -> vector<20x64xf32>
    %70 = arith.addf %64, %69 : vector<20x64xf32>
    %c0_61 = arith.constant 0 : index
    %c23_62 = arith.constant 23 : index
    %c0_63 = arith.constant 0 : index
    %71 = vector.load %arg1[%c0_61, %c23_62, %c0_63] : memref<1x110x48xbf16, #tpu.memory_space<vmem>>, vector<1x20x48xbf16>
    %72 = vector.shape_cast %71 : vector<1x20x48xbf16> to vector<20x48xbf16>
    %c1_64 = arith.constant 1 : index
    %c0_65 = arith.constant 0 : index
    %c0_66 = arith.constant 0 : index
    %73 = vector.load %arg2[%c1_64, %c0_65, %c0_66] : memref<9x48x64xbf16, #tpu.memory_space<vmem>>, vector<1x48x64xbf16>
    %74 = vector.shape_cast %73 : vector<1x48x64xbf16> to vector<48x64xbf16>
    %cst_67 = arith.constant dense<0.000000e+00> : vector<20x64xf32>
    %75 = tpu.matmul %72, %74, %cst_67 {dimension_numbers = #tpu.dot_dimension_numbers<[1], [0], [0], [1], [0, 0, 1, 1], [], []>} : vector<20x48xbf16>, vector<48x64xbf16>, vector<20x64xf32> -> vector<20x64xf32>
    %76 = arith.addf %70, %75 : vector<20x64xf32>
    %c0_68 = arith.constant 0 : index
    %c24_69 = arith.constant 24 : index
    %c0_70 = arith.constant 0 : index
    %77 = vector.load %arg1[%c0_68, %c24_69, %c0_70] : memref<1x110x48xbf16, #tpu.memory_space<vmem>>, vector<1x20x48xbf16>
    %78 = vector.shape_cast %77 : vector<1x20x48xbf16> to vector<20x48xbf16>
    %c2_71 = arith.constant 2 : index
    %c0_72 = arith.constant 0 : index
    %c0_73 = arith.constant 0 : index
    %79 = vector.load %arg2[%c2_71, %c0_72, %c0_73] : memref<9x48x64xbf16, #tpu.memory_space<vmem>>, vector<1x48x64xbf16>
    %80 = vector.shape_cast %79 : vector<1x48x64xbf16> to vector<48x64xbf16>
    %cst_74 = arith.constant dense<0.000000e+00> : vector<20x64xf32>
    %81 = tpu.matmul %78, %80, %cst_74 {dimension_numbers = #tpu.dot_dimension_numbers<[1], [0], [0], [1], [0, 0, 1, 1], [], []>} : vector<20x48xbf16>, vector<48x64xbf16>, vector<20x64xf32> -> vector<20x64xf32>
    %82 = arith.addf %76, %81 : vector<20x64xf32>
    %c0_75 = arith.constant 0 : index
    %c44_76 = arith.constant 44 : index
    %c0_77 = arith.constant 0 : index
    %83 = vector.load %arg1[%c0_75, %c44_76, %c0_77] : memref<1x110x48xbf16, #tpu.memory_space<vmem>>, vector<1x20x48xbf16>
    %84 = vector.shape_cast %83 : vector<1x20x48xbf16> to vector<20x48xbf16>
    %c3_78 = arith.constant 3 : index
    %c0_79 = arith.constant 0 : index
    %c0_80 = arith.constant 0 : index
    %85 = vector.load %arg2[%c3_78, %c0_79, %c0_80] : memref<9x48x64xbf16, #tpu.memory_space<vmem>>, vector<1x48x64xbf16>
    %86 = vector.shape_cast %85 : vector<1x48x64xbf16> to vector<48x64xbf16>
    %cst_81 = arith.constant dense<0.000000e+00> : vector<20x64xf32>
    %87 = tpu.matmul %84, %86, %cst_81 {dimension_numbers = #tpu.dot_dimension_numbers<[1], [0], [0], [1], [0, 0, 1, 1], [], []>} : vector<20x48xbf16>, vector<48x64xbf16>, vector<20x64xf32> -> vector<20x64xf32>
    %88 = arith.addf %82, %87 : vector<20x64xf32>
    %c0_82 = arith.constant 0 : index
    %c45_83 = arith.constant 45 : index
    %c0_84 = arith.constant 0 : index
    %89 = vector.load %arg1[%c0_82, %c45_83, %c0_84] : memref<1x110x48xbf16, #tpu.memory_space<vmem>>, vector<1x20x48xbf16>
    %90 = vector.shape_cast %89 : vector<1x20x48xbf16> to vector<20x48xbf16>
    %c4_85 = arith.constant 4 : index
    %c0_86 = arith.constant 0 : index
    %c0_87 = arith.constant 0 : index
    %91 = vector.load %arg2[%c4_85, %c0_86, %c0_87] : memref<9x48x64xbf16, #tpu.memory_space<vmem>>, vector<1x48x64xbf16>
    %92 = vector.shape_cast %91 : vector<1x48x64xbf16> to vector<48x64xbf16>
    %cst_88 = arith.constant dense<0.000000e+00> : vector<20x64xf32>
    %93 = tpu.matmul %90, %92, %cst_88 {dimension_numbers = #tpu.dot_dimension_numbers<[1], [0], [0], [1], [0, 0, 1, 1], [], []>} : vector<20x48xbf16>, vector<48x64xbf16>, vector<20x64xf32> -> vector<20x64xf32>
    %94 = arith.addf %88, %93 : vector<20x64xf32>
    %c0_89 = arith.constant 0 : index
    %c46_90 = arith.constant 46 : index
    %c0_91 = arith.constant 0 : index
    %95 = vector.load %arg1[%c0_89, %c46_90, %c0_91] : memref<1x110x48xbf16, #tpu.memory_space<vmem>>, vector<1x20x48xbf16>
    %96 = vector.shape_cast %95 : vector<1x20x48xbf16> to vector<20x48xbf16>
    %c5_92 = arith.constant 5 : index
    %c0_93 = arith.constant 0 : index
    %c0_94 = arith.constant 0 : index
    %97 = vector.load %arg2[%c5_92, %c0_93, %c0_94] : memref<9x48x64xbf16, #tpu.memory_space<vmem>>, vector<1x48x64xbf16>
    %98 = vector.shape_cast %97 : vector<1x48x64xbf16> to vector<48x64xbf16>
    %cst_95 = arith.constant dense<0.000000e+00> : vector<20x64xf32>
    %99 = tpu.matmul %96, %98, %cst_95 {dimension_numbers = #tpu.dot_dimension_numbers<[1], [0], [0], [1], [0, 0, 1, 1], [], []>} : vector<20x48xbf16>, vector<48x64xbf16>, vector<20x64xf32> -> vector<20x64xf32>
    %100 = arith.addf %94, %99 : vector<20x64xf32>
    %c0_96 = arith.constant 0 : index
    %c66 = arith.constant 66 : index
    %c0_97 = arith.constant 0 : index
    %101 = vector.load %arg1[%c0_96, %c66, %c0_97] : memref<1x110x48xbf16, #tpu.memory_space<vmem>>, vector<1x20x48xbf16>
    %102 = vector.shape_cast %101 : vector<1x20x48xbf16> to vector<20x48xbf16>
    %c6_98 = arith.constant 6 : index
    %c0_99 = arith.constant 0 : index
    %c0_100 = arith.constant 0 : index
    %103 = vector.load %arg2[%c6_98, %c0_99, %c0_100] : memref<9x48x64xbf16, #tpu.memory_space<vmem>>, vector<1x48x64xbf16>
    %104 = vector.shape_cast %103 : vector<1x48x64xbf16> to vector<48x64xbf16>
    %cst_101 = arith.constant dense<0.000000e+00> : vector<20x64xf32>
    %105 = tpu.matmul %102, %104, %cst_101 {dimension_numbers = #tpu.dot_dimension_numbers<[1], [0], [0], [1], [0, 0, 1, 1], [], []>} : vector<20x48xbf16>, vector<48x64xbf16>, vector<20x64xf32> -> vector<20x64xf32>
    %106 = arith.addf %100, %105 : vector<20x64xf32>
    %c0_102 = arith.constant 0 : index
    %c67 = arith.constant 67 : index
    %c0_103 = arith.constant 0 : index
    %107 = vector.load %arg1[%c0_102, %c67, %c0_103] : memref<1x110x48xbf16, #tpu.memory_space<vmem>>, vector<1x20x48xbf16>
    %108 = vector.shape_cast %107 : vector<1x20x48xbf16> to vector<20x48xbf16>
    %c7_104 = arith.constant 7 : index
    %c0_105 = arith.constant 0 : index
    %c0_106 = arith.constant 0 : index
    %109 = vector.load %arg2[%c7_104, %c0_105, %c0_106] : memref<9x48x64xbf16, #tpu.memory_space<vmem>>, vector<1x48x64xbf16>
    %110 = vector.shape_cast %109 : vector<1x48x64xbf16> to vector<48x64xbf16>
    %cst_107 = arith.constant dense<0.000000e+00> : vector<20x64xf32>
    %111 = tpu.matmul %108, %110, %cst_107 {dimension_numbers = #tpu.dot_dimension_numbers<[1], [0], [0], [1], [0, 0, 1, 1], [], []>} : vector<20x48xbf16>, vector<48x64xbf16>, vector<20x64xf32> -> vector<20x64xf32>
    %112 = arith.addf %106, %111 : vector<20x64xf32>
    %c0_108 = arith.constant 0 : index
    %c68 = arith.constant 68 : index
    %c0_109 = arith.constant 0 : index
    %113 = vector.load %arg1[%c0_108, %c68, %c0_109] : memref<1x110x48xbf16, #tpu.memory_space<vmem>>, vector<1x20x48xbf16>
    %114 = vector.shape_cast %113 : vector<1x20x48xbf16> to vector<20x48xbf16>
    %c8_110 = arith.constant 8 : index
    %c0_111 = arith.constant 0 : index
    %c0_112 = arith.constant 0 : index
    %115 = vector.load %arg2[%c8_110, %c0_111, %c0_112] : memref<9x48x64xbf16, #tpu.memory_space<vmem>>, vector<1x48x64xbf16>
    %116 = vector.shape_cast %115 : vector<1x48x64xbf16> to vector<48x64xbf16>
    %cst_113 = arith.constant dense<0.000000e+00> : vector<20x64xf32>
    %117 = tpu.matmul %114, %116, %cst_113 {dimension_numbers = #tpu.dot_dimension_numbers<[1], [0], [0], [1], [0, 0, 1, 1], [], []>} : vector<20x48xbf16>, vector<48x64xbf16>, vector<20x64xf32> -> vector<20x64xf32>
    %118 = arith.addf %112, %117 : vector<20x64xf32>
    %cst_114 = arith.constant 0.000000e+00 : f32
    %119 = vector.broadcast %cst_114 : f32 to vector<20x64xf32>
    %120 = arith.maximumf %118, %119 : vector<20x64xf32>
    %121 = arith.truncf %120 : vector<20x64xf32> to vector<20x64xbf16>
    %cst_115 = arith.constant 0.000000e+00 : f32
    %122 = vector.broadcast %cst_115 : f32 to vector<20x64xf32>
    %c0_116 = arith.constant 0 : index
    %c0_117 = arith.constant 0 : index
    %123 = vector.load %arg3[%c0_116, %c0_117] : memref<1x64xf32, #tpu.memory_space<vmem>>, vector<1x64xf32>
    %124 = vector.broadcast %123 : vector<1x64xf32> to vector<20x64xf32>
    %125 = arith.addf %122, %124 : vector<20x64xf32>
    %c0_118 = arith.constant 0 : index
    %c44_119 = arith.constant 44 : index
    %c0_120 = arith.constant 0 : index
    %126 = vector.load %arg1[%c0_118, %c44_119, %c0_120] : memref<1x110x48xbf16, #tpu.memory_space<vmem>>, vector<1x20x48xbf16>
    %127 = vector.shape_cast %126 : vector<1x20x48xbf16> to vector<20x48xbf16>
    %c0_121 = arith.constant 0 : index
    %c0_122 = arith.constant 0 : index
    %c0_123 = arith.constant 0 : index
    %128 = vector.load %arg2[%c0_121, %c0_122, %c0_123] : memref<9x48x64xbf16, #tpu.memory_space<vmem>>, vector<1x48x64xbf16>
    %129 = vector.shape_cast %128 : vector<1x48x64xbf16> to vector<48x64xbf16>
    %cst_124 = arith.constant dense<0.000000e+00> : vector<20x64xf32>
    %130 = tpu.matmul %127, %129, %cst_124 {dimension_numbers = #tpu.dot_dimension_numbers<[1], [0], [0], [1], [0, 0, 1, 1], [], []>} : vector<20x48xbf16>, vector<48x64xbf16>, vector<20x64xf32> -> vector<20x64xf32>
    %131 = arith.addf %125, %130 : vector<20x64xf32>
    %c0_125 = arith.constant 0 : index
    %c45_126 = arith.constant 45 : index
    %c0_127 = arith.constant 0 : index
    %132 = vector.load %arg1[%c0_125, %c45_126, %c0_127] : memref<1x110x48xbf16, #tpu.memory_space<vmem>>, vector<1x20x48xbf16>
    %133 = vector.shape_cast %132 : vector<1x20x48xbf16> to vector<20x48xbf16>
    %c1_128 = arith.constant 1 : index
    %c0_129 = arith.constant 0 : index
    %c0_130 = arith.constant 0 : index
    %134 = vector.load %arg2[%c1_128, %c0_129, %c0_130] : memref<9x48x64xbf16, #tpu.memory_space<vmem>>, vector<1x48x64xbf16>
    %135 = vector.shape_cast %134 : vector<1x48x64xbf16> to vector<48x64xbf16>
    %cst_131 = arith.constant dense<0.000000e+00> : vector<20x64xf32>
    %136 = tpu.matmul %133, %135, %cst_131 {dimension_numbers = #tpu.dot_dimension_numbers<[1], [0], [0], [1], [0, 0, 1, 1], [], []>} : vector<20x48xbf16>, vector<48x64xbf16>, vector<20x64xf32> -> vector<20x64xf32>
    %137 = arith.addf %131, %136 : vector<20x64xf32>
    %c0_132 = arith.constant 0 : index
    %c46_133 = arith.constant 46 : index
    %c0_134 = arith.constant 0 : index
    %138 = vector.load %arg1[%c0_132, %c46_133, %c0_134] : memref<1x110x48xbf16, #tpu.memory_space<vmem>>, vector<1x20x48xbf16>
    %139 = vector.shape_cast %138 : vector<1x20x48xbf16> to vector<20x48xbf16>
    %c2_135 = arith.constant 2 : index
    %c0_136 = arith.constant 0 : index
    %c0_137 = arith.constant 0 : index
    %140 = vector.load %arg2[%c2_135, %c0_136, %c0_137] : memref<9x48x64xbf16, #tpu.memory_space<vmem>>, vector<1x48x64xbf16>
    %141 = vector.shape_cast %140 : vector<1x48x64xbf16> to vector<48x64xbf16>
    %cst_138 = arith.constant dense<0.000000e+00> : vector<20x64xf32>
    %142 = tpu.matmul %139, %141, %cst_138 {dimension_numbers = #tpu.dot_dimension_numbers<[1], [0], [0], [1], [0, 0, 1, 1], [], []>} : vector<20x48xbf16>, vector<48x64xbf16>, vector<20x64xf32> -> vector<20x64xf32>
    %143 = arith.addf %137, %142 : vector<20x64xf32>
    %c0_139 = arith.constant 0 : index
    %c66_140 = arith.constant 66 : index
    %c0_141 = arith.constant 0 : index
    %144 = vector.load %arg1[%c0_139, %c66_140, %c0_141] : memref<1x110x48xbf16, #tpu.memory_space<vmem>>, vector<1x20x48xbf16>
    %145 = vector.shape_cast %144 : vector<1x20x48xbf16> to vector<20x48xbf16>
    %c3_142 = arith.constant 3 : index
    %c0_143 = arith.constant 0 : index
    %c0_144 = arith.constant 0 : index
    %146 = vector.load %arg2[%c3_142, %c0_143, %c0_144] : memref<9x48x64xbf16, #tpu.memory_space<vmem>>, vector<1x48x64xbf16>
    %147 = vector.shape_cast %146 : vector<1x48x64xbf16> to vector<48x64xbf16>
    %cst_145 = arith.constant dense<0.000000e+00> : vector<20x64xf32>
    %148 = tpu.matmul %145, %147, %cst_145 {dimension_numbers = #tpu.dot_dimension_numbers<[1], [0], [0], [1], [0, 0, 1, 1], [], []>} : vector<20x48xbf16>, vector<48x64xbf16>, vector<20x64xf32> -> vector<20x64xf32>
    %149 = arith.addf %143, %148 : vector<20x64xf32>
    %c0_146 = arith.constant 0 : index
    %c67_147 = arith.constant 67 : index
    %c0_148 = arith.constant 0 : index
    %150 = vector.load %arg1[%c0_146, %c67_147, %c0_148] : memref<1x110x48xbf16, #tpu.memory_space<vmem>>, vector<1x20x48xbf16>
    %151 = vector.shape_cast %150 : vector<1x20x48xbf16> to vector<20x48xbf16>
    %c4_149 = arith.constant 4 : index
    %c0_150 = arith.constant 0 : index
    %c0_151 = arith.constant 0 : index
    %152 = vector.load %arg2[%c4_149, %c0_150, %c0_151] : memref<9x48x64xbf16, #tpu.memory_space<vmem>>, vector<1x48x64xbf16>
    %153 = vector.shape_cast %152 : vector<1x48x64xbf16> to vector<48x64xbf16>
    %cst_152 = arith.constant dense<0.000000e+00> : vector<20x64xf32>
    %154 = tpu.matmul %151, %153, %cst_152 {dimension_numbers = #tpu.dot_dimension_numbers<[1], [0], [0], [1], [0, 0, 1, 1], [], []>} : vector<20x48xbf16>, vector<48x64xbf16>, vector<20x64xf32> -> vector<20x64xf32>
    %155 = arith.addf %149, %154 : vector<20x64xf32>
    %c0_153 = arith.constant 0 : index
    %c68_154 = arith.constant 68 : index
    %c0_155 = arith.constant 0 : index
    %156 = vector.load %arg1[%c0_153, %c68_154, %c0_155] : memref<1x110x48xbf16, #tpu.memory_space<vmem>>, vector<1x20x48xbf16>
    %157 = vector.shape_cast %156 : vector<1x20x48xbf16> to vector<20x48xbf16>
    %c5_156 = arith.constant 5 : index
    %c0_157 = arith.constant 0 : index
    %c0_158 = arith.constant 0 : index
    %158 = vector.load %arg2[%c5_156, %c0_157, %c0_158] : memref<9x48x64xbf16, #tpu.memory_space<vmem>>, vector<1x48x64xbf16>
    %159 = vector.shape_cast %158 : vector<1x48x64xbf16> to vector<48x64xbf16>
    %cst_159 = arith.constant dense<0.000000e+00> : vector<20x64xf32>
    %160 = tpu.matmul %157, %159, %cst_159 {dimension_numbers = #tpu.dot_dimension_numbers<[1], [0], [0], [1], [0, 0, 1, 1], [], []>} : vector<20x48xbf16>, vector<48x64xbf16>, vector<20x64xf32> -> vector<20x64xf32>
    %161 = arith.addf %155, %160 : vector<20x64xf32>
    %c0_160 = arith.constant 0 : index
    %c88 = arith.constant 88 : index
    %c0_161 = arith.constant 0 : index
    %162 = vector.load %arg1[%c0_160, %c88, %c0_161] : memref<1x110x48xbf16, #tpu.memory_space<vmem>>, vector<1x20x48xbf16>
    %163 = vector.shape_cast %162 : vector<1x20x48xbf16> to vector<20x48xbf16>
    %c6_162 = arith.constant 6 : index
    %c0_163 = arith.constant 0 : index
    %c0_164 = arith.constant 0 : index
    %164 = vector.load %arg2[%c6_162, %c0_163, %c0_164] : memref<9x48x64xbf16, #tpu.memory_space<vmem>>, vector<1x48x64xbf16>
    %165 = vector.shape_cast %164 : vector<1x48x64xbf16> to vector<48x64xbf16>
    %cst_165 = arith.constant dense<0.000000e+00> : vector<20x64xf32>
    %166 = tpu.matmul %163, %165, %cst_165 {dimension_numbers = #tpu.dot_dimension_numbers<[1], [0], [0], [1], [0, 0, 1, 1], [], []>} : vector<20x48xbf16>, vector<48x64xbf16>, vector<20x64xf32> -> vector<20x64xf32>
    %167 = arith.addf %161, %166 : vector<20x64xf32>
    %c0_166 = arith.constant 0 : index
    %c89 = arith.constant 89 : index
    %c0_167 = arith.constant 0 : index
    %168 = vector.load %arg1[%c0_166, %c89, %c0_167] : memref<1x110x48xbf16, #tpu.memory_space<vmem>>, vector<1x20x48xbf16>
    %169 = vector.shape_cast %168 : vector<1x20x48xbf16> to vector<20x48xbf16>
    %c7_168 = arith.constant 7 : index
    %c0_169 = arith.constant 0 : index
    %c0_170 = arith.constant 0 : index
    %170 = vector.load %arg2[%c7_168, %c0_169, %c0_170] : memref<9x48x64xbf16, #tpu.memory_space<vmem>>, vector<1x48x64xbf16>
    %171 = vector.shape_cast %170 : vector<1x48x64xbf16> to vector<48x64xbf16>
    %cst_171 = arith.constant dense<0.000000e+00> : vector<20x64xf32>
    %172 = tpu.matmul %169, %171, %cst_171 {dimension_numbers = #tpu.dot_dimension_numbers<[1], [0], [0], [1], [0, 0, 1, 1], [], []>} : vector<20x48xbf16>, vector<48x64xbf16>, vector<20x64xf32> -> vector<20x64xf32>
    %173 = arith.addf %167, %172 : vector<20x64xf32>
    %c0_172 = arith.constant 0 : index
    %c90 = arith.constant 90 : index
    %c0_173 = arith.constant 0 : index
    %174 = vector.load %arg1[%c0_172, %c90, %c0_173] : memref<1x110x48xbf16, #tpu.memory_space<vmem>>, vector<1x20x48xbf16>
    %175 = vector.shape_cast %174 : vector<1x20x48xbf16> to vector<20x48xbf16>
    %c8_174 = arith.constant 8 : index
    %c0_175 = arith.constant 0 : index
    %c0_176 = arith.constant 0 : index
    %176 = vector.load %arg2[%c8_174, %c0_175, %c0_176] : memref<9x48x64xbf16, #tpu.memory_space<vmem>>, vector<1x48x64xbf16>
    %177 = vector.shape_cast %176 : vector<1x48x64xbf16> to vector<48x64xbf16>
    %cst_177 = arith.constant dense<0.000000e+00> : vector<20x64xf32>
    %178 = tpu.matmul %175, %177, %cst_177 {dimension_numbers = #tpu.dot_dimension_numbers<[1], [0], [0], [1], [0, 0, 1, 1], [], []>} : vector<20x48xbf16>, vector<48x64xbf16>, vector<20x64xf32> -> vector<20x64xf32>
    %179 = arith.addf %173, %178 : vector<20x64xf32>
    %cst_178 = arith.constant 0.000000e+00 : f32
    %180 = vector.broadcast %cst_178 : f32 to vector<20x64xf32>
    %181 = arith.maximumf %179, %180 : vector<20x64xf32>
    %182 = arith.truncf %181 : vector<20x64xf32> to vector<20x64xbf16>
    %cst_179 = arith.constant 0.000000e+00 : f32
    %183 = vector.broadcast %cst_179 : f32 to vector<18x64xf32>
    %c0_180 = arith.constant 0 : index
    %c0_181 = arith.constant 0 : index
    %184 = vector.load %arg5[%c0_180, %c0_181] : memref<1x64xf32, #tpu.memory_space<vmem>>, vector<1x64xf32>
    %185 = vector.broadcast %184 : vector<1x64xf32> to vector<18x64xf32>
    %186 = arith.addf %183, %185 : vector<18x64xf32>
    %187 = vector.extract_strided_slice %60 {offsets = [0, 0], sizes = [18, 64], strides = [1, 1]} : vector<20x64xbf16> to vector<18x64xbf16>
    %c0_182 = arith.constant 0 : index
    %c0_183 = arith.constant 0 : index
    %c0_184 = arith.constant 0 : index
    %188 = vector.load %arg4[%c0_182, %c0_183, %c0_184] : memref<9x64x64xbf16, #tpu.memory_space<vmem>>, vector<1x64x64xbf16>
    %189 = vector.shape_cast %188 : vector<1x64x64xbf16> to vector<64x64xbf16>
    %cst_185 = arith.constant dense<0.000000e+00> : vector<18x64xf32>
    %190 = tpu.matmul %187, %189, %cst_185 {dimension_numbers = #tpu.dot_dimension_numbers<[1], [0], [0], [1], [0, 0, 1, 1], [], []>} : vector<18x64xbf16>, vector<64x64xbf16>, vector<18x64xf32> -> vector<18x64xf32>
    %191 = arith.addf %186, %190 : vector<18x64xf32>
    %192 = vector.extract_strided_slice %60 {offsets = [1, 0], sizes = [18, 64], strides = [1, 1]} : vector<20x64xbf16> to vector<18x64xbf16>
    %c1_186 = arith.constant 1 : index
    %c0_187 = arith.constant 0 : index
    %c0_188 = arith.constant 0 : index
    %193 = vector.load %arg4[%c1_186, %c0_187, %c0_188] : memref<9x64x64xbf16, #tpu.memory_space<vmem>>, vector<1x64x64xbf16>
    %194 = vector.shape_cast %193 : vector<1x64x64xbf16> to vector<64x64xbf16>
    %cst_189 = arith.constant dense<0.000000e+00> : vector<18x64xf32>
    %195 = tpu.matmul %192, %194, %cst_189 {dimension_numbers = #tpu.dot_dimension_numbers<[1], [0], [0], [1], [0, 0, 1, 1], [], []>} : vector<18x64xbf16>, vector<64x64xbf16>, vector<18x64xf32> -> vector<18x64xf32>
    %196 = arith.addf %191, %195 : vector<18x64xf32>
    %197 = vector.extract_strided_slice %60 {offsets = [2, 0], sizes = [18, 64], strides = [1, 1]} : vector<20x64xbf16> to vector<18x64xbf16>
    %c2_190 = arith.constant 2 : index
    %c0_191 = arith.constant 0 : index
    %c0_192 = arith.constant 0 : index
    %198 = vector.load %arg4[%c2_190, %c0_191, %c0_192] : memref<9x64x64xbf16, #tpu.memory_space<vmem>>, vector<1x64x64xbf16>
    %199 = vector.shape_cast %198 : vector<1x64x64xbf16> to vector<64x64xbf16>
    %cst_193 = arith.constant dense<0.000000e+00> : vector<18x64xf32>
    %200 = tpu.matmul %197, %199, %cst_193 {dimension_numbers = #tpu.dot_dimension_numbers<[1], [0], [0], [1], [0, 0, 1, 1], [], []>} : vector<18x64xbf16>, vector<64x64xbf16>, vector<18x64xf32> -> vector<18x64xf32>
    %201 = arith.addf %196, %200 : vector<18x64xf32>
    %202 = vector.extract_strided_slice %121 {offsets = [0, 0], sizes = [18, 64], strides = [1, 1]} : vector<20x64xbf16> to vector<18x64xbf16>
    %c3_194 = arith.constant 3 : index
    %c0_195 = arith.constant 0 : index
    %c0_196 = arith.constant 0 : index
    %203 = vector.load %arg4[%c3_194, %c0_195, %c0_196] : memref<9x64x64xbf16, #tpu.memory_space<vmem>>, vector<1x64x64xbf16>
    %204 = vector.shape_cast %203 : vector<1x64x64xbf16> to vector<64x64xbf16>
    %cst_197 = arith.constant dense<0.000000e+00> : vector<18x64xf32>
    %205 = tpu.matmul %202, %204, %cst_197 {dimension_numbers = #tpu.dot_dimension_numbers<[1], [0], [0], [1], [0, 0, 1, 1], [], []>} : vector<18x64xbf16>, vector<64x64xbf16>, vector<18x64xf32> -> vector<18x64xf32>
    %206 = arith.addf %201, %205 : vector<18x64xf32>
    %207 = vector.extract_strided_slice %121 {offsets = [1, 0], sizes = [18, 64], strides = [1, 1]} : vector<20x64xbf16> to vector<18x64xbf16>
    %c4_198 = arith.constant 4 : index
    %c0_199 = arith.constant 0 : index
    %c0_200 = arith.constant 0 : index
    %208 = vector.load %arg4[%c4_198, %c0_199, %c0_200] : memref<9x64x64xbf16, #tpu.memory_space<vmem>>, vector<1x64x64xbf16>
    %209 = vector.shape_cast %208 : vector<1x64x64xbf16> to vector<64x64xbf16>
    %cst_201 = arith.constant dense<0.000000e+00> : vector<18x64xf32>
    %210 = tpu.matmul %207, %209, %cst_201 {dimension_numbers = #tpu.dot_dimension_numbers<[1], [0], [0], [1], [0, 0, 1, 1], [], []>} : vector<18x64xbf16>, vector<64x64xbf16>, vector<18x64xf32> -> vector<18x64xf32>
    %211 = arith.addf %206, %210 : vector<18x64xf32>
    %212 = vector.extract_strided_slice %121 {offsets = [2, 0], sizes = [18, 64], strides = [1, 1]} : vector<20x64xbf16> to vector<18x64xbf16>
    %c5_202 = arith.constant 5 : index
    %c0_203 = arith.constant 0 : index
    %c0_204 = arith.constant 0 : index
    %213 = vector.load %arg4[%c5_202, %c0_203, %c0_204] : memref<9x64x64xbf16, #tpu.memory_space<vmem>>, vector<1x64x64xbf16>
    %214 = vector.shape_cast %213 : vector<1x64x64xbf16> to vector<64x64xbf16>
    %cst_205 = arith.constant dense<0.000000e+00> : vector<18x64xf32>
    %215 = tpu.matmul %212, %214, %cst_205 {dimension_numbers = #tpu.dot_dimension_numbers<[1], [0], [0], [1], [0, 0, 1, 1], [], []>} : vector<18x64xbf16>, vector<64x64xbf16>, vector<18x64xf32> -> vector<18x64xf32>
    %216 = arith.addf %211, %215 : vector<18x64xf32>
    %217 = vector.extract_strided_slice %182 {offsets = [0, 0], sizes = [18, 64], strides = [1, 1]} : vector<20x64xbf16> to vector<18x64xbf16>
    %c6_206 = arith.constant 6 : index
    %c0_207 = arith.constant 0 : index
    %c0_208 = arith.constant 0 : index
    %218 = vector.load %arg4[%c6_206, %c0_207, %c0_208] : memref<9x64x64xbf16, #tpu.memory_space<vmem>>, vector<1x64x64xbf16>
    %219 = vector.shape_cast %218 : vector<1x64x64xbf16> to vector<64x64xbf16>
    %cst_209 = arith.constant dense<0.000000e+00> : vector<18x64xf32>
    %220 = tpu.matmul %217, %219, %cst_209 {dimension_numbers = #tpu.dot_dimension_numbers<[1], [0], [0], [1], [0, 0, 1, 1], [], []>} : vector<18x64xbf16>, vector<64x64xbf16>, vector<18x64xf32> -> vector<18x64xf32>
    %221 = arith.addf %216, %220 : vector<18x64xf32>
    %222 = vector.extract_strided_slice %182 {offsets = [1, 0], sizes = [18, 64], strides = [1, 1]} : vector<20x64xbf16> to vector<18x64xbf16>
    %c7_210 = arith.constant 7 : index
    %c0_211 = arith.constant 0 : index
    %c0_212 = arith.constant 0 : index
    %223 = vector.load %arg4[%c7_210, %c0_211, %c0_212] : memref<9x64x64xbf16, #tpu.memory_space<vmem>>, vector<1x64x64xbf16>
    %224 = vector.shape_cast %223 : vector<1x64x64xbf16> to vector<64x64xbf16>
    %cst_213 = arith.constant dense<0.000000e+00> : vector<18x64xf32>
    %225 = tpu.matmul %222, %224, %cst_213 {dimension_numbers = #tpu.dot_dimension_numbers<[1], [0], [0], [1], [0, 0, 1, 1], [], []>} : vector<18x64xbf16>, vector<64x64xbf16>, vector<18x64xf32> -> vector<18x64xf32>
    %226 = arith.addf %221, %225 : vector<18x64xf32>
    %227 = vector.extract_strided_slice %182 {offsets = [2, 0], sizes = [18, 64], strides = [1, 1]} : vector<20x64xbf16> to vector<18x64xbf16>
    %c8_214 = arith.constant 8 : index
    %c0_215 = arith.constant 0 : index
    %c0_216 = arith.constant 0 : index
    %228 = vector.load %arg4[%c8_214, %c0_215, %c0_216] : memref<9x64x64xbf16, #tpu.memory_space<vmem>>, vector<1x64x64xbf16>
    %229 = vector.shape_cast %228 : vector<1x64x64xbf16> to vector<64x64xbf16>
    %cst_217 = arith.constant dense<0.000000e+00> : vector<18x64xf32>
    %230 = tpu.matmul %227, %229, %cst_217 {dimension_numbers = #tpu.dot_dimension_numbers<[1], [0], [0], [1], [0, 0, 1, 1], [], []>} : vector<18x64xbf16>, vector<64x64xbf16>, vector<18x64xf32> -> vector<18x64xf32>
    %231 = arith.addf %226, %230 : vector<18x64xf32>
    %cst_218 = arith.constant 0.000000e+00 : f32
    %232 = vector.broadcast %cst_218 : f32 to vector<18x64xf32>
    %233 = arith.maximumf %231, %232 : vector<18x64xf32>
    %234 = arith.truncf %233 : vector<18x64xf32> to vector<18x64xbf16>
    %cst_219 = arith.constant 0.000000e+00 : f32
    %235 = vector.broadcast %cst_219 : f32 to vector<1x128xf32>
    %c0_220 = arith.constant 0 : index
    %c0_221 = arith.constant 0 : index
    %236 = vector.load %arg7[%c0_220, %c0_221] : memref<1x128xf32, #tpu.memory_space<vmem>>, vector<1x128xf32>
    %237 = arith.addf %235, %236 : vector<1x128xf32>
    %238 = vector.extract_strided_slice %234 {offsets = [0, 0], sizes = [1, 64], strides = [1, 1]} : vector<18x64xbf16> to vector<1x64xbf16>
    %c0_222 = arith.constant 0 : index
    %c0_223 = arith.constant 0 : index
    %c0_224 = arith.constant 0 : index
    %239 = vector.load %arg6[%c0_222, %c0_223, %c0_224] : memref<18x64x128xbf16, #tpu.memory_space<vmem>>, vector<1x64x128xbf16>
    %240 = vector.shape_cast %239 : vector<1x64x128xbf16> to vector<64x128xbf16>
    %cst_225 = arith.constant dense<0.000000e+00> : vector<1x128xf32>
    %241 = tpu.matmul %238, %240, %cst_225 {dimension_numbers = #tpu.dot_dimension_numbers<[1], [0], [0], [1], [0, 0, 1, 1], [], []>} : vector<1x64xbf16>, vector<64x128xbf16>, vector<1x128xf32> -> vector<1x128xf32>
    %242 = arith.addf %237, %241 : vector<1x128xf32>
    %243 = vector.extract_strided_slice %234 {offsets = [1, 0], sizes = [1, 64], strides = [1, 1]} : vector<18x64xbf16> to vector<1x64xbf16>
    %c1_226 = arith.constant 1 : index
    %c0_227 = arith.constant 0 : index
    %c0_228 = arith.constant 0 : index
    %244 = vector.load %arg6[%c1_226, %c0_227, %c0_228] : memref<18x64x128xbf16, #tpu.memory_space<vmem>>, vector<1x64x128xbf16>
    %245 = vector.shape_cast %244 : vector<1x64x128xbf16> to vector<64x128xbf16>
    %cst_229 = arith.constant dense<0.000000e+00> : vector<1x128xf32>
    %246 = tpu.matmul %243, %245, %cst_229 {dimension_numbers = #tpu.dot_dimension_numbers<[1], [0], [0], [1], [0, 0, 1, 1], [], []>} : vector<1x64xbf16>, vector<64x128xbf16>, vector<1x128xf32> -> vector<1x128xf32>
    %247 = arith.addf %242, %246 : vector<1x128xf32>
    %248 = vector.extract_strided_slice %234 {offsets = [2, 0], sizes = [1, 64], strides = [1, 1]} : vector<18x64xbf16> to vector<1x64xbf16>
    %c2_230 = arith.constant 2 : index
    %c0_231 = arith.constant 0 : index
    %c0_232 = arith.constant 0 : index
    %249 = vector.load %arg6[%c2_230, %c0_231, %c0_232] : memref<18x64x128xbf16, #tpu.memory_space<vmem>>, vector<1x64x128xbf16>
    %250 = vector.shape_cast %249 : vector<1x64x128xbf16> to vector<64x128xbf16>
    %cst_233 = arith.constant dense<0.000000e+00> : vector<1x128xf32>
    %251 = tpu.matmul %248, %250, %cst_233 {dimension_numbers = #tpu.dot_dimension_numbers<[1], [0], [0], [1], [0, 0, 1, 1], [], []>} : vector<1x64xbf16>, vector<64x128xbf16>, vector<1x128xf32> -> vector<1x128xf32>
    %252 = arith.addf %247, %251 : vector<1x128xf32>
    %253 = vector.extract_strided_slice %234 {offsets = [3, 0], sizes = [1, 64], strides = [1, 1]} : vector<18x64xbf16> to vector<1x64xbf16>
    %c3_234 = arith.constant 3 : index
    %c0_235 = arith.constant 0 : index
    %c0_236 = arith.constant 0 : index
    %254 = vector.load %arg6[%c3_234, %c0_235, %c0_236] : memref<18x64x128xbf16, #tpu.memory_space<vmem>>, vector<1x64x128xbf16>
    %255 = vector.shape_cast %254 : vector<1x64x128xbf16> to vector<64x128xbf16>
    %cst_237 = arith.constant dense<0.000000e+00> : vector<1x128xf32>
    %256 = tpu.matmul %253, %255, %cst_237 {dimension_numbers = #tpu.dot_dimension_numbers<[1], [0], [0], [1], [0, 0, 1, 1], [], []>} : vector<1x64xbf16>, vector<64x128xbf16>, vector<1x128xf32> -> vector<1x128xf32>
    %257 = arith.addf %252, %256 : vector<1x128xf32>
    %258 = vector.extract_strided_slice %234 {offsets = [4, 0], sizes = [1, 64], strides = [1, 1]} : vector<18x64xbf16> to vector<1x64xbf16>
    %c4_238 = arith.constant 4 : index
    %c0_239 = arith.constant 0 : index
    %c0_240 = arith.constant 0 : index
    %259 = vector.load %arg6[%c4_238, %c0_239, %c0_240] : memref<18x64x128xbf16, #tpu.memory_space<vmem>>, vector<1x64x128xbf16>
    %260 = vector.shape_cast %259 : vector<1x64x128xbf16> to vector<64x128xbf16>
    %cst_241 = arith.constant dense<0.000000e+00> : vector<1x128xf32>
    %261 = tpu.matmul %258, %260, %cst_241 {dimension_numbers = #tpu.dot_dimension_numbers<[1], [0], [0], [1], [0, 0, 1, 1], [], []>} : vector<1x64xbf16>, vector<64x128xbf16>, vector<1x128xf32> -> vector<1x128xf32>
    %262 = arith.addf %257, %261 : vector<1x128xf32>
    %263 = vector.extract_strided_slice %234 {offsets = [5, 0], sizes = [1, 64], strides = [1, 1]} : vector<18x64xbf16> to vector<1x64xbf16>
    %c5_242 = arith.constant 5 : index
    %c0_243 = arith.constant 0 : index
    %c0_244 = arith.constant 0 : index
    %264 = vector.load %arg6[%c5_242, %c0_243, %c0_244] : memref<18x64x128xbf16, #tpu.memory_space<vmem>>, vector<1x64x128xbf16>
    %265 = vector.shape_cast %264 : vector<1x64x128xbf16> to vector<64x128xbf16>
    %cst_245 = arith.constant dense<0.000000e+00> : vector<1x128xf32>
    %266 = tpu.matmul %263, %265, %cst_245 {dimension_numbers = #tpu.dot_dimension_numbers<[1], [0], [0], [1], [0, 0, 1, 1], [], []>} : vector<1x64xbf16>, vector<64x128xbf16>, vector<1x128xf32> -> vector<1x128xf32>
    %267 = arith.addf %262, %266 : vector<1x128xf32>
    %268 = vector.extract_strided_slice %234 {offsets = [6, 0], sizes = [1, 64], strides = [1, 1]} : vector<18x64xbf16> to vector<1x64xbf16>
    %c6_246 = arith.constant 6 : index
    %c0_247 = arith.constant 0 : index
    %c0_248 = arith.constant 0 : index
    %269 = vector.load %arg6[%c6_246, %c0_247, %c0_248] : memref<18x64x128xbf16, #tpu.memory_space<vmem>>, vector<1x64x128xbf16>
    %270 = vector.shape_cast %269 : vector<1x64x128xbf16> to vector<64x128xbf16>
    %cst_249 = arith.constant dense<0.000000e+00> : vector<1x128xf32>
    %271 = tpu.matmul %268, %270, %cst_249 {dimension_numbers = #tpu.dot_dimension_numbers<[1], [0], [0], [1], [0, 0, 1, 1], [], []>} : vector<1x64xbf16>, vector<64x128xbf16>, vector<1x128xf32> -> vector<1x128xf32>
    %272 = arith.addf %267, %271 : vector<1x128xf32>
    %273 = vector.extract_strided_slice %234 {offsets = [7, 0], sizes = [1, 64], strides = [1, 1]} : vector<18x64xbf16> to vector<1x64xbf16>
    %c7_250 = arith.constant 7 : index
    %c0_251 = arith.constant 0 : index
    %c0_252 = arith.constant 0 : index
    %274 = vector.load %arg6[%c7_250, %c0_251, %c0_252] : memref<18x64x128xbf16, #tpu.memory_space<vmem>>, vector<1x64x128xbf16>
    %275 = vector.shape_cast %274 : vector<1x64x128xbf16> to vector<64x128xbf16>
    %cst_253 = arith.constant dense<0.000000e+00> : vector<1x128xf32>
    %276 = tpu.matmul %273, %275, %cst_253 {dimension_numbers = #tpu.dot_dimension_numbers<[1], [0], [0], [1], [0, 0, 1, 1], [], []>} : vector<1x64xbf16>, vector<64x128xbf16>, vector<1x128xf32> -> vector<1x128xf32>
    %277 = arith.addf %272, %276 : vector<1x128xf32>
    %278 = vector.extract_strided_slice %234 {offsets = [8, 0], sizes = [1, 64], strides = [1, 1]} : vector<18x64xbf16> to vector<1x64xbf16>
    %c8_254 = arith.constant 8 : index
    %c0_255 = arith.constant 0 : index
    %c0_256 = arith.constant 0 : index
    %279 = vector.load %arg6[%c8_254, %c0_255, %c0_256] : memref<18x64x128xbf16, #tpu.memory_space<vmem>>, vector<1x64x128xbf16>
    %280 = vector.shape_cast %279 : vector<1x64x128xbf16> to vector<64x128xbf16>
    %cst_257 = arith.constant dense<0.000000e+00> : vector<1x128xf32>
    %281 = tpu.matmul %278, %280, %cst_257 {dimension_numbers = #tpu.dot_dimension_numbers<[1], [0], [0], [1], [0, 0, 1, 1], [], []>} : vector<1x64xbf16>, vector<64x128xbf16>, vector<1x128xf32> -> vector<1x128xf32>
    %282 = arith.addf %277, %281 : vector<1x128xf32>
    %283 = vector.extract_strided_slice %234 {offsets = [9, 0], sizes = [1, 64], strides = [1, 1]} : vector<18x64xbf16> to vector<1x64xbf16>
    %c9 = arith.constant 9 : index
    %c0_258 = arith.constant 0 : index
    %c0_259 = arith.constant 0 : index
    %284 = vector.load %arg6[%c9, %c0_258, %c0_259] : memref<18x64x128xbf16, #tpu.memory_space<vmem>>, vector<1x64x128xbf16>
    %285 = vector.shape_cast %284 : vector<1x64x128xbf16> to vector<64x128xbf16>
    %cst_260 = arith.constant dense<0.000000e+00> : vector<1x128xf32>
    %286 = tpu.matmul %283, %285, %cst_260 {dimension_numbers = #tpu.dot_dimension_numbers<[1], [0], [0], [1], [0, 0, 1, 1], [], []>} : vector<1x64xbf16>, vector<64x128xbf16>, vector<1x128xf32> -> vector<1x128xf32>
    %287 = arith.addf %282, %286 : vector<1x128xf32>
    %288 = vector.extract_strided_slice %234 {offsets = [10, 0], sizes = [1, 64], strides = [1, 1]} : vector<18x64xbf16> to vector<1x64xbf16>
    %c10 = arith.constant 10 : index
    %c0_261 = arith.constant 0 : index
    %c0_262 = arith.constant 0 : index
    %289 = vector.load %arg6[%c10, %c0_261, %c0_262] : memref<18x64x128xbf16, #tpu.memory_space<vmem>>, vector<1x64x128xbf16>
    %290 = vector.shape_cast %289 : vector<1x64x128xbf16> to vector<64x128xbf16>
    %cst_263 = arith.constant dense<0.000000e+00> : vector<1x128xf32>
    %291 = tpu.matmul %288, %290, %cst_263 {dimension_numbers = #tpu.dot_dimension_numbers<[1], [0], [0], [1], [0, 0, 1, 1], [], []>} : vector<1x64xbf16>, vector<64x128xbf16>, vector<1x128xf32> -> vector<1x128xf32>
    %292 = arith.addf %287, %291 : vector<1x128xf32>
    %293 = vector.extract_strided_slice %234 {offsets = [11, 0], sizes = [1, 64], strides = [1, 1]} : vector<18x64xbf16> to vector<1x64xbf16>
    %c11 = arith.constant 11 : index
    %c0_264 = arith.constant 0 : index
    %c0_265 = arith.constant 0 : index
    %294 = vector.load %arg6[%c11, %c0_264, %c0_265] : memref<18x64x128xbf16, #tpu.memory_space<vmem>>, vector<1x64x128xbf16>
    %295 = vector.shape_cast %294 : vector<1x64x128xbf16> to vector<64x128xbf16>
    %cst_266 = arith.constant dense<0.000000e+00> : vector<1x128xf32>
    %296 = tpu.matmul %293, %295, %cst_266 {dimension_numbers = #tpu.dot_dimension_numbers<[1], [0], [0], [1], [0, 0, 1, 1], [], []>} : vector<1x64xbf16>, vector<64x128xbf16>, vector<1x128xf32> -> vector<1x128xf32>
    %297 = arith.addf %292, %296 : vector<1x128xf32>
    %298 = vector.extract_strided_slice %234 {offsets = [12, 0], sizes = [1, 64], strides = [1, 1]} : vector<18x64xbf16> to vector<1x64xbf16>
    %c12 = arith.constant 12 : index
    %c0_267 = arith.constant 0 : index
    %c0_268 = arith.constant 0 : index
    %299 = vector.load %arg6[%c12, %c0_267, %c0_268] : memref<18x64x128xbf16, #tpu.memory_space<vmem>>, vector<1x64x128xbf16>
    %300 = vector.shape_cast %299 : vector<1x64x128xbf16> to vector<64x128xbf16>
    %cst_269 = arith.constant dense<0.000000e+00> : vector<1x128xf32>
    %301 = tpu.matmul %298, %300, %cst_269 {dimension_numbers = #tpu.dot_dimension_numbers<[1], [0], [0], [1], [0, 0, 1, 1], [], []>} : vector<1x64xbf16>, vector<64x128xbf16>, vector<1x128xf32> -> vector<1x128xf32>
    %302 = arith.addf %297, %301 : vector<1x128xf32>
    %303 = vector.extract_strided_slice %234 {offsets = [13, 0], sizes = [1, 64], strides = [1, 1]} : vector<18x64xbf16> to vector<1x64xbf16>
    %c13 = arith.constant 13 : index
    %c0_270 = arith.constant 0 : index
    %c0_271 = arith.constant 0 : index
    %304 = vector.load %arg6[%c13, %c0_270, %c0_271] : memref<18x64x128xbf16, #tpu.memory_space<vmem>>, vector<1x64x128xbf16>
    %305 = vector.shape_cast %304 : vector<1x64x128xbf16> to vector<64x128xbf16>
    %cst_272 = arith.constant dense<0.000000e+00> : vector<1x128xf32>
    %306 = tpu.matmul %303, %305, %cst_272 {dimension_numbers = #tpu.dot_dimension_numbers<[1], [0], [0], [1], [0, 0, 1, 1], [], []>} : vector<1x64xbf16>, vector<64x128xbf16>, vector<1x128xf32> -> vector<1x128xf32>
    %307 = arith.addf %302, %306 : vector<1x128xf32>
    %308 = vector.extract_strided_slice %234 {offsets = [14, 0], sizes = [1, 64], strides = [1, 1]} : vector<18x64xbf16> to vector<1x64xbf16>
    %c14 = arith.constant 14 : index
    %c0_273 = arith.constant 0 : index
    %c0_274 = arith.constant 0 : index
    %309 = vector.load %arg6[%c14, %c0_273, %c0_274] : memref<18x64x128xbf16, #tpu.memory_space<vmem>>, vector<1x64x128xbf16>
    %310 = vector.shape_cast %309 : vector<1x64x128xbf16> to vector<64x128xbf16>
    %cst_275 = arith.constant dense<0.000000e+00> : vector<1x128xf32>
    %311 = tpu.matmul %308, %310, %cst_275 {dimension_numbers = #tpu.dot_dimension_numbers<[1], [0], [0], [1], [0, 0, 1, 1], [], []>} : vector<1x64xbf16>, vector<64x128xbf16>, vector<1x128xf32> -> vector<1x128xf32>
    %312 = arith.addf %307, %311 : vector<1x128xf32>
    %313 = vector.extract_strided_slice %234 {offsets = [15, 0], sizes = [1, 64], strides = [1, 1]} : vector<18x64xbf16> to vector<1x64xbf16>
    %c15 = arith.constant 15 : index
    %c0_276 = arith.constant 0 : index
    %c0_277 = arith.constant 0 : index
    %314 = vector.load %arg6[%c15, %c0_276, %c0_277] : memref<18x64x128xbf16, #tpu.memory_space<vmem>>, vector<1x64x128xbf16>
    %315 = vector.shape_cast %314 : vector<1x64x128xbf16> to vector<64x128xbf16>
    %cst_278 = arith.constant dense<0.000000e+00> : vector<1x128xf32>
    %316 = tpu.matmul %313, %315, %cst_278 {dimension_numbers = #tpu.dot_dimension_numbers<[1], [0], [0], [1], [0, 0, 1, 1], [], []>} : vector<1x64xbf16>, vector<64x128xbf16>, vector<1x128xf32> -> vector<1x128xf32>
    %317 = arith.addf %312, %316 : vector<1x128xf32>
    %318 = vector.extract_strided_slice %234 {offsets = [16, 0], sizes = [1, 64], strides = [1, 1]} : vector<18x64xbf16> to vector<1x64xbf16>
    %c16 = arith.constant 16 : index
    %c0_279 = arith.constant 0 : index
    %c0_280 = arith.constant 0 : index
    %319 = vector.load %arg6[%c16, %c0_279, %c0_280] : memref<18x64x128xbf16, #tpu.memory_space<vmem>>, vector<1x64x128xbf16>
    %320 = vector.shape_cast %319 : vector<1x64x128xbf16> to vector<64x128xbf16>
    %cst_281 = arith.constant dense<0.000000e+00> : vector<1x128xf32>
    %321 = tpu.matmul %318, %320, %cst_281 {dimension_numbers = #tpu.dot_dimension_numbers<[1], [0], [0], [1], [0, 0, 1, 1], [], []>} : vector<1x64xbf16>, vector<64x128xbf16>, vector<1x128xf32> -> vector<1x128xf32>
    %322 = arith.addf %317, %321 : vector<1x128xf32>
    %323 = vector.extract_strided_slice %234 {offsets = [17, 0], sizes = [1, 64], strides = [1, 1]} : vector<18x64xbf16> to vector<1x64xbf16>
    %c17 = arith.constant 17 : index
    %c0_282 = arith.constant 0 : index
    %c0_283 = arith.constant 0 : index
    %324 = vector.load %arg6[%c17, %c0_282, %c0_283] : memref<18x64x128xbf16, #tpu.memory_space<vmem>>, vector<1x64x128xbf16>
    %325 = vector.shape_cast %324 : vector<1x64x128xbf16> to vector<64x128xbf16>
    %cst_284 = arith.constant dense<0.000000e+00> : vector<1x128xf32>
    %326 = tpu.matmul %323, %325, %cst_284 {dimension_numbers = #tpu.dot_dimension_numbers<[1], [0], [0], [1], [0, 0, 1, 1], [], []>} : vector<1x64xbf16>, vector<64x128xbf16>, vector<1x128xf32> -> vector<1x128xf32>
    %327 = arith.addf %322, %326 : vector<1x128xf32>
    %cst_285 = arith.constant 0.000000e+00 : f32
    %328 = vector.broadcast %cst_285 : f32 to vector<1x128xf32>
    %329 = arith.maximumf %327, %328 : vector<1x128xf32>
    %330 = arith.truncf %329 : vector<1x128xf32> to vector<1x128xbf16>
    %c0_286 = arith.constant 0 : index
    %c0_287 = arith.constant 0 : index
    %331 = vector.load %arg8[%c0_286, %c0_287] : memref<128x128xbf16, #tpu.memory_space<vmem>>, vector<128x128xbf16>
    %cst_288 = arith.constant dense<0.000000e+00> : vector<1x128xf32>
    %332 = tpu.matmul %330, %331, %cst_288 {dimension_numbers = #tpu.dot_dimension_numbers<[1], [0], [0], [1], [0, 0, 1, 1], [], []>} : vector<1x128xbf16>, vector<128x128xbf16>, vector<1x128xf32> -> vector<1x128xf32>
    %c0_289 = arith.constant 0 : index
    %c0_290 = arith.constant 0 : index
    %333 = vector.load %arg9[%c0_289, %c0_290] : memref<1x128xf32, #tpu.memory_space<vmem>>, vector<1x128xf32>
    %334 = arith.addf %332, %333 : vector<1x128xf32>
    %cst_291 = arith.constant 0.000000e+00 : f32
    %335 = vector.broadcast %cst_291 : f32 to vector<1x128xf32>
    %336 = arith.maximumf %334, %335 : vector<1x128xf32>
    %337 = arith.truncf %336 : vector<1x128xf32> to vector<1x128xbf16>
    %c0_292 = arith.constant 0 : index
    %c0_293 = arith.constant 0 : index
    %338 = vector.load %arg10[%c0_292, %c0_293] : memref<128x128xbf16, #tpu.memory_space<vmem>>, vector<128x128xbf16>
    %cst_294 = arith.constant dense<0.000000e+00> : vector<1x128xf32>
    %339 = tpu.matmul %337, %338, %cst_294 {dimension_numbers = #tpu.dot_dimension_numbers<[1], [0], [0], [1], [0, 0, 1, 1], [], []>} : vector<1x128xbf16>, vector<128x128xbf16>, vector<1x128xf32> -> vector<1x128xf32>
    %c0_295 = arith.constant 0 : index
    %c0_296 = arith.constant 0 : index
    %340 = vector.load %arg11[%c0_295, %c0_296] : memref<1x128xf32, #tpu.memory_space<vmem>>, vector<1x128xf32>
    %341 = arith.addf %339, %340 : vector<1x128xf32>
    %cst_297 = arith.constant 0.000000e+00 : f32
    %342 = vector.broadcast %cst_297 : f32 to vector<1x128xf32>
    %343 = arith.maximumf %341, %342 : vector<1x128xf32>
    %344 = arith.truncf %343 : vector<1x128xf32> to vector<1x128xbf16>
    %c0_298 = arith.constant 0 : index
    %c0_299 = arith.constant 0 : index
    %345 = vector.load %arg12[%c0_298, %c0_299] : memref<128x128xbf16, #tpu.memory_space<vmem>>, vector<128x128xbf16>
    %cst_300 = arith.constant dense<0.000000e+00> : vector<1x128xf32>
    %346 = tpu.matmul %344, %345, %cst_300 {dimension_numbers = #tpu.dot_dimension_numbers<[1], [0], [0], [1], [0, 0, 1, 1], [], []>} : vector<1x128xbf16>, vector<128x128xbf16>, vector<1x128xf32> -> vector<1x128xf32>
    %c0_301 = arith.constant 0 : index
    %c0_302 = arith.constant 0 : index
    %347 = vector.load %arg13[%c0_301, %c0_302] : memref<1x128xf32, #tpu.memory_space<vmem>>, vector<1x128xf32>
    %348 = arith.addf %346, %347 : vector<1x128xf32>
    %349 = vector.shape_cast %348 : vector<1x128xf32> to vector<1x1x128xf32>
    %c0_303 = arith.constant 0 : index
    %c0_304 = arith.constant 0 : index
    %c0_305 = arith.constant 0 : index
    %350 = vector.load %arg14[%c0_303, %c0_304, %c0_305] : memref<1x1x128xf32, #tpu.memory_space<vmem>>, vector<1x1x128xf32>
    tpu.vector_store %arg14[%c0_303, %c0_304, %c0_305], %349 {strides = array<i32>} : memref<1x1x128xf32, #tpu.memory_space<vmem>>, vector<1x1x128xf32>,
    return
  }
  func.func @transform_0(%arg0: i32) -> (i32, i32, i32) {
    %c0_i32 = arith.constant 0 : i32
    %c0_i32_0 = arith.constant 0 : i32
    %c0_i32_1 = arith.constant 0 : i32
    return %arg0, %c0_i32, %c0_i32_0 : i32, i32, i32
  }
  func.func @transform_1(%arg0: i32) -> (i32, i32, i32) {
    %c0_i32 = arith.constant 0 : i32
    %c0_i32_0 = arith.constant 0 : i32
    %c0_i32_1 = arith.constant 0 : i32
    %c0_i32_2 = arith.constant 0 : i32
    return %c0_i32, %c0_i32_0, %c0_i32_1 : i32, i32, i32
  }
  func.func @transform_2(%arg0: i32) -> (i32, i32) {
    %c0_i32 = arith.constant 0 : i32
    %c0_i32_0 = arith.constant 0 : i32
    %c0_i32_1 = arith.constant 0 : i32
    return %c0_i32, %c0_i32_0 : i32, i32
  }
  func.func @transform_3(%arg0: i32) -> (i32, i32, i32) {
    %c0_i32 = arith.constant 0 : i32
    %c0_i32_0 = arith.constant 0 : i32
    %c0_i32_1 = arith.constant 0 : i32
    %c0_i32_2 = arith.constant 0 : i32
    return %c0_i32, %c0_i32_0, %c0_i32_1 : i32, i32, i32
  }
  func.func @transform_4(%arg0: i32) -> (i32, i32) {
    %c0_i32 = arith.constant 0 : i32
    %c0_i32_0 = arith.constant 0 : i32
    %c0_i32_1 = arith.constant 0 : i32
    return %c0_i32, %c0_i32_0 : i32, i32
  }
  func.func @transform_5(%arg0: i32) -> (i32, i32, i32) {
    %c0_i32 = arith.constant 0 : i32
    %c0_i32_0 = arith.constant 0 : i32
    %c0_i32_1 = arith.constant 0 : i32
    %c0_i32_2 = arith.constant 0 : i32
    return %c0_i32, %c0_i32_0, %c0_i32_1 : i32, i32, i32
  }
  func.func @transform_6(%arg0: i32) -> (i32, i32) {
    %c0_i32 = arith.constant 0 : i32
    %c0_i32_0 = arith.constant 0 : i32
    %c0_i32_1 = arith.constant 0 : i32
    return %c0_i32, %c0_i32_0 : i32, i32
  }
  func.func @transform_7(%arg0: i32) -> (i32, i32) {
    %c0_i32 = arith.constant 0 : i32
    %c0_i32_0 = arith.constant 0 : i32
    %c0_i32_1 = arith.constant 0 : i32
    return %c0_i32, %c0_i32_0 : i32, i32
  }
  func.func @transform_8(%arg0: i32) -> (i32, i32) {
    %c0_i32 = arith.constant 0 : i32
    %c0_i32_0 = arith.constant 0 : i32
    %c0_i32_1 = arith.constant 0 : i32
    return %c0_i32, %c0_i32_0 : i32, i32
  }
  func.func @transform_9(%arg0: i32) -> (i32, i32) {
    %c0_i32 = arith.constant 0 : i32
    %c0_i32_0 = arith.constant 0 : i32
    %c0_i32_1 = arith.constant 0 : i32
    return %c0_i32, %c0_i32_0 : i32, i32
  }
  func.func @transform_10(%arg0: i32) -> (i32, i32) {
    %c0_i32 = arith.constant 0 : i32
    %c0_i32_0 = arith.constant 0 : i32
    %c0_i32_1 = arith.constant 0 : i32
    return %c0_i32, %c0_i32_0 : i32, i32
  }
  func.func @transform_11(%arg0: i32) -> (i32, i32) {
    %c0_i32 = arith.constant 0 : i32
    %c0_i32_0 = arith.constant 0 : i32
    %c0_i32_1 = arith.constant 0 : i32
    return %c0_i32, %c0_i32_0 : i32, i32
  }
  func.func @transform_12(%arg0: i32) -> (i32, i32) {
    %c0_i32 = arith.constant 0 : i32
    %c0_i32_0 = arith.constant 0 : i32
    %c0_i32_1 = arith.constant 0 : i32
    return %c0_i32, %c0_i32_0 : i32, i32
  }
  func.func @transform_13(%arg0: i32) -> (i32, i32, i32) {
    %c0_i32 = arith.constant 0 : i32
    %c0_i32_0 = arith.constant 0 : i32
    %c0_i32_1 = arith.constant 0 : i32
    return %arg0, %c0_i32, %c0_i32_0 : i32, i32, i32
  }
}

</mosaic_0001>

<bundles_post_ra>
// kernel: pilotnet_forward.4
= control target key start
LH: loop header
LB: loop body
LE: loop exit
PB: predicated region body
PF: predicated region fallthrough
CT: control target
= control target key end

     0   :  { %s3569_s12 = smov 0   ;;  %s3571_s13 = smov 0   ;;  %s4347_s0 = inlined_call_operand.vmem [shape: bf16[6076,75], index: 0, kind: input, shape index: {}]   ;;  %s4348_s1 = inlined_call_operand.vmem [shape: bf16[75,24], index: 1, kind: input, shape index: {}]   ;;  %s4349_s2 = inlined_call_operand.vmem [shape: f32[1,24], index: 2, kind: input, shape index: {}]   ;;  %s4350_s3 = inlined_call_operand.vmem [shape: bf16[6076,24], index: 3, kind: output, shape index: {}]  }
   0x1   :  { %s3573_s14 = smov 0  }
   0x2 LB: > { %s3582_s15 = sadd.s32 4294967295, %s3514_s14   ;;  %s3584_s16 = sadd.s32 1, %s3514_s14   ;;  %s3514_s14 = sphi %s3573_s14, %s4357_s14   ;;  %s3510_s13 = sphi %s3571_s13, %s4356_s13   ;;  %s3506_s12 = sphi %s3569_s12, %s4355_s12  }
   0x3   : > { %s85_s17 = ssub.s32 %s3514_s14, %s3584_s16  ;;  %s88_s18 = sadd.s32 1, %s3510_s13 }
   0x4   : > { %p86_p0 = scmp.eq.s32.totalorder %s85_s17, 0  ;;  %p98_p1 = scmp.ne.s32.totalorder %s3510_s13, %s3506_s12 }
   0x5   : > { %p99_p2 = scmp.eq.s32.totalorder %s3582_s15, 5  ;;  %p2670_p3 = scmp.ge.s32.totalorder %s3514_s14, 1 }
   0x6   : > { %s3592_s19 = scalar_select %p86_p0, %s3510_s13, %s88_s18  }
   0x7   : > { %p3594_p4 = por %p99_p2, %p98_p1  ;;  %p146_p5 = scmp.lt.s32.totalorder %s3514_s14, 7 }
   0x9   : > { %p147_p6 = pnand %p2670_p3, %p146_p5 }
   0xa   : > { %v3390_v0 = vld [vmem:[%s4348_s1] sm:$0xff] (!%p147_p6)   ;;  %v3391_v1 = vld [vmem:[%s4348_s1 + $0x8] sm:$0xff] (!%p147_p6)   ;;  %vm880_vm0 = vcmask (!%p147_p6), 1044480   ;;  %v3392_v2 = vld [vmem:[%s4348_s1 + $0x10] sm:$0xff] (!%p147_p6)   ;;  %s3608_s27 = sshll.u32 (!%p147_p6), %s3582_s15, 7  ;;  %vm881_vm1 = vcmask (!%p147_p6), 1045504  }
   0xb   : > { %150 = sbr.rel (%p147_p6) target bundleno = 464 (0x1d0), region = 32  ;;  %3153 = vmatprep.subr.bf16.mxu0 (!%p147_p6), %v3390_v0  ;;  %3291 = vmatprep.subr.bf16.mxu1 (!%p147_p6), %v3390_v0  ;;  %v3548_v3 = vmov (!%p147_p6), 65535   ;;  %p178_p7 = scmp.lt.s32.totalorder (!%p147_p6), %s3608_s27, 759  ;;  %v3393_v5 = vld [vmem:[%s4348_s1 + $0x18] sm:$0xff] (!%p147_p6)   ;;  %v3394_v6 = vld [vmem:[%s4348_s1 + $0x20] sm:$0x3f] (!%p147_p6)  }
   0xc   : > { %3154 = vmatpush3.bf16.msra.mxu0 (!%p147_p6), %v3390_v0  ;;  %3296 = vmatpush3.bf16.msra.mxu1 (!%p147_p6), %v3390_v0  ;;  %v882_v4 = vsel (!%p147_p6), %vm880_vm0, 4294967295, %v3548_v3  ;;  %vm687_vm2 = vcmask (!%p147_p6), 613376   ;;  %s170_s10 = sand.u32 (!%p147_p6), 1, %s3506_s12   ;;  %vm2072_vm3 = vcmask (!%p147_p6), 191488  }
   0xd   : > { %3155 = vmatprep.subr.bf16.mxu0 (!%p147_p6), %v3391_v1  ;;  %3292 = vmatprep.subr.bf16.mxu1 (!%p147_p6), %v3391_v1  ;;  %v883_v7 = vsel (!%p147_p6), %vm881_vm1, %v882_v4, 0  ;;  %s2671_s17 = sshll.u32 (!%p147_p6), %s170_s10, 9 }
   0xe   : > { %v885_v8 = vand.u32 (!%p147_p6), %v3394_v6, %v883_v7  ;;  %s3765_s12 = scalar_lea.vmem (!%p147_p6), [#allocation2], %s2671_s17  }
  0x10   : > { %3156 = vmatpush3.bf16.msra.mxu0 (!%p147_p6), %v3391_v1  ;;  %3297 = vmatpush3.bf16.msra.mxu1 (!%p147_p6), %v3391_v1 }
  0x11   : > { %3157 = vmatprep.subr.bf16.mxu0 (!%p147_p6), %v3392_v2  ;;  %3293 = vmatprep.subr.bf16.mxu1 (!%p147_p6), %v3392_v2 }
  0x12   : > { %s179_s5 = scalar_select %p178_p7, %s3608_s27, 759 }
  0x13   : > { %s2209_s22 = ssub.s32 (%p3594_p4), 760, %s3608_s27  ;;  %s3081_s23 = sshll.u32 (%p3594_p4), %s3582_s15, 9 }
  0x14   : > { %s2673_s6 = sshll.u32 %s179_s5, 2  ;;  %3158 = vmatpush3.bf16.msra.mxu0 %v3392_v2  ;;  %3298 = vmatpush3.bf16.msra.mxu1 %v3392_v2  ;;  %p2210_p8 = scmp.lt.s32.totalorder (%p3594_p4), %s2209_s22, 128 }
  0x15   : > { %s3621_s9 = scalar_lea.vmem %s4347_s0, %s2673_s6  ;;  %3159 = vmatprep.subr.bf16.mxu0 %v3393_v5  ;;  %3294 = vmatprep.subr.bf16.mxu1 %v3393_v5  ;;  %s4155_s26 = scalar_lea.vmem (%p3594_p4), %s4350_s3, %s3081_s23  }
  0x16   : > { %v3395_v9 = vld [vmem:[%s3621_s9] sm:$0xff]   ;;  %v3397_v11 = vld [vmem:[%s3621_s9 + $0x8] sm:$0xff]   ;;  %v3399_v13 = vld [vmem:[%s3621_s9 + $0x10] sm:$0xff]  }
  0x17   : > { %v3396_v10 = vld [vmem:[%s3621_s9 + $0x100] sm:$0xff]   ;;  %3163 = vmatprep.mubr.msk.bf16.mxu0 %vm687_vm2, %v3395_v9  ;;  %v3398_v12 = vld [vmem:[%s3621_s9 + $0x108] sm:$0xff]   ;;  %v3400_v14 = vld [vmem:[%s3621_s9 + $0x110] sm:$0xff]  }
  0x18   : > { %3160 = vmatpush3.bf16.msra.mxu0 %v3393_v5  ;;  %3299 = vmatpush3.bf16.msra.mxu1 %v3393_v5  ;;  %v3401_v15 = vld [vmem:[%s3621_s9 + $0x18] sm:$0xff]   ;;  %v3403_v17 = vld [vmem:[%s3621_s9 + $0x20] sm:$0xff]   ;;  %v3405_v19 = vld [vmem:[%s3621_s9 + $0x28] sm:$0xff]  }
  0x19   : > { %3161 = vmatprep.subr.bf16.mxu0 %v885_v8  ;;  %3295 = vmatprep.subr.bf16.mxu1 %v885_v8  ;;  %v3402_v16 = vld [vmem:[%s3621_s9 + $0x118] sm:$0xff]   ;;  %v3404_v18 = vld [vmem:[%s3621_s9 + $0x120] sm:$0xff]   ;;  %v3406_v20 = vld [vmem:[%s3621_s9 + $0x128] sm:$0xff]  }
  0x1a   : > { %3227 = vmatprep.mubr.msk.bf16.mxu1 %vm687_vm2, %v3396_v10  ;;  %v3407_v21 = vld [vmem:[%s3621_s9 + $0x30] sm:$0xff]   ;;  %v3409_v23 = vld [vmem:[%s3621_s9 + $0x38] sm:$0xff]   ;;  %v3411_v25 = vld [vmem:[%s3621_s9 + $0x40] sm:$0xff]  }
  0x1b   : > { %v3408_v22 = vld [vmem:[%s3621_s9 + $0x130] sm:$0xff]   ;;  %v3410_v24 = vld [vmem:[%s3621_s9 + $0x138] sm:$0xff]   ;;  %v3412_v26 = vld [vmem:[%s3621_s9 + $0x140] sm:$0xff]  }
  0x1c   : > { %3162 = vmatpush3.bf16.msra.mxu0 %v885_v8  ;;  %3300 = vmatpush3.bf16.msra.mxu1 %v885_v8  ;;  %v3413_v27 = vld [vmem:[%s3621_s9 + $0x48] sm:$0xff]   ;;  %v3415_v29 = vld [vmem:[%s3621_s9 + $0x50] sm:$0xff]   ;;  %v3417_v31 = vld [vmem:[%s3621_s9 + $0x58] sm:$0xff]  }
  0x1d   : > { %v3414_v28 = vld [vmem:[%s3621_s9 + $0x148] sm:$0xff]   ;;  %v3416_v30 = vld [vmem:[%s3621_s9 + $0x150] sm:$0xff]   ;;  %v3418_v32 = vld [vmem:[%s3621_s9 + $0x158] sm:$0xff]  }
  0x1e   : > { %v3419_v33 = vld [vmem:[%s3621_s9 + $0x60] sm:$0xff]   ;;  %v3421_v35 = vld [vmem:[%s3621_s9 + $0x68] sm:$0xff]   ;;  %v3423_v37 = vld [vmem:[%s3621_s9 + $0x70] sm:$0xff]  }
  0x1f   : > { %3164 = vmatmul.mubr.msk.bf16.vlgmr.msra.gmra.mrb[0].mxu0 %vm687_vm2, %v3397_v11  ;;  %3228 = vmatmul.mubr.msk.bf16.vlgmr.msra.gmra.mrb[0].mxu1 %vm687_vm2, %v3398_v12  ;;  %v3420_v34 = vld [vmem:[%s3621_s9 + $0x160] sm:$0xff]   ;;  %v3422_v36 = vld [vmem:[%s3621_s9 + $0x168] sm:$0xff]   ;;  %v3424_v38 = vld [vmem:[%s3621_s9 + $0x170] sm:$0xff]  }
  0x20   : > { %3167 = vmatprep.mubr.msk.bf16.mxu0 %vm687_vm2, %v3399_v13  ;;  %3231 = vmatprep.mubr.msk.bf16.mxu1 %vm687_vm2, %v3400_v14  ;;  %v3425_v39 = vld [vmem:[%s3621_s9 + $0x78] sm:$0xff]   ;;  %v3427_v41 = vld [vmem:[%s3621_s9 + $0x80] sm:$0xff]   ;;  %v3429_v43 = vld [vmem:[%s3621_s9 + $0x88] sm:$0xff]  }
  0x21   : > { %v3426_v40 = vld [vmem:[%s3621_s9 + $0x178] sm:$0xff]   ;;  %v3428_v42 = vld [vmem:[%s3621_s9 + $0x180] sm:$0xff]   ;;  %v3430_v44 = vld [vmem:[%s3621_s9 + $0x188] sm:$0xff]  }
  0x22   : > { %v3431_v45 = vld [vmem:[%s3621_s9 + $0x90] sm:$0xff]   ;;  %v3433_v47 = vld [vmem:[%s3621_s9 + $0x98] sm:$0xff]   ;;  %v3435_v49 = vld [vmem:[%s3621_s9 + $0xa0] sm:$0xff]  }
  0x23   : > { %v3432_v46 = vld [vmem:[%s3621_s9 + $0x190] sm:$0xff]   ;;  %v3434_v48 = vld [vmem:[%s3621_s9 + $0x198] sm:$0xff]   ;;  %v3436_v50 = vld [vmem:[%s3621_s9 + $0x1a0] sm:$0xff]  }
  0x24   : > { %v3437_v51 = vld [vmem:[%s3621_s9 + $0xa8] sm:$0xff]   ;;  %v3439_v53 = vld [vmem:[%s3621_s9 + $0xb0] sm:$0xff]   ;;  %v3441_v55 = vld [vmem:[%s3621_s9 + $0xb8] sm:$0xff]  }
  0x25   : > { %v3438_v52 = vld [vmem:[%s3621_s9 + $0x1a8] sm:$0xff]   ;;  %v3440_v54 = vld [vmem:[%s3621_s9 + $0x1b0] sm:$0xff]   ;;  %v3442_v56 = vld [vmem:[%s3621_s9 + $0x1b8] sm:$0xff]  }
  0x26   : > { %v3443_v57 = vld [vmem:[%s3621_s9 + $0xc0] sm:$0xff]   ;;  %v3445_v59 = vld [vmem:[%s3621_s9 + $0xc8] sm:$0xff]   ;;  %v3447_v61 = vld [vmem:[%s3621_s9 + $0xd0] sm:$0xff]  }
  0x27   : > { %3168 = vmatmul.mubr.msk.bf16.gmra.mrb[4].mxu0 %vm687_vm2, %v3401_v15  ;;  %3232 = vmatmul.mubr.msk.bf16.gmra.mrb[4].mxu1 %vm687_vm2, %v3402_v16  ;;  %v3444_v58 = vld [vmem:[%s3621_s9 + $0x1c0] sm:$0xff]   ;;  %v3446_v60 = vld [vmem:[%s3621_s9 + $0x1c8] sm:$0xff]   ;;  %v3448_v62 = vld [vmem:[%s3621_s9 + $0x1d0] sm:$0xff]  }
  0x28   : > { %3171 = vmatprep.mubr.msk.bf16.mxu0 %vm687_vm2, %v3403_v17  ;;  %3235 = vmatprep.mubr.msk.bf16.mxu1 %vm687_vm2, %v3404_v18  ;;  %v3449_v63 = vld [vmem:[%s3621_s9 + $0xd8] sm:$0xff]   ;;  %v3451_v1 = vld [vmem:[%s3621_s9 + $0xe0] sm:$0xff]   ;;  %v3453_v3 = vld [vmem:[%s3621_s9 + $0xe8] sm:$0xff]  }
  0x29   : > { %v3450_v0 = vld [vmem:[%s3621_s9 + $0x1d8] sm:$0xff]   ;;  %v3452_v2 = vld [vmem:[%s3621_s9 + $0x1e0] sm:$0xff]   ;;  %v3454_v4 = vld [vmem:[%s3621_s9 + $0x1e8] sm:$0xff]  }
  0x2a   : > { %v3455_v5 = vld [vmem:[%s3621_s9 + $0xf0] sm:$0xff]   ;;  %v3457_v7 = vld [vmem:[%s3621_s9 + $0xf8] sm:$0xff]   ;;  %v3755_v9 = vld [vmem:[%s4349_s2] ss:$0 sm:$0xff] }
  0x2b   : > { %v3456_v6 = vld [vmem:[%s3621_s9 + $0x1f0] sm:$0xff]   ;;  %v3458_v8 = vld [vmem:[%s3621_s9 + $0x1f8] sm:$0xff]  }
  0x2f   : > { %3172 = vmatmul.mubr.msk.bf16.gmra.mrb[8].mxu0 %vm687_vm2, %v3405_v19  ;;  %3236 = vmatmul.mubr.msk.bf16.gmra.mrb[8].mxu1 %vm687_vm2, %v3406_v20 }
  0x30   : > { %3175 = vmatprep.mubr.msk.bf16.mxu0 %vm687_vm2, %v3407_v21  ;;  %3239 = vmatprep.mubr.msk.bf16.mxu1 %vm687_vm2, %v3408_v22 }
  0x37   : > { %3176 = vmatmul.mubr.msk.bf16.gmra.mrb[12].mxu0 %vm687_vm2, %v3409_v23  ;;  %3240 = vmatmul.mubr.msk.bf16.gmra.mrb[12].mxu1 %vm687_vm2, %v3410_v24 }
  0x38   : > { %3179 = vmatprep.mubr.msk.bf16.mxu0 %vm687_vm2, %v3411_v25  ;;  %3243 = vmatprep.mubr.msk.bf16.mxu1 %vm687_vm2, %v3412_v26 }
  0x3f   : > { %3180 = vmatmul.mubr.msk.bf16.gmra.mrb[16].mxu0 %vm687_vm2, %v3413_v27  ;;  %3244 = vmatmul.mubr.msk.bf16.gmra.mrb[16].mxu1 %vm687_vm2, %v3414_v28 }
  0x40   : > { %3183 = vmatprep.mubr.msk.bf16.mxu0 %vm687_vm2, %v3415_v29  ;;  %3247 = vmatprep.mubr.msk.bf16.mxu1 %vm687_vm2, %v3416_v30 }
  0x47   : > { %3184 = vmatmul.mubr.msk.bf16.gmra.mrb[20].mxu0 %vm687_vm2, %v3417_v31  ;;  %3248 = vmatmul.mubr.msk.bf16.gmra.mrb[20].mxu1 %vm687_vm2, %v3418_v32 }
  0x48   : > { %3187 = vmatprep.mubr.msk.bf16.mxu0 %vm687_vm2, %v3419_v33  ;;  %3251 = vmatprep.mubr.msk.bf16.mxu1 %vm687_vm2, %v3420_v34 }
  0x4f   : > { %3188 = vmatmul.mubr.msk.bf16.gmra.mrb[24].mxu0 %vm687_vm2, %v3421_v35  ;;  %3252 = vmatmul.mubr.msk.bf16.gmra.mrb[24].mxu1 %vm687_vm2, %v3422_v36 }
  0x50   : > { %3191 = vmatprep.mubr.msk.bf16.mxu0 %vm687_vm2, %v3423_v37  ;;  %3255 = vmatprep.mubr.msk.bf16.mxu1 %vm687_vm2, %v3424_v38 }
  0x57   : > { %3192 = vmatmul.mubr.msk.bf16.gmra.mrb[28].mxu0 %vm687_vm2, %v3425_v39  ;;  %3256 = vmatmul.mubr.msk.bf16.gmra.mrb[28].mxu1 %vm687_vm2, %v3426_v40 }
  0x58   : > { %3195 = vmatprep.mubr.msk.bf16.mxu0 %vm687_vm2, %v3427_v41  ;;  %3259 = vmatprep.mubr.msk.bf16.mxu1 %vm687_vm2, %v3428_v42 }
  0x5f   : > { %3196 = vmatmul.mubr.msk.bf16.gmra.mrb[32].mxu0 %vm687_vm2, %v3429_v43  ;;  %3260 = vmatmul.mubr.msk.bf16.gmra.mrb[32].mxu1 %vm687_vm2, %v3430_v44 }
  0x60   : > { %3199 = vmatprep.mubr.msk.bf16.mxu0 %vm687_vm2, %v3431_v45  ;;  %3263 = vmatprep.mubr.msk.bf16.mxu1 %vm687_vm2, %v3432_v46 }
  0x67   : > { %3200 = vmatmul.mubr.msk.bf16.gmra.mrb[36].mxu0 %vm687_vm2, %v3433_v47  ;;  %3264 = vmatmul.mubr.msk.bf16.gmra.mrb[36].mxu1 %vm687_vm2, %v3434_v48 }
  0x68   : > { %3203 = vmatprep.mubr.msk.bf16.mxu0 %vm687_vm2, %v3435_v49  ;;  %3267 = vmatprep.mubr.msk.bf16.mxu1 %vm687_vm2, %v3436_v50 }
  0x6f   : > { %3204 = vmatmul.mubr.msk.bf16.gmra.mrb[40].mxu0 %vm687_vm2, %v3437_v51  ;;  %3268 = vmatmul.mubr.msk.bf16.gmra.mrb[40].mxu1 %vm687_vm2, %v3438_v52 }
  0x70   : > { %3207 = vmatprep.mubr.msk.bf16.mxu0 %vm687_vm2, %v3439_v53  ;;  %3271 = vmatprep.mubr.msk.bf16.mxu1 %vm687_vm2, %v3440_v54 }
  0x77   : > { %3208 = vmatmul.mubr.msk.bf16.gmra.mrb[44].mxu0 %vm687_vm2, %v3441_v55  ;;  %3272 = vmatmul.mubr.msk.bf16.gmra.mrb[44].mxu1 %vm687_vm2, %v3442_v56 }
  0x78   : > { %3211 = vmatprep.mubr.msk.bf16.mxu0 %vm687_vm2, %v3443_v57  ;;  %3275 = vmatprep.mubr.msk.bf16.mxu1 %vm687_vm2, %v3444_v58 }
  0x7f   : > { %3212 = vmatmul.mubr.msk.bf16.gmra.mrb[48].mxu0 %vm687_vm2, %v3445_v59  ;;  %3276 = vmatmul.mubr.msk.bf16.gmra.mrb[48].mxu1 %vm687_vm2, %v3446_v60 }
  0x80   : > { %3215 = vmatprep.mubr.msk.bf16.mxu0 %vm687_vm2, %v3447_v61  ;;  %3279 = vmatprep.mubr.msk.bf16.mxu1 %vm687_vm2, %v3448_v62 }
  0x87   : > { %3216 = vmatmul.mubr.msk.bf16.gmra.mrb[52].mxu0 %vm687_vm2, %v3449_v63  ;;  %3280 = vmatmul.mubr.msk.bf16.gmra.mrb[52].mxu1 %vm687_vm2, %v3450_v0 }
  0x88   : > { %3219 = vmatprep.mubr.msk.bf16.mxu0 %vm687_vm2, %v3451_v1  ;;  %3283 = vmatprep.mubr.msk.bf16.mxu1 %vm687_vm2, %v3452_v2 }
  0x8f   : > { %3220 = vmatmul.mubr.msk.bf16.gmra.mrb[56].mxu0 %vm687_vm2, %v3453_v3  ;;  %3284 = vmatmul.mubr.msk.bf16.gmra.mrb[56].mxu1 %vm687_vm2, %v3454_v4 }
  0x90   : > { %3223 = vmatprep.mubr.msk.bf16.mxu0 %vm687_vm2, %v3455_v5  ;;  %3287 = vmatprep.mubr.msk.bf16.mxu1 %vm687_vm2, %v3456_v6 }
  0x97   : > { %3224 = vmatmul.mubr.msk.bf16.gmra.mrb[60].mxu0 %vm687_vm2, %v3457_v7  ;;  %3288 = vmatmul.mubr.msk.bf16.gmra.mrb[60].mxu1 %vm687_vm2, %v3458_v8 }
  0xf2   : > { %v3165_v10 = vpop.f32.mrb[0].mxu0  ;;  %v3229_v11 = vpop.f32.mrb[0].mxu1 }
  0xf3   : > { %v930_v12 = vadd.f32 %v3165_v10, %v3755_v9  ;;  %v1186_v13 = vadd.f32 %v3229_v11, %v3755_v9  ;;  %v921_v14 = vpop.f32.mrb[1].mxu0  ;;  %v1177_v15 = vpop.f32.mrb[1].mxu1 }
  0xf4   : > { %v922_v16 = vadd.f32 %v3755_v9, %v921_v14  ;;  %v1178_v17 = vadd.f32 %v3755_v9, %v1177_v15  ;;  %v3166_v18 = vpop.f32.mrb[2].mxu0  ;;  %v3230_v19 = vpop.f32.mrb[2].mxu1 }
  0xf5   : > { %v1434_v20 = vmax.f32 %v930_v12, 0.0  ;;  %v1498_v21 = vmax.f32 %v1186_v13, 0.0  ;;  %v933_v22 = vadd.f32 %v3166_v18, %v3755_v9  ;;  %v1189_v23 = vadd.f32 %v3230_v19, %v3755_v9  ;;  %v924_v24 = vpop.f32.mrb[3].mxu0  ;;  %v1180_v25 = vpop.f32.mrb[3].mxu1 }
  0xf6   : > { %v1432_v26 = vmax.f32 %v922_v16, 0.0  ;;  %v1496_v27 = vmax.f32 %v1178_v17, 0.0  ;;  %v925_v28 = vadd.f32 %v3755_v9, %v924_v24  ;;  %v1181_v29 = vadd.f32 %v3755_v9, %v1180_v25 }
  0xf7   : > { %v2955_v30 = vpack.c.bf16 %v1434_v20, %v1434_v20  ;;  %v3019_v31 = vpack.c.bf16 %v1498_v21, %v1498_v21  ;;  %v1435_v32 = vmax.f32 %v933_v22, 0.0  ;;  %v1499_v33 = vmax.f32 %v1189_v23, 0.0 }
  0xf8   : > { %v2953_v34 = vpack.c.bf16 %v1432_v26, %v1432_v26  ;;  %v3017_v35 = vpack.c.bf16 %v1496_v27, %v1496_v27  ;;  %v1433_v36 = vmax.f32 %v925_v28, 0.0  ;;  %v1497_v37 = vmax.f32 %v1181_v29, 0.0 }
  0xf9   : > { %2075 = vst.msk [vmem:[%s3765_s12 + $0x8] sm:$0xf] %vm2072_vm3, %v2955_v30  ;;  %2139 = vst.msk [vmem:[%s3765_s12 + $0x108] sm:$0xf] %vm2072_vm3, %v3019_v31  ;;  %v2956_v38 = vpack.c.bf16 %v1435_v32, %v1435_v32  ;;  %v3020_v39 = vpack.c.bf16 %v1499_v33, %v1499_v33 }
  0xfa   : > { %2073 = vst.msk [vmem:[%s3765_s12] sm:$0xf] %vm2072_vm3, %v2953_v34  ;;  %2137 = vst.msk [vmem:[%s3765_s12 + $0x100] sm:$0xf] %vm2072_vm3, %v3017_v35  ;;  %v2954_v40 = vpack.c.bf16 %v1433_v36, %v1433_v36  ;;  %v3018_v41 = vpack.c.bf16 %v1497_v37, %v1497_v37  ;;  %v3169_v42 = vpop.f32.mrb[4].mxu0  ;;  %v3233_v43 = vpop.f32.mrb[4].mxu1 }
  0xfb   : > { %2076 = vst.msk [vmem:[%s3765_s12 + $0xc] sm:$0xf] %vm2072_vm3, %v2956_v38  ;;  %2140 = vst.msk [vmem:[%s3765_s12 + $0x10c] sm:$0xf] %vm2072_vm3, %v3020_v39  ;;  %v946_v44 = vadd.f32 %v3169_v42, %v3755_v9  ;;  %v1202_v45 = vadd.f32 %v3233_v43, %v3755_v9  ;;  %v937_v46 = vpop.f32.mrb[5].mxu0  ;;  %v1193_v47 = vpop.f32.mrb[5].mxu1 }
  0xfc   : > { %2074 = vst.msk [vmem:[%s3765_s12 + $0x4] sm:$0xf] %vm2072_vm3, %v2954_v40  ;;  %2138 = vst.msk [vmem:[%s3765_s12 + $0x104] sm:$0xf] %vm2072_vm3, %v3018_v41  ;;  %v938_v48 = vadd.f32 %v3755_v9, %v937_v46  ;;  %v1194_v49 = vadd.f32 %v3755_v9, %v1193_v47  ;;  %v3170_v50 = vpop.f32.mrb[6].mxu0  ;;  %v3234_v51 = vpop.f32.mrb[6].mxu1 }
  0xfd   : > { %v1438_v52 = vmax.f32 %v946_v44, 0.0  ;;  %v1502_v53 = vmax.f32 %v1202_v45, 0.0  ;;  %v949_v54 = vadd.f32 %v3170_v50, %v3755_v9  ;;  %v1205_v55 = vadd.f32 %v3234_v51, %v3755_v9  ;;  %v940_v56 = vpop.f32.mrb[7].mxu0  ;;  %v1196_v57 = vpop.f32.mrb[7].mxu1 }
  0xfe   : > { %v1436_v58 = vmax.f32 %v938_v48, 0.0  ;;  %v1500_v59 = vmax.f32 %v1194_v49, 0.0  ;;  %v941_v60 = vadd.f32 %v3755_v9, %v940_v56  ;;  %v1197_v61 = vadd.f32 %v3755_v9, %v1196_v57 }
  0xff   : > { %v2959_v62 = vpack.c.bf16 %v1438_v52, %v1438_v52  ;;  %v3023_v63 = vpack.c.bf16 %v1502_v53, %v1502_v53  ;;  %v1439_v0 = vmax.f32 %v949_v54, 0.0  ;;  %v1503_v1 = vmax.f32 %v1205_v55, 0.0 }
 0x100   : > { %v2957_v2 = vpack.c.bf16 %v1436_v58, %v1436_v58  ;;  %v3021_v3 = vpack.c.bf16 %v1500_v59, %v1500_v59  ;;  %v1437_v4 = vmax.f32 %v941_v60, 0.0  ;;  %v1501_v5 = vmax.f32 %v1197_v61, 0.0 }
 0x101   : > { %2079 = vst.msk [vmem:[%s3765_s12 + $0x18] sm:$0xf] %vm2072_vm3, %v2959_v62  ;;  %2143 = vst.msk [vmem:[%s3765_s12 + $0x118] sm:$0xf] %vm2072_vm3, %v3023_v63  ;;  %v2960_v6 = vpack.c.bf16 %v1439_v0, %v1439_v0  ;;  %v3024_v7 = vpack.c.bf16 %v1503_v1, %v1503_v1 }
 0x102   : > { %2077 = vst.msk [vmem:[%s3765_s12 + $0x10] sm:$0xf] %vm2072_vm3, %v2957_v2  ;;  %2141 = vst.msk [vmem:[%s3765_s12 + $0x110] sm:$0xf] %vm2072_vm3, %v3021_v3  ;;  %v2958_v8 = vpack.c.bf16 %v1437_v4, %v1437_v4  ;;  %v3022_v10 = vpack.c.bf16 %v1501_v5, %v1501_v5  ;;  %v3173_v11 = vpop.f32.mrb[8].mxu0  ;;  %v3237_v12 = vpop.f32.mrb[8].mxu1 }
 0x103   : > { %2080 = vst.msk [vmem:[%s3765_s12 + $0x1c] sm:$0xf] %vm2072_vm3, %v2960_v6  ;;  %2144 = vst.msk [vmem:[%s3765_s12 + $0x11c] sm:$0xf] %vm2072_vm3, %v3024_v7  ;;  %v962_v13 = vadd.f32 %v3173_v11, %v3755_v9  ;;  %v1218_v14 = vadd.f32 %v3237_v12, %v3755_v9  ;;  %v953_v15 = vpop.f32.mrb[9].mxu0  ;;  %v1209_v16 = vpop.f32.mrb[9].mxu1 }
 0x104   : > { %2078 = vst.msk [vmem:[%s3765_s12 + $0x14] sm:$0xf] %vm2072_vm3, %v2958_v8  ;;  %2142 = vst.msk [vmem:[%s3765_s12 + $0x114] sm:$0xf] %vm2072_vm3, %v3022_v10  ;;  %v954_v17 = vadd.f32 %v3755_v9, %v953_v15  ;;  %v1210_v18 = vadd.f32 %v3755_v9, %v1209_v16  ;;  %v3174_v19 = vpop.f32.mrb[10].mxu0  ;;  %v3238_v20 = vpop.f32.mrb[10].mxu1 }
 0x105   : > { %v1442_v21 = vmax.f32 %v962_v13, 0.0  ;;  %v1506_v22 = vmax.f32 %v1218_v14, 0.0  ;;  %v965_v23 = vadd.f32 %v3174_v19, %v3755_v9  ;;  %v1221_v24 = vadd.f32 %v3238_v20, %v3755_v9  ;;  %v956_v25 = vpop.f32.mrb[11].mxu0  ;;  %v1212_v26 = vpop.f32.mrb[11].mxu1 }
 0x106   : > { %v1440_v27 = vmax.f32 %v954_v17, 0.0  ;;  %v1504_v28 = vmax.f32 %v1210_v18, 0.0  ;;  %v957_v29 = vadd.f32 %v3755_v9, %v956_v25  ;;  %v1213_v30 = vadd.f32 %v3755_v9, %v1212_v26 }
 0x107   : > { %v2963_v31 = vpack.c.bf16 %v1442_v21, %v1442_v21  ;;  %v3027_v32 = vpack.c.bf16 %v1506_v22, %v1506_v22  ;;  %v1443_v33 = vmax.f32 %v965_v23, 0.0  ;;  %v1507_v34 = vmax.f32 %v1221_v24, 0.0 }
 0x108   : > { %v2961_v35 = vpack.c.bf16 %v1440_v27, %v1440_v27  ;;  %v3025_v36 = vpack.c.bf16 %v1504_v28, %v1504_v28  ;;  %v1441_v37 = vmax.f32 %v957_v29, 0.0  ;;  %v1505_v38 = vmax.f32 %v1213_v30, 0.0 }
 0x109   : > { %2083 = vst.msk [vmem:[%s3765_s12 + $0x28] sm:$0xf] %vm2072_vm3, %v2963_v31  ;;  %2147 = vst.msk [vmem:[%s3765_s12 + $0x128] sm:$0xf] %vm2072_vm3, %v3027_v32  ;;  %v2964_v39 = vpack.c.bf16 %v1443_v33, %v1443_v33  ;;  %v3028_v40 = vpack.c.bf16 %v1507_v34, %v1507_v34 }
 0x10a   : > { %2081 = vst.msk [vmem:[%s3765_s12 + $0x20] sm:$0xf] %vm2072_vm3, %v2961_v35  ;;  %2145 = vst.msk [vmem:[%s3765_s12 + $0x120] sm:$0xf] %vm2072_vm3, %v3025_v36  ;;  %v2962_v41 = vpack.c.bf16 %v1441_v37, %v1441_v37  ;;  %v3026_v42 = vpack.c.bf16 %v1505_v38, %v1505_v38  ;;  %v3177_v43 = vpop.f32.mrb[12].mxu0  ;;  %v3241_v44 = vpop.f32.mrb[12].mxu1 }
 0x10b   : > { %2084 = vst.msk [vmem:[%s3765_s12 + $0x2c] sm:$0xf] %vm2072_vm3, %v2964_v39  ;;  %2148 = vst.msk [vmem:[%s3765_s12 + $0x12c] sm:$0xf] %vm2072_vm3, %v3028_v40  ;;  %v978_v45 = vadd.f32 %v3177_v43, %v3755_v9  ;;  %v1234_v46 = vadd.f32 %v3241_v44, %v3755_v9  ;;  %v969_v47 = vpop.f32.mrb[13].mxu0  ;;  %v1225_v48 = vpop.f32.mrb[13].mxu1 }
 0x10c   : > { %2082 = vst.msk [vmem:[%s3765_s12 + $0x24] sm:$0xf] %vm2072_vm3, %v2962_v41  ;;  %2146 = vst.msk [vmem:[%s3765_s12 + $0x124] sm:$0xf] %vm2072_vm3, %v3026_v42  ;;  %v970_v49 = vadd.f32 %v3755_v9, %v969_v47  ;;  %v1226_v50 = vadd.f32 %v3755_v9, %v1225_v48  ;;  %v3178_v51 = vpop.f32.mrb[14].mxu0  ;;  %v3242_v52 = vpop.f32.mrb[14].mxu1 }
 0x10d   : > { %v1446_v53 = vmax.f32 %v978_v45, 0.0  ;;  %v1510_v54 = vmax.f32 %v1234_v46, 0.0  ;;  %v981_v55 = vadd.f32 %v3178_v51, %v3755_v9  ;;  %v1237_v56 = vadd.f32 %v3242_v52, %v3755_v9  ;;  %v972_v57 = vpop.f32.mrb[15].mxu0  ;;  %v1228_v58 = vpop.f32.mrb[15].mxu1 }
 0x10e   : > { %v1444_v59 = vmax.f32 %v970_v49, 0.0  ;;  %v1508_v60 = vmax.f32 %v1226_v50, 0.0  ;;  %v973_v61 = vadd.f32 %v3755_v9, %v972_v57  ;;  %v1229_v62 = vadd.f32 %v3755_v9, %v1228_v58 }
 0x10f   : > { %v2967_v63 = vpack.c.bf16 %v1446_v53, %v1446_v53  ;;  %v3031_v0 = vpack.c.bf16 %v1510_v54, %v1510_v54  ;;  %v1447_v1 = vmax.f32 %v981_v55, 0.0  ;;  %v1511_v2 = vmax.f32 %v1237_v56, 0.0 }
 0x110   : > { %v2965_v3 = vpack.c.bf16 %v1444_v59, %v1444_v59  ;;  %v3029_v4 = vpack.c.bf16 %v1508_v60, %v1508_v60  ;;  %v1445_v5 = vmax.f32 %v973_v61, 0.0  ;;  %v1509_v6 = vmax.f32 %v1229_v62, 0.0 }
 0x111   : > { %2087 = vst.msk [vmem:[%s3765_s12 + $0x38] sm:$0xf] %vm2072_vm3, %v2967_v63  ;;  %2151 = vst.msk [vmem:[%s3765_s12 + $0x138] sm:$0xf] %vm2072_vm3, %v3031_v0  ;;  %v2968_v7 = vpack.c.bf16 %v1447_v1, %v1447_v1  ;;  %v3032_v8 = vpack.c.bf16 %v1511_v2, %v1511_v2 }
 0x112   : > { %2085 = vst.msk [vmem:[%s3765_s12 + $0x30] sm:$0xf] %vm2072_vm3, %v2965_v3  ;;  %2149 = vst.msk [vmem:[%s3765_s12 + $0x130] sm:$0xf] %vm2072_vm3, %v3029_v4  ;;  %v2966_v10 = vpack.c.bf16 %v1445_v5, %v1445_v5  ;;  %v3030_v11 = vpack.c.bf16 %v1509_v6, %v1509_v6  ;;  %v3181_v12 = vpop.f32.mrb[16].mxu0  ;;  %v3245_v13 = vpop.f32.mrb[16].mxu1 }
 0x113   : > { %2088 = vst.msk [vmem:[%s3765_s12 + $0x3c] sm:$0xf] %vm2072_vm3, %v2968_v7  ;;  %2152 = vst.msk [vmem:[%s3765_s12 + $0x13c] sm:$0xf] %vm2072_vm3, %v3032_v8  ;;  %v994_v14 = vadd.f32 %v3181_v12, %v3755_v9  ;;  %v1250_v15 = vadd.f32 %v3245_v13, %v3755_v9  ;;  %v985_v16 = vpop.f32.mrb[17].mxu0  ;;  %v1241_v17 = vpop.f32.mrb[17].mxu1 }
 0x114   : > { %2086 = vst.msk [vmem:[%s3765_s12 + $0x34] sm:$0xf] %vm2072_vm3, %v2966_v10  ;;  %2150 = vst.msk [vmem:[%s3765_s12 + $0x134] sm:$0xf] %vm2072_vm3, %v3030_v11  ;;  %v986_v18 = vadd.f32 %v3755_v9, %v985_v16  ;;  %v1242_v19 = vadd.f32 %v3755_v9, %v1241_v17  ;;  %v3182_v20 = vpop.f32.mrb[18].mxu0  ;;  %v3246_v21 = vpop.f32.mrb[18].mxu1 }
 0x115   : > { %v1450_v22 = vmax.f32 %v994_v14, 0.0  ;;  %v1514_v23 = vmax.f32 %v1250_v15, 0.0  ;;  %v997_v24 = vadd.f32 %v3182_v20, %v3755_v9  ;;  %v1253_v25 = vadd.f32 %v3246_v21, %v3755_v9  ;;  %v988_v26 = vpop.f32.mrb[19].mxu0  ;;  %v1244_v27 = vpop.f32.mrb[19].mxu1 }
 0x116   : > { %v1448_v28 = vmax.f32 %v986_v18, 0.0  ;;  %v1512_v29 = vmax.f32 %v1242_v19, 0.0  ;;  %v989_v30 = vadd.f32 %v3755_v9, %v988_v26  ;;  %v1245_v31 = vadd.f32 %v3755_v9, %v1244_v27 }
 0x117   : > { %v2971_v32 = vpack.c.bf16 %v1450_v22, %v1450_v22  ;;  %v3035_v33 = vpack.c.bf16 %v1514_v23, %v1514_v23  ;;  %v1451_v34 = vmax.f32 %v997_v24, 0.0  ;;  %v1515_v35 = vmax.f32 %v1253_v25, 0.0 }
 0x118   : > { %v2969_v36 = vpack.c.bf16 %v1448_v28, %v1448_v28  ;;  %v3033_v37 = vpack.c.bf16 %v1512_v29, %v1512_v29  ;;  %v1449_v38 = vmax.f32 %v989_v30, 0.0  ;;  %v1513_v39 = vmax.f32 %v1245_v31, 0.0 }
 0x119   : > { %2091 = vst.msk [vmem:[%s3765_s12 + $0x48] sm:$0xf] %vm2072_vm3, %v2971_v32  ;;  %2155 = vst.msk [vmem:[%s3765_s12 + $0x148] sm:$0xf] %vm2072_vm3, %v3035_v33  ;;  %v2972_v40 = vpack.c.bf16 %v1451_v34, %v1451_v34  ;;  %v3036_v41 = vpack.c.bf16 %v1515_v35, %v1515_v35 }
 0x11a   : > { %2089 = vst.msk [vmem:[%s3765_s12 + $0x40] sm:$0xf] %vm2072_vm3, %v2969_v36  ;;  %2153 = vst.msk [vmem:[%s3765_s12 + $0x140] sm:$0xf] %vm2072_vm3, %v3033_v37  ;;  %v2970_v42 = vpack.c.bf16 %v1449_v38, %v1449_v38  ;;  %v3034_v43 = vpack.c.bf16 %v1513_v39, %v1513_v39  ;;  %v3185_v44 = vpop.f32.mrb[20].mxu0  ;;  %v3249_v45 = vpop.f32.mrb[20].mxu1 }
 0x11b   : > { %2092 = vst.msk [vmem:[%s3765_s12 + $0x4c] sm:$0xf] %vm2072_vm3, %v2972_v40  ;;  %2156 = vst.msk [vmem:[%s3765_s12 + $0x14c] sm:$0xf] %vm2072_vm3, %v3036_v41  ;;  %v1010_v46 = vadd.f32 %v3185_v44, %v3755_v9  ;;  %v1266_v47 = vadd.f32 %v3249_v45, %v3755_v9  ;;  %v1001_v48 = vpop.f32.mrb[21].mxu0  ;;  %v1257_v49 = vpop.f32.mrb[21].mxu1 }
 0x11c   : > { %2090 = vst.msk [vmem:[%s3765_s12 + $0x44] sm:$0xf] %vm2072_vm3, %v2970_v42  ;;  %2154 = vst.msk [vmem:[%s3765_s12 + $0x144] sm:$0xf] %vm2072_vm3, %v3034_v43  ;;  %v1002_v50 = vadd.f32 %v3755_v9, %v1001_v48  ;;  %v1258_v51 = vadd.f32 %v3755_v9, %v1257_v49  ;;  %v3186_v52 = vpop.f32.mrb[22].mxu0  ;;  %v3250_v53 = vpop.f32.mrb[22].mxu1 }
 0x11d   : > { %v1454_v54 = vmax.f32 %v1010_v46, 0.0  ;;  %v1518_v55 = vmax.f32 %v1266_v47, 0.0  ;;  %v1013_v56 = vadd.f32 %v3186_v52, %v3755_v9  ;;  %v1269_v57 = vadd.f32 %v3250_v53, %v3755_v9  ;;  %v1004_v58 = vpop.f32.mrb[23].mxu0  ;;  %v1260_v59 = vpop.f32.mrb[23].mxu1 }
 0x11e   : > { %v1452_v60 = vmax.f32 %v1002_v50, 0.0  ;;  %v1516_v61 = vmax.f32 %v1258_v51, 0.0  ;;  %v1005_v62 = vadd.f32 %v3755_v9, %v1004_v58  ;;  %v1261_v63 = vadd.f32 %v3755_v9, %v1260_v59 }
 0x11f   : > { %v2975_v0 = vpack.c.bf16 %v1454_v54, %v1454_v54  ;;  %v3039_v1 = vpack.c.bf16 %v1518_v55, %v1518_v55  ;;  %v1455_v2 = vmax.f32 %v1013_v56, 0.0  ;;  %v1519_v3 = vmax.f32 %v1269_v57, 0.0 }
 0x120   : > { %v2973_v4 = vpack.c.bf16 %v1452_v60, %v1452_v60  ;;  %v3037_v5 = vpack.c.bf16 %v1516_v61, %v1516_v61  ;;  %v1453_v6 = vmax.f32 %v1005_v62, 0.0  ;;  %v1517_v7 = vmax.f32 %v1261_v63, 0.0 }
 0x121   : > { %2095 = vst.msk [vmem:[%s3765_s12 + $0x58] sm:$0xf] %vm2072_vm3, %v2975_v0  ;;  %2159 = vst.msk [vmem:[%s3765_s12 + $0x158] sm:$0xf] %vm2072_vm3, %v3039_v1  ;;  %v2976_v8 = vpack.c.bf16 %v1455_v2, %v1455_v2  ;;  %v3040_v10 = vpack.c.bf16 %v1519_v3, %v1519_v3 }
 0x122   : > { %2093 = vst.msk [vmem:[%s3765_s12 + $0x50] sm:$0xf] %vm2072_vm3, %v2973_v4  ;;  %2157 = vst.msk [vmem:[%s3765_s12 + $0x150] sm:$0xf] %vm2072_vm3, %v3037_v5  ;;  %v2974_v11 = vpack.c.bf16 %v1453_v6, %v1453_v6  ;;  %v3038_v12 = vpack.c.bf16 %v1517_v7, %v1517_v7  ;;  %v3189_v13 = vpop.f32.mrb[24].mxu0  ;;  %v3253_v14 = vpop.f32.mrb[24].mxu1 }
 0x123   : > { %2096 = vst.msk [vmem:[%s3765_s12 + $0x5c] sm:$0xf] %vm2072_vm3, %v2976_v8  ;;  %2160 = vst.msk [vmem:[%s3765_s12 + $0x15c] sm:$0xf] %vm2072_vm3, %v3040_v10  ;;  %v1026_v15 = vadd.f32 %v3189_v13, %v3755_v9  ;;  %v1282_v16 = vadd.f32 %v3253_v14, %v3755_v9  ;;  %v1017_v17 = vpop.f32.mrb[25].mxu0  ;;  %v1273_v18 = vpop.f32.mrb[25].mxu1 }
 0x124   : > { %2094 = vst.msk [vmem:[%s3765_s12 + $0x54] sm:$0xf] %vm2072_vm3, %v2974_v11  ;;  %2158 = vst.msk [vmem:[%s3765_s12 + $0x154] sm:$0xf] %vm2072_vm3, %v3038_v12  ;;  %v1018_v19 = vadd.f32 %v3755_v9, %v1017_v17  ;;  %v1274_v20 = vadd.f32 %v3755_v9, %v1273_v18  ;;  %v3190_v21 = vpop.f32.mrb[26].mxu0  ;;  %v3254_v22 = vpop.f32.mrb[26].mxu1 }
 0x125   : > { %v1458_v23 = vmax.f32 %v1026_v15, 0.0  ;;  %v1522_v24 = vmax.f32 %v1282_v16, 0.0  ;;  %v1029_v25 = vadd.f32 %v3190_v21, %v3755_v9  ;;  %v1285_v26 = vadd.f32 %v3254_v22, %v3755_v9  ;;  %v1020_v27 = vpop.f32.mrb[27].mxu0  ;;  %v1276_v28 = vpop.f32.mrb[27].mxu1 }
 0x126   : > { %v1456_v29 = vmax.f32 %v1018_v19, 0.0  ;;  %v1520_v30 = vmax.f32 %v1274_v20, 0.0  ;;  %v1021_v31 = vadd.f32 %v3755_v9, %v1020_v27  ;;  %v1277_v32 = vadd.f32 %v3755_v9, %v1276_v28 }
 0x127   : > { %v2979_v33 = vpack.c.bf16 %v1458_v23, %v1458_v23  ;;  %v3043_v34 = vpack.c.bf16 %v1522_v24, %v1522_v24  ;;  %v1459_v35 = vmax.f32 %v1029_v25, 0.0  ;;  %v1523_v36 = vmax.f32 %v1285_v26, 0.0 }
 0x128   : > { %v2977_v37 = vpack.c.bf16 %v1456_v29, %v1456_v29  ;;  %v3041_v38 = vpack.c.bf16 %v1520_v30, %v1520_v30  ;;  %v1457_v39 = vmax.f32 %v1021_v31, 0.0  ;;  %v1521_v40 = vmax.f32 %v1277_v32, 0.0 }
 0x129   : > { %2099 = vst.msk [vmem:[%s3765_s12 + $0x68] sm:$0xf] %vm2072_vm3, %v2979_v33  ;;  %2163 = vst.msk [vmem:[%s3765_s12 + $0x168] sm:$0xf] %vm2072_vm3, %v3043_v34  ;;  %v2980_v41 = vpack.c.bf16 %v1459_v35, %v1459_v35  ;;  %v3044_v42 = vpack.c.bf16 %v1523_v36, %v1523_v36 }
 0x12a   : > { %2097 = vst.msk [vmem:[%s3765_s12 + $0x60] sm:$0xf] %vm2072_vm3, %v2977_v37  ;;  %2161 = vst.msk [vmem:[%s3765_s12 + $0x160] sm:$0xf] %vm2072_vm3, %v3041_v38  ;;  %v2978_v43 = vpack.c.bf16 %v1457_v39, %v1457_v39  ;;  %v3042_v44 = vpack.c.bf16 %v1521_v40, %v1521_v40  ;;  %v3193_v45 = vpop.f32.mrb[28].mxu0  ;;  %v3257_v46 = vpop.f32.mrb[28].mxu1 }
 0x12b   : > { %2100 = vst.msk [vmem:[%s3765_s12 + $0x6c] sm:$0xf] %vm2072_vm3, %v2980_v41  ;;  %2164 = vst.msk [vmem:[%s3765_s12 + $0x16c] sm:$0xf] %vm2072_vm3, %v3044_v42  ;;  %v1042_v47 = vadd.f32 %v3193_v45, %v3755_v9  ;;  %v1298_v48 = vadd.f32 %v3257_v46, %v3755_v9  ;;  %v1033_v49 = vpop.f32.mrb[29].mxu0  ;;  %v1289_v50 = vpop.f32.mrb[29].mxu1 }
 0x12c   : > { %2098 = vst.msk [vmem:[%s3765_s12 + $0x64] sm:$0xf] %vm2072_vm3, %v2978_v43  ;;  %2162 = vst.msk [vmem:[%s3765_s12 + $0x164] sm:$0xf] %vm2072_vm3, %v3042_v44  ;;  %v1034_v51 = vadd.f32 %v3755_v9, %v1033_v49  ;;  %v1290_v52 = vadd.f32 %v3755_v9, %v1289_v50  ;;  %v3194_v53 = vpop.f32.mrb[30].mxu0  ;;  %v3258_v54 = vpop.f32.mrb[30].mxu1 }
 0x12d   : > { %v1462_v55 = vmax.f32 %v1042_v47, 0.0  ;;  %v1526_v56 = vmax.f32 %v1298_v48, 0.0  ;;  %v1045_v57 = vadd.f32 %v3194_v53, %v3755_v9  ;;  %v1301_v58 = vadd.f32 %v3258_v54, %v3755_v9  ;;  %v1036_v59 = vpop.f32.mrb[31].mxu0  ;;  %v1292_v60 = vpop.f32.mrb[31].mxu1 }
 0x12e   : > { %v1460_v61 = vmax.f32 %v1034_v51, 0.0  ;;  %v1524_v62 = vmax.f32 %v1290_v52, 0.0  ;;  %v1037_v63 = vadd.f32 %v3755_v9, %v1036_v59  ;;  %v1293_v0 = vadd.f32 %v3755_v9, %v1292_v60 }
 0x12f   : > { %v2983_v1 = vpack.c.bf16 %v1462_v55, %v1462_v55  ;;  %v3047_v2 = vpack.c.bf16 %v1526_v56, %v1526_v56  ;;  %v1463_v3 = vmax.f32 %v1045_v57, 0.0  ;;  %v1527_v4 = vmax.f32 %v1301_v58, 0.0 }
 0x130   : > { %v2981_v5 = vpack.c.bf16 %v1460_v61, %v1460_v61  ;;  %v3045_v6 = vpack.c.bf16 %v1524_v62, %v1524_v62  ;;  %v1461_v7 = vmax.f32 %v1037_v63, 0.0  ;;  %v1525_v8 = vmax.f32 %v1293_v0, 0.0 }
 0x131   : > { %2103 = vst.msk [vmem:[%s3765_s12 + $0x78] sm:$0xf] %vm2072_vm3, %v2983_v1  ;;  %2167 = vst.msk [vmem:[%s3765_s12 + $0x178] sm:$0xf] %vm2072_vm3, %v3047_v2  ;;  %v2984_v10 = vpack.c.bf16 %v1463_v3, %v1463_v3  ;;  %v3048_v11 = vpack.c.bf16 %v1527_v4, %v1527_v4 }
 0x132   : > { %2101 = vst.msk [vmem:[%s3765_s12 + $0x70] sm:$0xf] %vm2072_vm3, %v2981_v5  ;;  %2165 = vst.msk [vmem:[%s3765_s12 + $0x170] sm:$0xf] %vm2072_vm3, %v3045_v6  ;;  %v2982_v12 = vpack.c.bf16 %v1461_v7, %v1461_v7  ;;  %v3046_v13 = vpack.c.bf16 %v1525_v8, %v1525_v8  ;;  %v3197_v14 = vpop.f32.mrb[32].mxu0  ;;  %v3261_v15 = vpop.f32.mrb[32].mxu1 }
 0x133   : > { %2104 = vst.msk [vmem:[%s3765_s12 + $0x7c] sm:$0xf] %vm2072_vm3, %v2984_v10  ;;  %2168 = vst.msk [vmem:[%s3765_s12 + $0x17c] sm:$0xf] %vm2072_vm3, %v3048_v11  ;;  %v1058_v16 = vadd.f32 %v3197_v14, %v3755_v9  ;;  %v1314_v17 = vadd.f32 %v3261_v15, %v3755_v9  ;;  %v1049_v18 = vpop.f32.mrb[33].mxu0  ;;  %v1305_v19 = vpop.f32.mrb[33].mxu1 }
 0x134   : > { %2102 = vst.msk [vmem:[%s3765_s12 + $0x74] sm:$0xf] %vm2072_vm3, %v2982_v12  ;;  %2166 = vst.msk [vmem:[%s3765_s12 + $0x174] sm:$0xf] %vm2072_vm3, %v3046_v13  ;;  %v1050_v20 = vadd.f32 %v3755_v9, %v1049_v18  ;;  %v1306_v21 = vadd.f32 %v3755_v9, %v1305_v19  ;;  %v3198_v22 = vpop.f32.mrb[34].mxu0  ;;  %v3262_v23 = vpop.f32.mrb[34].mxu1 }
 0x135   : > { %v1466_v24 = vmax.f32 %v1058_v16, 0.0  ;;  %v1530_v25 = vmax.f32 %v1314_v17, 0.0  ;;  %v1061_v26 = vadd.f32 %v3198_v22, %v3755_v9  ;;  %v1317_v27 = vadd.f32 %v3262_v23, %v3755_v9  ;;  %v1052_v28 = vpop.f32.mrb[35].mxu0  ;;  %v1308_v29 = vpop.f32.mrb[35].mxu1 }
 0x136   : > { %v1464_v30 = vmax.f32 %v1050_v20, 0.0  ;;  %v1528_v31 = vmax.f32 %v1306_v21, 0.0  ;;  %v1053_v32 = vadd.f32 %v3755_v9, %v1052_v28  ;;  %v1309_v33 = vadd.f32 %v3755_v9, %v1308_v29 }
 0x137   : > { %v2987_v34 = vpack.c.bf16 %v1466_v24, %v1466_v24  ;;  %v3051_v35 = vpack.c.bf16 %v1530_v25, %v1530_v25  ;;  %v1467_v36 = vmax.f32 %v1061_v26, 0.0  ;;  %v1531_v37 = vmax.f32 %v1317_v27, 0.0 }
 0x138   : > { %v2985_v38 = vpack.c.bf16 %v1464_v30, %v1464_v30  ;;  %v3049_v39 = vpack.c.bf16 %v1528_v31, %v1528_v31  ;;  %v1465_v40 = vmax.f32 %v1053_v32, 0.0  ;;  %v1529_v41 = vmax.f32 %v1309_v33, 0.0 }
 0x139   : > { %2107 = vst.msk [vmem:[%s3765_s12 + $0x88] sm:$0xf] %vm2072_vm3, %v2987_v34  ;;  %2171 = vst.msk [vmem:[%s3765_s12 + $0x188] sm:$0xf] %vm2072_vm3, %v3051_v35  ;;  %v2988_v42 = vpack.c.bf16 %v1467_v36, %v1467_v36  ;;  %v3052_v43 = vpack.c.bf16 %v1531_v37, %v1531_v37 }
 0x13a   : > { %2105 = vst.msk [vmem:[%s3765_s12 + $0x80] sm:$0xf] %vm2072_vm3, %v2985_v38  ;;  %2169 = vst.msk [vmem:[%s3765_s12 + $0x180] sm:$0xf] %vm2072_vm3, %v3049_v39  ;;  %v2986_v44 = vpack.c.bf16 %v1465_v40, %v1465_v40  ;;  %v3050_v45 = vpack.c.bf16 %v1529_v41, %v1529_v41  ;;  %v3201_v46 = vpop.f32.mrb[36].mxu0  ;;  %v3265_v47 = vpop.f32.mrb[36].mxu1 }
 0x13b   : > { %2108 = vst.msk [vmem:[%s3765_s12 + $0x8c] sm:$0xf] %vm2072_vm3, %v2988_v42  ;;  %2172 = vst.msk [vmem:[%s3765_s12 + $0x18c] sm:$0xf] %vm2072_vm3, %v3052_v43  ;;  %v1074_v48 = vadd.f32 %v3201_v46, %v3755_v9  ;;  %v1330_v49 = vadd.f32 %v3265_v47, %v3755_v9  ;;  %v1065_v50 = vpop.f32.mrb[37].mxu0  ;;  %v1321_v51 = vpop.f32.mrb[37].mxu1 }
 0x13c   : > { %2106 = vst.msk [vmem:[%s3765_s12 + $0x84] sm:$0xf] %vm2072_vm3, %v2986_v44  ;;  %2170 = vst.msk [vmem:[%s3765_s12 + $0x184] sm:$0xf] %vm2072_vm3, %v3050_v45  ;;  %v1066_v52 = vadd.f32 %v3755_v9, %v1065_v50  ;;  %v1322_v53 = vadd.f32 %v3755_v9, %v1321_v51  ;;  %v3202_v54 = vpop.f32.mrb[38].mxu0  ;;  %v3266_v55 = vpop.f32.mrb[38].mxu1 }
 0x13d   : > { %v1470_v56 = vmax.f32 %v1074_v48, 0.0  ;;  %v1534_v57 = vmax.f32 %v1330_v49, 0.0  ;;  %v1077_v58 = vadd.f32 %v3202_v54, %v3755_v9  ;;  %v1333_v59 = vadd.f32 %v3266_v55, %v3755_v9  ;;  %v1068_v60 = vpop.f32.mrb[39].mxu0  ;;  %v1324_v61 = vpop.f32.mrb[39].mxu1 }
 0x13e   : > { %v1468_v62 = vmax.f32 %v1066_v52, 0.0  ;;  %v1532_v63 = vmax.f32 %v1322_v53, 0.0  ;;  %v1069_v0 = vadd.f32 %v3755_v9, %v1068_v60  ;;  %v1325_v1 = vadd.f32 %v3755_v9, %v1324_v61 }
 0x13f   : > { %v2991_v2 = vpack.c.bf16 %v1470_v56, %v1470_v56  ;;  %v3055_v3 = vpack.c.bf16 %v1534_v57, %v1534_v57  ;;  %v1471_v4 = vmax.f32 %v1077_v58, 0.0  ;;  %v1535_v5 = vmax.f32 %v1333_v59, 0.0 }
 0x140   : > { %v2989_v6 = vpack.c.bf16 %v1468_v62, %v1468_v62  ;;  %v3053_v7 = vpack.c.bf16 %v1532_v63, %v1532_v63  ;;  %v1469_v8 = vmax.f32 %v1069_v0, 0.0  ;;  %v1533_v10 = vmax.f32 %v1325_v1, 0.0 }
 0x141   : > { %2111 = vst.msk [vmem:[%s3765_s12 + $0x98] sm:$0xf] %vm2072_vm3, %v2991_v2  ;;  %2175 = vst.msk [vmem:[%s3765_s12 + $0x198] sm:$0xf] %vm2072_vm3, %v3055_v3  ;;  %v2992_v11 = vpack.c.bf16 %v1471_v4, %v1471_v4  ;;  %v3056_v12 = vpack.c.bf16 %v1535_v5, %v1535_v5 }
 0x142   : > { %2109 = vst.msk [vmem:[%s3765_s12 + $0x90] sm:$0xf] %vm2072_vm3, %v2989_v6  ;;  %2173 = vst.msk [vmem:[%s3765_s12 + $0x190] sm:$0xf] %vm2072_vm3, %v3053_v7  ;;  %v2990_v13 = vpack.c.bf16 %v1469_v8, %v1469_v8  ;;  %v3054_v14 = vpack.c.bf16 %v1533_v10, %v1533_v10  ;;  %v3205_v15 = vpop.f32.mrb[40].mxu0  ;;  %v3269_v16 = vpop.f32.mrb[40].mxu1 }
 0x143   : > { %2112 = vst.msk [vmem:[%s3765_s12 + $0x9c] sm:$0xf] %vm2072_vm3, %v2992_v11  ;;  %2176 = vst.msk [vmem:[%s3765_s12 + $0x19c] sm:$0xf] %vm2072_vm3, %v3056_v12  ;;  %v1090_v17 = vadd.f32 %v3205_v15, %v3755_v9  ;;  %v1346_v18 = vadd.f32 %v3269_v16, %v3755_v9  ;;  %v1081_v19 = vpop.f32.mrb[41].mxu0  ;;  %v1337_v20 = vpop.f32.mrb[41].mxu1 }
 0x144   : > { %2110 = vst.msk [vmem:[%s3765_s12 + $0x94] sm:$0xf] %vm2072_vm3, %v2990_v13  ;;  %2174 = vst.msk [vmem:[%s3765_s12 + $0x194] sm:$0xf] %vm2072_vm3, %v3054_v14  ;;  %v1082_v21 = vadd.f32 %v3755_v9, %v1081_v19  ;;  %v1338_v22 = vadd.f32 %v3755_v9, %v1337_v20  ;;  %v3206_v23 = vpop.f32.mrb[42].mxu0  ;;  %v3270_v24 = vpop.f32.mrb[42].mxu1 }
 0x145   : > { %v1474_v25 = vmax.f32 %v1090_v17, 0.0  ;;  %v1538_v26 = vmax.f32 %v1346_v18, 0.0  ;;  %v1093_v27 = vadd.f32 %v3206_v23, %v3755_v9  ;;  %v1349_v28 = vadd.f32 %v3270_v24, %v3755_v9  ;;  %v1084_v29 = vpop.f32.mrb[43].mxu0  ;;  %v1340_v30 = vpop.f32.mrb[43].mxu1 }
 0x146   : > { %v1472_v31 = vmax.f32 %v1082_v21, 0.0  ;;  %v1536_v32 = vmax.f32 %v1338_v22, 0.0  ;;  %v1085_v33 = vadd.f32 %v3755_v9, %v1084_v29  ;;  %v1341_v34 = vadd.f32 %v3755_v9, %v1340_v30 }
 0x147   : > { %v2995_v35 = vpack.c.bf16 %v1474_v25, %v1474_v25  ;;  %v3059_v36 = vpack.c.bf16 %v1538_v26, %v1538_v26  ;;  %v1475_v37 = vmax.f32 %v1093_v27, 0.0  ;;  %v1539_v38 = vmax.f32 %v1349_v28, 0.0 }
 0x148   : > { %v2993_v39 = vpack.c.bf16 %v1472_v31, %v1472_v31  ;;  %v3057_v40 = vpack.c.bf16 %v1536_v32, %v1536_v32  ;;  %v1473_v41 = vmax.f32 %v1085_v33, 0.0  ;;  %v1537_v42 = vmax.f32 %v1341_v34, 0.0 }
 0x149   : > { %2115 = vst.msk [vmem:[%s3765_s12 + $0xa8] sm:$0xf] %vm2072_vm3, %v2995_v35  ;;  %2179 = vst.msk [vmem:[%s3765_s12 + $0x1a8] sm:$0xf] %vm2072_vm3, %v3059_v36  ;;  %v2996_v43 = vpack.c.bf16 %v1475_v37, %v1475_v37  ;;  %v3060_v44 = vpack.c.bf16 %v1539_v38, %v1539_v38 }
 0x14a   : > { %2113 = vst.msk [vmem:[%s3765_s12 + $0xa0] sm:$0xf] %vm2072_vm3, %v2993_v39  ;;  %2177 = vst.msk [vmem:[%s3765_s12 + $0x1a0] sm:$0xf] %vm2072_vm3, %v3057_v40  ;;  %v2994_v45 = vpack.c.bf16 %v1473_v41, %v1473_v41  ;;  %v3058_v46 = vpack.c.bf16 %v1537_v42, %v1537_v42  ;;  %v3209_v47 = vpop.f32.mrb[44].mxu0  ;;  %v3273_v48 = vpop.f32.mrb[44].mxu1 }
 0x14b   : > { %2116 = vst.msk [vmem:[%s3765_s12 + $0xac] sm:$0xf] %vm2072_vm3, %v2996_v43  ;;  %2180 = vst.msk [vmem:[%s3765_s12 + $0x1ac] sm:$0xf] %vm2072_vm3, %v3060_v44  ;;  %v1106_v49 = vadd.f32 %v3209_v47, %v3755_v9  ;;  %v1362_v50 = vadd.f32 %v3273_v48, %v3755_v9  ;;  %v1097_v51 = vpop.f32.mrb[45].mxu0  ;;  %v1353_v52 = vpop.f32.mrb[45].mxu1 }
 0x14c   : > { %2114 = vst.msk [vmem:[%s3765_s12 + $0xa4] sm:$0xf] %vm2072_vm3, %v2994_v45  ;;  %2178 = vst.msk [vmem:[%s3765_s12 + $0x1a4] sm:$0xf] %vm2072_vm3, %v3058_v46  ;;  %v1098_v53 = vadd.f32 %v3755_v9, %v1097_v51  ;;  %v1354_v54 = vadd.f32 %v3755_v9, %v1353_v52  ;;  %v3210_v55 = vpop.f32.mrb[46].mxu0  ;;  %v3274_v56 = vpop.f32.mrb[46].mxu1 }
 0x14d   : > { %v1478_v57 = vmax.f32 %v1106_v49, 0.0  ;;  %v1542_v58 = vmax.f32 %v1362_v50, 0.0  ;;  %v1109_v59 = vadd.f32 %v3210_v55, %v3755_v9  ;;  %v1365_v60 = vadd.f32 %v3274_v56, %v3755_v9  ;;  %v1100_v61 = vpop.f32.mrb[47].mxu0  ;;  %v1356_v62 = vpop.f32.mrb[47].mxu1  ;;  %v4070_v49 = vld [vmem:[%s4349_s2] ss:$0 sm:$0xff] }
 0x14e   : > { %v1476_v63 = vmax.f32 %v1098_v53, 0.0  ;;  %v1540_v0 = vmax.f32 %v1354_v54, 0.0  ;;  %v1101_v1 = vadd.f32 %v3755_v9, %v1100_v61  ;;  %v1357_v2 = vadd.f32 %v3755_v9, %v1356_v62 }
 0x14f   : > { %v2999_v3 = vpack.c.bf16 %v1478_v57, %v1478_v57  ;;  %v3063_v4 = vpack.c.bf16 %v1542_v58, %v1542_v58  ;;  %v1479_v5 = vmax.f32 %v1109_v59, 0.0  ;;  %v1543_v6 = vmax.f32 %v1365_v60, 0.0 }
 0x150   : > { %v2997_v7 = vpack.c.bf16 %v1476_v63, %v1476_v63  ;;  %v3061_v8 = vpack.c.bf16 %v1540_v0, %v1540_v0  ;;  %v1477_v10 = vmax.f32 %v1101_v1, 0.0  ;;  %v1541_v11 = vmax.f32 %v1357_v2, 0.0 }
 0x151   : > { %2119 = vst.msk [vmem:[%s3765_s12 + $0xb8] sm:$0xf] %vm2072_vm3, %v2999_v3  ;;  %2183 = vst.msk [vmem:[%s3765_s12 + $0x1b8] sm:$0xf] %vm2072_vm3, %v3063_v4  ;;  %v3000_v12 = vpack.c.bf16 %v1479_v5, %v1479_v5  ;;  %v3064_v13 = vpack.c.bf16 %v1543_v6, %v1543_v6 }
 0x152   : > { %2117 = vst.msk [vmem:[%s3765_s12 + $0xb0] sm:$0xf] %vm2072_vm3, %v2997_v7  ;;  %2181 = vst.msk [vmem:[%s3765_s12 + $0x1b0] sm:$0xf] %vm2072_vm3, %v3061_v8  ;;  %v2998_v14 = vpack.c.bf16 %v1477_v10, %v1477_v10  ;;  %v3062_v15 = vpack.c.bf16 %v1541_v11, %v1541_v11  ;;  %v3213_v16 = vpop.f32.mrb[48].mxu0  ;;  %v3277_v17 = vpop.f32.mrb[48].mxu1 }
 0x153   : > { %2120 = vst.msk [vmem:[%s3765_s12 + $0xbc] sm:$0xf] %vm2072_vm3, %v3000_v12  ;;  %2184 = vst.msk [vmem:[%s3765_s12 + $0x1bc] sm:$0xf] %vm2072_vm3, %v3064_v13  ;;  %v1122_v18 = vadd.f32 %v3213_v16, %v3755_v9  ;;  %v1378_v19 = vadd.f32 %v3277_v17, %v3755_v9  ;;  %v1113_v20 = vpop.f32.mrb[49].mxu0  ;;  %v1369_v21 = vpop.f32.mrb[49].mxu1 }
 0x154   : > { %2118 = vst.msk [vmem:[%s3765_s12 + $0xb4] sm:$0xf] %vm2072_vm3, %v2998_v14  ;;  %2182 = vst.msk [vmem:[%s3765_s12 + $0x1b4] sm:$0xf] %vm2072_vm3, %v3062_v15  ;;  %v1114_v22 = vadd.f32 %v3755_v9, %v1113_v20  ;;  %v1370_v23 = vadd.f32 %v3755_v9, %v1369_v21  ;;  %v3214_v24 = vpop.f32.mrb[50].mxu0  ;;  %v3278_v25 = vpop.f32.mrb[50].mxu1 }
 0x155   : > { %v1482_v26 = vmax.f32 %v1122_v18, 0.0  ;;  %v1546_v27 = vmax.f32 %v1378_v19, 0.0  ;;  %v1125_v28 = vadd.f32 %v3214_v24, %v3755_v9  ;;  %v1381_v29 = vadd.f32 %v3278_v25, %v3755_v9  ;;  %v1116_v30 = vpop.f32.mrb[51].mxu0  ;;  %v1372_v31 = vpop.f32.mrb[51].mxu1 }
 0x156   : > { %v1480_v32 = vmax.f32 %v1114_v22, 0.0  ;;  %v1544_v33 = vmax.f32 %v1370_v23, 0.0  ;;  %v1117_v34 = vadd.f32 %v3755_v9, %v1116_v30  ;;  %v1373_v35 = vadd.f32 %v3755_v9, %v1372_v31 }
 0x157   : > { %v3003_v36 = vpack.c.bf16 %v1482_v26, %v1482_v26  ;;  %v3067_v37 = vpack.c.bf16 %v1546_v27, %v1546_v27  ;;  %v1483_v38 = vmax.f32 %v1125_v28, 0.0  ;;  %v1547_v39 = vmax.f32 %v1381_v29, 0.0 }
 0x158   : > { %v3001_v40 = vpack.c.bf16 %v1480_v32, %v1480_v32  ;;  %v3065_v41 = vpack.c.bf16 %v1544_v33, %v1544_v33  ;;  %v1481_v42 = vmax.f32 %v1117_v34, 0.0  ;;  %v1545_v43 = vmax.f32 %v1373_v35, 0.0 }
 0x159   : > { %2123 = vst.msk [vmem:[%s3765_s12 + $0xc8] sm:$0xf] %vm2072_vm3, %v3003_v36  ;;  %2187 = vst.msk [vmem:[%s3765_s12 + $0x1c8] sm:$0xf] %vm2072_vm3, %v3067_v37  ;;  %v3004_v44 = vpack.c.bf16 %v1483_v38, %v1483_v38  ;;  %v3068_v45 = vpack.c.bf16 %v1547_v39, %v1547_v39 }
 0x15a   : > { %2121 = vst.msk [vmem:[%s3765_s12 + $0xc0] sm:$0xf] %vm2072_vm3, %v3001_v40  ;;  %2185 = vst.msk [vmem:[%s3765_s12 + $0x1c0] sm:$0xf] %vm2072_vm3, %v3065_v41  ;;  %v3002_v9 = vpack.c.bf16 %v1481_v42, %v1481_v42  ;;  %v3066_v46 = vpack.c.bf16 %v1545_v43, %v1545_v43  ;;  %v3217_v47 = vpop.f32.mrb[52].mxu0  ;;  %v3281_v48 = vpop.f32.mrb[52].mxu1 }
 0x15b   : > { %2124 = vst.msk [vmem:[%s3765_s12 + $0xcc] sm:$0xf] %vm2072_vm3, %v3004_v44  ;;  %2188 = vst.msk [vmem:[%s3765_s12 + $0x1cc] sm:$0xf] %vm2072_vm3, %v3068_v45  ;;  %v1138_v50 = vadd.f32 %v4070_v49, %v3217_v47  ;;  %v1394_v51 = vadd.f32 %v4070_v49, %v3281_v48  ;;  %v1129_v52 = vpop.f32.mrb[53].mxu0  ;;  %v1385_v53 = vpop.f32.mrb[53].mxu1 }
 0x15c   : > { %2122 = vst.msk [vmem:[%s3765_s12 + $0xc4] sm:$0xf] %vm2072_vm3, %v3002_v9  ;;  %2186 = vst.msk [vmem:[%s3765_s12 + $0x1c4] sm:$0xf] %vm2072_vm3, %v3066_v46  ;;  %v1130_v54 = vadd.f32 %v4070_v49, %v1129_v52  ;;  %v1386_v55 = vadd.f32 %v4070_v49, %v1385_v53  ;;  %v3218_v56 = vpop.f32.mrb[54].mxu0  ;;  %v3282_v57 = vpop.f32.mrb[54].mxu1 }
 0x15d   : > { %v1486_v58 = vmax.f32 %v1138_v50, 0.0  ;;  %v1550_v59 = vmax.f32 %v1394_v51, 0.0  ;;  %v1141_v60 = vadd.f32 %v4070_v49, %v3218_v56  ;;  %v1397_v61 = vadd.f32 %v4070_v49, %v3282_v57  ;;  %v1132_v62 = vpop.f32.mrb[55].mxu0  ;;  %v1388_v63 = vpop.f32.mrb[55].mxu1 }
 0x15e   : > { %v1484_v0 = vmax.f32 %v1130_v54, 0.0  ;;  %v1548_v1 = vmax.f32 %v1386_v55, 0.0  ;;  %v1133_v2 = vadd.f32 %v4070_v49, %v1132_v62  ;;  %v1389_v3 = vadd.f32 %v4070_v49, %v1388_v63 }
 0x15f   : > { %v3007_v4 = vpack.c.bf16 %v1486_v58, %v1486_v58  ;;  %v3071_v5 = vpack.c.bf16 %v1550_v59, %v1550_v59  ;;  %v1487_v6 = vmax.f32 %v1141_v60, 0.0  ;;  %v1551_v7 = vmax.f32 %v1397_v61, 0.0 }
 0x160   : > { %v3005_v8 = vpack.c.bf16 %v1484_v0, %v1484_v0  ;;  %v3069_v10 = vpack.c.bf16 %v1548_v1, %v1548_v1  ;;  %v1485_v11 = vmax.f32 %v1133_v2, 0.0  ;;  %v1549_v12 = vmax.f32 %v1389_v3, 0.0 }
 0x161   : > { %2127 = vst.msk [vmem:[%s3765_s12 + $0xd8] sm:$0xf] %vm2072_vm3, %v3007_v4  ;;  %2191 = vst.msk [vmem:[%s3765_s12 + $0x1d8] sm:$0xf] %vm2072_vm3, %v3071_v5  ;;  %v3008_v13 = vpack.c.bf16 %v1487_v6, %v1487_v6  ;;  %v3072_v14 = vpack.c.bf16 %v1551_v7, %v1551_v7 }
 0x162   : > { %2125 = vst.msk [vmem:[%s3765_s12 + $0xd0] sm:$0xf] %vm2072_vm3, %v3005_v8  ;;  %2189 = vst.msk [vmem:[%s3765_s12 + $0x1d0] sm:$0xf] %vm2072_vm3, %v3069_v10  ;;  %v3006_v15 = vpack.c.bf16 %v1485_v11, %v1485_v11  ;;  %v3070_v16 = vpack.c.bf16 %v1549_v12, %v1549_v12  ;;  %v3221_v17 = vpop.f32.mrb[56].mxu0  ;;  %v3285_v18 = vpop.f32.mrb[56].mxu1 }
 0x163   : > { %2128 = vst.msk [vmem:[%s3765_s12 + $0xdc] sm:$0xf] %vm2072_vm3, %v3008_v13  ;;  %2192 = vst.msk [vmem:[%s3765_s12 + $0x1dc] sm:$0xf] %vm2072_vm3, %v3072_v14  ;;  %v1154_v19 = vadd.f32 %v4070_v49, %v3221_v17  ;;  %v1410_v20 = vadd.f32 %v4070_v49, %v3285_v18  ;;  %v1145_v21 = vpop.f32.mrb[57].mxu0  ;;  %v1401_v22 = vpop.f32.mrb[57].mxu1 }
 0x164   : > { %2126 = vst.msk [vmem:[%s3765_s12 + $0xd4] sm:$0xf] %vm2072_vm3, %v3006_v15  ;;  %2190 = vst.msk [vmem:[%s3765_s12 + $0x1d4] sm:$0xf] %vm2072_vm3, %v3070_v16  ;;  %v1146_v23 = vadd.f32 %v4070_v49, %v1145_v21  ;;  %v1402_v24 = vadd.f32 %v4070_v49, %v1401_v22  ;;  %v3222_v25 = vpop.f32.mrb[58].mxu0  ;;  %v3286_v26 = vpop.f32.mrb[58].mxu1 }
 0x165   : > { %v1490_v27 = vmax.f32 %v1154_v19, 0.0  ;;  %v1554_v28 = vmax.f32 %v1410_v20, 0.0  ;;  %v1157_v29 = vadd.f32 %v4070_v49, %v3222_v25  ;;  %v1413_v30 = vadd.f32 %v4070_v49, %v3286_v26  ;;  %v1148_v31 = vpop.f32.mrb[59].mxu0  ;;  %v1404_v32 = vpop.f32.mrb[59].mxu1 }
 0x166   : > { %v1488_v33 = vmax.f32 %v1146_v23, 0.0  ;;  %v1552_v34 = vmax.f32 %v1402_v24, 0.0  ;;  %v1149_v35 = vadd.f32 %v4070_v49, %v1148_v31  ;;  %v1405_v36 = vadd.f32 %v4070_v49, %v1404_v32 }
 0x167   : > { %v3011_v37 = vpack.c.bf16 %v1490_v27, %v1490_v27  ;;  %v3075_v38 = vpack.c.bf16 %v1554_v28, %v1554_v28  ;;  %v1491_v39 = vmax.f32 %v1157_v29, 0.0  ;;  %v1555_v40 = vmax.f32 %v1413_v30, 0.0 }
 0x168   : > { %v3009_v41 = vpack.c.bf16 %v1488_v33, %v1488_v33  ;;  %v3073_v42 = vpack.c.bf16 %v1552_v34, %v1552_v34  ;;  %v1489_v43 = vmax.f32 %v1149_v35, 0.0  ;;  %v1553_v44 = vmax.f32 %v1405_v36, 0.0 }
 0x169   : > { %2131 = vst.msk [vmem:[%s3765_s12 + $0xe8] sm:$0xf] %vm2072_vm3, %v3011_v37  ;;  %2195 = vst.msk [vmem:[%s3765_s12 + $0x1e8] sm:$0xf] %vm2072_vm3, %v3075_v38  ;;  %v3012_v45 = vpack.c.bf16 %v1491_v39, %v1491_v39  ;;  %v3076_v9 = vpack.c.bf16 %v1555_v40, %v1555_v40 }
 0x16a   : > { %2129 = vst.msk [vmem:[%s3765_s12 + $0xe0] sm:$0xf] %vm2072_vm3, %v3009_v41  ;;  %2193 = vst.msk [vmem:[%s3765_s12 + $0x1e0] sm:$0xf] %vm2072_vm3, %v3073_v42  ;;  %v3010_v46 = vpack.c.bf16 %v1489_v43, %v1489_v43  ;;  %v3074_v47 = vpack.c.bf16 %v1553_v44, %v1553_v44  ;;  %v3225_v48 = vpop.f32.mrb[60].mxu0  ;;  %v3289_v50 = vpop.f32.mrb[60].mxu1 }
 0x16b   : > { %2132 = vst.msk [vmem:[%s3765_s12 + $0xec] sm:$0xf] %vm2072_vm3, %v3012_v45  ;;  %2196 = vst.msk [vmem:[%s3765_s12 + $0x1ec] sm:$0xf] %vm2072_vm3, %v3076_v9  ;;  %v1170_v51 = vadd.f32 %v4070_v49, %v3225_v48  ;;  %v1426_v52 = vadd.f32 %v4070_v49, %v3289_v50  ;;  %v1161_v53 = vpop.f32.mrb[61].mxu0  ;;  %v1417_v54 = vpop.f32.mrb[61].mxu1 }
 0x16c   : > { %2130 = vst.msk [vmem:[%s3765_s12 + $0xe4] sm:$0xf] %vm2072_vm3, %v3010_v46  ;;  %2194 = vst.msk [vmem:[%s3765_s12 + $0x1e4] sm:$0xf] %vm2072_vm3, %v3074_v47  ;;  %v1162_v55 = vadd.f32 %v4070_v49, %v1161_v53  ;;  %v1418_v56 = vadd.f32 %v4070_v49, %v1417_v54  ;;  %v3226_v57 = vpop.f32.mrb[62].mxu0  ;;  %v3290_v58 = vpop.f32.mrb[62].mxu1 }
 0x16d   : > { %v1494_v59 = vmax.f32 %v1170_v51, 0.0  ;;  %v1558_v60 = vmax.f32 %v1426_v52, 0.0  ;;  %v1173_v61 = vadd.f32 %v4070_v49, %v3226_v57  ;;  %v1429_v62 = vadd.f32 %v4070_v49, %v3290_v58  ;;  %v1164_v63 = vpop.f32.mrb[63].mxu0  ;;  %v1420_v0 = vpop.f32.mrb[63].mxu1 }
 0x16e   : > { %v1492_v1 = vmax.f32 %v1162_v55, 0.0  ;;  %v1556_v2 = vmax.f32 %v1418_v56, 0.0  ;;  %v1165_v3 = vadd.f32 %v4070_v49, %v1164_v63  ;;  %v1421_v4 = vadd.f32 %v4070_v49, %v1420_v0  ;;  %2207 = sbr.rel (!%p3594_p4) target bundleno = 464 (0x1d0), region = 36 }
 0x16f   : > { %v3015_v5 = vpack.c.bf16 %v1494_v59, %v1494_v59  ;;  %v3079_v6 = vpack.c.bf16 %v1558_v60, %v1558_v60  ;;  %v1495_v7 = vmax.f32 %v1173_v61, 0.0  ;;  %v1559_v8 = vmax.f32 %v1429_v62, 0.0 }
 0x170   : > { %v3013_v10 = vpack.c.bf16 %v1492_v1, %v1492_v1  ;;  %v3077_v11 = vpack.c.bf16 %v1556_v2, %v1556_v2  ;;  %v1493_v12 = vmax.f32 %v1165_v3, 0.0  ;;  %v1557_v13 = vmax.f32 %v1421_v4, 0.0 }
 0x171   : > { %2135 = vst.msk [vmem:[%s3765_s12 + $0xf8] sm:$0xf] %vm2072_vm3, %v3015_v5  ;;  %2199 = vst.msk [vmem:[%s3765_s12 + $0x1f8] sm:$0xf] %vm2072_vm3, %v3079_v6  ;;  %v3016_v14 = vpack.c.bf16 %v1495_v7, %v1495_v7  ;;  %v3080_v15 = vpack.c.bf16 %v1559_v8, %v1559_v8 }
 0x172   : > { %2133 = vst.msk [vmem:[%s3765_s12 + $0xf0] sm:$0xf] %vm2072_vm3, %v3013_v10  ;;  %2197 = vst.msk [vmem:[%s3765_s12 + $0x1f0] sm:$0xf] %vm2072_vm3, %v3077_v11  ;;  %v3014_v49 = vpack.c.bf16 %v1493_v12, %v1493_v12  ;;  %v3078_v16 = vpack.c.bf16 %v1557_v13, %v1557_v13 }
 0x173   : > { %2136 = vst.msk [vmem:[%s3765_s12 + $0xfc] sm:$0xf] %vm2072_vm3, %v3016_v14  ;;  %2200 = vst.msk [vmem:[%s3765_s12 + $0x1fc] sm:$0xf] %vm2072_vm3, %v3080_v15 }
 0x174   : > { %2134 = vst.msk [vmem:[%s3765_s12 + $0xf4] sm:$0xf] %vm2072_vm3, %v3014_v49  ;;  %2198 = vst.msk [vmem:[%s3765_s12 + $0x1f4] sm:$0xf] %vm2072_vm3, %v3078_v16 }
 0x175   : > { %s4359_s22 = smov (!%p2210_p8, %s2209_s22), 128 }
 0x176   : > { %s2938_s28 = sshll.u32 %s4359_s22, 6 }
 0x177   : > { %p2941_p9 = scmp.eq.s32.totalorder %s2938_s28, 0 }
 0x178   : > { %s4161_s29 = sshrl.u32 (!%p2941_p9), %s4359_s22, 6 }
 0x179   : > { %2218 = sbr.rel (%p2941_p9) target bundleno = 464 (0x1d0), region = 40  ;;  %p2942_p10 = scmp.le.s32.totalorder (!%p2941_p9), %s4161_s29, 0 }
 0x180   : > { %2623 = sbr.rel (%p2942_p10) target bundleno = 443 (0x1bb), region = 112  ;;  %s4352_s15 = smov (!%p2942_p10), %s4155_s26 }
 0x181   : > { %s4353_s20 = smov (!%p2942_p10), %s3765_s12  ;;  %s4170_s27 = smov (!%p2942_p10), 0  }
 0x182   : > { %s4172_s30 = smov (!%p2942_p10), 0  }
 0x187 LB: >> { %v2234_v17 = vld [vmem:[%s3522_s20] sm:$0xf]  ;;  %v2236_v18 = vld [vmem:[%s3522_s20 + $0x4] sm:$0xf]  ;;  %v2238_v19 = vld [vmem:[%s3522_s20 + $0x8] sm:$0xf]  ;;  %s3530_s30 = sphi %s4172_s30, %s2228_s30   ;;  %s3526_s27 = sphi %s4170_s27, %s4354_s27   ;;  %s3522_s20 = sphi %s4353_s20, %s2367_s20   ;;  %s3518_s15 = sphi %s4352_s15, %s2368_s15  }
 0x188   : >> { %2235 = vst [vmem:[%s3518_s15] sm:$0xf] %v2234_v17  ;;  %2237 = vst [vmem:[%s3518_s15 + $0x4] sm:$0xf] %v2236_v18  ;;  %v2240_v20 = vld [vmem:[%s3522_s20 + $0xc] sm:$0xf]  ;;  %s2362_s4 = sadd.s32 1, %s3526_s27 }
 0x189   : >> { %2239 = vst [vmem:[%s3518_s15 + $0x8] sm:$0xf] %v2238_v19  ;;  %v2242_v21 = vld [vmem:[%s3522_s20 + $0x10] sm:$0xf]  ;;  %v2244_v22 = vld [vmem:[%s3522_s20 + $0x14] sm:$0xf]  ;;  %p2363_p11 = scmp.ge.s32.totalorder %s2362_s4, %s4161_s29 }
 0x18a   : >> { %2241 = vst [vmem:[%s3518_s15 + $0xc] sm:$0xf] %v2240_v20  ;;  %2243 = vst [vmem:[%s3518_s15 + $0x10] sm:$0xf] %v2242_v21  ;;  %v2246_v23 = vld [vmem:[%s3522_s20 + $0x18] sm:$0xf] }
 0x18b   : >> { %2245 = vst [vmem:[%s3518_s15 + $0x14] sm:$0xf] %v2244_v22  ;;  %v2248_v24 = vld [vmem:[%s3522_s20 + $0x1c] sm:$0xf]  ;;  %v2250_v25 = vld [vmem:[%s3522_s20 + $0x20] sm:$0xf] }
 0x18c   : >> { %2247 = vst [vmem:[%s3518_s15 + $0x18] sm:$0xf] %v2246_v23  ;;  %2249 = vst [vmem:[%s3518_s15 + $0x1c] sm:$0xf] %v2248_v24  ;;  %v2252_v26 = vld [vmem:[%s3522_s20 + $0x24] sm:$0xf] }
 0x18d   : >> { %2251 = vst [vmem:[%s3518_s15 + $0x20] sm:$0xf] %v2250_v25  ;;  %v2254_v27 = vld [vmem:[%s3522_s20 + $0x28] sm:$0xf]  ;;  %v2256_v28 = vld [vmem:[%s3522_s20 + $0x2c] sm:$0xf] }
 0x18e   : >> { %2253 = vst [vmem:[%s3518_s15 + $0x24] sm:$0xf] %v2252_v26  ;;  %2255 = vst [vmem:[%s3518_s15 + $0x28] sm:$0xf] %v2254_v27  ;;  %v2258_v29 = vld [vmem:[%s3522_s20 + $0x30] sm:$0xf] }
 0x18f   : >> { %2257 = vst [vmem:[%s3518_s15 + $0x2c] sm:$0xf] %v2256_v28  ;;  %v2260_v30 = vld [vmem:[%s3522_s20 + $0x34] sm:$0xf]  ;;  %v2262_v31 = vld [vmem:[%s3522_s20 + $0x38] sm:$0xf] }
 0x190   : >> { %2259 = vst [vmem:[%s3518_s15 + $0x30] sm:$0xf] %v2258_v29  ;;  %2261 = vst [vmem:[%s3518_s15 + $0x34] sm:$0xf] %v2260_v30  ;;  %v2264_v32 = vld [vmem:[%s3522_s20 + $0x3c] sm:$0xf] }
 0x191   : >> { %2263 = vst [vmem:[%s3518_s15 + $0x38] sm:$0xf] %v2262_v31  ;;  %v2266_v33 = vld [vmem:[%s3522_s20 + $0x40] sm:$0xf]  ;;  %v2268_v34 = vld [vmem:[%s3522_s20 + $0x44] sm:$0xf] }
 0x192   : >> { %2265 = vst [vmem:[%s3518_s15 + $0x3c] sm:$0xf] %v2264_v32  ;;  %2267 = vst [vmem:[%s3518_s15 + $0x40] sm:$0xf] %v2266_v33  ;;  %v2270_v35 = vld [vmem:[%s3522_s20 + $0x48] sm:$0xf] }
 0x193   : >> { %2269 = vst [vmem:[%s3518_s15 + $0x44] sm:$0xf] %v2268_v34  ;;  %v2272_v36 = vld [vmem:[%s3522_s20 + $0x4c] sm:$0xf]  ;;  %v2274_v37 = vld [vmem:[%s3522_s20 + $0x50] sm:$0xf] }
 0x194   : >> { %2271 = vst [vmem:[%s3518_s15 + $0x48] sm:$0xf] %v2270_v35  ;;  %2273 = vst [vmem:[%s3518_s15 + $0x4c] sm:$0xf] %v2272_v36  ;;  %v2276_v38 = vld [vmem:[%s3522_s20 + $0x54] sm:$0xf] }
 0x195   : >> { %2275 = vst [vmem:[%s3518_s15 + $0x50] sm:$0xf] %v2274_v37  ;;  %v2278_v39 = vld [vmem:[%s3522_s20 + $0x58] sm:$0xf]  ;;  %v2280_v40 = vld [vmem:[%s3522_s20 + $0x5c] sm:$0xf] }
 0x196   : >> { %2277 = vst [vmem:[%s3518_s15 + $0x54] sm:$0xf] %v2276_v38  ;;  %2279 = vst [vmem:[%s3518_s15 + $0x58] sm:$0xf] %v2278_v39  ;;  %v2282_v41 = vld [vmem:[%s3522_s20 + $0x60] sm:$0xf] }
 0x197   : >> { %2281 = vst [vmem:[%s3518_s15 + $0x5c] sm:$0xf] %v2280_v40  ;;  %v2284_v42 = vld [vmem:[%s3522_s20 + $0x64] sm:$0xf]  ;;  %v2286_v43 = vld [vmem:[%s3522_s20 + $0x68] sm:$0xf] }
 0x198   : >> { %2283 = vst [vmem:[%s3518_s15 + $0x60] sm:$0xf] %v2282_v41  ;;  %2285 = vst [vmem:[%s3518_s15 + $0x64] sm:$0xf] %v2284_v42  ;;  %v2288_v44 = vld [vmem:[%s3522_s20 + $0x6c] sm:$0xf] }
 0x199   : >> { %2287 = vst [vmem:[%s3518_s15 + $0x68] sm:$0xf] %v2286_v43  ;;  %v2290_v45 = vld [vmem:[%s3522_s20 + $0x70] sm:$0xf]  ;;  %v2292_v9 = vld [vmem:[%s3522_s20 + $0x74] sm:$0xf] }
 0x19a   : >> { %2289 = vst [vmem:[%s3518_s15 + $0x6c] sm:$0xf] %v2288_v44  ;;  %2291 = vst [vmem:[%s3518_s15 + $0x70] sm:$0xf] %v2290_v45  ;;  %v2294_v46 = vld [vmem:[%s3522_s20 + $0x78] sm:$0xf] }
 0x19b   : >> { %2293 = vst [vmem:[%s3518_s15 + $0x74] sm:$0xf] %v2292_v9  ;;  %v2296_v47 = vld [vmem:[%s3522_s20 + $0x7c] sm:$0xf]  ;;  %v2298_v48 = vld [vmem:[%s3522_s20 + $0x80] sm:$0xf] }
 0x19c   : >> { %2295 = vst [vmem:[%s3518_s15 + $0x78] sm:$0xf] %v2294_v46  ;;  %2297 = vst [vmem:[%s3518_s15 + $0x7c] sm:$0xf] %v2296_v47  ;;  %v2300_v50 = vld [vmem:[%s3522_s20 + $0x84] sm:$0xf] }
 0x19d   : >> { %2299 = vst [vmem:[%s3518_s15 + $0x80] sm:$0xf] %v2298_v48  ;;  %v2302_v51 = vld [vmem:[%s3522_s20 + $0x88] sm:$0xf]  ;;  %v2304_v52 = vld [vmem:[%s3522_s20 + $0x8c] sm:$0xf] }
 0x19e   : >> { %2301 = vst [vmem:[%s3518_s15 + $0x84] sm:$0xf] %v2300_v50  ;;  %2303 = vst [vmem:[%s3518_s15 + $0x88] sm:$0xf] %v2302_v51  ;;  %v2306_v53 = vld [vmem:[%s3522_s20 + $0x90] sm:$0xf] }
 0x19f   : >> { %2305 = vst [vmem:[%s3518_s15 + $0x8c] sm:$0xf] %v2304_v52  ;;  %v2308_v54 = vld [vmem:[%s3522_s20 + $0x94] sm:$0xf]  ;;  %v2310_v55 = vld [vmem:[%s3522_s20 + $0x98] sm:$0xf] }
 0x1a0   : >> { %2307 = vst [vmem:[%s3518_s15 + $0x90] sm:$0xf] %v2306_v53  ;;  %2309 = vst [vmem:[%s3518_s15 + $0x94] sm:$0xf] %v2308_v54  ;;  %v2312_v56 = vld [vmem:[%s3522_s20 + $0x9c] sm:$0xf] }
 0x1a1   : >> { %2311 = vst [vmem:[%s3518_s15 + $0x98] sm:$0xf] %v2310_v55  ;;  %v2314_v57 = vld [vmem:[%s3522_s20 + $0xa0] sm:$0xf]  ;;  %v2316_v58 = vld [vmem:[%s3522_s20 + $0xa4] sm:$0xf] }
 0x1a2   : >> { %2313 = vst [vmem:[%s3518_s15 + $0x9c] sm:$0xf] %v2312_v56  ;;  %2315 = vst [vmem:[%s3518_s15 + $0xa0] sm:$0xf] %v2314_v57  ;;  %v2318_v59 = vld [vmem:[%s3522_s20 + $0xa8] sm:$0xf] }
 0x1a3   : >> { %2317 = vst [vmem:[%s3518_s15 + $0xa4] sm:$0xf] %v2316_v58  ;;  %v2320_v60 = vld [vmem:[%s3522_s20 + $0xac] sm:$0xf]  ;;  %v2322_v61 = vld [vmem:[%s3522_s20 + $0xb0] sm:$0xf] }
 0x1a4   : >> { %2319 = vst [vmem:[%s3518_s15 + $0xa8] sm:$0xf] %v2318_v59  ;;  %2321 = vst [vmem:[%s3518_s15 + $0xac] sm:$0xf] %v2320_v60  ;;  %v2324_v62 = vld [vmem:[%s3522_s20 + $0xb4] sm:$0xf] }
 0x1a5   : >> { %2323 = vst [vmem:[%s3518_s15 + $0xb0] sm:$0xf] %v2322_v61  ;;  %v2326_v63 = vld [vmem:[%s3522_s20 + $0xb8] sm:$0xf]  ;;  %v2328_v0 = vld [vmem:[%s3522_s20 + $0xbc] sm:$0xf] }
 0x1a6   : >> { %2325 = vst [vmem:[%s3518_s15 + $0xb4] sm:$0xf] %v2324_v62  ;;  %2327 = vst [vmem:[%s3518_s15 + $0xb8] sm:$0xf] %v2326_v63  ;;  %v2330_v1 = vld [vmem:[%s3522_s20 + $0xc0] sm:$0xf] }
 0x1a7   : >> { %2329 = vst [vmem:[%s3518_s15 + $0xbc] sm:$0xf] %v2328_v0  ;;  %v2332_v2 = vld [vmem:[%s3522_s20 + $0xc4] sm:$0xf]  ;;  %v2334_v3 = vld [vmem:[%s3522_s20 + $0xc8] sm:$0xf] }
 0x1a8   : >> { %2331 = vst [vmem:[%s3518_s15 + $0xc0] sm:$0xf] %v2330_v1  ;;  %2333 = vst [vmem:[%s3518_s15 + $0xc4] sm:$0xf] %v2332_v2  ;;  %v2336_v4 = vld [vmem:[%s3522_s20 + $0xcc] sm:$0xf] }
 0x1a9   : >> { %2335 = vst [vmem:[%s3518_s15 + $0xc8] sm:$0xf] %v2334_v3  ;;  %v2338_v5 = vld [vmem:[%s3522_s20 + $0xd0] sm:$0xf]  ;;  %v2340_v6 = vld [vmem:[%s3522_s20 + $0xd4] sm:$0xf] }
 0x1aa   : >> { %2337 = vst [vmem:[%s3518_s15 + $0xcc] sm:$0xf] %v2336_v4  ;;  %2339 = vst [vmem:[%s3518_s15 + $0xd0] sm:$0xf] %v2338_v5  ;;  %v2342_v7 = vld [vmem:[%s3522_s20 + $0xd8] sm:$0xf] }
 0x1ab   : >> { %2341 = vst [vmem:[%s3518_s15 + $0xd4] sm:$0xf] %v2340_v6  ;;  %v2344_v8 = vld [vmem:[%s3522_s20 + $0xdc] sm:$0xf]  ;;  %v2346_v10 = vld [vmem:[%s3522_s20 + $0xe0] sm:$0xf] }
 0x1ac   : >> { %2343 = vst [vmem:[%s3518_s15 + $0xd8] sm:$0xf] %v2342_v7  ;;  %2345 = vst [vmem:[%s3518_s15 + $0xdc] sm:$0xf] %v2344_v8  ;;  %v2348_v11 = vld [vmem:[%s3522_s20 + $0xe4] sm:$0xf] }
 0x1ad   : >> { %2347 = vst [vmem:[%s3518_s15 + $0xe0] sm:$0xf] %v2346_v10  ;;  %v2350_v12 = vld [vmem:[%s3522_s20 + $0xe8] sm:$0xf]  ;;  %v2352_v13 = vld [vmem:[%s3522_s20 + $0xec] sm:$0xf] }
 0x1ae   : >> { %2349 = vst [vmem:[%s3518_s15 + $0xe4] sm:$0xf] %v2348_v11  ;;  %2351 = vst [vmem:[%s3518_s15 + $0xe8] sm:$0xf] %v2350_v12  ;;  %v2354_v14 = vld [vmem:[%s3522_s20 + $0xf0] sm:$0xf] }
 0x1af   : >> { %2353 = vst [vmem:[%s3518_s15 + $0xec] sm:$0xf] %v2352_v13  ;;  %v2356_v15 = vld [vmem:[%s3522_s20 + $0xf4] sm:$0xf]  ;;  %v2358_v49 = vld [vmem:[%s3522_s20 + $0xf8] sm:$0xf] }
 0x1b0   : >> { %2355 = vst [vmem:[%s3518_s15 + $0xf0] sm:$0xf] %v2354_v14  ;;  %2357 = vst [vmem:[%s3518_s15 + $0xf4] sm:$0xf] %v2356_v15  ;;  %v2360_v16 = vld [vmem:[%s3522_s20 + $0xfc] sm:$0xf] }
 0x1b1   : >> { %2359 = vst [vmem:[%s3518_s15 + $0xf8] sm:$0xf] %v2358_v49  ;;  %2361 = vst [vmem:[%s3518_s15 + $0xfc] sm:$0xf] %v2360_v16  ;;  %s4361_s4 = smov (%p2363_p11, %s2362_s4), 0  ;;  %s2228_s30 = sadd.s32 1, %s3530_s30  }
 0x1b2   : >> { %s2943_s5 = sshll.u32 %s4361_s4, 8  ;;  %p2227_p12 = scmp.ge.s32.totalorder %s2228_s30, %s4161_s29 }
 0x1b3   : >> { %s2367_s20 = scalar_lea.vmem %s3765_s12, %s2943_s5 [#allocation2]   ;;  %s2368_s15 = scalar_lea.vmem %s4155_s26, %s2943_s5  }
 0x1b4   : >> { %s4354_s27 = smov %s4361_s4  ;;  %2230 = sbr.rel (!%p2227_p12) target bundleno = 391 (0x187), region = 118 }
 0x1bb PF: > { %s4329_s6 = sand.u32 63, %s4359_s22   ;;  %s3082_s7 = sshll.u32 %s4161_s29, 8 }
 0x1bc   : > { %s2373_s8 = scalar_lea.vmem %s3765_s12, %s3082_s7 [#allocation2]   ;;  %s2375_s9 = scalar_lea.vmem %s4155_s26, %s3082_s7  }
 0x1bd   : > { %p2948_p13 = scmp.le.s32.totalorder %s4329_s6, 0 }
 0x1be   : > { %s3532_s10 = smov (!%p2948_p13), %s2375_s9   ;;  %s3536_s11 = smov (!%p2948_p13), %s2373_s8  }
 0x1bf   : > { %2637 = sbr.rel (%p2948_p13) target bundleno = 464 (0x1d0), region = 123  ;;  %s3540_s14 = smov (!%p2948_p13), 0  }
 0x1c0   : > { %s3544_s17 = smov (!%p2948_p13), 0  }
 0x1c6 LB: >> { %v2385_v17 = vld [vmem:[%s3538_s11] sm:$0xf]  ;;  %s2387_s18 = sadd.s32 1, %s3542_s14  ;;  %s2379_s17 = sadd.s32 1, %s3546_s17   ;;  %s3546_s17 = sphi %s3544_s17, %s2379_s17   ;;  %s3542_s14 = sphi %s3540_s14, %s3541_s14   ;;  %s3538_s11 = sphi %s3536_s11, %s2392_s11   ;;  %s3534_s10 = sphi %s3532_s10, %s2393_s10  }
 0x1c7   : >> { %2386 = vst [vmem:[%s3534_s10] sm:$0xf] %v2385_v17  ;;  %p2388_p0 = scmp.ge.s32.totalorder %s2387_s18, %s4329_s6  ;;  %p2378_p1 = scmp.ge.s32.totalorder %s2379_s17, %s4329_s6 }
 0x1c9   : >> { %s4363_s18 = smov (%p2388_p0, %s2387_s18), 0  ;;  %2381 = sbr.rel (!%p2378_p1) target bundleno = 454 (0x1c6), region = 129 }
 0x1ca   : >> { %s2949_s12 = sshll.u32 %s4363_s18, 2  ;;  %s3541_s14 = smov %s4363_s18  }
 0x1cb   : >> { %s2392_s11 = scalar_lea.vmem %s2373_s8, %s2949_s12 [#allocation2]   ;;  %s2393_s10 = scalar_lea.vmem %s2375_s9, %s2949_s12  }
 0x1d0 PF: > { %p10_p2 = scmp.ge.s32.totalorder %s3584_s16, 8   ;;  %s4355_s12 = smov %s3510_s13 }
 0x1d1   : > { %s4356_s13 = smov %s3592_s19  ;;  %s4357_s14 = smov %s3584_s16 }
 0x1d2   :  { %12 = sbr.rel (!%p10_p2) target bundleno = 2 (0x2), region = 140 }

// kernel: pilotnet_forward.5
= control target key start
LH: loop header
LB: loop body
LE: loop exit
PB: predicated region body
PF: predicated region fallthrough
CT: control target
= control target key end

     0   :  { %s7483_s12 = smov 0   ;;  %s7485_s13 = smov 0   ;;  %s9314_s0 = inlined_call_operand.vmem [shape: bf16[1316,600], index: 0, kind: input, shape index: {}]   ;;  %s9315_s1 = inlined_call_operand.vmem [shape: bf16[600,36], index: 1, kind: input, shape index: {}]   ;;  %s9316_s2 = inlined_call_operand.vmem [shape: f32[1,36], index: 2, kind: input, shape index: {}]   ;;  %s9317_s3 = inlined_call_operand.vmem [shape: bf16[1316,36], index: 3, kind: output, shape index: {}]  }
   0x1   :  { %s7487_s14 = smov 0  }
   0x2 LB: > { %s7496_s15 = sadd.s32 4294967295, %s7428_s14   ;;  %s7498_s16 = sadd.s32 1, %s7428_s14   ;;  %s7428_s14 = sphi %s7487_s14, %s9492_s14   ;;  %s7424_s13 = sphi %s7485_s13, %s9491_s13   ;;  %s7420_s12 = sphi %s7483_s12, %s9490_s12  }
   0x3   : > { %s85_s17 = ssub.s32 %s7428_s14, %s7498_s16  ;;  %s88_s18 = sadd.s32 1, %s7424_s13 }
   0x4   : > { %p86_p0 = scmp.eq.s32.totalorder %s85_s17, 0  ;;  %p98_p1 = scmp.ne.s32.totalorder %s7424_s13, %s7420_s12 }
   0x5   : > { %p99_p2 = scmp.eq.s32.totalorder %s7496_s15, 1  ;;  %p5562_p3 = scmp.ge.s32.totalorder %s7428_s14, 1 }
   0x6   : > { %s7506_s19 = scalar_select %p86_p0, %s7424_s13, %s88_s18  }
   0x7   : > { %p7508_p4 = por %p99_p2, %p98_p1  ;;  %p149_p5 = scmp.lt.s32.totalorder %s7428_s14, 3 }
   0x9   : > { %p150_p6 = pnand %p5562_p3, %p149_p5 }
   0xb   : > { %153 = sbr.rel (%p150_p6) target bundleno = 1029 (0x405), region = 32 }
  0x12   : > { %v6886_v0 = vld [vmem:[%s9315_s1] sm:$0xff]   ;;  %v7462_v1 = vmov 0   ;;  %s7518_s23 = sshll.u32 %s7496_s15, 7  ;;  %v6887_v2 = vld [vmem:[%s9315_s1 + $0x8] sm:$0xff]   ;;  %v6888_v3 = vld [vmem:[%s9315_s1 + $0x10] sm:$0xff]   ;;  %vm2685_vm0 = vcmask 1043456  }
  0x13   : > { %2689 = vmatprep.subr.bf16.mxu0 %v7462_v1  ;;  %6475 = vmatprep.subr.bf16.mxu1 %v7462_v1  ;;  %p184_p7 = scmp.lt.s32.totalorder %s7518_s23, 164  ;;  %v6889_v4 = vld [vmem:[%s9315_s1 + $0x18] sm:$0xff]   ;;  %v6890_v5 = vld [vmem:[%s9315_s1 + $0x20] sm:$0xff]   ;;  %v6891_v7 = vld [vmem:[%s9315_s1 + $0x28] sm:$0xff]   ;;  %vm2492_vm1 = vcmask 719872   ;;  %vm4964_vm2 = vcmask 289792  }
  0x14   : > { %2690 = vmatpush1.bf16.msra.mxu0 %v6886_v0  ;;  %6491 = vmatpush1.bf16.msra.mxu1 %v6886_v0  ;;  %v6892_v9 = vld [vmem:[%s9315_s1 + $0x30] sm:$0xff]   ;;  %v6893_v10 = vld [vmem:[%s9315_s1 + $0x38] sm:$0xff]   ;;  %v6894_v11 = vld [vmem:[%s9315_s1 + $0x40] sm:$0xff]   ;;  %s5101_s6 = ssub.s32 (%p7508_p4), 165, %s7518_s23  ;;  %s6262_s7 = sshll.u32 (%p7508_p4), %s7496_s15, 9 }
  0x15   : > { %2691 = vmatprep.subr.bf16.mxu0 %v7462_v1  ;;  %6476 = vmatprep.subr.bf16.mxu1 %v7462_v1  ;;  %s185_s28 = scalar_select %p184_p7, %s7518_s23, 164  ;;  %v6895_v12 = vld [vmem:[%s9315_s1 + $0x48] sm:$0xff]   ;;  %v6896_v13 = vld [vmem:[%s9315_s1 + $0x50] sm:$0xff]   ;;  %v6897_v14 = vld [vmem:[%s9315_s1 + $0x58] sm:$0xff]  }
  0x16   : > { %v6898_v15 = vld [vmem:[%s9315_s1 + $0x60] sm:$0xff]   ;;  %v6899_v16 = vld [vmem:[%s9315_s1 + $0x68] sm:$0xff]   ;;  %v6900_v17 = vld [vmem:[%s9315_s1 + $0x70] sm:$0xff]   ;;  %p5102_p8 = scmp.lt.s32.totalorder (%p7508_p4), %s5101_s6, 128  ;;  %s9122_s11 = scalar_lea.vmem (%p7508_p4), %s9317_s3, %s6262_s7  }
  0x17   : > { %s6796_s4 = smul.u32 20, %s185_s28  ;;  %v6901_v18 = vld [vmem:[%s9315_s1 + $0x78] sm:$0xff]   ;;  %v6909_v19 = vld [vmem:[%s9315_s1 + $0x100] sm:$0xff]   ;;  %v6966_v25 = vld [vmem:[%s9315_s1 + $0x108] sm:$0xff]   ;;  %s175_s28 = sand.u32 1, %s7420_s12  }
  0x18   : > { %2692 = vmatpush1.bf16.msra.mxu0 %v6887_v2  ;;  %6492 = vmatpush1.bf16.msra.mxu1 %v6887_v2  ;;  %v6908_v22 = vld [vmem:[%s9315_s1 + $0x80] sm:$0xff]   ;;  %v6916_v26 = vld [vmem:[%s9315_s1 + $0x88] sm:$0xff]   ;;  %v6923_v31 = vld [vmem:[%s9315_s1 + $0x90] sm:$0xff]   ;;  %s8437_s29 = sshll.u32 %s175_s28, 9 }
  0x19   : > { %2693 = vmatprep.subr.bf16.mxu0 %v7462_v1  ;;  %6477 = vmatprep.subr.bf16.mxu1 %v7462_v1  ;;  %s7543_s9 = scalar_lea.vmem %s9314_s0, %s6796_s4  ;;  %v6930_v32 = vld [vmem:[%s9315_s1 + $0x98] sm:$0xff]   ;;  %v6937_v37 = vld [vmem:[%s9315_s1 + $0xa0] sm:$0xff]   ;;  %v7022_v38 = vld [vmem:[%s9315_s1 + $0x110] sm:$0xff]   ;;  %s8460_s12 = scalar_lea.vmem [#allocation2], %s8437_s29  }
  0x1a   : > { %v6904_v6 = vld [vmem:[%s7543_s9 + $0x4] ss:$20 sps:$4 sm:$0xff]   ;;  %v6902_v20 = vld [vmem:[%s7543_s9] ss:$20 sps:$4 sm:$0xff]   ;;  %v6914_v27 = vld [vmem:[%s7543_s9 + $0x28] ss:$20 sps:$4 sm:$0xff]  }
  0x1b   : > { %v6907_v8 = vld [vmem:[%s7543_s9 + $0x284] ss:$20 sps:$4 sm:$0xff]   ;;  %2721 = vmatprep.mubr.bf16.mxu0 %v6904_v6  ;;  %v6905_v21 = vld [vmem:[%s7543_s9 + $0x280] ss:$20 sps:$4 sm:$0xff]   ;;  %v6915_v28 = vld [vmem:[%s7543_s9 + $0x2a8] ss:$20 sps:$4 sm:$0xff]  }
  0x1c   : > { %2694 = vmatpush1.bf16.msra.mxu0 %v6888_v3  ;;  %6493 = vmatpush1.bf16.msra.mxu1 %v6888_v3  ;;  %v6910_v23 = vld [vmem:[%s7543_s9 + $0x2c] ss:$20 sps:$4 sm:$0xff]   ;;  %v6917_v29 = vld [vmem:[%s7543_s9 + $0x54] ss:$20 sps:$4 sm:$0xff]   ;;  %v6921_v33 = vld [vmem:[%s7543_s9 + $0x50] ss:$20 sps:$4 sm:$0xff]  }
  0x1d   : > { %2695 = vmatprep.subr.bf16.mxu0 %v7462_v1  ;;  %6478 = vmatprep.subr.bf16.mxu1 %v7462_v1  ;;  %v6912_v24 = vld [vmem:[%s7543_s9 + $0x2ac] ss:$20 sps:$4 sm:$0xff]   ;;  %v6919_v30 = vld [vmem:[%s7543_s9 + $0x2d4] ss:$20 sps:$4 sm:$0xff]   ;;  %v6922_v34 = vld [vmem:[%s7543_s9 + $0x2d0] ss:$20 sps:$4 sm:$0xff]  }
  0x1e   : > { %2849 = vmatprep.mubr.bf16.mxu1 %v6907_v8  ;;  %v6924_v35 = vld [vmem:[%s7543_s9 + $0x7c] ss:$20 sps:$4 sm:$0xff]   ;;  %v6944_v39 = vld [vmem:[%s9315_s1 + $0xa8] sm:$0xff]   ;;  %v6931_v42 = vld [vmem:[%s7543_s9 + $0xa4] ss:$20 sps:$4 sm:$0xff]  }
  0x1f   : > { %v6926_v36 = vld [vmem:[%s7543_s9 + $0x2fc] ss:$20 sps:$4 sm:$0xff]   ;;  %v6928_v40 = vld [vmem:[%s7543_s9 + $0x78] ss:$20 sps:$4 sm:$0xff]   ;;  %v6935_v46 = vld [vmem:[%s7543_s9 + $0xa0] ss:$20 sps:$4 sm:$0xff]  }
  0x20   : > { %2696 = vmatpush1.bf16.msra.mxu0 %v6889_v4  ;;  %6494 = vmatpush1.bf16.msra.mxu1 %v6889_v4  ;;  %v6929_v41 = vld [vmem:[%s7543_s9 + $0x2f8] ss:$20 sps:$4 sm:$0xff]   ;;  %v6951_v44 = vld [vmem:[%s9315_s1 + $0xb0] sm:$0xff]   ;;  %v6965_v50 = vld [vmem:[%s9315_s1 + $0xc0] sm:$0xff]  }
  0x21   : > { %2697 = vmatprep.subr.bf16.mxu0 %v7462_v1  ;;  %6479 = vmatprep.subr.bf16.mxu1 %v7462_v1  ;;  %v6933_v43 = vld [vmem:[%s7543_s9 + $0x324] ss:$20 sps:$4 sm:$0xff]   ;;  %v6936_v47 = vld [vmem:[%s7543_s9 + $0x320] ss:$20 sps:$4 sm:$0xff]   ;;  %v6973_v51 = vld [vmem:[%s9315_s1 + $0xc8] sm:$0xff]  }
  0x22   : > { %v6958_v45 = vld [vmem:[%s9315_s1 + $0xb8] sm:$0xff]   ;;  %v6938_v48 = vld [vmem:[%s7543_s9 + $0xcc] ss:$20 sps:$4 sm:$0xff]   ;;  %v6945_v54 = vld [vmem:[%s7543_s9 + $0xf4] ss:$20 sps:$4 sm:$0xff]  }
  0x23   : > { %v6940_v49 = vld [vmem:[%s7543_s9 + $0x34c] ss:$20 sps:$4 sm:$0xff]   ;;  %v6942_v52 = vld [vmem:[%s7543_s9 + $0xc8] ss:$20 sps:$4 sm:$0xff]   ;;  %v6980_v56 = vld [vmem:[%s9315_s1 + $0xd0] sm:$0xff]  }
  0x24   : > { %2698 = vmatpush1.bf16.msra.mxu0 %v6890_v5  ;;  %6495 = vmatpush1.bf16.msra.mxu1 %v6890_v5  ;;  %v6943_v53 = vld [vmem:[%s7543_s9 + $0x348] ss:$20 sps:$4 sm:$0xff]   ;;  %v6949_v58 = vld [vmem:[%s7543_s9 + $0xf0] ss:$20 sps:$4 sm:$0xff]   ;;  %v6956_v0 = vld [vmem:[%s7543_s9 + $0x118] ss:$20 sps:$4 sm:$0xff]  }
  0x25   : > { %2699 = vmatprep.subr.bf16.mxu0 %v7462_v1  ;;  %6480 = vmatprep.subr.bf16.mxu1 %v7462_v1  ;;  %v6947_v55 = vld [vmem:[%s7543_s9 + $0x374] ss:$20 sps:$4 sm:$0xff]   ;;  %v6987_v57 = vld [vmem:[%s9315_s1 + $0xd8] sm:$0xff]   ;;  %v6950_v59 = vld [vmem:[%s7543_s9 + $0x370] ss:$20 sps:$4 sm:$0xff]  }
  0x26   : > { %v6952_v60 = vld [vmem:[%s7543_s9 + $0x11c] ss:$20 sps:$4 sm:$0xff]   ;;  %v6994_v62 = vld [vmem:[%s9315_s1 + $0xe0] sm:$0xff]   ;;  %v7001_v63 = vld [vmem:[%s9315_s1 + $0xe8] sm:$0xff]  }
  0x27   : > { %v6954_v61 = vld [vmem:[%s7543_s9 + $0x39c] ss:$20 sps:$4 sm:$0xff]   ;;  %v6957_v2 = vld [vmem:[%s7543_s9 + $0x398] ss:$20 sps:$4 sm:$0xff]   ;;  %v6964_v8 = vld [vmem:[%s7543_s9 + $0x3c0] ss:$20 sps:$4 sm:$0xff]  }
  0x28   : > { %2700 = vmatpush1.bf16.msra.mxu0 %v6891_v7  ;;  %6496 = vmatpush1.bf16.msra.mxu1 %v6891_v7  ;;  %v6959_v3 = vld [vmem:[%s7543_s9 + $0x144] ss:$20 sps:$4 sm:$0xff]   ;;  %v7008_v5 = vld [vmem:[%s9315_s1 + $0xf0] sm:$0xff]  }
  0x29   : > { %2701 = vmatprep.subr.bf16.mxu0 %v7462_v1  ;;  %6481 = vmatprep.subr.bf16.mxu1 %v7462_v1  ;;  %v6961_v4 = vld [vmem:[%s7543_s9 + $0x3c4] ss:$20 sps:$4 sm:$0xff]   ;;  %v6963_v7 = vld [vmem:[%s7543_s9 + $0x140] ss:$20 sps:$4 sm:$0xff]  }
  0x2a   : > { %v7015_v6 = vld [vmem:[%s9315_s1 + $0xf8] sm:$0xff]  }
  0x2c   : > { %2702 = vmatpush1.bf16.msra.mxu0 %v6892_v9  ;;  %6497 = vmatpush1.bf16.msra.mxu1 %v6892_v9  ;;  %v6967_v9 = vld [vmem:[%s7543_s9 + $0x16c] ss:$20 sps:$4 sm:$0xff]  }
  0x2d   : > { %2703 = vmatprep.subr.bf16.mxu0 %v7462_v1  ;;  %6482 = vmatprep.subr.bf16.mxu1 %v7462_v1 }
  0x30   : > { %2704 = vmatpush1.bf16.msra.mxu0 %v6893_v10  ;;  %6498 = vmatpush1.bf16.msra.mxu1 %v6893_v10  ;;  %v6969_v10 = vld [vmem:[%s7543_s9 + $0x3ec] ss:$20 sps:$4 sm:$0xff]  }
  0x31   : > { %2705 = vmatprep.subr.bf16.mxu0 %v7462_v1  ;;  %6483 = vmatprep.subr.bf16.mxu1 %v7462_v1 }
  0x34   : > { %2706 = vmatpush1.bf16.msra.mxu0 %v6894_v11  ;;  %6499 = vmatpush1.bf16.msra.mxu1 %v6894_v11  ;;  %v7071_v11 = vld [vmem:[%s9315_s1 + $0x118] sm:$0xff]  }
  0x35   : > { %2707 = vmatprep.subr.bf16.mxu0 %v7462_v1  ;;  %6484 = vmatprep.subr.bf16.mxu1 %v7462_v1 }
  0x38   : > { %2708 = vmatpush1.bf16.msra.mxu0 %v6895_v12  ;;  %6500 = vmatpush1.bf16.msra.mxu1 %v6895_v12  ;;  %v6971_v12 = vld [vmem:[%s7543_s9 + $0x168] ss:$20 sps:$4 sm:$0xff]  }
  0x39   : > { %2709 = vmatprep.subr.bf16.mxu0 %v7462_v1  ;;  %6485 = vmatprep.subr.bf16.mxu1 %v7462_v1 }
  0x3c   : > { %2710 = vmatpush1.bf16.msra.mxu0 %v6896_v13  ;;  %6501 = vmatpush1.bf16.msra.mxu1 %v6896_v13  ;;  %v6972_v13 = vld [vmem:[%s7543_s9 + $0x3e8] ss:$20 sps:$4 sm:$0xff]  }
  0x3d   : > { %2711 = vmatprep.subr.bf16.mxu0 %v7462_v1  ;;  %6486 = vmatprep.subr.bf16.mxu1 %v7462_v1 }
  0x40   : > { %2712 = vmatpush1.bf16.msra.mxu0 %v6897_v14  ;;  %6502 = vmatpush1.bf16.msra.mxu1 %v6897_v14  ;;  %v6974_v14 = vld [vmem:[%s7543_s9 + $0x194] ss:$20 sps:$4 sm:$0xff]  }
  0x41   : > { %2713 = vmatprep.subr.bf16.mxu0 %v7462_v1  ;;  %6487 = vmatprep.subr.bf16.mxu1 %v7462_v1 }
  0x44   : > { %2714 = vmatpush1.bf16.msra.mxu0 %v6898_v15  ;;  %6503 = vmatpush1.bf16.msra.mxu1 %v6898_v15  ;;  %v6978_v15 = vld [vmem:[%s7543_s9 + $0x190] ss:$20 sps:$4 sm:$0xff]  }
  0x45   : > { %2715 = vmatprep.subr.bf16.mxu0 %v7462_v1  ;;  %6488 = vmatprep.subr.bf16.mxu1 %v7462_v1 }
  0x48   : > { %2716 = vmatpush1.bf16.msra.mxu0 %v6899_v16  ;;  %6504 = vmatpush1.bf16.msra.mxu1 %v6899_v16  ;;  %v6979_v16 = vld [vmem:[%s7543_s9 + $0x410] ss:$20 sps:$4 sm:$0xff]  }
  0x49   : > { %2717 = vmatprep.subr.bf16.mxu0 %v7462_v1  ;;  %6489 = vmatprep.subr.bf16.mxu1 %v7462_v1 }
  0x4c   : > { %2718 = vmatpush1.bf16.msra.mxu0 %v6900_v17  ;;  %6505 = vmatpush1.bf16.msra.mxu1 %v6900_v17  ;;  %v6981_v17 = vld [vmem:[%s7543_s9 + $0x1bc] ss:$20 sps:$4 sm:$0xff]  }
  0x4d   : > { %2719 = vmatprep.subr.bf16.mxu0 %v7462_v1  ;;  %6490 = vmatprep.subr.bf16.mxu1 %v7462_v1 }
  0x50   : > { %2720 = vmatpush1.bf16.msra.mxu0 %v6901_v18  ;;  %6506 = vmatpush1.bf16.msra.mxu1 %v6901_v18  ;;  %v6983_v18 = vld [vmem:[%s7543_s9 + $0x43c] ss:$20 sps:$4 sm:$0xff]  }
  0x51   : > { %3234 = vmatprep.subr.bf16.mxu0 %v7462_v1  ;;  %6335 = vmatprep.subr.bf16.mxu1 %v6909_v19 }
  0x53   : > { %2722 = vmatmul.mubr.bf16.vlgmr.msra.gmra.mrb[0].mxu0 %v6902_v20  ;;  %2850 = vmatmul.mubr.bf16.vlgmr.msra.gmra.mrb[0].mxu1 %v6905_v21  ;;  %v6986_v20 = vld [vmem:[%s7543_s9 + $0x438] ss:$20 sps:$4 sm:$0xff]  }
  0x54   : > { %3235 = vmatpush1.bf16.msra.mxu0 %v6908_v22  ;;  %6336 = vmatpush3.bf16.msra.mxu1 %v6909_v19  ;;  %v6985_v19 = vld [vmem:[%s7543_s9 + $0x1b8] ss:$20 sps:$4 sm:$0xff]  }
  0x55   : > { %2729 = vmatprep.mubr.bf16.mxu0 %v6910_v23  ;;  %2857 = vmatprep.mubr.bf16.mxu1 %v6912_v24  ;;  %v6988_v21 = vld [vmem:[%s7543_s9 + $0x1e4] ss:$20 sps:$4 sm:$0xff]   ;;  %v6992_v23 = vld [vmem:[%s7543_s9 + $0x1e0] ss:$20 sps:$4 sm:$0xff]  }
  0x56   : > { %3236 = vmatprep.subr.bf16.mxu0 %v7462_v1  ;;  %6337 = vmatprep.subr.bf16.mxu1 %v6966_v25  ;;  %v6990_v22 = vld [vmem:[%s7543_s9 + $0x464] ss:$20 sps:$4 sm:$0xff]   ;;  %v6993_v24 = vld [vmem:[%s7543_s9 + $0x460] ss:$20 sps:$4 sm:$0xff]  }
  0x58   : > { %3237 = vmatpush1.bf16.msra.mxu0 %v6916_v26  ;;  %6338 = vmatpush3.bf16.msra.mxu1 %v6966_v25  ;;  %v6995_v25 = vld [vmem:[%s7543_s9 + $0x20c] ss:$20 sps:$4 sm:$0xff]  }
  0x59   : > { %3238 = vmatprep.subr.bf16.mxu0 %v7462_v1  ;;  %6339 = vmatprep.subr.bf16.mxu1 %v7022_v38  ;;  %v6997_v26 = vld [vmem:[%s7543_s9 + $0x48c] ss:$20 sps:$4 sm:$0xff]  }
  0x5b   : > { %2730 = vmatmul.mubr.bf16.gmra.mrb[4].mxu0 %v6914_v27  ;;  %2858 = vmatmul.mubr.bf16.gmra.mrb[4].mxu1 %v6915_v28  ;;  %v6999_v27 = vld [vmem:[%s7543_s9 + $0x208] ss:$20 sps:$4 sm:$0xff]  }
  0x5c   : > { %2737 = vmatprep.mubr.bf16.mxu0 %v6917_v29  ;;  %2865 = vmatprep.mubr.bf16.mxu1 %v6919_v30  ;;  %v7000_v28 = vld [vmem:[%s7543_s9 + $0x488] ss:$20 sps:$4 sm:$0xff]  }
  0x5d   : > { %3239 = vmatpush1.bf16.msra.mxu0 %v6923_v31  ;;  %6340 = vmatpush3.bf16.msra.mxu1 %v7022_v38  ;;  %v7002_v29 = vld [vmem:[%s7543_s9 + $0x234] ss:$20 sps:$4 sm:$0xff]   ;;  %v7006_v31 = vld [vmem:[%s7543_s9 + $0x230] ss:$20 sps:$4 sm:$0xff]   ;;  %v7020_v38 = vld [vmem:[%s7543_s9 + $0xc] ss:$20 sps:$4 sm:$0xff]  }
  0x5e   : > { %3240 = vmatprep.subr.bf16.mxu0 %v7462_v1  ;;  %6341 = vmatprep.subr.bf16.mxu1 %v7071_v11  ;;  %v7004_v30 = vld [vmem:[%s7543_s9 + $0x4b4] ss:$20 sps:$4 sm:$0xff]  }
  0x61   : > { %3241 = vmatpush1.bf16.msra.mxu0 %v6930_v32  ;;  %6342 = vmatpush3.bf16.msra.mxu1 %v7071_v11  ;;  %v7007_v32 = vld [vmem:[%s7543_s9 + $0x4b0] ss:$20 sps:$4 sm:$0xff]   ;;  %v7072_v11 = vld [vmem:[%s7543_s9 + $0x66c] ss:$20 sps:$4 sm:$0xff]  }
  0x62   : > { %3242 = vmatprep.subr.bf16.mxu0 %v7462_v1 }
  0x63   : > { %2738 = vmatmul.mubr.bf16.gmra.mrb[8].mxu0 %v6921_v33  ;;  %2866 = vmatmul.mubr.bf16.gmra.mrb[8].mxu1 %v6922_v34  ;;  %v7009_v33 = vld [vmem:[%s7543_s9 + $0x25c] ss:$20 sps:$4 sm:$0xff]  }
  0x64   : > { %2745 = vmatprep.mubr.bf16.mxu0 %v6924_v35  ;;  %2873 = vmatprep.mubr.bf16.mxu1 %v6926_v36  ;;  %v7011_v34 = vld [vmem:[%s7543_s9 + $0x4dc] ss:$20 sps:$4 sm:$0xff]   ;;  %v7013_v35 = vld [vmem:[%s7543_s9 + $0x258] ss:$20 sps:$4 sm:$0xff]  }
  0x65   : > { %3243 = vmatpush1.bf16.msra.mxu0 %v6937_v37  ;;  %v7014_v36 = vld [vmem:[%s7543_s9 + $0x4d8] ss:$20 sps:$4 sm:$0xff]  }
  0x66   : > { %3244 = vmatprep.subr.bf16.mxu0 %v7462_v1  ;;  %v7016_v37 = vld [vmem:[%s7543_s9 + $0x504] ss:$20 sps:$4 sm:$0xff]  }
  0x69   : > { %3245 = vmatpush1.bf16.msra.mxu0 %v6944_v39  ;;  %v7018_v39 = vld [vmem:[%s7543_s9 + $0x8] ss:$20 sps:$4 sm:$0xff]  }
  0x6a   : > { %3246 = vmatprep.subr.bf16.mxu0 %v7462_v1 }
  0x6b   : > { %2746 = vmatmul.mubr.bf16.gmra.mrb[12].mxu0 %v6928_v40  ;;  %2874 = vmatmul.mubr.bf16.gmra.mrb[12].mxu1 %v6929_v41  ;;  %v7021_v40 = vld [vmem:[%s7543_s9 + $0x500] ss:$20 sps:$4 sm:$0xff]  }
  0x6c   : > { %2753 = vmatprep.mubr.bf16.mxu0 %v6931_v42  ;;  %2881 = vmatprep.mubr.bf16.mxu1 %v6933_v43  ;;  %v7023_v41 = vld [vmem:[%s7543_s9 + $0x52c] ss:$20 sps:$4 sm:$0xff]   ;;  %v7025_v42 = vld [vmem:[%s7543_s9 + $0x34] ss:$20 sps:$4 sm:$0xff]  }
  0x6d   : > { %3247 = vmatpush1.bf16.msra.mxu0 %v6951_v44  ;;  %v7120_v43 = vld [vmem:[%s9315_s1 + $0x120] sm:$0xff]   ;;  %v7027_v44 = vld [vmem:[%s7543_s9 + $0x528] ss:$20 sps:$4 sm:$0xff]  }
  0x6e   : > { %3248 = vmatprep.subr.bf16.mxu0 %v7462_v1  ;;  %6343 = vmatprep.subr.bf16.mxu1 %v7120_v43 }
  0x6f   : > { %6344 = vmatpush3.bf16.msra.mxu1 %v7120_v43  ;;  %v7102_v43 = vld [vmem:[%s7543_s9 + $0x734] ss:$20 sps:$4 sm:$0xff]  }
  0x71   : > { %3249 = vmatpush1.bf16.msra.mxu0 %v6958_v45  ;;  %v7028_v45 = vld [vmem:[%s7543_s9 + $0x30] ss:$20 sps:$4 sm:$0xff]  }
  0x72   : > { %3250 = vmatprep.subr.bf16.mxu0 %v7462_v1 }
  0x73   : > { %2754 = vmatmul.mubr.bf16.gmra.mrb[16].mxu0 %v6935_v46  ;;  %2882 = vmatmul.mubr.bf16.gmra.mrb[16].mxu1 %v6936_v47  ;;  %v7029_v46 = vld [vmem:[%s7543_s9 + $0x554] ss:$20 sps:$4 sm:$0xff]   ;;  %v7031_v47 = vld [vmem:[%s7543_s9 + $0x5c] ss:$20 sps:$4 sm:$0xff]  }
  0x74   : > { %2761 = vmatprep.mubr.bf16.mxu0 %v6938_v48  ;;  %2889 = vmatprep.mubr.bf16.mxu1 %v6940_v49  ;;  %v7033_v48 = vld [vmem:[%s7543_s9 + $0x550] ss:$20 sps:$4 sm:$0xff]   ;;  %v7034_v49 = vld [vmem:[%s7543_s9 + $0x58] ss:$20 sps:$4 sm:$0xff]  }
  0x75   : > { %3251 = vmatpush1.bf16.msra.mxu0 %v6965_v50  ;;  %v7035_v50 = vld [vmem:[%s7543_s9 + $0x57c] ss:$20 sps:$4 sm:$0xff]  }
  0x76   : > { %3252 = vmatprep.subr.bf16.mxu0 %v7462_v1 }
  0x79   : > { %3253 = vmatpush1.bf16.msra.mxu0 %v6973_v51  ;;  %v7037_v51 = vld [vmem:[%s7543_s9 + $0x84] ss:$20 sps:$4 sm:$0xff]  }
  0x7a   : > { %3254 = vmatprep.subr.bf16.mxu0 %v7462_v1 }
  0x7b   : > { %2762 = vmatmul.mubr.bf16.gmra.mrb[20].mxu0 %v6942_v52  ;;  %2890 = vmatmul.mubr.bf16.gmra.mrb[20].mxu1 %v6943_v53  ;;  %v7039_v52 = vld [vmem:[%s7543_s9 + $0x578] ss:$20 sps:$4 sm:$0xff]   ;;  %v7040_v53 = vld [vmem:[%s7543_s9 + $0x80] ss:$20 sps:$4 sm:$0xff]  }
  0x7c   : > { %2769 = vmatprep.mubr.bf16.mxu0 %v6945_v54  ;;  %2897 = vmatprep.mubr.bf16.mxu1 %v6947_v55  ;;  %v7041_v54 = vld [vmem:[%s7543_s9 + $0x5a4] ss:$20 sps:$4 sm:$0xff]   ;;  %v7043_v55 = vld [vmem:[%s7543_s9 + $0xac] ss:$20 sps:$4 sm:$0xff]  }
  0x7d   : > { %3255 = vmatpush1.bf16.msra.mxu0 %v6980_v56  ;;  %v7045_v56 = vld [vmem:[%s7543_s9 + $0x5a0] ss:$20 sps:$4 sm:$0xff]  }
  0x7e   : > { %3256 = vmatprep.subr.bf16.mxu0 %v7462_v1 }
  0x81   : > { %3257 = vmatpush1.bf16.msra.mxu0 %v6987_v57  ;;  %v7046_v57 = vld [vmem:[%s7543_s9 + $0xa8] ss:$20 sps:$4 sm:$0xff]  }
  0x82   : > { %3258 = vmatprep.subr.bf16.mxu0 %v7462_v1 }
  0x83   : > { %2770 = vmatmul.mubr.bf16.gmra.mrb[24].mxu0 %v6949_v58  ;;  %2898 = vmatmul.mubr.bf16.gmra.mrb[24].mxu1 %v6950_v59  ;;  %v7047_v58 = vld [vmem:[%s7543_s9 + $0x5cc] ss:$20 sps:$4 sm:$0xff]   ;;  %v7049_v59 = vld [vmem:[%s7543_s9 + $0xd4] ss:$20 sps:$4 sm:$0xff]  }
  0x84   : > { %2777 = vmatprep.mubr.bf16.mxu0 %v6952_v60  ;;  %2905 = vmatprep.mubr.bf16.mxu1 %v6954_v61  ;;  %v7051_v60 = vld [vmem:[%s7543_s9 + $0x5c8] ss:$20 sps:$4 sm:$0xff]   ;;  %v7052_v61 = vld [vmem:[%s7543_s9 + $0xd0] ss:$20 sps:$4 sm:$0xff]  }
  0x85   : > { %3259 = vmatpush1.bf16.msra.mxu0 %v6994_v62  ;;  %v7053_v62 = vld [vmem:[%s7543_s9 + $0x5f4] ss:$20 sps:$4 sm:$0xff]  }
  0x86   : > { %3260 = vmatprep.subr.bf16.mxu0 %v7462_v1 }
  0x89   : > { %3261 = vmatpush1.bf16.msra.mxu0 %v7001_v63  ;;  %v7055_v63 = vld [vmem:[%s7543_s9 + $0xfc] ss:$20 sps:$4 sm:$0xff]  }
  0x8a   : > { %3262 = vmatprep.subr.bf16.mxu0 %v7462_v1 }
  0x8b   : > { %2778 = vmatmul.mubr.bf16.gmra.mrb[28].mxu0 %v6956_v0  ;;  %2906 = vmatmul.mubr.bf16.gmra.mrb[28].mxu1 %v6957_v2  ;;  %v7057_v0 = vld [vmem:[%s7543_s9 + $0x5f0] ss:$20 sps:$4 sm:$0xff]   ;;  %v7058_v2 = vld [vmem:[%s7543_s9 + $0xf8] ss:$20 sps:$4 sm:$0xff]  }
  0x8c   : > { %2785 = vmatprep.mubr.bf16.mxu0 %v6959_v3  ;;  %2913 = vmatprep.mubr.bf16.mxu1 %v6961_v4  ;;  %v7059_v3 = vld [vmem:[%s7543_s9 + $0x61c] ss:$20 sps:$4 sm:$0xff]   ;;  %v7061_v4 = vld [vmem:[%s7543_s9 + $0x124] ss:$20 sps:$4 sm:$0xff]  }
  0x8d   : > { %3263 = vmatpush1.bf16.msra.mxu0 %v7008_v5  ;;  %v7063_v5 = vld [vmem:[%s7543_s9 + $0x618] ss:$20 sps:$4 sm:$0xff]  }
  0x8e   : > { %3264 = vmatprep.subr.bf16.mxu0 %v7462_v1  ;;  %v6976_v1 = vld [vmem:[%s7543_s9 + $0x414] ss:$20 sps:$4 sm:$0xff]  }
  0x91   : > { %3265 = vmatpush1.bf16.msra.mxu0 %v7015_v6  ;;  %v7064_v6 = vld [vmem:[%s7543_s9 + $0x120] ss:$20 sps:$4 sm:$0xff]  }
  0x93   : > { %2786 = vmatmul.mubr.bf16.gmra.mrb[32].mxu0 %v6963_v7  ;;  %2914 = vmatmul.mubr.bf16.gmra.mrb[32].mxu1 %v6964_v8  ;;  %v7065_v7 = vld [vmem:[%s7543_s9 + $0x644] ss:$20 sps:$4 sm:$0xff]   ;;  %v7067_v8 = vld [vmem:[%s7543_s9 + $0x14c] ss:$20 sps:$4 sm:$0xff]  }
  0x94   : > { %2793 = vmatprep.mubr.bf16.mxu0 %v6967_v9  ;;  %2921 = vmatprep.mubr.bf16.mxu1 %v6969_v10  ;;  %v7069_v9 = vld [vmem:[%s7543_s9 + $0x640] ss:$20 sps:$4 sm:$0xff]   ;;  %v7070_v10 = vld [vmem:[%s7543_s9 + $0x148] ss:$20 sps:$4 sm:$0xff]  }
  0x9b   : > { %2794 = vmatmul.mubr.bf16.gmra.mrb[36].mxu0 %v6971_v12  ;;  %2922 = vmatmul.mubr.bf16.gmra.mrb[36].mxu1 %v6972_v13  ;;  %v7074_v12 = vld [vmem:[%s7543_s9 + $0x174] ss:$20 sps:$4 sm:$0xff]  }
  0x9c   : > { %2801 = vmatprep.mubr.bf16.mxu0 %v6974_v14  ;;  %2929 = vmatprep.mubr.bf16.mxu1 %v6976_v1  ;;  %v7169_v13 = vld [vmem:[%s9315_s1 + $0x128] ss:$0 sps:$4 sm:$0xff]  }
  0x9d   : > { %6795 = vmatprep.subr.msk.bf16.mxu1 %vm2685_vm0, %v7169_v13  ;;  %v2687_v14 = vsel %vm2685_vm0, %v7169_v13, 0  ;;  %v7076_v1 = vld [vmem:[%s7543_s9 + $0x668] ss:$20 sps:$4 sm:$0xff]  }
  0x9e   : > { %6346 = vmatpush3.bf16.msra.mxu1 %v2687_v14  ;;  %v7129_v13 = vld [vmem:[%s7543_s9 + $0x2dc] ss:$20 sps:$4 sm:$0xff]  }
  0xa3   : > { %2802 = vmatmul.mubr.bf16.gmra.mrb[40].mxu0 %v6978_v15  ;;  %2930 = vmatmul.mubr.bf16.gmra.mrb[40].mxu1 %v6979_v16  ;;  %v7077_v15 = vld [vmem:[%s7543_s9 + $0x170] ss:$20 sps:$4 sm:$0xff]   ;;  %v7078_v16 = vld [vmem:[%s7543_s9 + $0x694] ss:$20 sps:$4 sm:$0xff]  }
  0xa4   : > { %2809 = vmatprep.mubr.bf16.mxu0 %v6981_v17  ;;  %2937 = vmatprep.mubr.bf16.mxu1 %v6983_v18  ;;  %v7080_v17 = vld [vmem:[%s7543_s9 + $0x19c] ss:$20 sps:$4 sm:$0xff]  }
  0xa5   : > { %v7082_v18 = vld [vmem:[%s7543_s9 + $0x690] ss:$20 sps:$4 sm:$0xff]  }
  0xab   : > { %2810 = vmatmul.mubr.bf16.gmra.mrb[44].mxu0 %v6985_v19  ;;  %2938 = vmatmul.mubr.bf16.gmra.mrb[44].mxu1 %v6986_v20  ;;  %v7083_v19 = vld [vmem:[%s7543_s9 + $0x198] ss:$20 sps:$4 sm:$0xff]   ;;  %v7084_v20 = vld [vmem:[%s7543_s9 + $0x6bc] ss:$20 sps:$4 sm:$0xff]  }
  0xac   : > { %2817 = vmatprep.mubr.bf16.mxu0 %v6988_v21  ;;  %2945 = vmatprep.mubr.bf16.mxu1 %v6990_v22  ;;  %v7086_v21 = vld [vmem:[%s7543_s9 + $0x1c4] ss:$20 sps:$4 sm:$0xff]  }
  0xb3   : > { %2818 = vmatmul.mubr.bf16.gmra.mrb[48].mxu0 %v6992_v23  ;;  %2946 = vmatmul.mubr.bf16.gmra.mrb[48].mxu1 %v6993_v24  ;;  %v7088_v24 = vld [vmem:[%s7543_s9 + $0x6b8] ss:$20 sps:$4 sm:$0xff]  }
  0xb4   : > { %2825 = vmatprep.mubr.bf16.mxu0 %v6995_v25  ;;  %2953 = vmatprep.mubr.bf16.mxu1 %v6997_v26  ;;  %v7089_v25 = vld [vmem:[%s7543_s9 + $0x1c0] ss:$20 sps:$4 sm:$0xff]  }
  0xbb   : > { %2826 = vmatmul.mubr.bf16.gmra.mrb[52].mxu0 %v6999_v27  ;;  %2954 = vmatmul.mubr.bf16.gmra.mrb[52].mxu1 %v7000_v28  ;;  %v7090_v27 = vld [vmem:[%s7543_s9 + $0x6e4] ss:$20 sps:$4 sm:$0xff]   ;;  %v7092_v28 = vld [vmem:[%s7543_s9 + $0x1ec] ss:$20 sps:$4 sm:$0xff]  }
  0xbc   : > { %2833 = vmatprep.mubr.bf16.mxu0 %v7002_v29  ;;  %2961 = vmatprep.mubr.bf16.mxu1 %v7004_v30 }
  0xc3   : > { %2834 = vmatmul.mubr.bf16.gmra.mrb[56].mxu0 %v7006_v31  ;;  %2962 = vmatmul.mubr.bf16.gmra.mrb[56].mxu1 %v7007_v32  ;;  %v7094_v32 = vld [vmem:[%s7543_s9 + $0x6e0] ss:$20 sps:$4 sm:$0xff]  }
  0xc4   : > { %2841 = vmatprep.mubr.bf16.mxu0 %v7009_v33  ;;  %2969 = vmatprep.mubr.bf16.mxu1 %v7011_v34  ;;  %v7095_v33 = vld [vmem:[%s7543_s9 + $0x1e8] ss:$20 sps:$4 sm:$0xff]  }
  0xcb   : > { %2842 = vmatmul.mubr.bf16.gmra.mrb[60].mxu0 %v7013_v35  ;;  %2970 = vmatmul.mubr.bf16.gmra.mrb[60].mxu1 %v7014_v36  ;;  %v7096_v35 = vld [vmem:[%s7543_s9 + $0x70c] ss:$20 sps:$4 sm:$0xff]   ;;  %v7098_v36 = vld [vmem:[%s7543_s9 + $0x214] ss:$20 sps:$4 sm:$0xff]  }
  0xcc   : > { %2977 = vmatprep.mubr.bf16.mxu1 %v7016_v37  ;;  %3266 = vmatprep.mubr.bf16.mxu0 %v7020_v38 }
  0xd3   : > { %2978 = vmatmul.mubr.bf16.gmra.mrb[64].mxu1 %v7021_v40  ;;  %3267 = vmatmul.mubr.bf16.vlgmr.msra.gmra.mrb[0].mxu0 %v7018_v39  ;;  %v7100_v40 = vld [vmem:[%s7543_s9 + $0x708] ss:$20 sps:$4 sm:$0xff]  }
  0xd4   : > { %2985 = vmatprep.mubr.bf16.mxu1 %v7023_v41  ;;  %3274 = vmatprep.mubr.bf16.mxu0 %v7025_v42  ;;  %v7101_v41 = vld [vmem:[%s7543_s9 + $0x210] ss:$20 sps:$4 sm:$0xff]  }
  0xdb   : > { %2986 = vmatmul.mubr.bf16.gmra.mrb[68].mxu1 %v7027_v44  ;;  %3275 = vmatmul.mubr.bf16.gmra.mrb[4].mxu0 %v7028_v45  ;;  %v7104_v44 = vld [vmem:[%s7543_s9 + $0x23c] ss:$20 sps:$4 sm:$0xff]  }
  0xdc   : > { %2993 = vmatprep.mubr.bf16.mxu1 %v7029_v46  ;;  %3282 = vmatprep.mubr.bf16.mxu0 %v7031_v47 }
  0xe3   : > { %2994 = vmatmul.mubr.bf16.gmra.mrb[72].mxu1 %v7033_v48  ;;  %3283 = vmatmul.mubr.bf16.gmra.mrb[8].mxu0 %v7034_v49  ;;  %v7106_v48 = vld [vmem:[%s7543_s9 + $0x730] ss:$20 sps:$4 sm:$0xff]   ;;  %v7107_v49 = vld [vmem:[%s7543_s9 + $0x238] ss:$20 sps:$4 sm:$0xff]  }
  0xe4   : > { %3001 = vmatprep.mubr.bf16.mxu1 %v7035_v50  ;;  %3290 = vmatprep.mubr.bf16.mxu0 %v7037_v51  ;;  %v7108_v51 = vld [vmem:[%s7543_s9 + $0x75c] ss:$20 sps:$4 sm:$0xff]  }
  0xeb   : > { %3002 = vmatmul.mubr.bf16.gmra.mrb[76].mxu1 %v7039_v52  ;;  %3291 = vmatmul.mubr.bf16.gmra.mrb[12].mxu0 %v7040_v53  ;;  %v7110_v52 = vld [vmem:[%s7543_s9 + $0x264] ss:$20 sps:$4 sm:$0xff]  }
  0xec   : > { %3009 = vmatprep.mubr.bf16.mxu1 %v7041_v54  ;;  %3298 = vmatprep.mubr.bf16.mxu0 %v7043_v55 }
  0xf3   : > { %3010 = vmatmul.mubr.bf16.gmra.mrb[80].mxu1 %v7045_v56  ;;  %3299 = vmatmul.mubr.bf16.gmra.mrb[16].mxu0 %v7046_v57  ;;  %v7112_v56 = vld [vmem:[%s7543_s9 + $0x758] ss:$20 sps:$4 sm:$0xff]   ;;  %v7113_v57 = vld [vmem:[%s7543_s9 + $0x260] ss:$20 sps:$4 sm:$0xff]  }
  0xf4   : > { %3017 = vmatprep.mubr.bf16.mxu1 %v7047_v58  ;;  %3306 = vmatprep.mubr.bf16.mxu0 %v7049_v59  ;;  %v7114_v59 = vld [vmem:[%s7543_s9 + $0x784] ss:$20 sps:$4 sm:$0xff]  }
  0xfb   : > { %3018 = vmatmul.mubr.bf16.gmra.mrb[84].mxu1 %v7051_v60  ;;  %3307 = vmatmul.mubr.bf16.gmra.mrb[20].mxu0 %v7052_v61  ;;  %v7116_v60 = vld [vmem:[%s7543_s9 + $0x28c] ss:$20 sps:$4 sm:$0xff]  }
  0xfc   : > { %3025 = vmatprep.mubr.bf16.mxu1 %v7053_v62  ;;  %3314 = vmatprep.mubr.bf16.mxu0 %v7055_v63 }
 0x103   : > { %3026 = vmatmul.mubr.bf16.gmra.mrb[88].mxu1 %v7057_v0  ;;  %3315 = vmatmul.mubr.bf16.gmra.mrb[24].mxu0 %v7058_v2  ;;  %v7118_v0 = vld [vmem:[%s7543_s9 + $0x780] ss:$20 sps:$4 sm:$0xff]   ;;  %v7119_v2 = vld [vmem:[%s7543_s9 + $0x288] ss:$20 sps:$4 sm:$0xff]  }
 0x104   : > { %3033 = vmatprep.mubr.bf16.mxu1 %v7059_v3  ;;  %3322 = vmatprep.mubr.bf16.mxu0 %v7061_v4  ;;  %v7121_v4 = vld [vmem:[%s7543_s9 + $0x7ac] ss:$20 sps:$4 sm:$0xff]  }
 0x10b   : > { %3034 = vmatmul.mubr.bf16.gmra.mrb[92].mxu1 %v7063_v5  ;;  %3323 = vmatmul.mubr.bf16.gmra.mrb[28].mxu0 %v7064_v6  ;;  %v7123_v5 = vld [vmem:[%s7543_s9 + $0x2b4] ss:$20 sps:$4 sm:$0xff]  }
 0x10c   : > { %3041 = vmatprep.mubr.bf16.mxu1 %v7065_v7  ;;  %3330 = vmatprep.mubr.bf16.mxu0 %v7067_v8 }
 0x113   : > { %3042 = vmatmul.mubr.bf16.gmra.mrb[96].mxu1 %v7069_v9  ;;  %3331 = vmatmul.mubr.bf16.gmra.mrb[32].mxu0 %v7070_v10  ;;  %v7125_v9 = vld [vmem:[%s7543_s9 + $0x7a8] ss:$20 sps:$4 sm:$0xff]   ;;  %v7126_v10 = vld [vmem:[%s7543_s9 + $0x2b0] ss:$20 sps:$4 sm:$0xff]  }
 0x114   : > { %3049 = vmatprep.mubr.bf16.mxu1 %v7072_v11  ;;  %3338 = vmatprep.mubr.bf16.mxu0 %v7074_v12  ;;  %v7127_v12 = vld [vmem:[%s7543_s9 + $0x7d4] ss:$20 sps:$4 sm:$0xff]  }
 0x11b   : > { %3050 = vmatmul.mubr.bf16.gmra.mrb[100].mxu1 %v7076_v1  ;;  %3339 = vmatmul.mubr.bf16.gmra.mrb[36].mxu0 %v7077_v15 }
 0x11c   : > { %3057 = vmatprep.mubr.bf16.mxu1 %v7078_v16  ;;  %3346 = vmatprep.mubr.bf16.mxu0 %v7080_v17  ;;  %v7131_v16 = vld [vmem:[%s7543_s9 + $0x7d0] ss:$20 sps:$4 sm:$0xff]   ;;  %v7132_v17 = vld [vmem:[%s7543_s9 + $0x2d8] ss:$20 sps:$4 sm:$0xff]  }
 0x123   : > { %3058 = vmatmul.mubr.bf16.gmra.mrb[104].mxu1 %v7082_v18  ;;  %3347 = vmatmul.mubr.bf16.gmra.mrb[40].mxu0 %v7083_v19  ;;  %v7133_v19 = vld [vmem:[%s7543_s9 + $0x7fc] ss:$20 sps:$4 sm:$0xff]  }
 0x124   : > { %3065 = vmatprep.mubr.bf16.mxu1 %v7084_v20  ;;  %3354 = vmatprep.mubr.bf16.mxu0 %v7086_v21  ;;  %v7135_v20 = vld [vmem:[%s7543_s9 + $0x304] ss:$20 sps:$4 sm:$0xff]  }
 0x126   : > { %v7794_v22 = vpop.f32.mrb[0].mxu1 }
 0x127   : > { %v2853_v23 = vpop.f32.mrb[1].mxu1 }
 0x128   : > { %v7798_v26 = vpop.f32.mrb[2].mxu1 }
 0x129   : > { %v2856_v29 = vpop.f32.mrb[3].mxu1 }
 0x12a   : > { %v7139_v29 = vld [vmem:[%s7543_s9 + $0x824] ss:$20 sps:$4 sm:$0xff]  }
 0x12b   : > { %3066 = vmatmul.mubr.bf16.gmra.mrb[108].mxu1 %v7088_v24  ;;  %3355 = vmatmul.mubr.bf16.gmra.mrb[44].mxu0 %v7089_v25  ;;  %v7137_v25 = vld [vmem:[%s7543_s9 + $0x7f8] ss:$20 sps:$4 sm:$0xff]  }
 0x12c   : > { %3073 = vmatprep.mubr.bf16.mxu1 %v7090_v27  ;;  %3362 = vmatprep.mubr.bf16.mxu0 %v7092_v28  ;;  %v7138_v27 = vld [vmem:[%s7543_s9 + $0x300] ss:$20 sps:$4 sm:$0xff]  }
 0x12e   : > { %v7802_v30 = vpop.f32.mrb[4].mxu1 }
 0x12f   : > { %v2861_v31 = vpop.f32.mrb[5].mxu1 }
 0x130   : > { %v7806_v34 = vpop.f32.mrb[6].mxu1  ;;  %v7141_v31 = vld [vmem:[%s7543_s9 + $0x32c] ss:$20 sps:$4 sm:$0xff]  }
 0x131   : > { %v2864_v37 = vpop.f32.mrb[7].mxu1 }
 0x132   : > { %v7144_v37 = vld [vmem:[%s7543_s9 + $0x328] ss:$20 sps:$4 sm:$0xff]  }
 0x133   : > { %3074 = vmatmul.mubr.bf16.gmra.mrb[112].mxu1 %v7094_v32  ;;  %3363 = vmatmul.mubr.bf16.gmra.mrb[48].mxu0 %v7095_v33 }
 0x134   : > { %3081 = vmatprep.mubr.bf16.mxu1 %v7096_v35  ;;  %3370 = vmatprep.mubr.bf16.mxu0 %v7098_v36  ;;  %v7143_v36 = vld [vmem:[%s7543_s9 + $0x820] ss:$20 sps:$4 sm:$0xff]  }
 0x136   : > { %v7810_v38 = vpop.f32.mrb[8].mxu1 }
 0x137   : > { %v2869_v39 = vpop.f32.mrb[9].mxu1 }
 0x138   : > { %v7814_v42 = vpop.f32.mrb[10].mxu1 }
 0x139   : > { %v2872_v45 = vpop.f32.mrb[11].mxu1 }
 0x13b   : > { %3082 = vmatmul.mubr.bf16.gmra.mrb[116].mxu1 %v7100_v40  ;;  %3371 = vmatmul.mubr.bf16.gmra.mrb[52].mxu0 %v7101_v41  ;;  %v7145_v40 = vld [vmem:[%s7543_s9 + $0x84c] ss:$20 sps:$4 sm:$0xff]   ;;  %v7147_v41 = vld [vmem:[%s7543_s9 + $0x354] ss:$20 sps:$4 sm:$0xff]  }
 0x13c   : > { %3089 = vmatprep.mubr.bf16.mxu1 %v7102_v43  ;;  %3378 = vmatprep.mubr.bf16.mxu0 %v7104_v44 }
 0x13e   : > { %v7818_v46 = vpop.f32.mrb[12].mxu1 }
 0x13f   : > { %v2877_v47 = vpop.f32.mrb[13].mxu1 }
 0x140   : > { %v7822_v50 = vpop.f32.mrb[14].mxu1  ;;  %v7149_v47 = vld [vmem:[%s7543_s9 + $0x848] ss:$20 sps:$4 sm:$0xff]  }
 0x141   : > { %v2880_v53 = vpop.f32.mrb[15].mxu1 }
 0x143   : > { %3090 = vmatmul.mubr.bf16.gmra.mrb[120].mxu1 %v7106_v48  ;;  %3379 = vmatmul.mubr.bf16.gmra.mrb[56].mxu0 %v7107_v49  ;;  %v7150_v48 = vld [vmem:[%s7543_s9 + $0x350] ss:$20 sps:$4 sm:$0xff]  }
 0x144   : > { %3097 = vmatprep.mubr.bf16.mxu1 %v7108_v51  ;;  %3386 = vmatprep.mubr.bf16.mxu0 %v7110_v52  ;;  %v7151_v51 = vld [vmem:[%s7543_s9 + $0x874] ss:$20 sps:$4 sm:$0xff]   ;;  %v7153_v52 = vld [vmem:[%s7543_s9 + $0x37c] ss:$20 sps:$4 sm:$0xff]  }
 0x146   : > { %v7826_v54 = vpop.f32.mrb[16].mxu1 }
 0x147   : > { %v2885_v55 = vpop.f32.mrb[17].mxu1 }
 0x148   : > { %v7830_v58 = vpop.f32.mrb[18].mxu1 }
 0x149   : > { %v2888_v61 = vpop.f32.mrb[19].mxu1 }
 0x14a   : > { %v7157_v61 = vld [vmem:[%s7543_s9 + $0x89c] ss:$20 sps:$4 sm:$0xff]  }
 0x14b   : > { %3098 = vmatmul.mubr.bf16.gmra.mrb[124].mxu1 %v7112_v56  ;;  %3387 = vmatmul.mubr.bf16.gmra.mrb[60].mxu0 %v7113_v57  ;;  %v7155_v57 = vld [vmem:[%s7543_s9 + $0x870] ss:$20 sps:$4 sm:$0xff]  }
 0x14c   : > { %3105 = vmatprep.mubr.bf16.mxu1 %v7114_v59  ;;  %3394 = vmatprep.mubr.bf16.mxu0 %v7116_v60  ;;  %v7156_v59 = vld [vmem:[%s7543_s9 + $0x378] ss:$20 sps:$4 sm:$0xff]  }
 0x14e   : > { %v7834_v62 = vpop.f32.mrb[20].mxu1 }
 0x14f   : > { %v2893_v63 = vpop.f32.mrb[21].mxu1 }
 0x150   : > { %v7838_v3 = vpop.f32.mrb[22].mxu1  ;;  %v7159_v63 = vld [vmem:[%s7543_s9 + $0x3a4] ss:$20 sps:$4 sm:$0xff]  }
 0x151   : > { %v2896_v6 = vpop.f32.mrb[23].mxu1 }
 0x152   : > { %v7162_v6 = vld [vmem:[%s7543_s9 + $0x3a0] ss:$20 sps:$4 sm:$0xff]  }
 0x153   : > { %3106 = vmatmul.mubr.bf16.gmra.mrb[128].mxu1 %v7118_v0  ;;  %3395 = vmatmul.mubr.bf16.gmra.mrb[64].mxu0 %v7119_v2 }
 0x154   : > { %3113 = vmatprep.mubr.bf16.mxu1 %v7121_v4  ;;  %3402 = vmatprep.mubr.bf16.mxu0 %v7123_v5  ;;  %v7161_v5 = vld [vmem:[%s7543_s9 + $0x898] ss:$20 sps:$4 sm:$0xff]  }
 0x156   : > { %v7842_v7 = vpop.f32.mrb[24].mxu1 }
 0x157   : > { %v2901_v8 = vpop.f32.mrb[25].mxu1 }
 0x158   : > { %v7846_v11 = vpop.f32.mrb[26].mxu1 }
 0x159   : > { %v2904_v14 = vpop.f32.mrb[27].mxu1 }
 0x15b   : > { %3114 = vmatmul.mubr.bf16.gmra.mrb[132].mxu1 %v7125_v9  ;;  %3403 = vmatmul.mubr.bf16.gmra.mrb[68].mxu0 %v7126_v10  ;;  %v7163_v9 = vld [vmem:[%s7543_s9 + $0x8c4] ss:$20 sps:$4 sm:$0xff]   ;;  %v7165_v10 = vld [vmem:[%s7543_s9 + $0x3cc] ss:$20 sps:$4 sm:$0xff]  }
 0x15c   : > { %3121 = vmatprep.mubr.bf16.mxu1 %v7127_v12  ;;  %3410 = vmatprep.mubr.bf16.mxu0 %v7129_v13 }
 0x15e   : > { %v7850_v1 = vpop.f32.mrb[28].mxu1 }
 0x15f   : > { %v2909_v15 = vpop.f32.mrb[29].mxu1 }
 0x160   : > { %v7854_v18 = vpop.f32.mrb[30].mxu1  ;;  %v7167_v15 = vld [vmem:[%s7543_s9 + $0x8c0] ss:$20 sps:$4 sm:$0xff]  }
 0x161   : > { %v2912_v21 = vpop.f32.mrb[31].mxu1 }
 0x163   : > { %3122 = vmatmul.mubr.bf16.gmra.mrb[136].mxu1 %v7131_v16  ;;  %3411 = vmatmul.mubr.bf16.gmra.mrb[72].mxu0 %v7132_v17  ;;  %v7168_v16 = vld [vmem:[%s7543_s9 + $0x3c8] ss:$20 sps:$4 sm:$0xff]  }
 0x164   : > { %3129 = vmatprep.mubr.bf16.mxu1 %v7133_v19  ;;  %3418 = vmatprep.mubr.bf16.mxu0 %v7135_v20  ;;  %v7170_v19 = vld [vmem:[%s7543_s9 + $0x8ec] ss:$20 sps:$4 sm:$0xff]   ;;  %v7172_v20 = vld [vmem:[%s7543_s9 + $0x3f4] ss:$20 sps:$4 sm:$0xff]  }
 0x166   : > { %v7858_v23 = vpop.f32.mrb[32].mxu1 }
 0x167   : > { %v2917_v24 = vpop.f32.mrb[33].mxu1 }
 0x168   : > { %v7862_v28 = vpop.f32.mrb[34].mxu1 }
 0x169   : > { %v2920_v32 = vpop.f32.mrb[35].mxu1 }
 0x16a   : > { %v7176_v32 = vld [vmem:[%s7543_s9 + $0x914] ss:$20 sps:$4 sm:$0xff]  }
 0x16b   : > { %3130 = vmatmul.mubr.bf16.gmra.mrb[140].mxu1 %v7137_v25  ;;  %3419 = vmatmul.mubr.bf16.gmra.mrb[76].mxu0 %v7138_v27  ;;  %v7174_v27 = vld [vmem:[%s7543_s9 + $0x8e8] ss:$20 sps:$4 sm:$0xff]  }
 0x16c   : > { %3137 = vmatprep.mubr.bf16.mxu1 %v7139_v29  ;;  %3426 = vmatprep.mubr.bf16.mxu0 %v7141_v31  ;;  %v7175_v29 = vld [vmem:[%s7543_s9 + $0x3f0] ss:$20 sps:$4 sm:$0xff]  }
 0x16e   : > { %v7866_v33 = vpop.f32.mrb[36].mxu1 }
 0x16f   : > { %v2925_v35 = vpop.f32.mrb[37].mxu1 }
 0x170   : > { %v7870_v39 = vpop.f32.mrb[38].mxu1  ;;  %v7178_v35 = vld [vmem:[%s7543_s9 + $0x41c] ss:$20 sps:$4 sm:$0xff]  }
 0x171   : > { %v2928_v43 = vpop.f32.mrb[39].mxu1 }
 0x172   : > { %v7181_v43 = vld [vmem:[%s7543_s9 + $0x418] ss:$20 sps:$4 sm:$0xff]  }
 0x173   : > { %3138 = vmatmul.mubr.bf16.gmra.mrb[144].mxu1 %v7143_v36  ;;  %3427 = vmatmul.mubr.bf16.gmra.mrb[80].mxu0 %v7144_v37 }
 0x174   : > { %3145 = vmatprep.mubr.bf16.mxu1 %v7145_v40  ;;  %3434 = vmatprep.mubr.bf16.mxu0 %v7147_v41  ;;  %v7180_v41 = vld [vmem:[%s7543_s9 + $0x910] ss:$20 sps:$4 sm:$0xff]  }
 0x176   : > { %v7874_v44 = vpop.f32.mrb[40].mxu1 }
 0x177   : > { %v2933_v45 = vpop.f32.mrb[41].mxu1 }
 0x178   : > { %v7878_v49 = vpop.f32.mrb[42].mxu1 }
 0x179   : > { %v2936_v53 = vpop.f32.mrb[43].mxu1 }
 0x17b   : > { %3146 = vmatmul.mubr.bf16.gmra.mrb[148].mxu1 %v7149_v47  ;;  %3435 = vmatmul.mubr.bf16.gmra.mrb[84].mxu0 %v7150_v48  ;;  %v7182_v47 = vld [vmem:[%s7543_s9 + $0x93c] ss:$20 sps:$4 sm:$0xff]   ;;  %v7184_v48 = vld [vmem:[%s7543_s9 + $0x444] ss:$20 sps:$4 sm:$0xff]  }
 0x17c   : > { %3153 = vmatprep.mubr.bf16.mxu1 %v7151_v51  ;;  %3442 = vmatprep.mubr.bf16.mxu0 %v7153_v52 }
 0x17e   : > { %v7882_v55 = vpop.f32.mrb[44].mxu1 }
 0x17f   : > { %v2941_v56 = vpop.f32.mrb[45].mxu1 }
 0x180   : > { %v7886_v60 = vpop.f32.mrb[46].mxu1 }
 0x181   : > { %v2944_v0 = vpop.f32.mrb[47].mxu1 }
 0x183   : > { %3154 = vmatmul.mubr.bf16.gmra.mrb[152].mxu1 %v7155_v57  ;;  %3443 = vmatmul.mubr.bf16.gmra.mrb[88].mxu0 %v7156_v59  ;;  %v7186_v59 = vld [vmem:[%s7543_s9 + $0x938] ss:$20 sps:$4 sm:$0xff]  }
 0x184   : > { %3161 = vmatprep.mubr.bf16.mxu1 %v7157_v61  ;;  %3450 = vmatprep.mubr.bf16.mxu0 %v7159_v63  ;;  %v7187_v61 = vld [vmem:[%s7543_s9 + $0x440] ss:$20 sps:$4 sm:$0xff]  }
 0x186   : > { %v7890_v2 = vpop.f32.mrb[48].mxu1 }
 0x187   : > { %v2949_v4 = vpop.f32.mrb[49].mxu1 }
 0x188   : > { %v7894_v8 = vpop.f32.mrb[50].mxu1  ;;  %v7188_v4 = vld [vmem:[%s7543_s9 + $0x964] ss:$20 sps:$4 sm:$0xff]  }
 0x189   : > { %v2952_v12 = vpop.f32.mrb[51].mxu1 }
 0x18b   : > { %3162 = vmatmul.mubr.bf16.gmra.mrb[156].mxu1 %v7161_v5  ;;  %3451 = vmatmul.mubr.bf16.gmra.mrb[92].mxu0 %v7162_v6  ;;  %v7190_v5 = vld [vmem:[%s7543_s9 + $0x46c] ss:$20 sps:$4 sm:$0xff]  }
 0x18c   : > { %3169 = vmatprep.mubr.bf16.mxu1 %v7163_v9  ;;  %3458 = vmatprep.mubr.bf16.mxu0 %v7165_v10 }
 0x18e   : > { %v7898_v13 = vpop.f32.mrb[52].mxu1 }
 0x18f   : > { %v2957_v14 = vpop.f32.mrb[53].mxu1 }
 0x190   : > { %v7902_v17 = vpop.f32.mrb[54].mxu1 }
 0x191   : > { %v2960_v21 = vpop.f32.mrb[55].mxu1 }
 0x193   : > { %3170 = vmatmul.mubr.bf16.gmra.mrb[160].mxu1 %v7167_v15  ;;  %3459 = vmatmul.mubr.bf16.gmra.mrb[96].mxu0 %v7168_v16  ;;  %v7192_v16 = vld [vmem:[%s7543_s9 + $0x960] ss:$20 sps:$4 sm:$0xff]  }
 0x194   : > { %3177 = vmatprep.mubr.bf16.mxu1 %v7170_v19  ;;  %3466 = vmatprep.mubr.bf16.mxu0 %v7172_v20  ;;  %v7193_v19 = vld [vmem:[%s7543_s9 + $0x468] ss:$20 sps:$4 sm:$0xff]  }
 0x196   : > { %v7906_v24 = vpop.f32.mrb[56].mxu1 }
 0x197   : > { %v2965_v25 = vpop.f32.mrb[57].mxu1 }
 0x198   : > { %v7910_v31 = vpop.f32.mrb[58].mxu1  ;;  %v7194_v25 = vld [vmem:[%s7543_s9 + $0x98c] ss:$20 sps:$4 sm:$0xff]  }
 0x199   : > { %v2968_v36 = vpop.f32.mrb[59].mxu1 }
 0x19b   : > { %3178 = vmatmul.mubr.bf16.gmra.mrb[164].mxu1 %v7174_v27  ;;  %3467 = vmatmul.mubr.bf16.gmra.mrb[100].mxu0 %v7175_v29  ;;  %v7196_v27 = vld [vmem:[%s7543_s9 + $0x494] ss:$20 sps:$4 sm:$0xff]  }
 0x19c   : > { %3185 = vmatprep.mubr.bf16.mxu1 %v7176_v32  ;;  %3474 = vmatprep.mubr.bf16.mxu0 %v7178_v35 }
 0x19e   : > { %v7914_v37 = vpop.f32.mrb[60].mxu1 }
 0x19f   : > { %v2973_v40 = vpop.f32.mrb[61].mxu1 }
 0x1a0   : > { %v7918_v45 = vpop.f32.mrb[62].mxu1 }
 0x1a1   : > { %v2976_v51 = vpop.f32.mrb[63].mxu1 }
 0x1a3   : > { %3186 = vmatmul.mubr.bf16.gmra.mrb[168].mxu1 %v7180_v41  ;;  %3475 = vmatmul.mubr.bf16.gmra.mrb[104].mxu0 %v7181_v43  ;;  %v7198_v43 = vld [vmem:[%s7543_s9 + $0x988] ss:$20 sps:$4 sm:$0xff]  }
 0x1a4   : > { %3193 = vmatprep.mubr.bf16.mxu1 %v7182_v47  ;;  %3482 = vmatprep.mubr.bf16.mxu0 %v7184_v48  ;;  %v7199_v47 = vld [vmem:[%s7543_s9 + $0x490] ss:$20 sps:$4 sm:$0xff]  }
 0x1a6   : > { %v7922_v52 = vpop.f32.mrb[64].mxu1  ;;  %v7924_v53 = vpop.f32.mrb[0].mxu0 }
 0x1a7   : > { %v2981_v56 = vpop.f32.mrb[65].mxu1  ;;  %v3270_v57 = vpop.f32.mrb[1].mxu0 }
 0x1a8   : > { %v7928_v63 = vpop.f32.mrb[66].mxu1  ;;  %v7930_v0 = vpop.f32.mrb[2].mxu0  ;;  %v7200_v56 = vld [vmem:[%s7543_s9 + $0x9b4] ss:$20 sps:$4 sm:$0xff]   ;;  %v7202_v57 = vld [vmem:[%s7543_s9 + $0x4bc] ss:$20 sps:$4 sm:$0xff]  }
 0x1a9   : > { %v2984_v6 = vpop.f32.mrb[67].mxu1  ;;  %v3273_v9 = vpop.f32.mrb[3].mxu0 }
 0x1ab   : > { %3194 = vmatmul.mubr.bf16.gmra.mrb[172].mxu1 %v7186_v59  ;;  %3483 = vmatmul.mubr.bf16.gmra.mrb[108].mxu0 %v7187_v61 }
 0x1ac   : > { %3201 = vmatprep.mubr.bf16.mxu1 %v7188_v4  ;;  %3490 = vmatprep.mubr.bf16.mxu0 %v7190_v5 }
 0x1ae   : > { %v7934_v10 = vpop.f32.mrb[68].mxu1  ;;  %v7936_v12 = vpop.f32.mrb[4].mxu0 }
 0x1af   : > { %v2989_v14 = vpop.f32.mrb[69].mxu1  ;;  %v3278_v15 = vpop.f32.mrb[5].mxu0 }
 0x1b0   : > { %v7940_v20 = vpop.f32.mrb[70].mxu1  ;;  %v7942_v21 = vpop.f32.mrb[6].mxu0  ;;  %v7204_v14 = vld [vmem:[%s7543_s9 + $0x9b0] ss:$20 sps:$4 sm:$0xff]   ;;  %v7205_v15 = vld [vmem:[%s7543_s9 + $0x4b8] ss:$20 sps:$4 sm:$0xff]  }
 0x1b1   : > { %v2992_v29 = vpop.f32.mrb[71].mxu1  ;;  %v3281_v32 = vpop.f32.mrb[7].mxu0 }
 0x1b3   : > { %3202 = vmatmul.mubr.bf16.gmra.mrb[176].mxu1 %v7192_v16  ;;  %3491 = vmatmul.mubr.bf16.gmra.mrb[112].mxu0 %v7193_v19 }
 0x1b4   : > { %3209 = vmatprep.mubr.bf16.mxu1 %v7194_v25  ;;  %3498 = vmatprep.mubr.bf16.mxu0 %v7196_v27  ;;  %v7206_v25 = vld [vmem:[%s7543_s9 + $0x9dc] ss:$20 sps:$4 sm:$0xff]   ;;  %v7208_v27 = vld [vmem:[%s7543_s9 + $0x4e4] ss:$20 sps:$4 sm:$0xff]  }
 0x1b6   : > { %v7946_v35 = vpop.f32.mrb[72].mxu1  ;;  %v7948_v36 = vpop.f32.mrb[8].mxu0 }
 0x1b7   : > { %v2997_v40 = vpop.f32.mrb[73].mxu1  ;;  %v3286_v41 = vpop.f32.mrb[9].mxu0 }
 0x1b8   : > { %v7952_v48 = vpop.f32.mrb[74].mxu1  ;;  %v7954_v51 = vpop.f32.mrb[10].mxu0 }
 0x1b9   : > { %v3000_v59 = vpop.f32.mrb[75].mxu1  ;;  %v3289_v61 = vpop.f32.mrb[11].mxu0 }
 0x1bb   : > { %3210 = vmatmul.mubr.bf16.gmra.mrb[180].mxu1 %v7198_v43  ;;  %3499 = vmatmul.mubr.bf16.gmra.mrb[116].mxu0 %v7199_v47 }
 0x1bc   : > { %3217 = vmatprep.mubr.bf16.mxu1 %v7200_v56  ;;  %3506 = vmatprep.mubr.bf16.mxu0 %v7202_v57  ;;  %v7210_v56 = vld [vmem:[%s7543_s9 + $0x9d8] ss:$20 sps:$4 sm:$0xff]   ;;  %v7211_v57 = vld [vmem:[%s7543_s9 + $0x4e0] ss:$20 sps:$4 sm:$0xff]  }
 0x1be   : > { %v7958_v4 = vpop.f32.mrb[76].mxu1  ;;  %v7960_v5 = vpop.f32.mrb[12].mxu0 }
 0x1bf   : > { %9319 = vst [vmem:[#allocation3_spill] sm:$0xff] %v7958_v4  ;;  %v3005_v6 = vpop.f32.mrb[77].mxu1  ;;  %v3294_v9 = vpop.f32.mrb[13].mxu0 }
 0x1c0   : > { %v7964_v16 = vpop.f32.mrb[78].mxu1  ;;  %v7966_v19 = vpop.f32.mrb[14].mxu0  ;;  %v7212_v6 = vld [vmem:[%s7543_s9 + $0x50c] ss:$20 sps:$4 sm:$0xff]   ;;  %v7214_v9 = vld [vmem:[%s7543_s9 + $0x10] ss:$20 sps:$4 sm:$0xff]  }
 0x1c1   : > { %9320 = vst [vmem:[#allocation4_spill] sm:$0xff] %v7964_v16  ;;  %v3008_v29 = vpop.f32.mrb[79].mxu1  ;;  %v3297_v32 = vpop.f32.mrb[15].mxu0 }
 0x1c3   : > { %3218 = vmatmul.mubr.bf16.gmra.mrb[184].mxu1 %v7204_v14  ;;  %3507 = vmatmul.mubr.bf16.gmra.mrb[120].mxu0 %v7205_v15 }
 0x1c4   : > { %3225 = vmatprep.mubr.bf16.mxu1 %v7206_v25  ;;  %3514 = vmatprep.mubr.bf16.mxu0 %v7208_v27 }
 0x1c6   : > { %v7970_v40 = vpop.f32.mrb[80].mxu1  ;;  %v7972_v41 = vpop.f32.mrb[16].mxu0 }
 0x1c7   : > { %9321 = vst [vmem:[#allocation5_spill] sm:$0xff] %v7970_v40  ;;  %v3013_v43 = vpop.f32.mrb[81].mxu1  ;;  %v3302_v47 = vpop.f32.mrb[17].mxu0  ;;  %v7221_v40 = vld [vmem:[%s7543_s9 + $0x88] ss:$20 sps:$4 sm:$0xff]  }
 0x1c8   : > { %v7976_v59 = vpop.f32.mrb[82].mxu1  ;;  %v7978_v61 = vpop.f32.mrb[18].mxu0  ;;  %v7215_v43 = vld [vmem:[%s7543_s9 + $0x508] ss:$20 sps:$4 sm:$0xff]   ;;  %v7216_v47 = vld [vmem:[%s7543_s9 + $0x38] ss:$20 sps:$4 sm:$0xff]  }
 0x1c9   : > { %9322 = vst [vmem:[#allocation6_spill] sm:$0xff] %v7976_v59  ;;  %9323 = vst [vmem:[#allocation7_spill] sm:$0xff] %v7978_v61  ;;  %v3016_v14 = vpop.f32.mrb[83].mxu1  ;;  %v3305_v15 = vpop.f32.mrb[19].mxu0 }
 0x1ca   : > { %v7217_v15 = vld [vmem:[%s7543_s9 + $0x534] ss:$20 sps:$4 sm:$0xff]  }
 0x1cb   : > { %3226 = vmatmul.mubr.bf16.gmra.mrb[188].mxu1 %v7210_v56  ;;  %3515 = vmatmul.mubr.bf16.gmra.mrb[124].mxu0 %v7211_v57  ;;  %v7219_v56 = vld [vmem:[%s7543_s9 + $0x60] ss:$20 sps:$4 sm:$0xff]  }
 0x1cc   : > { %3522 = vmatprep.mubr.bf16.mxu0 %v7212_v6  ;;  %6347 = vmatprep.mubr.msk.bf16.mxu1 %vm2492_vm1, %v7214_v9 }
 0x1ce   : > { %v7983_v25 = vpop.f32.mrb[84].mxu1  ;;  %v7985_v27 = vpop.f32.mrb[20].mxu0 }
 0x1cf   : > { %9324 = vst [vmem:[#allocation8_spill] sm:$0xff] %v7983_v25  ;;  %v3021_v29 = vpop.f32.mrb[85].mxu1  ;;  %v3310_v32 = vpop.f32.mrb[21].mxu0  ;;  %v7220_v25 = vld [vmem:[%s7543_s9 + $0x530] ss:$20 sps:$4 sm:$0xff]  }
 0x1d0   : > { %v7989_v59 = vpop.f32.mrb[86].mxu1  ;;  %v7991_v14 = vpop.f32.mrb[22].mxu0 }
 0x1d1   : > { %9325 = vst [vmem:[#allocation9_spill] sm:$0xff] %v7989_v59  ;;  %v3024_v57 = vpop.f32.mrb[87].mxu1  ;;  %v3313_v6 = vpop.f32.mrb[23].mxu0 }
 0x1d3   : > { %3523 = vmatmul.mubr.bf16.gmra.mrb[128].mxu0 %v7215_v43  ;;  %6348 = vmatmul.mubr.msk.bf16.vlgmr.msra.gmra.mrb[192].mxu1 %vm2492_vm1, %v7216_v47  ;;  %v7222_v43 = vld [vmem:[%s7543_s9 + $0x55c] ss:$20 sps:$4 sm:$0xff]  }
 0x1d4   : > { %3530 = vmatprep.mubr.bf16.mxu0 %v7217_v15  ;;  %6351 = vmatprep.mubr.msk.bf16.mxu1 %vm2492_vm1, %v7219_v56  ;;  %v7224_v47 = vld [vmem:[%s7543_s9 + $0xb0] ss:$20 sps:$4 sm:$0xff]  }
 0x1d6   : > { %v7997_v9 = vpop.f32.mrb[88].mxu1  ;;  %v7999_v29 = vpop.f32.mrb[24].mxu0 }
 0x1d7   : > { %9326 = vst [vmem:[#allocation10_spill] sm:$0xff] %v7997_v9  ;;  %9327 = vst [vmem:[#allocation11_spill] sm:$0xff] %v7999_v29  ;;  %v3029_v32 = vpop.f32.mrb[89].mxu1  ;;  %v3318_v59 = vpop.f32.mrb[25].mxu0  ;;  %v7225_v9 = vld [vmem:[%s7543_s9 + $0x558] ss:$20 sps:$4 sm:$0xff]  }
 0x1d8   : > { %v8003_v16 = vpop.f32.mrb[90].mxu1  ;;  %v8005_v57 = vpop.f32.mrb[26].mxu0 }
 0x1d9   : > { %9328 = vst [vmem:[#allocation12_spill] sm:$0xff] %v8003_v16  ;;  %9329 = vst [vmem:[#allocation13_spill] sm:$0xff] %v8005_v57  ;;  %v3032_v15 = vpop.f32.mrb[91].mxu1  ;;  %v3321_v56 = vpop.f32.mrb[27].mxu0  ;;  %v7226_v57 = vld [vmem:[%s7543_s9 + $0xd8] ss:$20 sps:$4 sm:$0xff]  }
 0x1db   : > { %3531 = vmatmul.mubr.bf16.gmra.mrb[132].mxu0 %v7220_v25  ;;  %6352 = vmatmul.mubr.msk.bf16.gmra.mrb[196].mxu1 %vm2492_vm1, %v7221_v40  ;;  %v7227_v25 = vld [vmem:[%s7543_s9 + $0x584] ss:$20 sps:$4 sm:$0xff]   ;;  %v7229_v40 = vld [vmem:[%s7543_s9 + $0x100] ss:$20 sps:$4 sm:$0xff]  }
 0x1dc   : > { %3538 = vmatprep.mubr.bf16.mxu0 %v7222_v43  ;;  %6355 = vmatprep.mubr.msk.bf16.mxu1 %vm2492_vm1, %v7224_v47 }
 0x1de   : > { %v8011_v59 = vpop.f32.mrb[92].mxu1  ;;  %v8013_v6 = vpop.f32.mrb[28].mxu0 }
 0x1df   : > { %9330 = vst [vmem:[#allocation14_spill] sm:$0xff] %v8011_v59  ;;  %9331 = vst [vmem:[#allocation15_spill] sm:$0xff] %v8013_v6  ;;  %v3037_v32 = vpop.f32.mrb[93].mxu1  ;;  %v3326_v16 = vpop.f32.mrb[29].mxu0  ;;  %v7230_v59 = vld [vmem:[%s7543_s9 + $0x580] ss:$20 sps:$4 sm:$0xff]  }
 0x1e0   : > { %v8017_v29 = vpop.f32.mrb[94].mxu1  ;;  %v8019_v15 = vpop.f32.mrb[30].mxu0 }
 0x1e1   : > { %9332 = vst [vmem:[#allocation16_spill] sm:$0xff] %v8017_v29  ;;  %9333 = vst [vmem:[#allocation17_spill] sm:$0xff] %v8019_v15  ;;  %v3040_v43 = vpop.f32.mrb[95].mxu1  ;;  %v3329_v47 = vpop.f32.mrb[31].mxu0  ;;  %v7231_v15 = vld [vmem:[%s7543_s9 + $0x128] ss:$20 sps:$4 sm:$0xff]  }
 0x1e3   : > { %3539 = vmatmul.mubr.bf16.gmra.mrb[136].mxu0 %v7225_v9  ;;  %6356 = vmatmul.mubr.msk.bf16.gmra.mrb[200].mxu1 %vm2492_vm1, %v7226_v57  ;;  %v7232_v9 = vld [vmem:[%s7543_s9 + $0x5ac] ss:$20 sps:$4 sm:$0xff]   ;;  %v7234_v57 = vld [vmem:[%s7543_s9 + $0x150] ss:$20 sps:$4 sm:$0xff]  }
 0x1e4   : > { %3546 = vmatprep.mubr.bf16.mxu0 %v7227_v25  ;;  %6359 = vmatprep.mubr.msk.bf16.mxu1 %vm2492_vm1, %v7229_v40 }
 0x1e6   : > { %v8025_v16 = vpop.f32.mrb[96].mxu1  ;;  %v8027_v56 = vpop.f32.mrb[32].mxu0 }
 0x1e7   : > { %9334 = vst [vmem:[#allocation18_spill] sm:$0xff] %v8025_v16  ;;  %9335 = vst [vmem:[#allocation19_spill] sm:$0xff] %v8027_v56  ;;  %v3045_v32 = vpop.f32.mrb[97].mxu1  ;;  %v3334_v29 = vpop.f32.mrb[33].mxu0  ;;  %v7235_v16 = vld [vmem:[%s7543_s9 + $0x5a8] ss:$20 sps:$4 sm:$0xff]  }
 0x1e8   : > { %v8031_v6 = vpop.f32.mrb[98].mxu1  ;;  %v8033_v43 = vpop.f32.mrb[34].mxu0 }
 0x1e9   : > { %9336 = vst [vmem:[#allocation20_spill] sm:$0xff] %v8031_v6  ;;  %9337 = vst [vmem:[#allocation21_spill] sm:$0xff] %v8033_v43  ;;  %v3048_v25 = vpop.f32.mrb[99].mxu1  ;;  %v3337_v40 = vpop.f32.mrb[35].mxu0  ;;  %v7236_v43 = vld [vmem:[%s7543_s9 + $0x178] ss:$20 sps:$4 sm:$0xff]  }
 0x1eb   : > { %3547 = vmatmul.mubr.bf16.gmra.mrb[140].mxu0 %v7230_v59  ;;  %6360 = vmatmul.mubr.msk.bf16.gmra.mrb[204].mxu1 %vm2492_vm1, %v7231_v15  ;;  %v7237_v59 = vld [vmem:[%s7543_s9 + $0x5d4] ss:$20 sps:$4 sm:$0xff]  }
 0x1ec   : > { %3554 = vmatprep.mubr.bf16.mxu0 %v7232_v9  ;;  %6363 = vmatprep.mubr.msk.bf16.mxu1 %vm2492_vm1, %v7234_v57  ;;  %v7239_v15 = vld [vmem:[%s7543_s9 + $0x1a0] ss:$20 sps:$4 sm:$0xff]  }
 0x1ee   : > { %v8039_v29 = vpop.f32.mrb[100].mxu1  ;;  %v8041_v47 = vpop.f32.mrb[36].mxu0 }
 0x1ef   : > { %9338 = vst [vmem:[#allocation22_spill] sm:$0xff] %v8039_v29  ;;  %9339 = vst [vmem:[#allocation23_spill] sm:$0xff] %v8041_v47  ;;  %v3053_v32 = vpop.f32.mrb[101].mxu1  ;;  %v3342_v6 = vpop.f32.mrb[37].mxu0  ;;  %v7240_v29 = vld [vmem:[%s7543_s9 + $0x5d0] ss:$20 sps:$4 sm:$0xff]  }
 0x1f0   : > { %v8045_v56 = vpop.f32.mrb[102].mxu1  ;;  %v8047_v25 = vpop.f32.mrb[38].mxu0 }
 0x1f1   : > { %9340 = vst [vmem:[#allocation24_spill] sm:$0xff] %v8045_v56  ;;  %9341 = vst [vmem:[#allocation25_spill] sm:$0xff] %v8047_v25  ;;  %v3056_v9 = vpop.f32.mrb[103].mxu1  ;;  %v3345_v57 = vpop.f32.mrb[39].mxu0  ;;  %v7241_v25 = vld [vmem:[%s7543_s9 + $0x1c8] ss:$20 sps:$4 sm:$0xff]  }
 0x1f3   : > { %3555 = vmatmul.mubr.bf16.gmra.mrb[144].mxu0 %v7235_v16  ;;  %6364 = vmatmul.mubr.msk.bf16.gmra.mrb[208].mxu1 %vm2492_vm1, %v7236_v43  ;;  %v7242_v16 = vld [vmem:[%s7543_s9 + $0x5fc] ss:$20 sps:$4 sm:$0xff]  }
 0x1f4   : > { %3562 = vmatprep.mubr.bf16.mxu0 %v7237_v59  ;;  %6367 = vmatprep.mubr.msk.bf16.mxu1 %vm2492_vm1, %v7239_v15  ;;  %v7244_v43 = vld [vmem:[%s7543_s9 + $0x1f0] ss:$20 sps:$4 sm:$0xff]  }
 0x1f6   : > { %v8053_v6 = vpop.f32.mrb[104].mxu1  ;;  %v8055_v40 = vpop.f32.mrb[40].mxu0 }
 0x1f7   : > { %9342 = vst [vmem:[#allocation26_spill] sm:$0xff] %v8053_v6  ;;  %9343 = vst [vmem:[#allocation27_spill] sm:$0xff] %v8055_v40  ;;  %v3061_v32 = vpop.f32.mrb[105].mxu1  ;;  %v3350_v56 = vpop.f32.mrb[41].mxu0  ;;  %v7245_v6 = vld [vmem:[%s7543_s9 + $0x5f8] ss:$20 sps:$4 sm:$0xff]  }
 0x1f8   : > { %v8059_v47 = vpop.f32.mrb[106].mxu1  ;;  %v8061_v9 = vpop.f32.mrb[42].mxu0 }
 0x1f9   : > { %9344 = vst [vmem:[#allocation28_spill] sm:$0xff] %v8059_v47  ;;  %9345 = vst [vmem:[#allocation29_spill] sm:$0xff] %v8061_v9  ;;  %v3064_v59 = vpop.f32.mrb[107].mxu1  ;;  %v3353_v15 = vpop.f32.mrb[43].mxu0  ;;  %v7246_v9 = vld [vmem:[%s7543_s9 + $0x218] ss:$20 sps:$4 sm:$0xff]  }
 0x1fb   : > { %3563 = vmatmul.mubr.bf16.gmra.mrb[148].mxu0 %v7240_v29  ;;  %6368 = vmatmul.mubr.msk.bf16.gmra.mrb[212].mxu1 %vm2492_vm1, %v7241_v25  ;;  %v7247_v29 = vld [vmem:[%s7543_s9 + $0x624] ss:$20 sps:$4 sm:$0xff]   ;;  %v7249_v25 = vld [vmem:[%s7543_s9 + $0x240] ss:$20 sps:$4 sm:$0xff]  }
 0x1fc   : > { %3570 = vmatprep.mubr.bf16.mxu0 %v7242_v16  ;;  %6371 = vmatprep.mubr.msk.bf16.mxu1 %vm2492_vm1, %v7244_v43 }
 0x1fe   : > { %v8067_v56 = vpop.f32.mrb[108].mxu1  ;;  %v8069_v57 = vpop.f32.mrb[44].mxu0 }
 0x1ff   : > { %9346 = vst [vmem:[#allocation30_spill] sm:$0xff] %v8067_v56  ;;  %9347 = vst [vmem:[#allocation31_spill] sm:$0xff] %v8069_v57  ;;  %v3069_v32 = vpop.f32.mrb[109].mxu1  ;;  %v3358_v47 = vpop.f32.mrb[45].mxu0  ;;  %v7250_v56 = vld [vmem:[%s7543_s9 + $0x620] ss:$20 sps:$4 sm:$0xff]  }
 0x200   : > { %v8073_v40 = vpop.f32.mrb[110].mxu1  ;;  %v8075_v59 = vpop.f32.mrb[46].mxu0 }
 0x201   : > { %9348 = vst [vmem:[#allocation32_spill] sm:$0xff] %v8073_v40  ;;  %9349 = vst [vmem:[#allocation33_spill] sm:$0xff] %v8075_v59  ;;  %v3072_v16 = vpop.f32.mrb[111].mxu1  ;;  %v3361_v43 = vpop.f32.mrb[47].mxu0  ;;  %v7251_v59 = vld [vmem:[%s7543_s9 + $0x268] ss:$20 sps:$4 sm:$0xff]  }
 0x203   : > { %3571 = vmatmul.mubr.bf16.gmra.mrb[152].mxu0 %v7245_v6  ;;  %6372 = vmatmul.mubr.msk.bf16.gmra.mrb[216].mxu1 %vm2492_vm1, %v7246_v9  ;;  %v7252_v6 = vld [vmem:[%s7543_s9 + $0x64c] ss:$20 sps:$4 sm:$0xff]   ;;  %v7254_v9 = vld [vmem:[%s7543_s9 + $0x290] ss:$20 sps:$4 sm:$0xff]  }
 0x204   : > { %3578 = vmatprep.mubr.bf16.mxu0 %v7247_v29  ;;  %6375 = vmatprep.mubr.msk.bf16.mxu1 %vm2492_vm1, %v7249_v25 }
 0x206   : > { %v8081_v47 = vpop.f32.mrb[112].mxu1  ;;  %v8083_v15 = vpop.f32.mrb[48].mxu0 }
 0x207   : > { %9350 = vst [vmem:[#allocation34_spill] sm:$0xff] %v8081_v47  ;;  %9351 = vst [vmem:[#allocation35_spill] sm:$0xff] %v8083_v15  ;;  %v3077_v32 = vpop.f32.mrb[113].mxu1  ;;  %v3366_v40 = vpop.f32.mrb[49].mxu0  ;;  %v7255_v47 = vld [vmem:[%s7543_s9 + $0x648] ss:$20 sps:$4 sm:$0xff]  }
 0x208   : > { %v8087_v57 = vpop.f32.mrb[114].mxu1  ;;  %v8089_v16 = vpop.f32.mrb[50].mxu0 }
 0x209   : > { %9352 = vst [vmem:[#allocation36_spill] sm:$0xff] %v8087_v57  ;;  %9353 = vst [vmem:[#allocation37_spill] sm:$0xff] %v8089_v16  ;;  %v3080_v29 = vpop.f32.mrb[115].mxu1  ;;  %v3369_v25 = vpop.f32.mrb[51].mxu0  ;;  %v7256_v16 = vld [vmem:[%s7543_s9 + $0x2b8] ss:$20 sps:$4 sm:$0xff]  }
 0x20b   : > { %3579 = vmatmul.mubr.bf16.gmra.mrb[156].mxu0 %v7250_v56  ;;  %6376 = vmatmul.mubr.msk.bf16.gmra.mrb[220].mxu1 %vm2492_vm1, %v7251_v59  ;;  %v7257_v56 = vld [vmem:[%s7543_s9 + $0x674] ss:$20 sps:$4 sm:$0xff]  }
 0x20c   : > { %3586 = vmatprep.mubr.bf16.mxu0 %v7252_v6  ;;  %6379 = vmatprep.mubr.msk.bf16.mxu1 %vm2492_vm1, %v7254_v9  ;;  %v7259_v59 = vld [vmem:[%s7543_s9 + $0x2e0] ss:$20 sps:$4 sm:$0xff]  }
 0x20e   : > { %v8095_v40 = vpop.f32.mrb[116].mxu1  ;;  %v8097_v43 = vpop.f32.mrb[52].mxu0 }
 0x20f   : > { %9354 = vst [vmem:[#allocation38_spill] sm:$0xff] %v8095_v40  ;;  %9355 = vst [vmem:[#allocation39_spill] sm:$0xff] %v8097_v43  ;;  %v3085_v32 = vpop.f32.mrb[117].mxu1  ;;  %v3374_v57 = vpop.f32.mrb[53].mxu0  ;;  %v7260_v40 = vld [vmem:[%s7543_s9 + $0x670] ss:$20 sps:$4 sm:$0xff]  }
 0x210   : > { %v8101_v15 = vpop.f32.mrb[118].mxu1  ;;  %v8103_v29 = vpop.f32.mrb[54].mxu0 }
 0x211   : > { %9356 = vst [vmem:[#allocation40_spill] sm:$0xff] %v8101_v15  ;;  %9357 = vst [vmem:[#allocation41_spill] sm:$0xff] %v8103_v29  ;;  %v3088_v6 = vpop.f32.mrb[119].mxu1  ;;  %v3377_v9 = vpop.f32.mrb[55].mxu0  ;;  %v7261_v29 = vld [vmem:[%s7543_s9 + $0x308] ss:$20 sps:$4 sm:$0xff]  }
 0x213   : > { %3587 = vmatmul.mubr.bf16.gmra.mrb[160].mxu0 %v7255_v47  ;;  %6380 = vmatmul.mubr.msk.bf16.gmra.mrb[224].mxu1 %vm2492_vm1, %v7256_v16  ;;  %v7262_v47 = vld [vmem:[%s7543_s9 + $0x69c] ss:$20 sps:$4 sm:$0xff]  }
 0x214   : > { %3594 = vmatprep.mubr.bf16.mxu0 %v7257_v56  ;;  %6383 = vmatprep.mubr.msk.bf16.mxu1 %vm2492_vm1, %v7259_v59  ;;  %v7264_v16 = vld [vmem:[%s7543_s9 + $0x330] ss:$20 sps:$4 sm:$0xff]  }
 0x216   : > { %v8109_v57 = vpop.f32.mrb[120].mxu1  ;;  %v8111_v25 = vpop.f32.mrb[56].mxu0 }
 0x217   : > { %9358 = vst [vmem:[#allocation42_spill] sm:$0xff] %v8109_v57  ;;  %9359 = vst [vmem:[#allocation43_spill] sm:$0xff] %v8111_v25  ;;  %v3093_v32 = vpop.f32.mrb[121].mxu1  ;;  %v3382_v15 = vpop.f32.mrb[57].mxu0  ;;  %v7265_v57 = vld [vmem:[%s7543_s9 + $0x698] ss:$20 sps:$4 sm:$0xff]  }
 0x218   : > { %v8115_v43 = vpop.f32.mrb[122].mxu1  ;;  %v8117_v6 = vpop.f32.mrb[58].mxu0 }
 0x219   : > { %9360 = vst [vmem:[#allocation44_spill] sm:$0xff] %v8115_v43  ;;  %9361 = vst [vmem:[#allocation45_spill] sm:$0xff] %v8117_v6  ;;  %v3096_v56 = vpop.f32.mrb[123].mxu1  ;;  %v3385_v59 = vpop.f32.mrb[59].mxu0  ;;  %v7266_v6 = vld [vmem:[%s7543_s9 + $0x358] ss:$20 sps:$4 sm:$0xff]  }
 0x21a   : > { %v7267_v56 = vld [vmem:[%s7543_s9 + $0x6c4] ss:$20 sps:$4 sm:$0xff]  }
 0x21b   : > { %3595 = vmatmul.mubr.bf16.gmra.mrb[164].mxu0 %v7260_v40  ;;  %6384 = vmatmul.mubr.msk.bf16.gmra.mrb[228].mxu1 %vm2492_vm1, %v7261_v29  ;;  %v7269_v40 = vld [vmem:[%s7543_s9 + $0x380] ss:$20 sps:$4 sm:$0xff]  }
 0x21c   : > { %3602 = vmatprep.mubr.bf16.mxu0 %v7262_v47  ;;  %6387 = vmatprep.mubr.msk.bf16.mxu1 %vm2492_vm1, %v7264_v16  ;;  %v8138_v16 = vld [vmem:[%s9316_s2] ss:$0 sm:$0xff] }
 0x21e   : > { %v8123_v15 = vpop.f32.mrb[124].mxu1  ;;  %v8125_v9 = vpop.f32.mrb[60].mxu0 }
 0x21f   : > { %9362 = vst [vmem:[#allocation46_spill] sm:$0xff] %v8123_v15  ;;  %9363 = vst [vmem:[#allocation47_spill] sm:$0xff] %v8125_v9  ;;  %v3101_v32 = vpop.f32.mrb[125].mxu1  ;;  %v3390_v43 = vpop.f32.mrb[61].mxu0  ;;  %v2855_v15 = vadd.f32 %v8138_v16, %v7798_v26  ;;  %v2860_v26 = vadd.f32 %v8138_v16, %v7802_v30 }
 0x220   : > { %v8129_v25 = vpop.f32.mrb[126].mxu1  ;;  %v8131_v4 = vpop.f32.mrb[62].mxu0  ;;  %v2852_v43 = vadd.f32 %v8138_v16, %v7794_v22 }
 0x221   : > { %9364 = vst [vmem:[#allocation48_spill] sm:$0xff] %v8129_v25  ;;  %9365 = vst [vmem:[#allocation49_spill] sm:$0xff] %v8131_v4  ;;  %v3104_v29 = vpop.f32.mrb[127].mxu1  ;;  %v3393_v47 = vpop.f32.mrb[63].mxu0  ;;  %v7271_v4 = vld [vmem:[%s7543_s9 + $0x3a8] ss:$20 sps:$4 sm:$0xff]  }
 0x223   : > { %3603 = vmatmul.mubr.bf16.gmra.mrb[168].mxu0 %v7265_v57  ;;  %6388 = vmatmul.mubr.msk.bf16.gmra.mrb[232].mxu1 %vm2492_vm1, %v7266_v6  ;;  %v7270_v57 = vld [vmem:[%s7543_s9 + $0x6c0] ss:$20 sps:$4 sm:$0xff]  }
 0x224   : > { %3610 = vmatprep.mubr.bf16.mxu0 %v7267_v56  ;;  %6391 = vmatprep.mubr.msk.bf16.mxu1 %vm2492_vm1, %v7269_v40  ;;  %v7272_v56 = vld [vmem:[%s7543_s9 + $0x6ec] ss:$20 sps:$4 sm:$0xff]   ;;  %v7274_v40 = vld [vmem:[%s7543_s9 + $0x3d0] ss:$20 sps:$4 sm:$0xff]  }
 0x226   : > { %v8144_v59 = vpop.f32.mrb[128].mxu1  ;;  %v3396_v32 = vpop.f32.mrb[64].mxu0 }
 0x227   : > { %9366 = vst [vmem:[#allocation50_spill] sm:$0xff] %v8144_v59  ;;  %v8146_v29 = vadd.f32 %v3396_v32, %v2852_v43  ;;  %v3109_v47 = vpop.f32.mrb[129].mxu1  ;;  %v3398_v25 = vpop.f32.mrb[65].mxu0 }
 0x228   : > { %v8152_v9 = vpop.f32.mrb[130].mxu1  ;;  %v3399_v6 = vpop.f32.mrb[66].mxu0 }
 0x229   : > { %9367 = vst [vmem:[#allocation51_spill] sm:$0xff] %v8152_v9  ;;  %v8156_v22 = vadd.f32 %v3399_v6, %v2855_v15  ;;  %v3112_v59 = vpop.f32.mrb[131].mxu1  ;;  %v3401_v61 = vpop.f32.mrb[67].mxu0 }
 0x22a   : > { %v2863_v61 = vadd.f32 %v8138_v16, %v7806_v34  ;;  %v7275_v59 = vld [vmem:[%s7543_s9 + $0x6e8] ss:$20 sps:$4 sm:$0xff]   ;;  %v2868_v34 = vadd.f32 %v8138_v16, %v7810_v38 }
 0x22b   : > { %3611 = vmatmul.mubr.bf16.gmra.mrb[172].mxu0 %v7270_v57  ;;  %6392 = vmatmul.mubr.msk.bf16.gmra.mrb[236].mxu1 %vm2492_vm1, %v7271_v4  ;;  %v7276_v57 = vld [vmem:[%s7543_s9 + $0x3f8] ss:$20 sps:$4 sm:$0xff]  }
 0x22c   : > { %3618 = vmatprep.mubr.bf16.mxu0 %v7272_v56  ;;  %6395 = vmatprep.mubr.msk.bf16.mxu1 %vm2492_vm1, %v7274_v40  ;;  %v7277_v56 = vld [vmem:[%s7543_s9 + $0x714] ss:$20 sps:$4 sm:$0xff]  }
 0x22d   : > { %v7279_v40 = vld [vmem:[%s7543_s9 + $0x420] ss:$20 sps:$4 sm:$0xff]  }
 0x22e   : > { %v8162_v25 = vpop.f32.mrb[132].mxu1  ;;  %v3404_v43 = vpop.f32.mrb[68].mxu0 }
 0x22f   : > { %9368 = vst [vmem:[#allocation52_spill] sm:$0xff] %v8162_v25  ;;  %v8164_v32 = vadd.f32 %v3404_v43, %v2860_v26  ;;  %v3117_v15 = vpop.f32.mrb[133].mxu1  ;;  %v3406_v47 = vpop.f32.mrb[69].mxu0 }
 0x230   : > { %v8170_v6 = vpop.f32.mrb[134].mxu1  ;;  %v3407_v4 = vpop.f32.mrb[70].mxu0 }
 0x231   : > { %9369 = vst [vmem:[#allocation53_spill] sm:$0xff] %v8170_v6  ;;  %v8174_v30 = vadd.f32 %v3407_v4, %v2863_v61  ;;  %v3120_v25 = vpop.f32.mrb[135].mxu1  ;;  %v3409_v9 = vpop.f32.mrb[71].mxu0 }
 0x232   : > { %v2871_v9 = vadd.f32 %v8138_v16, %v7814_v42  ;;  %v7280_v25 = vld [vmem:[%s7543_s9 + $0x710] ss:$20 sps:$4 sm:$0xff]   ;;  %v2876_v42 = vadd.f32 %v8138_v16, %v7818_v46 }
 0x233   : > { %3619 = vmatmul.mubr.bf16.gmra.mrb[176].mxu0 %v7275_v59  ;;  %6396 = vmatmul.mubr.msk.bf16.gmra.mrb[240].mxu1 %vm2492_vm1, %v7276_v57  ;;  %v7281_v59 = vld [vmem:[%s7543_s9 + $0x448] ss:$20 sps:$4 sm:$0xff]  }
 0x234   : > { %3626 = vmatprep.mubr.bf16.mxu0 %v7277_v56  ;;  %6399 = vmatprep.mubr.msk.bf16.mxu1 %vm2492_vm1, %v7279_v40  ;;  %v7282_v56 = vld [vmem:[%s7543_s9 + $0x73c] ss:$20 sps:$4 sm:$0xff]  }
 0x235   : > { %v7284_v40 = vld [vmem:[%s7543_s9 + $0x470] ss:$20 sps:$4 sm:$0xff]  }
 0x236   : > { %v8180_v26 = vpop.f32.mrb[136].mxu1  ;;  %v3412_v43 = vpop.f32.mrb[72].mxu0 }
 0x237   : > { %9370 = vst [vmem:[#allocation54_spill] sm:$0xff] %v8180_v26  ;;  %v8182_v15 = vadd.f32 %v3412_v43, %v2868_v34  ;;  %v3125_v47 = vpop.f32.mrb[137].mxu1  ;;  %v3414_v61 = vpop.f32.mrb[73].mxu0 }
 0x238   : > { %v8188_v4 = vpop.f32.mrb[138].mxu1  ;;  %v3415_v57 = vpop.f32.mrb[74].mxu0 }
 0x239   : > { %9371 = vst [vmem:[#allocation55_spill] sm:$0xff] %v8188_v4  ;;  %v8192_v38 = vadd.f32 %v3415_v57, %v2871_v9  ;;  %v3128_v26 = vpop.f32.mrb[139].mxu1  ;;  %v3417_v6 = vpop.f32.mrb[75].mxu0 }
 0x23a   : > { %v2879_v6 = vadd.f32 %v8138_v16, %v7822_v50  ;;  %v7285_v26 = vld [vmem:[%s7543_s9 + $0x738] ss:$20 sps:$4 sm:$0xff]   ;;  %v2884_v50 = vadd.f32 %v8138_v16, %v7826_v54 }
 0x23b   : > { %3627 = vmatmul.mubr.bf16.gmra.mrb[180].mxu0 %v7280_v25  ;;  %6400 = vmatmul.mubr.msk.bf16.gmra.mrb[244].mxu1 %vm2492_vm1, %v7281_v59  ;;  %v7286_v25 = vld [vmem:[%s7543_s9 + $0x498] ss:$20 sps:$4 sm:$0xff]  }
 0x23c   : > { %3634 = vmatprep.mubr.bf16.mxu0 %v7282_v56  ;;  %6403 = vmatprep.mubr.msk.bf16.mxu1 %vm2492_vm1, %v7284_v40  ;;  %v7287_v56 = vld [vmem:[%s7543_s9 + $0x764] ss:$20 sps:$4 sm:$0xff]   ;;  %v7289_v40 = vld [vmem:[%s7543_s9 + $0x4c0] ss:$20 sps:$4 sm:$0xff]  }
 0x23e   : > { %v8198_v34 = vpop.f32.mrb[140].mxu1  ;;  %v3420_v43 = vpop.f32.mrb[76].mxu0 }
 0x23f   : > { %9372 = vst [vmem:[#allocation56_spill] sm:$0xff] %v8198_v34  ;;  %v8200_v47 = vadd.f32 %v3420_v43, %v2876_v42  ;;  %v3133_v61 = vpop.f32.mrb[141].mxu1  ;;  %v3422_v9 = vpop.f32.mrb[77].mxu0 }
 0x240   : > { %v8206_v57 = vpop.f32.mrb[142].mxu1  ;;  %v3423_v59 = vpop.f32.mrb[78].mxu0 }
 0x241   : > { %9373 = vst [vmem:[#allocation57_spill] sm:$0xff] %v8206_v57  ;;  %v8210_v46 = vadd.f32 %v3423_v59, %v2879_v6  ;;  %v3136_v34 = vpop.f32.mrb[143].mxu1  ;;  %v3425_v4 = vpop.f32.mrb[79].mxu0 }
 0x242   : > { %v2887_v4 = vadd.f32 %v8138_v16, %v7830_v58  ;;  %v7290_v34 = vld [vmem:[%s7543_s9 + $0x760] ss:$20 sps:$4 sm:$0xff]   ;;  %v2892_v58 = vadd.f32 %v8138_v16, %v7834_v62 }
 0x243   : > { %3635 = vmatmul.mubr.bf16.gmra.mrb[184].mxu0 %v7285_v26  ;;  %6404 = vmatmul.mubr.msk.bf16.gmra.mrb[248].mxu1 %vm2492_vm1, %v7286_v25  ;;  %v7291_v26 = vld [vmem:[%s7543_s9 + $0x4e8] ss:$20 sps:$4 sm:$0xff]  }
 0x244   : > { %3642 = vmatprep.mubr.bf16.mxu0 %v7287_v56  ;;  %6407 = vmatprep.mubr.msk.bf16.mxu1 %vm2492_vm1, %v7289_v40  ;;  %v7292_v56 = vld [vmem:[%s7543_s9 + $0x78c] ss:$20 sps:$4 sm:$0xff]   ;;  %v7294_v40 = vld [vmem:[%s7543_s9 + $0x510] ss:$20 sps:$4 sm:$0xff]  }
 0x246   : > { %v8216_v42 = vpop.f32.mrb[144].mxu1  ;;  %v3428_v43 = vpop.f32.mrb[80].mxu0 }
 0x247   : > { %9374 = vst [vmem:[#allocation58_spill] sm:$0xff] %v8216_v42  ;;  %v8218_v61 = vadd.f32 %v3428_v43, %v2884_v50  ;;  %v3141_v9 = vpop.f32.mrb[145].mxu1  ;;  %v3430_v6 = vpop.f32.mrb[81].mxu0 }
 0x248   : > { %v8224_v59 = vpop.f32.mrb[146].mxu1  ;;  %v3431_v25 = vpop.f32.mrb[82].mxu0 }
 0x249   : > { %9375 = vst [vmem:[#allocation59_spill] sm:$0xff] %v8224_v59  ;;  %v8228_v54 = vadd.f32 %v3431_v25, %v2887_v4  ;;  %v3144_v42 = vpop.f32.mrb[147].mxu1  ;;  %v3433_v57 = vpop.f32.mrb[83].mxu0 }
 0x24a   : > { %v2895_v57 = vadd.f32 %v8138_v16, %v7838_v3  ;;  %v7295_v42 = vld [vmem:[%s7543_s9 + $0x788] ss:$20 sps:$4 sm:$0xff]   ;;  %v2900_v3 = vadd.f32 %v8138_v16, %v7842_v7 }
 0x24b   : > { %3643 = vmatmul.mubr.bf16.gmra.mrb[188].mxu0 %v7290_v34  ;;  %6408 = vmatmul.mubr.msk.bf16.gmra.mrb[252].mxu1 %vm2492_vm1, %v7291_v26  ;;  %v7296_v34 = vld [vmem:[%s7543_s9 + $0x538] ss:$20 sps:$4 sm:$0xff]  }
 0x24c   : > { %3650 = vmatprep.mubr.bf16.mxu0 %v7292_v56  ;;  %6411 = vmatprep.mubr.msk.bf16.mxu1 %vm2492_vm1, %v7294_v40  ;;  %v7297_v56 = vld [vmem:[%s7543_s9 + $0x7b4] ss:$20 sps:$4 sm:$0xff]  }
 0x24d   : > { %v7299_v40 = vld [vmem:[%s7543_s9 + $0x560] ss:$20 sps:$4 sm:$0xff]  }
 0x24e   : > { %v8234_v50 = vpop.f32.mrb[148].mxu1  ;;  %v3436_v43 = vpop.f32.mrb[84].mxu0 }
 0x24f   : > { %9376 = vst [vmem:[#allocation60_spill] sm:$0xff] %v8234_v50  ;;  %v8236_v9 = vadd.f32 %v3436_v43, %v2892_v58  ;;  %v3149_v6 = vpop.f32.mrb[149].mxu1  ;;  %v3438_v4 = vpop.f32.mrb[85].mxu0 }
 0x250   : > { %v8242_v25 = vpop.f32.mrb[150].mxu1  ;;  %v3439_v26 = vpop.f32.mrb[86].mxu0 }
 0x251   : > { %9377 = vst [vmem:[#allocation61_spill] sm:$0xff] %v8242_v25  ;;  %v8246_v62 = vadd.f32 %v3439_v26, %v2895_v57  ;;  %v3152_v50 = vpop.f32.mrb[151].mxu1  ;;  %v3441_v59 = vpop.f32.mrb[87].mxu0 }
 0x252   : > { %v2903_v59 = vadd.f32 %v8138_v16, %v7846_v11  ;;  %v7300_v50 = vld [vmem:[%s7543_s9 + $0x7b0] ss:$20 sps:$4 sm:$0xff]   ;;  %v2908_v11 = vadd.f32 %v8138_v16, %v7850_v1 }
 0x253   : > { %3651 = vmatmul.mubr.bf16.gmra.mrb[192].mxu0 %v7295_v42  ;;  %6412 = vmatmul.mubr.msk.bf16.gmra.mrb[0].mxu1 %vm2492_vm1, %v7296_v34  ;;  %v7301_v42 = vld [vmem:[%s7543_s9 + $0x588] ss:$20 sps:$4 sm:$0xff]  }
 0x254   : > { %3658 = vmatprep.mubr.bf16.mxu0 %v7297_v56  ;;  %6415 = vmatprep.mubr.msk.bf16.mxu1 %vm2492_vm1, %v7299_v40  ;;  %v7302_v56 = vld [vmem:[%s7543_s9 + $0x7dc] ss:$20 sps:$4 sm:$0xff]  }
 0x255   : > { %v7304_v40 = vld [vmem:[%s7543_s9 + $0x5b0] ss:$20 sps:$4 sm:$0xff]  }
 0x256   : > { %v8252_v58 = vpop.f32.mrb[152].mxu1  ;;  %v3444_v43 = vpop.f32.mrb[88].mxu0 }
 0x257   : > { %9378 = vst [vmem:[#allocation62_spill] sm:$0xff] %v8252_v58  ;;  %v8254_v6 = vadd.f32 %v3444_v43, %v2900_v3  ;;  %v3157_v4 = vpop.f32.mrb[153].mxu1  ;;  %v3446_v57 = vpop.f32.mrb[89].mxu0 }
 0x258   : > { %v8260_v26 = vpop.f32.mrb[154].mxu1  ;;  %v3447_v34 = vpop.f32.mrb[90].mxu0 }
 0x259   : > { %9379 = vst [vmem:[#allocation63_spill] sm:$0xff] %v8260_v26  ;;  %v8264_v7 = vadd.f32 %v3447_v34, %v2903_v59  ;;  %v3160_v58 = vpop.f32.mrb[155].mxu1  ;;  %v3449_v25 = vpop.f32.mrb[91].mxu0 }
 0x25a   : > { %v2911_v25 = vadd.f32 %v8138_v16, %v7854_v18  ;;  %v7305_v58 = vld [vmem:[%s7543_s9 + $0x7d8] ss:$20 sps:$4 sm:$0xff]   ;;  %v2916_v18 = vadd.f32 %v8138_v16, %v7858_v23 }
 0x25b   : > { %3659 = vmatmul.mubr.bf16.gmra.mrb[196].mxu0 %v7300_v50  ;;  %6416 = vmatmul.mubr.msk.bf16.gmra.mrb[4].mxu1 %vm2492_vm1, %v7301_v42  ;;  %v7306_v50 = vld [vmem:[%s7543_s9 + $0x5d8] ss:$20 sps:$4 sm:$0xff]  }
 0x25c   : > { %3666 = vmatprep.mubr.bf16.mxu0 %v7302_v56  ;;  %6419 = vmatprep.mubr.msk.bf16.mxu1 %vm2492_vm1, %v7304_v40  ;;  %v7307_v56 = vld [vmem:[%s7543_s9 + $0x804] ss:$20 sps:$4 sm:$0xff]   ;;  %v7309_v40 = vld [vmem:[%s7543_s9 + $0x600] ss:$20 sps:$4 sm:$0xff]  }
 0x25e   : > { %v8270_v3 = vpop.f32.mrb[156].mxu1  ;;  %v3452_v43 = vpop.f32.mrb[92].mxu0 }
 0x25f   : > { %9380 = vst [vmem:[#allocation64_spill] sm:$0xff] %v8270_v3  ;;  %v8272_v4 = vadd.f32 %v3452_v43, %v2908_v11  ;;  %v3165_v57 = vpop.f32.mrb[157].mxu1  ;;  %v3454_v59 = vpop.f32.mrb[93].mxu0 }
 0x260   : > { %v8278_v34 = vpop.f32.mrb[158].mxu1  ;;  %v3455_v42 = vpop.f32.mrb[94].mxu0 }
 0x261   : > { %9381 = vst [vmem:[#allocation65_spill] sm:$0xff] %v8278_v34  ;;  %v8282_v1 = vadd.f32 %v3455_v42, %v2911_v25  ;;  %v3168_v3 = vpop.f32.mrb[159].mxu1  ;;  %v3457_v26 = vpop.f32.mrb[95].mxu0 }
 0x262   : > { %v2919_v26 = vadd.f32 %v8138_v16, %v7862_v28  ;;  %v7310_v3 = vld [vmem:[%s7543_s9 + $0x800] ss:$20 sps:$4 sm:$0xff]   ;;  %v2924_v28 = vadd.f32 %v8138_v16, %v7866_v33 }
 0x263   : > { %3667 = vmatmul.mubr.bf16.gmra.mrb[200].mxu0 %v7305_v58  ;;  %6420 = vmatmul.mubr.msk.bf16.gmra.mrb[8].mxu1 %vm2492_vm1, %v7306_v50  ;;  %v7311_v58 = vld [vmem:[%s7543_s9 + $0x628] ss:$20 sps:$4 sm:$0xff]  }
 0x264   : > { %3674 = vmatprep.mubr.bf16.mxu0 %v7307_v56  ;;  %6423 = vmatprep.mubr.msk.bf16.mxu1 %vm2492_vm1, %v7309_v40  ;;  %v7312_v56 = vld [vmem:[%s7543_s9 + $0x82c] ss:$20 sps:$4 sm:$0xff]   ;;  %v7314_v40 = vld [vmem:[%s7543_s9 + $0x650] ss:$20 sps:$4 sm:$0xff]  }
 0x266   : > { %v8288_v11 = vpop.f32.mrb[160].mxu1  ;;  %v3460_v43 = vpop.f32.mrb[96].mxu0 }
 0x267   : > { %9382 = vst [vmem:[#allocation66_spill] sm:$0xff] %v8288_v11  ;;  %v8290_v57 = vadd.f32 %v3460_v43, %v2916_v18  ;;  %v3173_v59 = vpop.f32.mrb[161].mxu1  ;;  %v3462_v25 = vpop.f32.mrb[97].mxu0 }
 0x268   : > { %v8296_v42 = vpop.f32.mrb[162].mxu1  ;;  %v3463_v50 = vpop.f32.mrb[98].mxu0 }
 0x269   : > { %9383 = vst [vmem:[#allocation67_spill] sm:$0xff] %v8296_v42  ;;  %v8300_v23 = vadd.f32 %v3463_v50, %v2919_v26  ;;  %v3176_v11 = vpop.f32.mrb[163].mxu1  ;;  %v3465_v34 = vpop.f32.mrb[99].mxu0 }
 0x26a   : > { %v2927_v34 = vadd.f32 %v8138_v16, %v7870_v39  ;;  %v7315_v11 = vld [vmem:[%s7543_s9 + $0x828] ss:$20 sps:$4 sm:$0xff]   ;;  %v2932_v39 = vadd.f32 %v8138_v16, %v7874_v44 }
 0x26b   : > { %3675 = vmatmul.mubr.bf16.gmra.mrb[204].mxu0 %v7310_v3  ;;  %6424 = vmatmul.mubr.msk.bf16.gmra.mrb[12].mxu1 %vm2492_vm1, %v7311_v58  ;;  %v7316_v3 = vld [vmem:[%s7543_s9 + $0x678] ss:$20 sps:$4 sm:$0xff]  }
 0x26c   : > { %3682 = vmatprep.mubr.bf16.mxu0 %v7312_v56  ;;  %6427 = vmatprep.mubr.msk.bf16.mxu1 %vm2492_vm1, %v7314_v40  ;;  %v7317_v56 = vld [vmem:[%s7543_s9 + $0x854] ss:$20 sps:$4 sm:$0xff]  }
 0x26d   : > { %v7319_v40 = vld [vmem:[%s7543_s9 + $0x6a0] ss:$20 sps:$4 sm:$0xff]  }
 0x26e   : > { %v8306_v18 = vpop.f32.mrb[164].mxu1  ;;  %v3468_v43 = vpop.f32.mrb[100].mxu0 }
 0x26f   : > { %9384 = vst [vmem:[#allocation68_spill] sm:$0xff] %v8306_v18  ;;  %v8308_v59 = vadd.f32 %v3468_v43, %v2924_v28  ;;  %v3181_v25 = vpop.f32.mrb[165].mxu1  ;;  %v3470_v26 = vpop.f32.mrb[101].mxu0 }
 0x270   : > { %v8314_v50 = vpop.f32.mrb[166].mxu1  ;;  %v3471_v58 = vpop.f32.mrb[102].mxu0 }
 0x271   : > { %9385 = vst [vmem:[#allocation69_spill] sm:$0xff] %v8314_v50  ;;  %v8318_v33 = vadd.f32 %v3471_v58, %v2927_v34  ;;  %v3184_v18 = vpop.f32.mrb[167].mxu1  ;;  %v3473_v42 = vpop.f32.mrb[103].mxu0 }
 0x272   : > { %v2935_v42 = vadd.f32 %v8138_v16, %v7878_v49  ;;  %v7320_v18 = vld [vmem:[%s7543_s9 + $0x850] ss:$20 sps:$4 sm:$0xff]   ;;  %v2940_v49 = vadd.f32 %v8138_v16, %v7882_v55 }
 0x273   : > { %3683 = vmatmul.mubr.bf16.gmra.mrb[208].mxu0 %v7315_v11  ;;  %6428 = vmatmul.mubr.msk.bf16.gmra.mrb[16].mxu1 %vm2492_vm1, %v7316_v3  ;;  %v7321_v11 = vld [vmem:[%s7543_s9 + $0x6c8] ss:$20 sps:$4 sm:$0xff]  }
 0x274   : > { %3690 = vmatprep.mubr.bf16.mxu0 %v7317_v56  ;;  %6431 = vmatprep.mubr.msk.bf16.mxu1 %vm2492_vm1, %v7319_v40  ;;  %v7322_v56 = vld [vmem:[%s7543_s9 + $0x87c] ss:$20 sps:$4 sm:$0xff]  }
 0x275   : > { %v7324_v40 = vld [vmem:[%s7543_s9 + $0x6f0] ss:$20 sps:$4 sm:$0xff]  }
 0x276   : > { %v8324_v28 = vpop.f32.mrb[168].mxu1  ;;  %v3476_v43 = vpop.f32.mrb[104].mxu0 }
 0x277   : > { %9386 = vst [vmem:[#allocation70_spill] sm:$0xff] %v8324_v28  ;;  %v8326_v25 = vadd.f32 %v3476_v43, %v2932_v39  ;;  %v3189_v26 = vpop.f32.mrb[169].mxu1  ;;  %v3478_v34 = vpop.f32.mrb[105].mxu0 }
 0x278   : > { %v8332_v58 = vpop.f32.mrb[170].mxu1  ;;  %v3479_v3 = vpop.f32.mrb[106].mxu0 }
 0x279   : > { %9387 = vst [vmem:[#allocation71_spill] sm:$0xff] %v8332_v58  ;;  %v8336_v44 = vadd.f32 %v3479_v3, %v2935_v42  ;;  %v3192_v28 = vpop.f32.mrb[171].mxu1  ;;  %v3481_v50 = vpop.f32.mrb[107].mxu0 }
 0x27a   : > { %v2943_v50 = vadd.f32 %v8138_v16, %v7886_v60  ;;  %v7325_v28 = vld [vmem:[%s7543_s9 + $0x878] ss:$20 sps:$4 sm:$0xff]   ;;  %v2948_v60 = vadd.f32 %v8138_v16, %v7890_v2 }
 0x27b   : > { %3691 = vmatmul.mubr.bf16.gmra.mrb[212].mxu0 %v7320_v18  ;;  %6432 = vmatmul.mubr.msk.bf16.gmra.mrb[20].mxu1 %vm2492_vm1, %v7321_v11  ;;  %v7326_v18 = vld [vmem:[%s7543_s9 + $0x718] ss:$20 sps:$4 sm:$0xff]  }
 0x27c   : > { %3698 = vmatprep.mubr.bf16.mxu0 %v7322_v56  ;;  %6435 = vmatprep.mubr.msk.bf16.mxu1 %vm2492_vm1, %v7324_v40  ;;  %v7327_v56 = vld [vmem:[%s7543_s9 + $0x8a4] ss:$20 sps:$4 sm:$0xff]   ;;  %v7329_v40 = vld [vmem:[%s7543_s9 + $0x740] ss:$20 sps:$4 sm:$0xff]  }
 0x27e   : > { %v8342_v39 = vpop.f32.mrb[172].mxu1  ;;  %v3484_v43 = vpop.f32.mrb[108].mxu0 }
 0x27f   : > { %9388 = vst [vmem:[#allocation72_spill] sm:$0xff] %v8342_v39  ;;  %v8344_v26 = vadd.f32 %v3484_v43, %v2940_v49  ;;  %v3197_v34 = vpop.f32.mrb[173].mxu1  ;;  %v3486_v42 = vpop.f32.mrb[109].mxu0 }
 0x280   : > { %v8350_v3 = vpop.f32.mrb[174].mxu1  ;;  %v3487_v11 = vpop.f32.mrb[110].mxu0 }
 0x281   : > { %9389 = vst [vmem:[#allocation73_spill] sm:$0xff] %v8350_v3  ;;  %v8354_v55 = vadd.f32 %v3487_v11, %v2943_v50  ;;  %v3200_v39 = vpop.f32.mrb[175].mxu1  ;;  %v3489_v58 = vpop.f32.mrb[111].mxu0 }
 0x282   : > { %v2951_v58 = vadd.f32 %v8138_v16, %v7894_v8  ;;  %v7330_v39 = vld [vmem:[%s7543_s9 + $0x8a0] ss:$20 sps:$4 sm:$0xff]   ;;  %v2956_v8 = vadd.f32 %v8138_v16, %v7898_v13 }
 0x283   : > { %3699 = vmatmul.mubr.bf16.gmra.mrb[216].mxu0 %v7325_v28  ;;  %6436 = vmatmul.mubr.msk.bf16.gmra.mrb[24].mxu1 %vm2492_vm1, %v7326_v18  ;;  %v7331_v28 = vld [vmem:[%s7543_s9 + $0x768] ss:$20 sps:$4 sm:$0xff]  }
 0x284   : > { %3706 = vmatprep.mubr.bf16.mxu0 %v7327_v56  ;;  %6439 = vmatprep.mubr.msk.bf16.mxu1 %vm2492_vm1, %v7329_v40  ;;  %v7332_v56 = vld [vmem:[%s7543_s9 + $0x8cc] ss:$20 sps:$4 sm:$0xff]   ;;  %v7334_v40 = vld [vmem:[%s7543_s9 + $0x790] ss:$20 sps:$4 sm:$0xff]  }
 0x286   : > { %v8360_v49 = vpop.f32.mrb[176].mxu1  ;;  %v3492_v43 = vpop.f32.mrb[112].mxu0 }
 0x287   : > { %9390 = vst [vmem:[#allocation74_spill] sm:$0xff] %v8360_v49  ;;  %v8362_v34 = vadd.f32 %v3492_v43, %v2948_v60  ;;  %v3205_v42 = vpop.f32.mrb[177].mxu1  ;;  %v3494_v50 = vpop.f32.mrb[113].mxu0 }
 0x288   : > { %v8368_v11 = vpop.f32.mrb[178].mxu1  ;;  %v3495_v18 = vpop.f32.mrb[114].mxu0 }
 0x289   : > { %9391 = vst [vmem:[#allocation75_spill] sm:$0xff] %v8368_v11  ;;  %v8372_v2 = vadd.f32 %v3495_v18, %v2951_v58  ;;  %v3208_v49 = vpop.f32.mrb[179].mxu1  ;;  %v3497_v3 = vpop.f32.mrb[115].mxu0 }
 0x28a   : > { %v2959_v3 = vadd.f32 %v8138_v16, %v7902_v17  ;;  %v7335_v49 = vld [vmem:[%s7543_s9 + $0x8c8] ss:$20 sps:$4 sm:$0xff]   ;;  %v2964_v17 = vadd.f32 %v8138_v16, %v7906_v24 }
 0x28b   : > { %3707 = vmatmul.mubr.bf16.gmra.mrb[220].mxu0 %v7330_v39  ;;  %6440 = vmatmul.mubr.msk.bf16.gmra.mrb[28].mxu1 %vm2492_vm1, %v7331_v28  ;;  %v7336_v39 = vld [vmem:[%s7543_s9 + $0x7b8] ss:$20 sps:$4 sm:$0xff]  }
 0x28c   : > { %3714 = vmatprep.mubr.bf16.mxu0 %v7332_v56  ;;  %6443 = vmatprep.mubr.msk.bf16.mxu1 %vm2492_vm1, %v7334_v40  ;;  %v7337_v56 = vld [vmem:[%s7543_s9 + $0x8f4] ss:$20 sps:$4 sm:$0xff]  }
 0x28d   : > { %v7339_v40 = vld [vmem:[%s7543_s9 + $0x7e0] ss:$20 sps:$4 sm:$0xff]  }
 0x28e   : > { %v8378_v60 = vpop.f32.mrb[180].mxu1  ;;  %v3500_v43 = vpop.f32.mrb[116].mxu0 }
 0x28f   : > { %9392 = vst [vmem:[#allocation76_spill] sm:$0xff] %v8378_v60  ;;  %v8380_v42 = vadd.f32 %v3500_v43, %v2956_v8  ;;  %v3213_v50 = vpop.f32.mrb[181].mxu1  ;;  %v3502_v58 = vpop.f32.mrb[117].mxu0 }
 0x290   : > { %v8386_v18 = vpop.f32.mrb[182].mxu1  ;;  %v3503_v28 = vpop.f32.mrb[118].mxu0 }
 0x291   : > { %9393 = vst [vmem:[#allocation77_spill] sm:$0xff] %v8386_v18  ;;  %v8390_v13 = vadd.f32 %v3503_v28, %v2959_v3  ;;  %v3216_v60 = vpop.f32.mrb[183].mxu1  ;;  %v3505_v11 = vpop.f32.mrb[119].mxu0 }
 0x292   : > { %v2967_v11 = vadd.f32 %v8138_v16, %v7910_v31  ;;  %v7340_v60 = vld [vmem:[%s7543_s9 + $0x8f0] ss:$20 sps:$4 sm:$0xff]   ;;  %v2972_v31 = vadd.f32 %v8138_v16, %v7914_v37 }
 0x293   : > { %3715 = vmatmul.mubr.bf16.gmra.mrb[224].mxu0 %v7335_v49  ;;  %6444 = vmatmul.mubr.msk.bf16.gmra.mrb[32].mxu1 %vm2492_vm1, %v7336_v39  ;;  %v7341_v49 = vld [vmem:[%s7543_s9 + $0x808] ss:$20 sps:$4 sm:$0xff]  }
 0x294   : > { %3722 = vmatprep.mubr.bf16.mxu0 %v7337_v56  ;;  %6447 = vmatprep.mubr.msk.bf16.mxu1 %vm2492_vm1, %v7339_v40  ;;  %v7342_v56 = vld [vmem:[%s7543_s9 + $0x91c] ss:$20 sps:$4 sm:$0xff]  }
 0x295   : > { %v7344_v40 = vld [vmem:[%s7543_s9 + $0x830] ss:$20 sps:$4 sm:$0xff]  }
 0x296   : > { %v8396_v8 = vpop.f32.mrb[184].mxu1  ;;  %v3508_v43 = vpop.f32.mrb[120].mxu0 }
 0x297   : > { %9394 = vst [vmem:[#allocation78_spill] sm:$0xff] %v8396_v8  ;;  %v8398_v50 = vadd.f32 %v3508_v43, %v2964_v17  ;;  %v3221_v58 = vpop.f32.mrb[185].mxu1  ;;  %v3510_v3 = vpop.f32.mrb[121].mxu0 }
 0x298   : > { %v8404_v28 = vpop.f32.mrb[186].mxu1  ;;  %v3511_v39 = vpop.f32.mrb[122].mxu0 }
 0x299   : > { %9395 = vst [vmem:[#allocation79_spill] sm:$0xff] %v8398_v50  ;;  %9396 = vst [vmem:[#allocation80_spill] sm:$0xff] %v8404_v28  ;;  %v8408_v24 = vadd.f32 %v3511_v39, %v2967_v11  ;;  %v3224_v8 = vpop.f32.mrb[187].mxu1  ;;  %v3513_v18 = vpop.f32.mrb[123].mxu0  ;;  %v7345_v11 = vld [vmem:[%s7543_s9 + $0x918] ss:$20 sps:$4 sm:$0xff]  }
 0x29a   : > { %v2975_v18 = vadd.f32 %v8138_v16, %v7918_v45  ;;  %v2980_v45 = vadd.f32 %v8138_v16, %v7922_v52 }
 0x29b   : > { %9397 = vst [vmem:[#allocation81_spill] sm:$0xff] %v8408_v24  ;;  %3723 = vmatmul.mubr.bf16.gmra.mrb[228].mxu0 %v7340_v60  ;;  %6448 = vmatmul.mubr.msk.bf16.gmra.mrb[36].mxu1 %vm2492_vm1, %v7341_v49  ;;  %v7346_v60 = vld [vmem:[%s7543_s9 + $0x858] ss:$20 sps:$4 sm:$0xff]  }
 0x29c   : > { %3730 = vmatprep.mubr.bf16.mxu0 %v7342_v56  ;;  %6451 = vmatprep.mubr.msk.bf16.mxu1 %vm2492_vm1, %v7344_v40  ;;  %v7347_v56 = vld [vmem:[%s7543_s9 + $0x944] ss:$20 sps:$4 sm:$0xff]   ;;  %v7349_v40 = vld [vmem:[%s7543_s9 + $0x880] ss:$20 sps:$4 sm:$0xff]  }
 0x29d   : > { %v7352_v24 = vld [vmem:[%s7543_s9 + $0x96c] ss:$20 sps:$4 sm:$0xff]  }
 0x29e   : > { %v8414_v17 = vpop.f32.mrb[188].mxu1  ;;  %v3516_v43 = vpop.f32.mrb[124].mxu0 }
 0x29f   : > { %9398 = vst [vmem:[#allocation82_spill] sm:$0xff] %v8414_v17  ;;  %v8416_v58 = vadd.f32 %v3516_v43, %v2972_v31  ;;  %v3229_v3 = vpop.f32.mrb[189].mxu1  ;;  %v3518_v8 = vpop.f32.mrb[125].mxu0  ;;  %v6509_v31 = vadd.f32 %v8138_v16, %v7936_v12  ;;  %v6507_v43 = vadd.f32 %v8138_v16, %v7924_v53  ;;  %v6508_v53 = vadd.f32 %v8138_v16, %v7930_v0 }
 0x2a0   : > { %v8422_v49 = vpop.f32.mrb[190].mxu1  ;;  %v3519_v39 = vpop.f32.mrb[126].mxu0  ;;  %v2983_v8 = vadd.f32 %v8138_v16, %v7928_v63 }
 0x2a1   : > { %9399 = vst [vmem:[#allocation83_spill] sm:$0xff] %v8416_v58  ;;  %9400 = vst [vmem:[#allocation84_spill] sm:$0xff] %v8422_v49  ;;  %v8426_v28 = vadd.f32 %v3519_v39, %v2975_v18  ;;  %v3232_v37 = vpop.f32.mrb[191].mxu1  ;;  %v3521_v17 = vpop.f32.mrb[127].mxu0  ;;  %v6510_v18 = vadd.f32 %v8138_v16, %v7942_v21  ;;  %v7350_v39 = vld [vmem:[%s7543_s9 + $0x940] ss:$20 sps:$4 sm:$0xff]  }
 0x2a3   : > { %9401 = vst [vmem:[#allocation85_spill] sm:$0xff] %v8426_v28  ;;  %3731 = vmatmul.mubr.bf16.gmra.mrb[232].mxu0 %v7345_v11  ;;  %6452 = vmatmul.mubr.msk.bf16.gmra.mrb[40].mxu1 %vm2492_vm1, %v7346_v60  ;;  %v7354_v28 = vld [vmem:[%s7543_s9 + $0x8d0] ss:$20 sps:$4 sm:$0xff]  }
 0x2a4   : > { %3738 = vmatprep.mubr.bf16.mxu0 %v7347_v56  ;;  %6455 = vmatprep.mubr.msk.bf16.mxu1 %vm2492_vm1, %v7349_v40  ;;  %v7351_v56 = vld [vmem:[%s7543_s9 + $0x8a8] ss:$20 sps:$4 sm:$0xff]  }
 0x2a6   : > { %v3524_v17 = vpop.f32.mrb[128].mxu0  ;;  %v6349_v3 = vpop.f32.mrb[192].mxu1 }
 0x2a7   : > { %v8443_v11 = vadd.f32 %v3524_v17, %v2980_v45  ;;  %v3822_v52 = vadd.f32 %v6509_v31, %v6349_v3  ;;  %v3526_v60 = vpop.f32.mrb[129].mxu0  ;;  %v3813_v12 = vpop.f32.mrb[193].mxu1 }
 0x2a8   : > { %v3814_v40 = vadd.f32 %v6507_v43, %v3813_v12  ;;  %v3527_v37 = vpop.f32.mrb[130].mxu0  ;;  %v6350_v49 = vpop.f32.mrb[194].mxu1 }
 0x2a9   : > { %v4326_v50 = vmax.f32 %v3822_v52, 0.0  ;;  %v8451_v63 = vadd.f32 %v3527_v37, %v2983_v8  ;;  %v3825_v58 = vadd.f32 %v6510_v18, %v6350_v49  ;;  %v3529_v21 = vpop.f32.mrb[131].mxu0  ;;  %v3816_v45 = vpop.f32.mrb[195].mxu1  ;;  %v2988_v8 = vadd.f32 %v8138_v16, %v7934_v10 }
 0x2aa   : > { %v4324_v31 = vmax.f32 %v3814_v40, 0.0  ;;  %v3817_v17 = vadd.f32 %v6508_v53, %v3816_v45  ;;  %v6513_v49 = vadd.f32 %v8138_v16, %v7960_v5  ;;  %v6514_v18 = vadd.f32 %v8138_v16, %v7966_v19  ;;  %v7356_v53 = vld [vmem:[%s7543_s9 + $0x8f8] ss:$20 sps:$4 sm:$0xff]   ;;  %v7357_v45 = vld [vmem:[%s7543_s9 + $0x994] ss:$20 sps:$4 sm:$0xff]  }
 0x2ab   : > { %v6136_v3 = vpack.c.bf16 %v4326_v50, %v4326_v50  ;;  %v4327_v60 = vmax.f32 %v3825_v58, 0.0  ;;  %3739 = vmatmul.mubr.bf16.gmra.mrb[236].mxu0 %v7350_v39  ;;  %6456 = vmatmul.mubr.msk.bf16.gmra.mrb[44].mxu1 %vm2492_vm1, %v7351_v56  ;;  %v2991_v58 = vadd.f32 %v8138_v16, %v7940_v20  ;;  %v7355_v56 = vld [vmem:[%s7543_s9 + $0x968] ss:$20 sps:$4 sm:$0xff]   ;;  %v6512_v40 = vadd.f32 %v8138_v16, %v7954_v51 }
 0x2ac   : > { %v6134_v0 = vpack.c.bf16 %v4324_v31, %v4324_v31  ;;  %v4325_v43 = vmax.f32 %v3817_v17, 0.0  ;;  %3746 = vmatprep.mubr.bf16.mxu0 %v7352_v24  ;;  %6459 = vmatprep.mubr.msk.bf16.mxu1 %vm2492_vm1, %v7354_v28  ;;  %v6511_v28 = vadd.f32 %v8138_v16, %v7948_v36  ;;  %v7359_v31 = vld [vmem:[%s7543_s9 + $0x920] ss:$20 sps:$4 sm:$0xff]  }
 0x2ad   : > { %4967 = vst.msk [vmem:[%s8460_s12 + $0x8] sm:$0xf] %vm4964_vm2, %v6136_v3  ;;  %v6137_v50 = vpack.c.bf16 %v4327_v60, %v4327_v60 }
 0x2ae   : > { %4965 = vst.msk [vmem:[%s8460_s12] sm:$0xf] %vm4964_vm2, %v6134_v0  ;;  %v6135_v10 = vpack.c.bf16 %v4325_v43, %v4325_v43  ;;  %v3532_v24 = vpop.f32.mrb[132].mxu0  ;;  %v6353_v5 = vpop.f32.mrb[196].mxu1 }
 0x2af   : > { %4968 = vst.msk [vmem:[%s8460_s12 + $0xc] sm:$0xf] %vm4964_vm2, %v6137_v50  ;;  %v8474_v52 = vadd.f32 %v3532_v24, %v2988_v8  ;;  %v3838_v12 = vadd.f32 %v6513_v49, %v6353_v5  ;;  %v3534_v39 = vpop.f32.mrb[133].mxu0  ;;  %v3829_v36 = vpop.f32.mrb[197].mxu1  ;;  %v6517_v24 = vadd.f32 %v8138_v16, %v7985_v27  ;;  %v6518_v27 = vadd.f32 %v8138_v16, %v7991_v14 }
 0x2b0   : > { %4966 = vst.msk [vmem:[%s8460_s12 + $0x4] sm:$0xf] %vm4964_vm2, %v6135_v10  ;;  %v3830_v37 = vadd.f32 %v6511_v28, %v3829_v36  ;;  %v3535_v21 = vpop.f32.mrb[134].mxu0  ;;  %v6354_v20 = vpop.f32.mrb[198].mxu1  ;;  %v2996_v10 = vadd.f32 %v8138_v16, %v7946_v35  ;;  %v2999_v35 = vadd.f32 %v8138_v16, %v7952_v48 }
 0x2b1   : > { %v4330_v19 = vmax.f32 %v3838_v12, 0.0  ;;  %v8484_v17 = vadd.f32 %v3535_v21, %v2991_v58  ;;  %v3841_v3 = vadd.f32 %v6514_v18, %v6354_v20  ;;  %v3537_v60 = vpop.f32.mrb[135].mxu0  ;;  %v3832_v0 = vpop.f32.mrb[199].mxu1  ;;  %v6515_v58 = vadd.f32 %v8138_v16, %v7972_v41  ;;  %v9402_v21 = vld [vmem:[#allocation7_spill] sm:$0xff] }
 0x2b2   : > { %v4328_v43 = vmax.f32 %v3830_v37, 0.0  ;;  %v3833_v8 = vadd.f32 %v6512_v40, %v3832_v0  ;;  %v7360_v40 = vld [vmem:[%s7543_s9 + $0x990] ss:$20 sps:$4 sm:$0xff]   ;;  %v7361_v37 = vld [vmem:[%s7543_s9 + $0x948] ss:$20 sps:$4 sm:$0xff]   ;;  %v6516_v20 = vadd.f32 %v8138_v16, %v9402_v21 }
 0x2b3   : > { %v6140_v49 = vpack.c.bf16 %v4330_v19, %v4330_v19  ;;  %v4331_v50 = vmax.f32 %v3841_v3, 0.0  ;;  %3747 = vmatmul.mubr.bf16.gmra.mrb[240].mxu0 %v7355_v56  ;;  %6460 = vmatmul.mubr.msk.bf16.gmra.mrb[48].mxu1 %vm2492_vm1, %v7356_v53  ;;  %v7362_v19 = vld [vmem:[%s7543_s9 + $0x9bc] ss:$20 sps:$4 sm:$0xff]  }
 0x2b4   : > { %v6138_v51 = vpack.c.bf16 %v4328_v43, %v4328_v43  ;;  %v4329_v28 = vmax.f32 %v3833_v8, 0.0  ;;  %3754 = vmatprep.mubr.bf16.mxu0 %v7357_v45  ;;  %6463 = vmatprep.mubr.msk.bf16.mxu1 %vm2492_vm1, %v7359_v31  ;;  %v7364_v3 = vld [vmem:[%s7543_s9 + $0x970] ss:$20 sps:$4 sm:$0xff]  }
 0x2b5   : > { %4971 = vst.msk [vmem:[%s8460_s12 + $0x18] sm:$0xf] %vm4964_vm2, %v6140_v49  ;;  %v6141_v5 = vpack.c.bf16 %v4331_v50, %v4331_v50  ;;  %v9407_v21 = vld [vmem:[#allocation17_spill] sm:$0xff] }
 0x2b6   : > { %4969 = vst.msk [vmem:[%s8460_s12 + $0x10] sm:$0xf] %vm4964_vm2, %v6138_v51  ;;  %v6139_v18 = vpack.c.bf16 %v4329_v28, %v4329_v28  ;;  %v3540_v12 = vpop.f32.mrb[136].mxu0  ;;  %v6357_v39 = vpop.f32.mrb[200].mxu1 }
 0x2b7   : > { %4972 = vst.msk [vmem:[%s8460_s12 + $0x1c] sm:$0xf] %vm4964_vm2, %v6141_v5  ;;  %v8504_v36 = vadd.f32 %v3540_v12, %v2996_v10  ;;  %v3854_v56 = vadd.f32 %v6517_v24, %v6357_v39  ;;  %v3542_v53 = vpop.f32.mrb[137].mxu0  ;;  %v3845_v41 = vpop.f32.mrb[201].mxu1  ;;  %v9403_v5 = vld [vmem:[#allocation3_spill] sm:$0xff] }
 0x2b8   : > { %4970 = vst.msk [vmem:[%s8460_s12 + $0x14] sm:$0xf] %vm4964_vm2, %v6139_v18  ;;  %v3846_v45 = vadd.f32 %v6515_v58, %v3845_v41  ;;  %v3543_v31 = vpop.f32.mrb[138].mxu0  ;;  %v6358_v48 = vpop.f32.mrb[202].mxu1  ;;  %v3004_v58 = vadd.f32 %v8138_v16, %v9403_v5  ;;  %v9404_v18 = vld [vmem:[#allocation15_spill] sm:$0xff] }
 0x2b9   : > { %v4334_v14 = vmax.f32 %v3854_v56, 0.0  ;;  %v8514_v60 = vadd.f32 %v3543_v31, %v2999_v35  ;;  %v3857_v0 = vadd.f32 %v6518_v27, %v6358_v48  ;;  %v3545_v43 = vpop.f32.mrb[139].mxu0  ;;  %v3848_v8 = vpop.f32.mrb[203].mxu1  ;;  %v6521_v12 = vadd.f32 %v8138_v16, %v9404_v18  ;;  %v9405_v35 = vld [vmem:[#allocation11_spill] sm:$0xff] }
 0x2ba   : > { %v4332_v49 = vmax.f32 %v3846_v45, 0.0  ;;  %v3849_v50 = vadd.f32 %v6516_v20, %v3848_v8  ;;  %v6519_v27 = vadd.f32 %v8138_v16, %v9405_v35  ;;  %v6522_v20 = vadd.f32 %v8138_v16, %v9407_v21 }
 0x2bb   : > { %v6144_v51 = vpack.c.bf16 %v4334_v14, %v4334_v14  ;;  %v4335_v28 = vmax.f32 %v3857_v0, 0.0  ;;  %3755 = vmatmul.mubr.bf16.gmra.mrb[244].mxu0 %v7360_v40  ;;  %6464 = vmatmul.mubr.msk.bf16.gmra.mrb[52].mxu1 %vm2492_vm1, %v7361_v37  ;;  %v9406_v40 = vld [vmem:[#allocation4_spill] sm:$0xff]  ;;  %v9408_v0 = vld [vmem:[#allocation13_spill] sm:$0xff] }
 0x2bc   : > { %v6142_v10 = vpack.c.bf16 %v4332_v49, %v4332_v49  ;;  %v4333_v24 = vmax.f32 %v3849_v50, 0.0  ;;  %3762 = vmatprep.mubr.bf16.mxu0 %v7362_v19  ;;  %6467 = vmatprep.mubr.msk.bf16.mxu1 %vm2492_vm1, %v7364_v3  ;;  %v3007_v37 = vadd.f32 %v8138_v16, %v9406_v40  ;;  %v7365_v3 = vld [vmem:[%s7543_s9 + $0x9b8] ss:$20 sps:$4 sm:$0xff]   ;;  %v6520_v43 = vadd.f32 %v8138_v16, %v9408_v0 }
 0x2bd   : > { %4975 = vst.msk [vmem:[%s8460_s12 + $0x28] sm:$0xf] %vm4964_vm2, %v6144_v51  ;;  %v6145_v39 = vpack.c.bf16 %v4335_v28, %v4335_v28  ;;  %v7366_v14 = vld [vmem:[%s7543_s9 + $0x998] ss:$20 sps:$4 sm:$0xff]   ;;  %v7369_v28 = vld [vmem:[%s7543_s9 + $0x9c0] ss:$20 sps:$4 sm:$0xff]  }
 0x2be   : > { %4973 = vst.msk [vmem:[%s8460_s12 + $0x20] sm:$0xf] %vm4964_vm2, %v6142_v10  ;;  %v6143_v56 = vpack.c.bf16 %v4333_v24, %v4333_v24  ;;  %v3548_v53 = vpop.f32.mrb[140].mxu0  ;;  %v6361_v41 = vpop.f32.mrb[204].mxu1  ;;  %v7367_v51 = vld [vmem:[%s7543_s9 + $0x9e4] ss:$20 sps:$4 sm:$0xff]  }
 0x2bf   : > { %4976 = vst.msk [vmem:[%s8460_s12 + $0x2c] sm:$0xf] %vm4964_vm2, %v6145_v39  ;;  %v8534_v45 = vadd.f32 %v3548_v53, %v3004_v58  ;;  %v3870_v31 = vadd.f32 %v6521_v12, %v6361_v41  ;;  %v3550_v48 = vpop.f32.mrb[141].mxu0  ;;  %v3861_v19 = vpop.f32.mrb[205].mxu1  ;;  %v9409_v41 = vld [vmem:[#allocation5_spill] sm:$0xff]  ;;  %v9412_v0 = vld [vmem:[#allocation6_spill] sm:$0xff] }
 0x2c0   : > { %4974 = vst.msk [vmem:[%s8460_s12 + $0x24] sm:$0xf] %vm4964_vm2, %v6143_v56  ;;  %v3862_v8 = vadd.f32 %v6519_v27, %v3861_v19  ;;  %v3551_v49 = vpop.f32.mrb[142].mxu0  ;;  %v6362_v50 = vpop.f32.mrb[206].mxu1  ;;  %v3012_v40 = vadd.f32 %v8138_v16, %v9409_v41 }
 0x2c1   : > { %v4338_v10 = vmax.f32 %v3870_v31, 0.0  ;;  %v8544_v24 = vadd.f32 %v3551_v49, %v3007_v37  ;;  %v3873_v5 = vadd.f32 %v6522_v20, %v6362_v50  ;;  %v3553_v58 = vpop.f32.mrb[143].mxu0  ;;  %v3864_v18 = vpop.f32.mrb[207].mxu1  ;;  %v9410_v37 = vld [vmem:[#allocation23_spill] sm:$0xff] }
 0x2c2   : > { %v4336_v12 = vmax.f32 %v3862_v8, 0.0  ;;  %v3865_v39 = vadd.f32 %v6520_v43, %v3864_v18  ;;  %v6525_v21 = vadd.f32 %v8138_v16, %v9410_v37  ;;  %v9411_v31 = vld [vmem:[#allocation19_spill] sm:$0xff]  ;;  %v3015_v43 = vadd.f32 %v8138_v16, %v9412_v0  ;;  %v9413_v8 = vld [vmem:[#allocation25_spill] sm:$0xff]  ;;  %v7371_v58 = vld [vmem:[%s7543_s9 + $0x9e8] ss:$20 sps:$4 sm:$0xff]  }
 0x2c3   : > { %v6148_v35 = vpack.c.bf16 %v4338_v10, %v4338_v10  ;;  %v4339_v53 = vmax.f32 %v3873_v5, 0.0  ;;  %3763 = vmatmul.mubr.bf16.gmra.mrb[248].mxu0 %v7365_v3  ;;  %6468 = vmatmul.mubr.msk.bf16.gmra.mrb[56].mxu1 %vm2492_vm1, %v7366_v14  ;;  %v6523_v48 = vadd.f32 %v8138_v16, %v9411_v31  ;;  %v6526_v49 = vadd.f32 %v8138_v16, %v9413_v8  ;;  %v7370_v5 = vld [vmem:[%s7543_s9 + $0x9e0] ss:$20 sps:$4 sm:$0xff]  }
 0x2c4   : > { %v6146_v27 = vpack.c.bf16 %v4336_v12, %v4336_v12  ;;  %v4337_v56 = vmax.f32 %v3865_v39, 0.0  ;;  %3770 = vmatprep.mubr.bf16.mxu0 %v7367_v51  ;;  %6471 = vmatprep.mubr.msk.bf16.mxu1 %vm2492_vm1, %v7369_v28  ;;  %v9414_v18 = vld [vmem:[#allocation21_spill] sm:$0xff] }
 0x2c5   : > { %4979 = vst.msk [vmem:[%s8460_s12 + $0x38] sm:$0xf] %vm4964_vm2, %v6148_v35  ;;  %v6149_v20 = vpack.c.bf16 %v4339_v53, %v4339_v53  ;;  %v6524_v12 = vadd.f32 %v8138_v16, %v9414_v18  ;;  %v9418_v18 = vld [vmem:[#allocation9_spill] sm:$0xff] }
 0x2c6   : > { %4977 = vst.msk [vmem:[%s8460_s12 + $0x30] sm:$0xf] %vm4964_vm2, %v6146_v27  ;;  %v6147_v19 = vpack.c.bf16 %v4337_v56, %v4337_v56  ;;  %v3556_v3 = vpop.f32.mrb[144].mxu0  ;;  %v6365_v14 = vpop.f32.mrb[208].mxu1 }
 0x2c7   : > { %4980 = vst.msk [vmem:[%s8460_s12 + $0x3c] sm:$0xf] %vm4964_vm2, %v6149_v20  ;;  %v8564_v50 = vadd.f32 %v3556_v3, %v3012_v40  ;;  %v3886_v51 = vadd.f32 %v6525_v21, %v6365_v14  ;;  %v3558_v28 = vpop.f32.mrb[145].mxu0  ;;  %v3877_v10 = vpop.f32.mrb[209].mxu1  ;;  %v9415_v14 = vld [vmem:[#allocation8_spill] sm:$0xff] }
 0x2c8   : > { %4978 = vst.msk [vmem:[%s8460_s12 + $0x34] sm:$0xf] %vm4964_vm2, %v6147_v19  ;;  %v3878_v39 = vadd.f32 %v6523_v48, %v3877_v10  ;;  %v3559_v35 = vpop.f32.mrb[146].mxu0  ;;  %v6366_v53 = vpop.f32.mrb[210].mxu1  ;;  %v8578_v19 = vld [vmem:[%s9316_s2] ss:$0 sm:$0xff] }
 0x2c9   : > { %v4342_v27 = vmax.f32 %v3886_v51, 0.0  ;;  %v8572_v56 = vadd.f32 %v3559_v35, %v3015_v43  ;;  %v3889_v41 = vadd.f32 %v6526_v49, %v6366_v53  ;;  %v3561_v40 = vpop.f32.mrb[147].mxu0  ;;  %v3880_v37 = vpop.f32.mrb[211].mxu1  ;;  %v3020_v0 = vadd.f32 %v8578_v19, %v9415_v14  ;;  %v9416_v43 = vld [vmem:[#allocation31_spill] sm:$0xff] }
 0x2ca   : > { %v4340_v21 = vmax.f32 %v3878_v39, 0.0  ;;  %v3881_v20 = vadd.f32 %v6524_v12, %v3880_v37  ;;  %v6529_v8 = vadd.f32 %v8578_v19, %v9416_v43  ;;  %v9417_v51 = vld [vmem:[#allocation27_spill] sm:$0xff]  ;;  %v3023_v12 = vadd.f32 %v8578_v19, %v9418_v18  ;;  %v9419_v39 = vld [vmem:[#allocation33_spill] sm:$0xff] }
 0x2cb   : > { %v6152_v31 = vpack.c.bf16 %v4342_v27, %v4342_v27  ;;  %v4343_v3 = vmax.f32 %v3889_v41, 0.0  ;;  %3771 = vmatmul.mubr.bf16.gmra.mrb[252].mxu0 %v7370_v5  ;;  %6472 = vmatmul.mubr.msk.bf16.gmra.mrb[60].mxu1 %vm2492_vm1, %v7371_v58  ;;  %v6527_v28 = vadd.f32 %v8578_v19, %v9417_v51  ;;  %v6530_v35 = vadd.f32 %v8578_v19, %v9419_v39  ;;  %v9420_v37 = vld [vmem:[#allocation29_spill] sm:$0xff]  ;;  %v9421_v39 = vld [vmem:[#allocation10_spill] sm:$0xff] }
 0x2cc   : > { %v6150_v16 = vpack.c.bf16 %v4340_v21, %v4340_v21  ;;  %v4341_v48 = vmax.f32 %v3881_v20, 0.0  ;;  %v6528_v21 = vadd.f32 %v8578_v19, %v9420_v37 }
 0x2cd   : > { %4983 = vst.msk [vmem:[%s8460_s12 + $0x48] sm:$0xf] %vm4964_vm2, %v6152_v31  ;;  %v6153_v49 = vpack.c.bf16 %v4343_v3, %v4343_v3 }
 0x2ce   : > { %4981 = vst.msk [vmem:[%s8460_s12 + $0x40] sm:$0xf] %vm4964_vm2, %v6150_v16  ;;  %v6151_v10 = vpack.c.bf16 %v4341_v48, %v4341_v48  ;;  %v3564_v5 = vpop.f32.mrb[148].mxu0  ;;  %v6369_v58 = vpop.f32.mrb[212].mxu1 }
 0x2cf   : > { %4984 = vst.msk [vmem:[%s8460_s12 + $0x4c] sm:$0xf] %vm4964_vm2, %v6153_v49  ;;  %v8596_v53 = vadd.f32 %v3564_v5, %v3020_v0  ;;  %v3902_v27 = vadd.f32 %v6529_v8, %v6369_v58  ;;  %v3566_v41 = vpop.f32.mrb[149].mxu0  ;;  %v3893_v40 = vpop.f32.mrb[213].mxu1 }
 0x2d0   : > { %4982 = vst.msk [vmem:[%s8460_s12 + $0x44] sm:$0xf] %vm4964_vm2, %v6151_v10  ;;  %v3894_v20 = vadd.f32 %v6527_v28, %v3893_v40  ;;  %v3567_v31 = vpop.f32.mrb[150].mxu0  ;;  %v6370_v3 = vpop.f32.mrb[214].mxu1  ;;  %v3028_v28 = vadd.f32 %v8578_v19, %v9421_v39  ;;  %v9422_v10 = vld [vmem:[#allocation39_spill] sm:$0xff] }
 0x2d1   : > { %v4346_v16 = vmax.f32 %v3902_v27, 0.0  ;;  %v8602_v48 = vadd.f32 %v3567_v31, %v3023_v12  ;;  %v3905_v14 = vadd.f32 %v6530_v35, %v6370_v3  ;;  %v3569_v43 = vpop.f32.mrb[151].mxu0  ;;  %v3896_v0 = vpop.f32.mrb[215].mxu1  ;;  %v6533_v41 = vadd.f32 %v8578_v19, %v9422_v10  ;;  %v9423_v35 = vld [vmem:[#allocation35_spill] sm:$0xff]  ;;  %v9425_v3 = vld [vmem:[#allocation41_spill] sm:$0xff] }
 0x2d2   : > { %v4344_v49 = vmax.f32 %v3894_v20, 0.0  ;;  %v3897_v8 = vadd.f32 %v6528_v21, %v3896_v0  ;;  %v6531_v27 = vadd.f32 %v8578_v19, %v9423_v35  ;;  %v9424_v20 = vld [vmem:[#allocation12_spill] sm:$0xff] }
 0x2d3   : > { %v6156_v51 = vpack.c.bf16 %v4346_v16, %v4346_v16  ;;  %v4347_v5 = vmax.f32 %v3905_v14, 0.0  ;;  %v3031_v31 = vadd.f32 %v8578_v19, %v9424_v20  ;;  %v6534_v16 = vadd.f32 %v8578_v19, %v9425_v3 }
 0x2d4   : > { %v6154_v58 = vpack.c.bf16 %v4344_v49, %v4344_v49  ;;  %v4345_v18 = vmax.f32 %v3897_v8, 0.0  ;;  %v9426_v8 = vld [vmem:[#allocation37_spill] sm:$0xff] }
 0x2d5   : > { %4987 = vst.msk [vmem:[%s8460_s12 + $0x58] sm:$0xf] %vm4964_vm2, %v6156_v51  ;;  %v6157_v12 = vpack.c.bf16 %v4347_v5, %v4347_v5  ;;  %v6532_v51 = vadd.f32 %v8578_v19, %v9426_v8  ;;  %v9428_v8 = vld [vmem:[#allocation14_spill] sm:$0xff] }
 0x2d6   : > { %4985 = vst.msk [vmem:[%s8460_s12 + $0x50] sm:$0xf] %vm4964_vm2, %v6154_v58  ;;  %v6155_v40 = vpack.c.bf16 %v4345_v18, %v4345_v18  ;;  %v3572_v37 = vpop.f32.mrb[152].mxu0  ;;  %v6373_v21 = vpop.f32.mrb[216].mxu1 }
 0x2d7   : > { %4988 = vst.msk [vmem:[%s8460_s12 + $0x5c] sm:$0xf] %vm4964_vm2, %v6157_v12  ;;  %v8620_v14 = vadd.f32 %v3572_v37, %v3028_v28  ;;  %v3918_v43 = vadd.f32 %v6533_v41, %v6373_v21  ;;  %v3574_v0 = vpop.f32.mrb[153].mxu0  ;;  %v3909_v49 = vpop.f32.mrb[217].mxu1 }
 0x2d8   : > { %4986 = vst.msk [vmem:[%s8460_s12 + $0x54] sm:$0xf] %vm4964_vm2, %v6155_v40  ;;  %v3910_v5 = vadd.f32 %v6531_v27, %v3909_v49  ;;  %v3575_v58 = vpop.f32.mrb[154].mxu0  ;;  %v6374_v18 = vpop.f32.mrb[218].mxu1  ;;  %v3036_v27 = vadd.f32 %v8578_v19, %v9428_v8  ;;  %v9429_v40 = vld [vmem:[#allocation47_spill] sm:$0xff] }
 0x2d9   : > { %v4350_v39 = vmax.f32 %v3918_v43, 0.0  ;;  %v8626_v10 = vadd.f32 %v3575_v58, %v3031_v31  ;;  %v3921_v35 = vadd.f32 %v6534_v16, %v6374_v18  ;;  %v3577_v12 = vpop.f32.mrb[155].mxu0  ;;  %v3912_v28 = vpop.f32.mrb[219].mxu1  ;;  %v6537_v49 = vadd.f32 %v8578_v19, %v9429_v40  ;;  %v9430_v16 = vld [vmem:[#allocation43_spill] sm:$0xff]  ;;  %v9431_v18 = vld [vmem:[#allocation16_spill] sm:$0xff] }
 0x2da   : > { %v4348_v37 = vmax.f32 %v3910_v5, 0.0  ;;  %v3913_v41 = vadd.f32 %v6532_v51, %v3912_v28  ;;  %v6535_v43 = vadd.f32 %v8578_v19, %v9430_v16 }
 0x2db   : > { %9427 = vst [vmem:[#allocation7_spill] sm:$0xff] %v8626_v10  ;;  %v6160_v21 = vpack.c.bf16 %v4350_v39, %v4350_v39  ;;  %v4351_v20 = vmax.f32 %v3921_v35, 0.0  ;;  %v3039_v39 = vadd.f32 %v8578_v19, %v9431_v18  ;;  %v9432_v35 = vld [vmem:[#allocation49_spill] sm:$0xff] }
 0x2dc   : > { %v6158_v3 = vpack.c.bf16 %v4348_v37, %v4348_v37  ;;  %v4349_v0 = vmax.f32 %v3913_v41, 0.0  ;;  %v6538_v12 = vadd.f32 %v8578_v19, %v9432_v35 }
 0x2dd   : > { %4991 = vst.msk [vmem:[%s8460_s12 + $0x68] sm:$0xf] %vm4964_vm2, %v6160_v21  ;;  %v6161_v31 = vpack.c.bf16 %v4351_v20, %v4351_v20  ;;  %v9433_v20 = vld [vmem:[#allocation45_spill] sm:$0xff] }
 0x2de   : > { %4989 = vst.msk [vmem:[%s8460_s12 + $0x60] sm:$0xf] %vm4964_vm2, %v6158_v3  ;;  %v6159_v51 = vpack.c.bf16 %v4349_v0, %v4349_v0  ;;  %v3580_v5 = vpop.f32.mrb[156].mxu0  ;;  %v6377_v58 = vpop.f32.mrb[220].mxu1  ;;  %v6536_v8 = vadd.f32 %v8578_v19, %v9433_v20 }
 0x2df   : > { %4992 = vst.msk [vmem:[%s8460_s12 + $0x6c] sm:$0xf] %vm4964_vm2, %v6161_v31  ;;  %v8644_v28 = vadd.f32 %v3580_v5, %v3036_v27  ;;  %v3934_v37 = vadd.f32 %v6537_v49, %v6377_v58  ;;  %v3582_v41 = vpop.f32.mrb[157].mxu0  ;;  %v3925_v21 = vpop.f32.mrb[221].mxu1 }
 0x2e0   : > { %4990 = vst.msk [vmem:[%s8460_s12 + $0x64] sm:$0xf] %vm4964_vm2, %v6159_v51  ;;  %v3926_v3 = vadd.f32 %v6535_v43, %v3925_v21  ;;  %v3583_v0 = vpop.f32.mrb[158].mxu0  ;;  %v6378_v40 = vpop.f32.mrb[222].mxu1  ;;  %v9434_v51 = vld [vmem:[#allocation18_spill] sm:$0xff] }
 0x2e1   : > { %v4354_v16 = vmax.f32 %v3934_v37, 0.0  ;;  %v8650_v18 = vadd.f32 %v3583_v0, %v3039_v39  ;;  %v3937_v35 = vadd.f32 %v6538_v12, %v6378_v40  ;;  %v3585_v31 = vpop.f32.mrb[159].mxu0  ;;  %v3928_v27 = vpop.f32.mrb[223].mxu1  ;;  %v3044_v43 = vadd.f32 %v8578_v19, %v9434_v51  ;;  %v9435_v0 = vld [vmem:[#allocation20_spill] sm:$0xff] }
 0x2e2   : > { %v4352_v49 = vmax.f32 %v3926_v3, 0.0  ;;  %v3929_v5 = vadd.f32 %v6536_v8, %v3928_v27  ;;  %v3047_v3 = vadd.f32 %v8578_v19, %v9435_v0 }
 0x2e3   : > { %v6164_v58 = vpack.c.bf16 %v4354_v16, %v4354_v16  ;;  %v4355_v41 = vmax.f32 %v3937_v35, 0.0 }
 0x2e4   : > { %v6162_v20 = vpack.c.bf16 %v4352_v49, %v4352_v49  ;;  %v4353_v10 = vmax.f32 %v3929_v5, 0.0 }
 0x2e5   : > { %4995 = vst.msk [vmem:[%s8460_s12 + $0x78] sm:$0xf] %vm4964_vm2, %v6164_v58  ;;  %v6165_v21 = vpack.c.bf16 %v4355_v41, %v4355_v41 }
 0x2e6   : > { %4993 = vst.msk [vmem:[%s8460_s12 + $0x70] sm:$0xf] %vm4964_vm2, %v6162_v20  ;;  %v6163_v39 = vpack.c.bf16 %v4353_v10, %v4353_v10  ;;  %v3588_v12 = vpop.f32.mrb[160].mxu0  ;;  %v6381_v37 = vpop.f32.mrb[224].mxu1 }
 0x2e7   : > { %4996 = vst.msk [vmem:[%s8460_s12 + $0x7c] sm:$0xf] %vm4964_vm2, %v6165_v21  ;;  %v8662_v8 = vadd.f32 %v3588_v12, %v3044_v43  ;;  %v3950_v40 = vadd.f32 %v6381_v37, %v8164_v32  ;;  %v3590_v16 = vpop.f32.mrb[161].mxu0  ;;  %v3941_v35 = vpop.f32.mrb[225].mxu1 }
 0x2e8   : > { %4994 = vst.msk [vmem:[%s8460_s12 + $0x74] sm:$0xf] %vm4964_vm2, %v6163_v39  ;;  %v3942_v31 = vadd.f32 %v3941_v35, %v8146_v29  ;;  %v3591_v27 = vpop.f32.mrb[162].mxu0  ;;  %v6382_v10 = vpop.f32.mrb[226].mxu1  ;;  %v9436_v29 = vld [vmem:[#allocation22_spill] sm:$0xff]  ;;  %v9437_v16 = vld [vmem:[#allocation24_spill] sm:$0xff] }
 0x2e9   : > { %v4358_v49 = vmax.f32 %v3950_v40, 0.0  ;;  %v8668_v5 = vadd.f32 %v3591_v27, %v3047_v3  ;;  %v3953_v58 = vadd.f32 %v6382_v10, %v8174_v30  ;;  %v3593_v41 = vpop.f32.mrb[163].mxu0  ;;  %v3944_v20 = vpop.f32.mrb[227].mxu1  ;;  %v3052_v37 = vadd.f32 %v8578_v19, %v9436_v29 }
 0x2ea   : > { %v4356_v51 = vmax.f32 %v3942_v31, 0.0  ;;  %v3945_v32 = vadd.f32 %v3944_v20, %v8156_v22  ;;  %v3055_v35 = vadd.f32 %v8578_v19, %v9437_v16 }
 0x2eb   : > { %v6168_v43 = vpack.c.bf16 %v4358_v49, %v4358_v49  ;;  %v4359_v21 = vmax.f32 %v3953_v58, 0.0 }
 0x2ec   : > { %v6166_v39 = vpack.c.bf16 %v4356_v51, %v4356_v51  ;;  %v4357_v12 = vmax.f32 %v3945_v32, 0.0 }
 0x2ed   : > { %4999 = vst.msk [vmem:[%s8460_s12 + $0x88] sm:$0xf] %vm4964_vm2, %v6168_v43  ;;  %v6169_v0 = vpack.c.bf16 %v4359_v21, %v4359_v21 }
 0x2ee   : > { %4997 = vst.msk [vmem:[%s8460_s12 + $0x80] sm:$0xf] %vm4964_vm2, %v6166_v39  ;;  %v6167_v30 = vpack.c.bf16 %v4357_v12, %v4357_v12  ;;  %v3596_v3 = vpop.f32.mrb[164].mxu0  ;;  %v6385_v40 = vpop.f32.mrb[228].mxu1 }
 0x2ef   : > { %5000 = vst.msk [vmem:[%s8460_s12 + $0x8c] sm:$0xf] %vm4964_vm2, %v6169_v0  ;;  %v8682_v22 = vadd.f32 %v3596_v3, %v3052_v37  ;;  %v3966_v31 = vadd.f32 %v6385_v40, %v8200_v47  ;;  %v3598_v27 = vpop.f32.mrb[165].mxu0  ;;  %v3957_v10 = vpop.f32.mrb[229].mxu1 }
 0x2f0   : > { %4998 = vst.msk [vmem:[%s8460_s12 + $0x84] sm:$0xf] %vm4964_vm2, %v6167_v30  ;;  %v3958_v49 = vadd.f32 %v3957_v10, %v8182_v15  ;;  %v3599_v58 = vpop.f32.mrb[166].mxu0  ;;  %v6386_v41 = vpop.f32.mrb[230].mxu1  ;;  %v9438_v15 = vld [vmem:[#allocation26_spill] sm:$0xff] }
 0x2f1   : > { %v4362_v20 = vmax.f32 %v3966_v31, 0.0  ;;  %v8688_v51 = vadd.f32 %v3599_v58, %v3055_v35  ;;  %v3969_v32 = vadd.f32 %v6386_v41, %v8210_v46  ;;  %v3601_v43 = vpop.f32.mrb[167].mxu0  ;;  %v3960_v21 = vpop.f32.mrb[231].mxu1  ;;  %v3060_v30 = vadd.f32 %v8578_v19, %v9438_v15  ;;  %v9439_v35 = vld [vmem:[#allocation28_spill] sm:$0xff] }
 0x2f2   : > { %v4360_v39 = vmax.f32 %v3958_v49, 0.0  ;;  %v3961_v47 = vadd.f32 %v3960_v21, %v8192_v38  ;;  %v3063_v31 = vadd.f32 %v8578_v19, %v9439_v35 }
 0x2f3   : > { %v6172_v12 = vpack.c.bf16 %v4362_v20, %v4362_v20  ;;  %v4363_v29 = vmax.f32 %v3969_v32, 0.0 }
 0x2f4   : > { %v6170_v37 = vpack.c.bf16 %v4360_v39, %v4360_v39  ;;  %v4361_v0 = vmax.f32 %v3961_v47, 0.0 }
 0x2f5   : > { %5003 = vst.msk [vmem:[%s8460_s12 + $0x98] sm:$0xf] %vm4964_vm2, %v6172_v12  ;;  %v6173_v3 = vpack.c.bf16 %v4363_v29, %v4363_v29 }
 0x2f6   : > { %5001 = vst.msk [vmem:[%s8460_s12 + $0x90] sm:$0xf] %vm4964_vm2, %v6170_v37  ;;  %v6171_v46 = vpack.c.bf16 %v4361_v0, %v4361_v0  ;;  %v3604_v40 = vpop.f32.mrb[168].mxu0  ;;  %v6389_v16 = vpop.f32.mrb[232].mxu1 }
 0x2f7   : > { %5004 = vst.msk [vmem:[%s8460_s12 + $0x9c] sm:$0xf] %vm4964_vm2, %v6173_v3  ;;  %v8702_v38 = vadd.f32 %v3604_v40, %v3060_v30  ;;  %v3982_v27 = vadd.f32 %v6389_v16, %v8236_v9  ;;  %v3606_v10 = vpop.f32.mrb[169].mxu0  ;;  %v3973_v49 = vpop.f32.mrb[233].mxu1  ;;  %v9441_v16 = vld [vmem:[#allocation32_spill] sm:$0xff] }
 0x2f8   : > { %5002 = vst.msk [vmem:[%s8460_s12 + $0x94] sm:$0xf] %vm4964_vm2, %v6171_v46  ;;  %v3974_v58 = vadd.f32 %v3973_v49, %v8218_v61  ;;  %v3607_v41 = vpop.f32.mrb[170].mxu0  ;;  %v6390_v20 = vpop.f32.mrb[234].mxu1  ;;  %v9440_v61 = vld [vmem:[#allocation30_spill] sm:$0xff]  ;;  %v3071_v35 = vadd.f32 %v8578_v19, %v9441_v16 }
 0x2f9   : > { %v4366_v32 = vmax.f32 %v3982_v27, 0.0  ;;  %v8708_v43 = vadd.f32 %v3607_v41, %v3063_v31  ;;  %v3985_v21 = vadd.f32 %v6390_v20, %v8246_v62  ;;  %v3609_v39 = vpop.f32.mrb[171].mxu0  ;;  %v3976_v47 = vpop.f32.mrb[235].mxu1  ;;  %v3068_v30 = vadd.f32 %v8578_v19, %v9440_v61 }
 0x2fa   : > { %v4364_v12 = vmax.f32 %v3974_v58, 0.0  ;;  %v3977_v9 = vadd.f32 %v3976_v47, %v8228_v54 }
 0x2fb   : > { %v6176_v29 = vpack.c.bf16 %v4366_v32, %v4366_v32  ;;  %v4367_v37 = vmax.f32 %v3985_v21, 0.0 }
 0x2fc   : > { %v6174_v0 = vpack.c.bf16 %v4364_v12, %v4364_v12  ;;  %v4365_v15 = vmax.f32 %v3977_v9, 0.0 }
 0x2fd   : > { %5007 = vst.msk [vmem:[%s8460_s12 + $0xa8] sm:$0xf] %vm4964_vm2, %v6176_v29  ;;  %v6177_v3 = vpack.c.bf16 %v4367_v37, %v4367_v37 }
 0x2fe   : > { %5005 = vst.msk [vmem:[%s8460_s12 + $0xa0] sm:$0xf] %vm4964_vm2, %v6174_v0  ;;  %v6175_v62 = vpack.c.bf16 %v4365_v15, %v4365_v15  ;;  %v3612_v46 = vpop.f32.mrb[172].mxu0  ;;  %v6393_v40 = vpop.f32.mrb[236].mxu1 }
 0x2ff   : > { %5008 = vst.msk [vmem:[%s8460_s12 + $0xac] sm:$0xf] %vm4964_vm2, %v6177_v3  ;;  %v8722_v54 = vadd.f32 %v3612_v46, %v3068_v30  ;;  %v3998_v31 = vadd.f32 %v6393_v40, %v8272_v4  ;;  %v3614_v27 = vpop.f32.mrb[173].mxu0  ;;  %v3989_v10 = vpop.f32.mrb[237].mxu1 }
 0x300   : > { %5006 = vst.msk [vmem:[%s8460_s12 + $0xa4] sm:$0xf] %vm4964_vm2, %v6175_v62  ;;  %v3990_v49 = vadd.f32 %v3989_v10, %v8254_v6  ;;  %v3615_v58 = vpop.f32.mrb[174].mxu0  ;;  %v6394_v41 = vpop.f32.mrb[238].mxu1  ;;  %v9442_v6 = vld [vmem:[#allocation34_spill] sm:$0xff]  ;;  %v9443_v62 = vld [vmem:[#allocation36_spill] sm:$0xff] }
 0x301   : > { %v4370_v20 = vmax.f32 %v3998_v31, 0.0  ;;  %v8728_v32 = vadd.f32 %v3615_v58, %v3071_v35  ;;  %v4001_v21 = vadd.f32 %v6394_v41, %v8282_v1  ;;  %v3617_v39 = vpop.f32.mrb[175].mxu0  ;;  %v3992_v47 = vpop.f32.mrb[239].mxu1  ;;  %v3076_v15 = vadd.f32 %v8578_v19, %v9442_v6 }
 0x302   : > { %v4368_v12 = vmax.f32 %v3990_v49, 0.0  ;;  %v3993_v4 = vadd.f32 %v3992_v47, %v8264_v7  ;;  %v3079_v46 = vadd.f32 %v8578_v19, %v9443_v62 }
 0x303   : > { %v6180_v9 = vpack.c.bf16 %v4370_v20, %v4370_v20  ;;  %v4371_v29 = vmax.f32 %v4001_v21, 0.0 }
 0x304   : > { %v6178_v37 = vpack.c.bf16 %v4368_v12, %v4368_v12  ;;  %v4369_v0 = vmax.f32 %v3993_v4, 0.0 }
 0x305   : > { %5011 = vst.msk [vmem:[%s8460_s12 + $0xb8] sm:$0xf] %vm4964_vm2, %v6180_v9  ;;  %v6181_v61 = vpack.c.bf16 %v4371_v29, %v4371_v29 }
 0x306   : > { %5009 = vst.msk [vmem:[%s8460_s12 + $0xb0] sm:$0xf] %vm4964_vm2, %v6178_v37  ;;  %v6179_v1 = vpack.c.bf16 %v4369_v0, %v4369_v0  ;;  %v3620_v30 = vpop.f32.mrb[176].mxu0  ;;  %v6397_v3 = vpop.f32.mrb[240].mxu1 }
 0x307   : > { %5012 = vst.msk [vmem:[%s8460_s12 + $0xbc] sm:$0xf] %vm4964_vm2, %v6181_v61  ;;  %v8742_v7 = vadd.f32 %v3620_v30, %v3076_v15  ;;  %v4014_v40 = vadd.f32 %v6397_v3, %v8308_v59  ;;  %v3622_v16 = vpop.f32.mrb[177].mxu0  ;;  %v4005_v35 = vpop.f32.mrb[241].mxu1  ;;  %v9445_v15 = vld [vmem:[#allocation40_spill] sm:$0xff] }
 0x308   : > { %5010 = vst.msk [vmem:[%s8460_s12 + $0xb4] sm:$0xf] %vm4964_vm2, %v6179_v1  ;;  %v4006_v31 = vadd.f32 %v4005_v35, %v8290_v57  ;;  %v3623_v27 = vpop.f32.mrb[178].mxu0  ;;  %v6398_v10 = vpop.f32.mrb[242].mxu1  ;;  %v9444_v57 = vld [vmem:[#allocation38_spill] sm:$0xff]  ;;  %v3087_v61 = vadd.f32 %v8578_v19, %v9445_v15 }
 0x309   : > { %v4374_v49 = vmax.f32 %v4014_v40, 0.0  ;;  %v8748_v58 = vadd.f32 %v3623_v27, %v3079_v46  ;;  %v4017_v41 = vadd.f32 %v6398_v10, %v8318_v33  ;;  %v3625_v20 = vpop.f32.mrb[179].mxu0  ;;  %v4008_v21 = vpop.f32.mrb[243].mxu1  ;;  %v3084_v29 = vadd.f32 %v8578_v19, %v9444_v57 }
 0x30a   : > { %v4372_v39 = vmax.f32 %v4006_v31, 0.0  ;;  %v4009_v59 = vadd.f32 %v4008_v21, %v8300_v23 }
 0x30b   : > { %v6184_v47 = vpack.c.bf16 %v4374_v49, %v4374_v49  ;;  %v4375_v12 = vmax.f32 %v4017_v41, 0.0 }
 0x30c   : > { %v6182_v4 = vpack.c.bf16 %v4372_v39, %v4372_v39  ;;  %v4373_v9 = vmax.f32 %v4009_v59, 0.0 }
 0x30d   : > { %5015 = vst.msk [vmem:[%s8460_s12 + $0xc8] sm:$0xf] %vm4964_vm2, %v6184_v47  ;;  %v6185_v37 = vpack.c.bf16 %v4375_v12, %v4375_v12 }
 0x30e   : > { %5013 = vst.msk [vmem:[%s8460_s12 + $0xc0] sm:$0xf] %vm4964_vm2, %v6182_v4  ;;  %v6183_v33 = vpack.c.bf16 %v4373_v9, %v4373_v9  ;;  %v3628_v0 = vpop.f32.mrb[180].mxu0  ;;  %v6401_v6 = vpop.f32.mrb[244].mxu1  ;;  %v9447_v9 = vld [vmem:[#allocation44_spill] sm:$0xff] }
 0x30f   : > { %5016 = vst.msk [vmem:[%s8460_s12 + $0xcc] sm:$0xf] %vm4964_vm2, %v6185_v37  ;;  %v8762_v23 = vadd.f32 %v3628_v0, %v3084_v29  ;;  %v4030_v1 = vadd.f32 %v6401_v6, %v8344_v26  ;;  %v3630_v30 = vpop.f32.mrb[181].mxu0  ;;  %v4021_v3 = vpop.f32.mrb[245].mxu1  ;;  %v3095_v57 = vadd.f32 %v8578_v19, %v9447_v9 }
 0x310   : > { %5014 = vst.msk [vmem:[%s8460_s12 + $0xc4] sm:$0xf] %vm4964_vm2, %v6183_v33  ;;  %v4022_v62 = vadd.f32 %v4021_v3, %v8326_v25  ;;  %v3631_v46 = vpop.f32.mrb[182].mxu0  ;;  %v6402_v40 = vpop.f32.mrb[246].mxu1  ;;  %v9446_v25 = vld [vmem:[#allocation42_spill] sm:$0xff] }
 0x311   : > { %v4378_v16 = vmax.f32 %v4030_v1, 0.0  ;;  %v8768_v35 = vadd.f32 %v3631_v46, %v3087_v61  ;;  %v4033_v31 = vadd.f32 %v6402_v40, %v8354_v55  ;;  %v3633_v27 = vpop.f32.mrb[183].mxu0  ;;  %v4024_v10 = vpop.f32.mrb[247].mxu1  ;;  %v3092_v59 = vadd.f32 %v8578_v19, %v9446_v25 }
 0x312   : > { %v4376_v49 = vmax.f32 %v4022_v62, 0.0  ;;  %v4025_v26 = vadd.f32 %v4024_v10, %v8336_v44 }
 0x313   : > { %v6188_v41 = vpack.c.bf16 %v4378_v16, %v4378_v16  ;;  %v4379_v20 = vmax.f32 %v4033_v31, 0.0 }
 0x314   : > { %v6186_v21 = vpack.c.bf16 %v4376_v49, %v4376_v49  ;;  %v4377_v39 = vmax.f32 %v4025_v26, 0.0 }
 0x315   : > { %5019 = vst.msk [vmem:[%s8460_s12 + $0xd8] sm:$0xf] %vm4964_vm2, %v6188_v41  ;;  %v6189_v47 = vpack.c.bf16 %v4379_v20, %v4379_v20  ;;  %v9449_v20 = vld [vmem:[#allocation48_spill] sm:$0xff] }
 0x316   : > { %5017 = vst.msk [vmem:[%s8460_s12 + $0xd0] sm:$0xf] %vm4964_vm2, %v6186_v21  ;;  %v6187_v55 = vpack.c.bf16 %v4377_v39, %v4377_v39  ;;  %v3636_v12 = vpop.f32.mrb[184].mxu0  ;;  %v6405_v4 = vpop.f32.mrb[248].mxu1  ;;  %v3103_v21 = vadd.f32 %v8578_v19, %v9449_v20  ;;  %v9450_v39 = vld [vmem:[#allocation83_spill] sm:$0xff] }
 0x317   : > { %5020 = vst.msk [vmem:[%s8460_s12 + $0xdc] sm:$0xf] %vm4964_vm2, %v6189_v47  ;;  %v8782_v44 = vadd.f32 %v3636_v12, %v3092_v59  ;;  %v4046_v29 = vadd.f32 %v6405_v4, %v8380_v42  ;;  %v3638_v37 = vpop.f32.mrb[185].mxu0  ;;  %v4037_v33 = vpop.f32.mrb[249].mxu1 }
 0x318   : > { %5018 = vst.msk [vmem:[%s8460_s12 + $0xd4] sm:$0xf] %vm4964_vm2, %v6187_v55  ;;  %v4038_v0 = vadd.f32 %v4037_v33, %v8362_v34  ;;  %v3639_v6 = vpop.f32.mrb[186].mxu0  ;;  %v6406_v15 = vpop.f32.mrb[250].mxu1  ;;  %v9448_v34 = vld [vmem:[#allocation46_spill] sm:$0xff]  ;;  %v9451_v55 = vld [vmem:[#allocation79_spill] sm:$0xff] }
 0x319   : > { %v4382_v61 = vmax.f32 %v4046_v29, 0.0  ;;  %v8788_v1 = vadd.f32 %v3639_v6, %v3095_v57  ;;  %v4049_v30 = vadd.f32 %v6406_v15, %v8390_v13  ;;  %v3641_v3 = vpop.f32.mrb[187].mxu0  ;;  %v4040_v62 = vpop.f32.mrb[251].mxu1  ;;  %v3100_v10 = vadd.f32 %v8578_v19, %v9448_v34  ;;  %v9452_v37 = vld [vmem:[#allocation85_spill] sm:$0xff] }
 0x31a   : > { %v4380_v46 = vmax.f32 %v4038_v0, 0.0  ;;  %v4041_v42 = vadd.f32 %v4040_v62, %v8372_v2 }
 0x31b   : > { %v6192_v40 = vpack.c.bf16 %v4382_v61, %v4382_v61  ;;  %v4383_v16 = vmax.f32 %v4049_v30, 0.0  ;;  %v9453_v61 = vld [vmem:[#allocation81_spill] sm:$0xff] }
 0x31c   : > { %v6190_v31 = vpack.c.bf16 %v4380_v46, %v4380_v46  ;;  %v4381_v27 = vmax.f32 %v4041_v42, 0.0 }
 0x31d   : > { %5023 = vst.msk [vmem:[%s8460_s12 + $0xe8] sm:$0xf] %vm4964_vm2, %v6192_v40  ;;  %v6193_v49 = vpack.c.bf16 %v4383_v16, %v4383_v16  ;;  %v9454_v40 = vld [vmem:[#allocation50_spill] sm:$0xff] }
 0x31e   : > { %5021 = vst.msk [vmem:[%s8460_s12 + $0xe0] sm:$0xf] %vm4964_vm2, %v6190_v31  ;;  %v6191_v13 = vpack.c.bf16 %v4381_v27, %v4381_v27  ;;  %v3644_v26 = vpop.f32.mrb[188].mxu0  ;;  %v6409_v41 = vpop.f32.mrb[252].mxu1  ;;  %v3108_v16 = vadd.f32 %v8578_v19, %v9454_v40 }
 0x31f   : > { %5024 = vst.msk [vmem:[%s8460_s12 + $0xec] sm:$0xf] %vm4964_vm2, %v6193_v49  ;;  %v8802_v2 = vadd.f32 %v3644_v26, %v3100_v10  ;;  %v4062_v25 = vadd.f32 %v6409_v41, %v9450_v39  ;;  %v3646_v59 = vpop.f32.mrb[189].mxu0  ;;  %v4053_v47 = vpop.f32.mrb[253].mxu1  ;;  %v9455_v49 = vld [vmem:[#allocation51_spill] sm:$0xff] }
 0x320   : > { %5022 = vst.msk [vmem:[%s8460_s12 + $0xe4] sm:$0xf] %vm4964_vm2, %v6191_v13  ;;  %v4054_v12 = vadd.f32 %v4053_v47, %v9451_v55  ;;  %v3647_v4 = vpop.f32.mrb[190].mxu0  ;;  %v6410_v9 = vpop.f32.mrb[254].mxu1  ;;  %v3111_v13 = vadd.f32 %v8578_v19, %v9455_v49 }
 0x321   : > { %v4386_v57 = vmax.f32 %v4062_v25, 0.0  ;;  %v8808_v29 = vadd.f32 %v3647_v4, %v3103_v21  ;;  %v4065_v33 = vadd.f32 %v6410_v9, %v9452_v37  ;;  %v3649_v0 = vpop.f32.mrb[191].mxu0  ;;  %v4056_v6 = vpop.f32.mrb[255].mxu1 }
 0x322   : > { %v4384_v15 = vmax.f32 %v4054_v12, 0.0  ;;  %v4057_v30 = vadd.f32 %v4056_v6, %v9453_v61 }
 0x323   : > { %v6196_v3 = vpack.c.bf16 %v4386_v57, %v4386_v57  ;;  %v4387_v62 = vmax.f32 %v4065_v33, 0.0 }
 0x324   : > { %v6194_v46 = vpack.c.bf16 %v4384_v15, %v4384_v15  ;;  %v4385_v42 = vmax.f32 %v4057_v30, 0.0 }
 0x325   : > { %5027 = vst.msk [vmem:[%s8460_s12 + $0xf8] sm:$0xf] %vm4964_vm2, %v6196_v3  ;;  %v6197_v31 = vpack.c.bf16 %v4387_v62, %v4387_v62  ;;  %v9457_v62 = vld [vmem:[#allocation53_spill] sm:$0xff] }
 0x326   : > { %5025 = vst.msk [vmem:[%s8460_s12 + $0xf0] sm:$0xf] %vm4964_vm2, %v6194_v46  ;;  %v6195_v27 = vpack.c.bf16 %v4385_v42, %v4385_v42  ;;  %v3652_v34 = vpop.f32.mrb[192].mxu0  ;;  %v6413_v10 = vpop.f32.mrb[0].mxu1  ;;  %v3119_v46 = vadd.f32 %v8578_v19, %v9457_v62 }
 0x327   : > { %5028 = vst.msk [vmem:[%s8460_s12 + $0xfc] sm:$0xf] %vm4964_vm2, %v6197_v31  ;;  %v8822_v26 = vadd.f32 %v3652_v34, %v3108_v16  ;;  %v4078_v41 = vadd.f32 %v6413_v10, %v8474_v52  ;;  %v3654_v20 = vpop.f32.mrb[193].mxu0  ;;  %v4069_v21 = vpop.f32.mrb[1].mxu1 }
 0x328   : > { %5026 = vst.msk [vmem:[%s8460_s12 + $0xf4] sm:$0xf] %vm4964_vm2, %v6195_v27  ;;  %v4070_v39 = vadd.f32 %v4069_v21, %v8443_v11  ;;  %v3655_v25 = vpop.f32.mrb[194].mxu0  ;;  %v6414_v59 = vpop.f32.mrb[2].mxu1  ;;  %v9456_v11 = vld [vmem:[#allocation52_spill] sm:$0xff] }
 0x329   : > { %v4390_v47 = vmax.f32 %v4078_v41, 0.0  ;;  %v8828_v55 = vadd.f32 %v3655_v25, %v3111_v13  ;;  %v4081_v12 = vadd.f32 %v6414_v59, %v8484_v17  ;;  %v3657_v4 = vpop.f32.mrb[195].mxu0  ;;  %v4072_v9 = vpop.f32.mrb[3].mxu1  ;;  %v3116_v15 = vadd.f32 %v8578_v19, %v9456_v11 }
 0x32a   : > { %v4388_v57 = vmax.f32 %v4070_v39, 0.0  ;;  %v4073_v52 = vadd.f32 %v4072_v9, %v8451_v63 }
 0x32b   : > { %v6200_v37 = vpack.c.bf16 %v4390_v47, %v4390_v47  ;;  %v4391_v33 = vmax.f32 %v4081_v12, 0.0 }
 0x32c   : > { %v6198_v0 = vpack.c.bf16 %v4388_v57, %v4388_v57  ;;  %v4389_v6 = vmax.f32 %v4073_v52, 0.0  ;;  %v9459_v52 = vld [vmem:[#allocation55_spill] sm:$0xff] }
 0x32d   : > { %5031 = vst.msk [vmem:[%s8460_s12 + $0x108] sm:$0xf] %vm4964_vm2, %v6200_v37  ;;  %v6201_v61 = vpack.c.bf16 %v4391_v33, %v4391_v33  ;;  %v3127_v37 = vadd.f32 %v8578_v19, %v9459_v52 }
 0x32e   : > { %5029 = vst.msk [vmem:[%s8460_s12 + $0x100] sm:$0xf] %vm4964_vm2, %v6198_v0  ;;  %v6199_v17 = vpack.c.bf16 %v4389_v6, %v4389_v6  ;;  %v3660_v30 = vpop.f32.mrb[196].mxu0  ;;  %v6417_v3 = vpop.f32.mrb[4].mxu1 }
 0x32f   : > { %5032 = vst.msk [vmem:[%s8460_s12 + $0x10c] sm:$0xf] %vm4964_vm2, %v6201_v61  ;;  %v8842_v63 = vadd.f32 %v3660_v30, %v3116_v15  ;;  %v4094_v42 = vadd.f32 %v6417_v3, %v8534_v45  ;;  %v3662_v40 = vpop.f32.mrb[197].mxu0  ;;  %v4085_v16 = vpop.f32.mrb[5].mxu1 }
 0x330   : > { %5030 = vst.msk [vmem:[%s8460_s12 + $0x104] sm:$0xf] %vm4964_vm2, %v6199_v17  ;;  %v4086_v31 = vadd.f32 %v4085_v16, %v8504_v36  ;;  %v3663_v27 = vpop.f32.mrb[198].mxu0  ;;  %v6418_v34 = vpop.f32.mrb[6].mxu1  ;;  %v9458_v36 = vld [vmem:[#allocation54_spill] sm:$0xff] }
 0x331   : > { %v4394_v10 = vmax.f32 %v4094_v42, 0.0  ;;  %v8848_v49 = vadd.f32 %v3663_v27, %v3119_v46  ;;  %v4097_v13 = vadd.f32 %v6418_v34, %v8544_v24  ;;  %v3665_v41 = vpop.f32.mrb[199].mxu0  ;;  %v4088_v20 = vpop.f32.mrb[7].mxu1  ;;  %v3124_v12 = vadd.f32 %v8578_v19, %v9458_v36 }
 0x332   : > { %v4392_v21 = vmax.f32 %v4086_v31, 0.0  ;;  %v4089_v45 = vadd.f32 %v4088_v20, %v8514_v60  ;;  %v9461_v20 = vld [vmem:[#allocation57_spill] sm:$0xff] }
 0x333   : > { %v6204_v39 = vpack.c.bf16 %v4394_v10, %v4394_v10  ;;  %v4395_v25 = vmax.f32 %v4097_v13, 0.0 }
 0x334   : > { %v6202_v59 = vpack.c.bf16 %v4392_v21, %v4392_v21  ;;  %v4393_v47 = vmax.f32 %v4089_v45, 0.0  ;;  %v3135_v21 = vadd.f32 %v8578_v19, %v9461_v20 }
 0x335   : > { %5035 = vst.msk [vmem:[%s8460_s12 + $0x118] sm:$0xf] %vm4964_vm2, %v6204_v39  ;;  %v6205_v4 = vpack.c.bf16 %v4395_v25, %v4395_v25 }
 0x336   : > { %5033 = vst.msk [vmem:[%s8460_s12 + $0x110] sm:$0xf] %vm4964_vm2, %v6202_v59  ;;  %v6203_v24 = vpack.c.bf16 %v4393_v47, %v4393_v47  ;;  %v3668_v9 = vpop.f32.mrb[200].mxu0  ;;  %v6421_v57 = vpop.f32.mrb[8].mxu1 }
 0x337   : > { %5036 = vst.msk [vmem:[%s8460_s12 + $0x11c] sm:$0xf] %vm4964_vm2, %v6205_v4  ;;  %v8862_v60 = vadd.f32 %v3668_v9, %v3124_v12  ;;  %v4110_v33 = vadd.f32 %v6421_v57, %v8596_v53  ;;  %v3670_v0 = vpop.f32.mrb[201].mxu0  ;;  %v4101_v6 = vpop.f32.mrb[9].mxu1 }
 0x338   : > { %5034 = vst.msk [vmem:[%s8460_s12 + $0x114] sm:$0xf] %vm4964_vm2, %v6203_v24  ;;  %v4102_v11 = vadd.f32 %v4101_v6, %v8564_v50  ;;  %v3671_v15 = vpop.f32.mrb[202].mxu0  ;;  %v6422_v61 = vpop.f32.mrb[10].mxu1  ;;  %v9460_v50 = vld [vmem:[#allocation56_spill] sm:$0xff] }
 0x339   : > { %v4398_v17 = vmax.f32 %v4110_v33, 0.0  ;;  %v8868_v30 = vadd.f32 %v3671_v15, %v3127_v37  ;;  %v4113_v3 = vadd.f32 %v6422_v61, %v8602_v48  ;;  %v3673_v62 = vpop.f32.mrb[203].mxu0  ;;  %v4104_v46 = vpop.f32.mrb[11].mxu1  ;;  %v3132_v34 = vadd.f32 %v8578_v19, %v9460_v50 }
 0x33a   : > { %v4396_v42 = vmax.f32 %v4102_v11, 0.0  ;;  %v4105_v53 = vadd.f32 %v4104_v46, %v8572_v56  ;;  %v9464_v62 = vld [vmem:[#allocation59_spill] sm:$0xff] }
 0x33b   : > { %v6208_v40 = vpack.c.bf16 %v4398_v17, %v4398_v17  ;;  %v4399_v16 = vmax.f32 %v4113_v3, 0.0  ;;  %v3143_v46 = vadd.f32 %v8578_v19, %v9464_v62 }
 0x33c   : > { %v6206_v31 = vpack.c.bf16 %v4396_v42, %v4396_v42  ;;  %v4397_v27 = vmax.f32 %v4105_v53, 0.0 }
 0x33d   : > { %5039 = vst.msk [vmem:[%s8460_s12 + $0x128] sm:$0xf] %vm4964_vm2, %v6208_v40  ;;  %v6209_v10 = vpack.c.bf16 %v4399_v16, %v4399_v16 }
 0x33e   : > { %5037 = vst.msk [vmem:[%s8460_s12 + $0x120] sm:$0xf] %vm4964_vm2, %v6206_v31  ;;  %v6207_v48 = vpack.c.bf16 %v4397_v27, %v4397_v27  ;;  %v3676_v13 = vpop.f32.mrb[204].mxu0  ;;  %v6425_v41 = vpop.f32.mrb[12].mxu1 }
 0x33f   : > { %5040 = vst.msk [vmem:[%s8460_s12 + $0x12c] sm:$0xf] %vm4964_vm2, %v6209_v10  ;;  %v8882_v56 = vadd.f32 %v3676_v13, %v3132_v34  ;;  %v4126_v45 = vadd.f32 %v6425_v41, %v8644_v28  ;;  %v3678_v39 = vpop.f32.mrb[205].mxu0  ;;  %v4117_v25 = vpop.f32.mrb[13].mxu1  ;;  %v9462_v28 = vld [vmem:[#allocation7_spill] sm:$0xff] }
 0x340   : > { %5038 = vst.msk [vmem:[%s8460_s12 + $0x124] sm:$0xf] %vm4964_vm2, %v6207_v48  ;;  %v4118_v59 = vadd.f32 %v4117_v25, %v8620_v14  ;;  %v3679_v47 = vpop.f32.mrb[206].mxu0  ;;  %v6426_v36 = vpop.f32.mrb[14].mxu1  ;;  %v9463_v14 = vld [vmem:[#allocation58_spill] sm:$0xff] }
 0x341   : > { %v4402_v12 = vmax.f32 %v4126_v45, 0.0  ;;  %v8888_v4 = vadd.f32 %v3679_v47, %v3135_v21  ;;  %v4129_v24 = vadd.f32 %v6426_v36, %v8650_v18  ;;  %v3681_v9 = vpop.f32.mrb[207].mxu0  ;;  %v4120_v57 = vpop.f32.mrb[15].mxu1  ;;  %v3140_v15 = vadd.f32 %v8578_v19, %v9463_v14 }
 0x342   : > { %v4400_v52 = vmax.f32 %v4118_v59, 0.0  ;;  %v4121_v37 = vadd.f32 %v4120_v57, %v9462_v28 }
 0x343   : > { %v6212_v33 = vpack.c.bf16 %v4402_v12, %v4402_v12  ;;  %v4403_v0 = vmax.f32 %v4129_v24, 0.0  ;;  %v9466_v24 = vld [vmem:[#allocation61_spill] sm:$0xff] }
 0x344   : > { %v6210_v6 = vpack.c.bf16 %v4400_v52, %v4400_v52  ;;  %v4401_v11 = vmax.f32 %v4121_v37, 0.0  ;;  %v3151_v9 = vadd.f32 %v8578_v19, %v9466_v24 }
 0x345   : > { %5043 = vst.msk [vmem:[%s8460_s12 + $0x138] sm:$0xf] %vm4964_vm2, %v6212_v33  ;;  %v6213_v61 = vpack.c.bf16 %v4403_v0, %v4403_v0 }
 0x346   : > { %5041 = vst.msk [vmem:[%s8460_s12 + $0x130] sm:$0xf] %vm4964_vm2, %v6210_v6  ;;  %v6211_v18 = vpack.c.bf16 %v4401_v11, %v4401_v11  ;;  %v3684_v17 = vpop.f32.mrb[208].mxu0  ;;  %v6429_v3 = vpop.f32.mrb[16].mxu1 }
 0x347   : > { %5044 = vst.msk [vmem:[%s8460_s12 + $0x13c] sm:$0xf] %vm4964_vm2, %v6213_v61  ;;  %v8902_v42 = vadd.f32 %v3684_v17, %v3140_v15  ;;  %v4142_v53 = vadd.f32 %v6429_v3, %v8682_v22  ;;  %v3686_v40 = vpop.f32.mrb[209].mxu0  ;;  %v4133_v16 = vpop.f32.mrb[17].mxu1 }
 0x348   : > { %5042 = vst.msk [vmem:[%s8460_s12 + $0x134] sm:$0xf] %vm4964_vm2, %v6211_v18  ;;  %v4134_v31 = vadd.f32 %v4133_v16, %v8662_v8  ;;  %v3687_v27 = vpop.f32.mrb[210].mxu0  ;;  %v6430_v50 = vpop.f32.mrb[18].mxu1  ;;  %v9465_v8 = vld [vmem:[#allocation60_spill] sm:$0xff] }
 0x349   : > { %v4406_v34 = vmax.f32 %v4142_v53, 0.0  ;;  %v8908_v10 = vadd.f32 %v3687_v27, %v3143_v46  ;;  %v4145_v48 = vadd.f32 %v6430_v50, %v8688_v51  ;;  %v3689_v13 = vpop.f32.mrb[211].mxu0  ;;  %v4136_v41 = vpop.f32.mrb[19].mxu1  ;;  %v3148_v59 = vadd.f32 %v8578_v19, %v9465_v8  ;;  %v9468_v27 = vld [vmem:[#allocation63_spill] sm:$0xff] }
 0x34a   : > { %v4404_v20 = vmax.f32 %v4134_v31, 0.0  ;;  %v4137_v22 = vadd.f32 %v4136_v41, %v8668_v5  ;;  %v3159_v50 = vadd.f32 %v8578_v19, %v9468_v27 }
 0x34b   : > { %v6216_v21 = vpack.c.bf16 %v4406_v34, %v4406_v34  ;;  %v4407_v45 = vmax.f32 %v4145_v48, 0.0 }
 0x34c   : > { %v6214_v39 = vpack.c.bf16 %v4404_v20, %v4404_v20  ;;  %v4405_v25 = vmax.f32 %v4137_v22, 0.0 }
 0x34d   : > { %5047 = vst.msk [vmem:[%s8460_s12 + $0x148] sm:$0xf] %vm4964_vm2, %v6216_v21  ;;  %v6217_v47 = vpack.c.bf16 %v4407_v45, %v4407_v45 }
 0x34e   : > { %5045 = vst.msk [vmem:[%s8460_s12 + $0x140] sm:$0xf] %vm4964_vm2, %v6214_v39  ;;  %v6215_v51 = vpack.c.bf16 %v4405_v25, %v4405_v25  ;;  %v3692_v36 = vpop.f32.mrb[212].mxu0  ;;  %v6433_v12 = vpop.f32.mrb[20].mxu1 }
 0x34f   : > { %5048 = vst.msk [vmem:[%s8460_s12 + $0x14c] sm:$0xf] %vm4964_vm2, %v6217_v47  ;;  %v8922_v5 = vadd.f32 %v3692_v36, %v3148_v59  ;;  %v4158_v57 = vadd.f32 %v6433_v12, %v8722_v54  ;;  %v3694_v52 = vpop.f32.mrb[213].mxu0  ;;  %v4149_v28 = vpop.f32.mrb[21].mxu1  ;;  %v8955_v36 = vld [vmem:[%s9316_s2] ss:$0 sm:$0xff] }
 0x350   : > { %5046 = vst.msk [vmem:[%s8460_s12 + $0x144] sm:$0xf] %vm4964_vm2, %v6215_v51  ;;  %v4150_v37 = vadd.f32 %v4149_v28, %v8702_v38  ;;  %v3695_v33 = vpop.f32.mrb[214].mxu0  ;;  %v6434_v0 = vpop.f32.mrb[22].mxu1  ;;  %v9467_v38 = vld [vmem:[#allocation62_spill] sm:$0xff]  ;;  %v9469_v12 = vld [vmem:[#allocation64_spill] sm:$0xff] }
 0x351   : > { %v4410_v6 = vmax.f32 %v4158_v57, 0.0  ;;  %v8928_v11 = vadd.f32 %v3695_v33, %v3151_v9  ;;  %v4161_v14 = vadd.f32 %v6434_v0, %v8728_v32  ;;  %v3697_v15 = vpop.f32.mrb[215].mxu0  ;;  %v4152_v61 = vpop.f32.mrb[23].mxu1  ;;  %v3156_v53 = vadd.f32 %v8578_v19, %v9467_v38  ;;  %v9470_v52 = vld [vmem:[#allocation65_spill] sm:$0xff] }
 0x352   : > { %v4408_v18 = vmax.f32 %v4150_v37, 0.0  ;;  %v4153_v54 = vadd.f32 %v4152_v61, %v8708_v43  ;;  %v3164_v24 = vadd.f32 %v8955_v36, %v9469_v12  ;;  %v3167_v28 = vadd.f32 %v8955_v36, %v9470_v52  ;;  %v9474_v52 = vld [vmem:[#allocation69_spill] sm:$0xff] }
 0x353   : > { %v6220_v17 = vpack.c.bf16 %v4410_v6, %v4410_v6  ;;  %v4411_v3 = vmax.f32 %v4161_v14, 0.0 }
 0x354   : > { %v6218_v62 = vpack.c.bf16 %v4408_v18, %v4408_v18  ;;  %v4409_v46 = vmax.f32 %v4153_v54, 0.0 }
 0x355   : > { %5051 = vst.msk [vmem:[%s8460_s12 + $0x158] sm:$0xf] %vm4964_vm2, %v6220_v17  ;;  %v6221_v40 = vpack.c.bf16 %v4411_v3, %v4411_v3 }
 0x356   : > { %5049 = vst.msk [vmem:[%s8460_s12 + $0x150] sm:$0xf] %vm4964_vm2, %v6218_v62  ;;  %v6219_v32 = vpack.c.bf16 %v4409_v46, %v4409_v46  ;;  %v3700_v16 = vpop.f32.mrb[216].mxu0  ;;  %v6437_v31 = vpop.f32.mrb[24].mxu1 }
 0x357   : > { %5052 = vst.msk [vmem:[%s8460_s12 + $0x15c] sm:$0xf] %vm4964_vm2, %v6221_v40  ;;  %v8942_v43 = vadd.f32 %v3700_v16, %v3156_v53  ;;  %v4174_v34 = vadd.f32 %v6437_v31, %v8762_v23  ;;  %v3702_v48 = vpop.f32.mrb[217].mxu0  ;;  %v4165_v13 = vpop.f32.mrb[25].mxu1 }
 0x358   : > { %5050 = vst.msk [vmem:[%s8460_s12 + $0x154] sm:$0xf] %vm4964_vm2, %v6219_v32  ;;  %v4166_v41 = vadd.f32 %v4165_v13, %v8742_v7  ;;  %v3703_v20 = vpop.f32.mrb[218].mxu0  ;;  %v6438_v22 = vpop.f32.mrb[26].mxu1 }
 0x359   : > { %v4414_v21 = vmax.f32 %v4174_v34, 0.0  ;;  %v8948_v45 = vadd.f32 %v3703_v20, %v3159_v50  ;;  %v4177_v19 = vadd.f32 %v6438_v22, %v8768_v35  ;;  %v3705_v39 = vpop.f32.mrb[219].mxu0  ;;  %v4168_v25 = vpop.f32.mrb[27].mxu1  ;;  %v9472_v34 = vld [vmem:[#allocation67_spill] sm:$0xff] }
 0x35a   : > { %v4412_v8 = vmax.f32 %v4166_v41, 0.0  ;;  %v4169_v23 = vadd.f32 %v4168_v25, %v8748_v58  ;;  %v3175_v48 = vadd.f32 %v8955_v36, %v9472_v34 }
 0x35b   : > { %v6224_v59 = vpack.c.bf16 %v4414_v21, %v4414_v21  ;;  %v4415_v47 = vmax.f32 %v4177_v19, 0.0 }
 0x35c   : > { %v6222_v51 = vpack.c.bf16 %v4412_v8, %v4412_v8  ;;  %v4413_v7 = vmax.f32 %v4169_v23, 0.0 }
 0x35d   : > { %5055 = vst.msk [vmem:[%s8460_s12 + $0x168] sm:$0xf] %vm4964_vm2, %v6224_v59  ;;  %v6225_v35 = vpack.c.bf16 %v4415_v47, %v4415_v47 }
 0x35e   : > { %5053 = vst.msk [vmem:[%s8460_s12 + $0x160] sm:$0xf] %vm4964_vm2, %v6222_v51  ;;  %v6223_v9 = vpack.c.bf16 %v4413_v7, %v4413_v7  ;;  %v3708_v58 = vpop.f32.mrb[220].mxu0  ;;  %v6441_v57 = vpop.f32.mrb[28].mxu1 }
 0x35f   : > { %5056 = vst.msk [vmem:[%s8460_s12 + $0x16c] sm:$0xf] %vm4964_vm2, %v6225_v35  ;;  %v8967_v37 = vadd.f32 %v3708_v58, %v3164_v24  ;;  %v4190_v33 = vadd.f32 %v6441_v57, %v8802_v2  ;;  %v3710_v0 = vpop.f32.mrb[221].mxu0  ;;  %v4181_v6 = vpop.f32.mrb[29].mxu1 }
 0x360   : > { %5054 = vst.msk [vmem:[%s8460_s12 + $0x164] sm:$0xf] %vm4964_vm2, %v6223_v9  ;;  %v4182_v14 = vadd.f32 %v4181_v6, %v8782_v44  ;;  %v3711_v15 = vpop.f32.mrb[222].mxu0  ;;  %v6442_v61 = vpop.f32.mrb[30].mxu1  ;;  %v9471_v44 = vld [vmem:[#allocation66_spill] sm:$0xff] }
 0x361   : > { %v4418_v18 = vmax.f32 %v4190_v33, 0.0  ;;  %v8973_v54 = vadd.f32 %v3711_v15, %v3167_v28  ;;  %v4193_v17 = vadd.f32 %v6442_v61, %v8808_v29  ;;  %v3713_v3 = vpop.f32.mrb[223].mxu0  ;;  %v4184_v62 = vpop.f32.mrb[31].mxu1  ;;  %v3172_v16 = vadd.f32 %v8955_v36, %v9471_v44 }
 0x362   : > { %v4416_v46 = vmax.f32 %v4182_v14, 0.0  ;;  %v4185_v2 = vadd.f32 %v4184_v62, %v8788_v1  ;;  %v3183_v28 = vadd.f32 %v8955_v36, %v9474_v52 }
 0x363   : > { %v6228_v38 = vpack.c.bf16 %v4418_v18, %v4418_v18  ;;  %v4419_v53 = vmax.f32 %v4193_v17, 0.0 }
 0x364   : > { %v6226_v40 = vpack.c.bf16 %v4416_v46, %v4416_v46  ;;  %v4417_v32 = vmax.f32 %v4185_v2, 0.0 }
 0x365   : > { %5059 = vst.msk [vmem:[%s8460_s12 + $0x178] sm:$0xf] %vm4964_vm2, %v6228_v38  ;;  %v6229_v31 = vpack.c.bf16 %v4419_v53, %v4419_v53 }
 0x366   : > { %5057 = vst.msk [vmem:[%s8460_s12 + $0x170] sm:$0xf] %vm4964_vm2, %v6226_v40  ;;  %v6227_v29 = vpack.c.bf16 %v4417_v32, %v4417_v32  ;;  %v3716_v27 = vpop.f32.mrb[224].mxu0  ;;  %v6445_v50 = vpop.f32.mrb[32].mxu1 }
 0x367   : > { %5060 = vst.msk [vmem:[%s8460_s12 + $0x17c] sm:$0xf] %vm4964_vm2, %v6229_v31  ;;  %v8987_v1 = vadd.f32 %v3716_v27, %v3172_v16  ;;  %v4206_v13 = vadd.f32 %v6445_v50, %v8842_v63  ;;  %v3718_v41 = vpop.f32.mrb[225].mxu0  ;;  %v4197_v20 = vpop.f32.mrb[33].mxu1  ;;  %v9476_v27 = vld [vmem:[#allocation71_spill] sm:$0xff] }
 0x368   : > { %5058 = vst.msk [vmem:[%s8460_s12 + $0x174] sm:$0xf] %vm4964_vm2, %v6227_v29  ;;  %v4198_v22 = vadd.f32 %v4197_v20, %v8822_v26  ;;  %v3719_v21 = vpop.f32.mrb[226].mxu0  ;;  %v6446_v19 = vpop.f32.mrb[34].mxu1  ;;  %v9473_v26 = vld [vmem:[#allocation68_spill] sm:$0xff]  ;;  %v3191_v50 = vadd.f32 %v8955_v36, %v9476_v27 }
 0x369   : > { %v4422_v39 = vmax.f32 %v4206_v13, 0.0  ;;  %v8993_v25 = vadd.f32 %v3719_v21, %v3175_v48  ;;  %v4209_v8 = vadd.f32 %v6446_v19, %v8848_v49  ;;  %v3721_v23 = vpop.f32.mrb[227].mxu0  ;;  %v4200_v59 = vpop.f32.mrb[35].mxu1  ;;  %v3180_v35 = vadd.f32 %v8955_v36, %v9473_v26 }
 0x36a   : > { %v4420_v47 = vmax.f32 %v4198_v22, 0.0  ;;  %v4201_v63 = vadd.f32 %v4200_v59, %v8828_v55 }
 0x36b   : > { %v6232_v51 = vpack.c.bf16 %v4422_v39, %v4422_v39  ;;  %v4423_v7 = vmax.f32 %v4209_v8, 0.0 }
 0x36c   : > { %v6230_v12 = vpack.c.bf16 %v4420_v47, %v4420_v47  ;;  %v4421_v24 = vmax.f32 %v4201_v63, 0.0 }
 0x36d   : > { %5063 = vst.msk [vmem:[%s8460_s12 + $0x188] sm:$0xf] %vm4964_vm2, %v6232_v51  ;;  %v6233_v9 = vpack.c.bf16 %v4423_v7, %v4423_v7 }
 0x36e   : > { %5061 = vst.msk [vmem:[%s8460_s12 + $0x180] sm:$0xf] %vm4964_vm2, %v6230_v12  ;;  %v6231_v49 = vpack.c.bf16 %v4421_v24, %v4421_v24  ;;  %v3724_v58 = vpop.f32.mrb[228].mxu0  ;;  %v6449_v57 = vpop.f32.mrb[36].mxu1 }
 0x36f   : > { %5064 = vst.msk [vmem:[%s8460_s12 + $0x18c] sm:$0xf] %vm4964_vm2, %v6233_v9  ;;  %v9007_v55 = vadd.f32 %v3724_v58, %v3180_v35  ;;  %v4222_v33 = vadd.f32 %v6449_v57, %v8882_v56  ;;  %v3726_v0 = vpop.f32.mrb[229].mxu0  ;;  %v4213_v6 = vpop.f32.mrb[37].mxu1  ;;  %v9478_v9 = vld [vmem:[#allocation73_spill] sm:$0xff] }
 0x370   : > { %5062 = vst.msk [vmem:[%s8460_s12 + $0x184] sm:$0xf] %vm4964_vm2, %v6231_v49  ;;  %v4214_v14 = vadd.f32 %v4213_v6, %v8862_v60  ;;  %v3727_v15 = vpop.f32.mrb[230].mxu0  ;;  %v6450_v61 = vpop.f32.mrb[38].mxu1  ;;  %v9475_v60 = vld [vmem:[#allocation70_spill] sm:$0xff]  ;;  %v3199_v49 = vadd.f32 %v8955_v36, %v9478_v9 }
 0x371   : > { %v4426_v18 = vmax.f32 %v4222_v33, 0.0  ;;  %v9013_v17 = vadd.f32 %v3727_v15, %v3183_v28  ;;  %v4225_v3 = vadd.f32 %v6450_v61, %v8888_v4  ;;  %v3729_v62 = vpop.f32.mrb[231].mxu0  ;;  %v4216_v46 = vpop.f32.mrb[39].mxu1  ;;  %v3188_v44 = vadd.f32 %v8955_v36, %v9475_v60  ;;  %v9480_v60 = vld [vmem:[#allocation75_spill] sm:$0xff] }
 0x372   : > { %v4424_v2 = vmax.f32 %v4214_v14, 0.0  ;;  %v4217_v56 = vadd.f32 %v4216_v46, %v8868_v30 }
 0x373   : > { %v6236_v38 = vpack.c.bf16 %v4426_v18, %v4426_v18  ;;  %v4427_v53 = vmax.f32 %v4225_v3, 0.0 }
 0x374   : > { %v6234_v40 = vpack.c.bf16 %v4424_v2, %v4424_v2  ;;  %v4425_v32 = vmax.f32 %v4217_v56, 0.0 }
 0x375   : > { %5067 = vst.msk [vmem:[%s8460_s12 + $0x198] sm:$0xf] %vm4964_vm2, %v6236_v38  ;;  %v6237_v16 = vpack.c.bf16 %v4427_v53, %v4427_v53  ;;  %v9479_v38 = vld [vmem:[#allocation74_spill] sm:$0xff] }
 0x376   : > { %5065 = vst.msk [vmem:[%s8460_s12 + $0x190] sm:$0xf] %vm4964_vm2, %v6234_v40  ;;  %v6235_v4 = vpack.c.bf16 %v4425_v32, %v4425_v32  ;;  %v3732_v31 = vpop.f32.mrb[232].mxu0  ;;  %v6453_v29 = vpop.f32.mrb[40].mxu1 }
 0x377   : > { %5068 = vst.msk [vmem:[%s8460_s12 + $0x19c] sm:$0xf] %vm4964_vm2, %v6237_v16  ;;  %v9027_v30 = vadd.f32 %v3732_v31, %v3188_v44  ;;  %v4238_v34 = vadd.f32 %v6453_v29, %v8922_v5  ;;  %v3734_v48 = vpop.f32.mrb[233].mxu0  ;;  %v4229_v13 = vpop.f32.mrb[41].mxu1  ;;  %v3207_v44 = vadd.f32 %v8955_v36, %v9480_v60 }
 0x378   : > { %5066 = vst.msk [vmem:[%s8460_s12 + $0x194] sm:$0xf] %vm4964_vm2, %v6235_v4  ;;  %v4230_v41 = vadd.f32 %v4229_v13, %v8902_v42  ;;  %v3735_v20 = vpop.f32.mrb[234].mxu0  ;;  %v6454_v22 = vpop.f32.mrb[42].mxu1  ;;  %v9477_v42 = vld [vmem:[#allocation72_spill] sm:$0xff] }
 0x379   : > { %v4430_v21 = vmax.f32 %v4238_v34, 0.0  ;;  %v9033_v19 = vadd.f32 %v3735_v20, %v3191_v50  ;;  %v4241_v39 = vadd.f32 %v6454_v22, %v8928_v11  ;;  %v3737_v8 = vpop.f32.mrb[235].mxu0  ;;  %v4232_v23 = vpop.f32.mrb[43].mxu1  ;;  %v3196_v12 = vadd.f32 %v8955_v36, %v9477_v42 }
 0x37a   : > { %v4428_v59 = vmax.f32 %v4230_v41, 0.0  ;;  %v4233_v5 = vadd.f32 %v4232_v23, %v8908_v10 }
 0x37b   : > { %v6240_v47 = vpack.c.bf16 %v4430_v21, %v4430_v21  ;;  %v4431_v63 = vmax.f32 %v4241_v39, 0.0 }
 0x37c   : > { %v6238_v51 = vpack.c.bf16 %v4428_v59, %v4428_v59  ;;  %v4429_v7 = vmax.f32 %v4233_v5, 0.0  ;;  %v9481_v59 = vld [vmem:[#allocation76_spill] sm:$0xff] }
 0x37d   : > { %5071 = vst.msk [vmem:[%s8460_s12 + $0x1a8] sm:$0xf] %vm4964_vm2, %v6240_v47  ;;  %v6241_v24 = vpack.c.bf16 %v4431_v63, %v4431_v63 }
 0x37e   : > { %5069 = vst.msk [vmem:[%s8460_s12 + $0x1a0] sm:$0xf] %vm4964_vm2, %v6238_v51  ;;  %v6239_v11 = vpack.c.bf16 %v4429_v7, %v4429_v7  ;;  %v3740_v26 = vpop.f32.mrb[236].mxu0  ;;  %v6457_v35 = vpop.f32.mrb[44].mxu1  ;;  %v9482_v51 = vld [vmem:[#allocation77_spill] sm:$0xff] }
 0x37f   : > { %5072 = vst.msk [vmem:[%s8460_s12 + $0x1ac] sm:$0xf] %vm4964_vm2, %v6241_v24  ;;  %v3741_v10 = vadd.f32 %v3740_v26, %v3196_v12  ;;  %v4254_v58 = vadd.f32 %v6457_v35, %v8967_v37  ;;  %v3742_v57 = vpop.f32.mrb[237].mxu0  ;;  %v4245_v52 = vpop.f32.mrb[45].mxu1  ;;  %v3215_v7 = vadd.f32 %v8955_v36, %v9482_v51 }
 0x380   : > { %5070 = vst.msk [vmem:[%s8460_s12 + $0x1a4] sm:$0xf] %vm4964_vm2, %v6239_v11  ;;  %v4246_v28 = vadd.f32 %v4245_v52, %v8942_v43  ;;  %v3743_v33 = vpop.f32.mrb[238].mxu0  ;;  %v6458_v0 = vpop.f32.mrb[46].mxu1  ;;  %v3204_v43 = vadd.f32 %v8955_v36, %v9479_v38 }
 0x381   : > { %v4434_v6 = vmax.f32 %v4254_v58, 0.0  ;;  %v3744_v14 = vadd.f32 %v3743_v33, %v3199_v49  ;;  %v4257_v15 = vadd.f32 %v6458_v0, %v8973_v54  ;;  %v3745_v61 = vpop.f32.mrb[239].mxu0  ;;  %v4248_v18 = vpop.f32.mrb[47].mxu1 }
 0x382   : > { %v4432_v3 = vmax.f32 %v4246_v28, 0.0  ;;  %v4249_v37 = vadd.f32 %v4248_v18, %v8948_v45  ;;  %v9483_v61 = vld [vmem:[#allocation78_spill] sm:$0xff] }
 0x383   : > { %v6244_v62 = vpack.c.bf16 %v4434_v6, %v4434_v6  ;;  %v4435_v46 = vmax.f32 %v4257_v15, 0.0 }
 0x384   : > { %v6242_v2 = vpack.c.bf16 %v4432_v3, %v4432_v3  ;;  %v4433_v56 = vmax.f32 %v4249_v37, 0.0 }
 0x385   : > { %5075 = vst.msk [vmem:[%s8460_s12 + $0x1b8] sm:$0xf] %vm4964_vm2, %v6244_v62  ;;  %v6245_v53 = vpack.c.bf16 %v4435_v46, %v4435_v46  ;;  %v9484_v62 = vld [vmem:[#allocation80_spill] sm:$0xff] }
 0x386   : > { %5073 = vst.msk [vmem:[%s8460_s12 + $0x1b0] sm:$0xf] %vm4964_vm2, %v6242_v2  ;;  %v6243_v54 = vpack.c.bf16 %v4433_v56, %v4433_v56  ;;  %v3748_v40 = vpop.f32.mrb[240].mxu0  ;;  %v6461_v32 = vpop.f32.mrb[48].mxu1  ;;  %v3223_v46 = vadd.f32 %v8955_v36, %v9484_v62 }
 0x387   : > { %5076 = vst.msk [vmem:[%s8460_s12 + $0x1bc] sm:$0xf] %vm4964_vm2, %v6245_v53  ;;  %v3749_v45 = vadd.f32 %v3748_v40, %v3204_v43  ;;  %v4270_v16 = vadd.f32 %v6461_v32, %v9007_v55  ;;  %v3750_v4 = vpop.f32.mrb[241].mxu0  ;;  %v4261_v31 = vpop.f32.mrb[49].mxu1 }
 0x388   : > { %5074 = vst.msk [vmem:[%s8460_s12 + $0x1b4] sm:$0xf] %vm4964_vm2, %v6243_v54  ;;  %v4262_v29 = vadd.f32 %v4261_v31, %v8987_v1  ;;  %v3751_v27 = vpop.f32.mrb[242].mxu0  ;;  %v6462_v50 = vpop.f32.mrb[50].mxu1  ;;  %v3212_v1 = vadd.f32 %v8955_v36, %v9481_v59 }
 0x389   : > { %v4438_v34 = vmax.f32 %v4270_v16, 0.0  ;;  %v3752_v48 = vadd.f32 %v3751_v27, %v3207_v44  ;;  %v4273_v13 = vadd.f32 %v6462_v50, %v9013_v17  ;;  %v3753_v41 = vpop.f32.mrb[243].mxu0  ;;  %v4264_v20 = vpop.f32.mrb[51].mxu1 }
 0x38a   : > { %v4436_v22 = vmax.f32 %v4262_v29, 0.0  ;;  %v4265_v55 = vadd.f32 %v4264_v20, %v8993_v25 }
 0x38b   : > { %v6248_v21 = vpack.c.bf16 %v4438_v34, %v4438_v34  ;;  %v4439_v39 = vmax.f32 %v4273_v13, 0.0  ;;  %v9485_v13 = vld [vmem:[#allocation82_spill] sm:$0xff] }
 0x38c   : > { %v6246_v8 = vpack.c.bf16 %v4436_v22, %v4436_v22  ;;  %v4437_v23 = vmax.f32 %v4265_v55, 0.0  ;;  %v3228_v41 = vadd.f32 %v8955_v36, %v9485_v13 }
 0x38d   : > { %5079 = vst.msk [vmem:[%s8460_s12 + $0x1c8] sm:$0xf] %vm4964_vm2, %v6248_v21  ;;  %v6249_v5 = vpack.c.bf16 %v4439_v39, %v4439_v39  ;;  %v9486_v21 = vld [vmem:[#allocation84_spill] sm:$0xff] }
 0x38e   : > { %5077 = vst.msk [vmem:[%s8460_s12 + $0x1c0] sm:$0xf] %vm4964_vm2, %v6246_v8  ;;  %v6247_v17 = vpack.c.bf16 %v4437_v23, %v4437_v23  ;;  %v3756_v47 = vpop.f32.mrb[244].mxu0  ;;  %v6465_v63 = vpop.f32.mrb[52].mxu1  ;;  %v3231_v39 = vadd.f32 %v8955_v36, %v9486_v21 }
 0x38f   : > { %5080 = vst.msk [vmem:[%s8460_s12 + $0x1cc] sm:$0xf] %vm4964_vm2, %v6249_v5  ;;  %v3757_v25 = vadd.f32 %v3756_v47, %v3212_v1  ;;  %v4286_v42 = vadd.f32 %v6465_v63, %v3741_v10  ;;  %v3758_v12 = vpop.f32.mrb[245].mxu0  ;;  %v4277_v24 = vpop.f32.mrb[53].mxu1 }
 0x390   : > { %5078 = vst.msk [vmem:[%s8460_s12 + $0x1c4] sm:$0xf] %vm4964_vm2, %v6247_v17  ;;  %v4278_v11 = vadd.f32 %v4277_v24, %v9027_v30  ;;  %v3759_v26 = vpop.f32.mrb[246].mxu0  ;;  %v6466_v35 = vpop.f32.mrb[54].mxu1  ;;  %v3220_v30 = vadd.f32 %v8955_v36, %v9483_v61 }
 0x391   : > { %v4442_v9 = vmax.f32 %v4286_v42, 0.0  ;;  %v3760_v49 = vadd.f32 %v3759_v26, %v3215_v7  ;;  %v4289_v58 = vadd.f32 %v6466_v35, %v3744_v14  ;;  %v3761_v57 = vpop.f32.mrb[247].mxu0  ;;  %v4280_v52 = vpop.f32.mrb[55].mxu1 }
 0x392   : > { %v4440_v28 = vmax.f32 %v4278_v11, 0.0  ;;  %v4281_v33 = vadd.f32 %v4280_v52, %v9033_v19 }
 0x393   : > { %v6252_v10 = vpack.c.bf16 %v4442_v9, %v4442_v9  ;;  %v4443_v0 = vmax.f32 %v4289_v58, 0.0 }
 0x394   : > { %v6250_v6 = vpack.c.bf16 %v4440_v28, %v4440_v28  ;;  %v4441_v15 = vmax.f32 %v4281_v33, 0.0 }
 0x395   : > { %5083 = vst.msk [vmem:[%s8460_s12 + $0x1d8] sm:$0xf] %vm4964_vm2, %v6252_v10  ;;  %v6253_v18 = vpack.c.bf16 %v4443_v0, %v4443_v0 }
 0x396   : > { %5081 = vst.msk [vmem:[%s8460_s12 + $0x1d0] sm:$0xf] %vm4964_vm2, %v6250_v6  ;;  %v6251_v14 = vpack.c.bf16 %v4441_v15, %v4441_v15  ;;  %v3764_v3 = vpop.f32.mrb[248].mxu0  ;;  %v6469_v37 = vpop.f32.mrb[56].mxu1 }
 0x397   : > { %5084 = vst.msk [vmem:[%s8460_s12 + $0x1dc] sm:$0xf] %vm4964_vm2, %v6253_v18  ;;  %v3765_v19 = vadd.f32 %v3764_v3, %v3220_v30  ;;  %v4302_v2 = vadd.f32 %v6469_v37, %v3757_v25  ;;  %v3766_v56 = vpop.f32.mrb[249].mxu0  ;;  %v4293_v38 = vpop.f32.mrb[57].mxu1 }
 0x398   : > { %5082 = vst.msk [vmem:[%s8460_s12 + $0x1d4] sm:$0xf] %vm4964_vm2, %v6251_v14  ;;  %v4294_v43 = vadd.f32 %v4293_v38, %v3749_v45  ;;  %v3767_v53 = vpop.f32.mrb[250].mxu0  ;;  %v6470_v54 = vpop.f32.mrb[58].mxu1 }
 0x399   : > { %v4446_v40 = vmax.f32 %v4302_v2, 0.0  ;;  %v3768_v32 = vadd.f32 %v3767_v53, %v3223_v46  ;;  %v4305_v60 = vadd.f32 %v6470_v54, %v3760_v49  ;;  %v3769_v44 = vpop.f32.mrb[251].mxu0  ;;  %v4296_v16 = vpop.f32.mrb[59].mxu1 }
 0x39a   : > { %v4444_v4 = vmax.f32 %v4294_v43, 0.0  ;;  %v4297_v31 = vadd.f32 %v4296_v16, %v3752_v48 }
 0x39b   : > { %v6256_v29 = vpack.c.bf16 %v4446_v40, %v4446_v40  ;;  %v4447_v27 = vmax.f32 %v4305_v60, 0.0 }
 0x39c   : > { %v6254_v50 = vpack.c.bf16 %v4444_v4, %v4444_v4  ;;  %v4445_v34 = vmax.f32 %v4297_v31, 0.0 }
 0x39d   : > { %5087 = vst.msk [vmem:[%s8460_s12 + $0x1e8] sm:$0xf] %vm4964_vm2, %v6256_v29  ;;  %v6257_v45 = vpack.c.bf16 %v4447_v27, %v4447_v27 }
 0x39e   : > { %5085 = vst.msk [vmem:[%s8460_s12 + $0x1e0] sm:$0xf] %vm4964_vm2, %v6254_v50  ;;  %v6255_v20 = vpack.c.bf16 %v4445_v34, %v4445_v34  ;;  %v3772_v22 = vpop.f32.mrb[252].mxu0  ;;  %v6473_v55 = vpop.f32.mrb[60].mxu1 }
 0x39f   : > { %5088 = vst.msk [vmem:[%s8460_s12 + $0x1ec] sm:$0xf] %vm4964_vm2, %v6257_v45  ;;  %v3773_v48 = vadd.f32 %v3772_v22, %v3228_v41  ;;  %v3774_v8 = vpop.f32.mrb[253].mxu0  ;;  %v4309_v23 = vpop.f32.mrb[61].mxu1 }
 0x3a0   : > { %5086 = vst.msk [vmem:[%s8460_s12 + $0x1e4] sm:$0xf] %vm4964_vm2, %v6255_v20  ;;  %v4310_v59 = vadd.f32 %v4309_v23, %v3765_v19  ;;  %v3775_v1 = vpop.f32.mrb[254].mxu0  ;;  %v6474_v5 = vpop.f32.mrb[62].mxu1 }
 0x3a1   : > { %v4318_v17 = vadd.f32 %v6473_v55, %v3773_v48  ;;  %v3776_v47 = vadd.f32 %v3775_v1, %v3231_v39  ;;  %v3777_v63 = vpop.f32.mrb[255].mxu0  ;;  %v4312_v51 = vpop.f32.mrb[63].mxu1 }
 0x3a2   : > { %v4448_v7 = vmax.f32 %v4310_v59, 0.0  ;;  %v4313_v36 = vadd.f32 %v4312_v51, %v3768_v32 }
 0x3a3   : > { %v4450_v25 = vmax.f32 %v4318_v17, 0.0  ;;  %v4321_v42 = vadd.f32 %v6474_v5, %v3776_v47  ;;  %5099 = sbr.rel (!%p7508_p4) target bundleno = 1029 (0x405), region = 36 }
 0x3a4   : > { %v6258_v12 = vpack.c.bf16 %v4448_v7, %v4448_v7  ;;  %v4449_v24 = vmax.f32 %v4313_v36, 0.0 }
 0x3a5   : > { %v6260_v11 = vpack.c.bf16 %v4450_v25, %v4450_v25  ;;  %v4451_v26 = vmax.f32 %v4321_v42, 0.0 }
 0x3a6   : > { %5089 = vst.msk [vmem:[%s8460_s12 + $0x1f0] sm:$0xf] %vm4964_vm2, %v6258_v12  ;;  %v6259_v35 = vpack.c.bf16 %v4449_v24, %v4449_v24 }
 0x3a7   : > { %5091 = vst.msk [vmem:[%s8460_s12 + $0x1f8] sm:$0xf] %vm4964_vm2, %v6260_v11  ;;  %v6261_v9 = vpack.c.bf16 %v4451_v26, %v4451_v26 }
 0x3a8   : > { %5090 = vst.msk [vmem:[%s8460_s12 + $0x1f4] sm:$0xf] %vm4964_vm2, %v6259_v35 }
 0x3a9   : > { %5092 = vst.msk [vmem:[%s8460_s12 + $0x1fc] sm:$0xf] %vm4964_vm2, %v6261_v9 }
 0x3aa   : > { %s9494_s6 = smov (!%p5102_p8, %s5101_s6), 128 }
 0x3ab   : > { %s6119_s14 = sshll.u32 %s9494_s6, 6 }
 0x3ac   : > { %p6122_p9 = scmp.eq.s32.totalorder %s6119_s14, 0 }
 0x3ad   : > { %s9128_s17 = sshrl.u32 (!%p6122_p9), %s9494_s6, 6 }
 0x3ae   : > { %5110 = sbr.rel (%p6122_p9) target bundleno = 1029 (0x405), region = 40  ;;  %p6123_p10 = scmp.le.s32.totalorder (!%p6122_p9), %s9128_s17, 0 }
 0x3b5   : > { %5515 = sbr.rel (%p6123_p10) target bundleno = 1008 (0x3f0), region = 112  ;;  %s9487_s15 = smov (!%p6123_p10), %s9122_s11 }
 0x3b6   : > { %s9488_s20 = smov (!%p6123_p10), %s8460_s12  ;;  %s9137_s23 = smov (!%p6123_p10), 0  }
 0x3b7   : > { %s9139_s18 = smov (!%p6123_p10), 0  }
 0x3bc LB: >> { %v5126_v49 = vld [vmem:[%s7436_s20] sm:$0xf]  ;;  %v5128_v58 = vld [vmem:[%s7436_s20 + $0x4] sm:$0xf]  ;;  %v5130_v57 = vld [vmem:[%s7436_s20 + $0x8] sm:$0xf]  ;;  %s7444_s18 = sphi %s9139_s18, %s5120_s18   ;;  %s7440_s23 = sphi %s9137_s23, %s9489_s23   ;;  %s7436_s20 = sphi %s9488_s20, %s5259_s20   ;;  %s7432_s15 = sphi %s9487_s15, %s5260_s15  }
 0x3bd   : >> { %5127 = vst [vmem:[%s7432_s15] sm:$0xf] %v5126_v49  ;;  %5129 = vst [vmem:[%s7432_s15 + $0x4] sm:$0xf] %v5128_v58  ;;  %v5132_v52 = vld [vmem:[%s7436_s20 + $0xc] sm:$0xf]  ;;  %s5254_s21 = sadd.s32 1, %s7440_s23 }
 0x3be   : >> { %5131 = vst [vmem:[%s7432_s15 + $0x8] sm:$0xf] %v5130_v57  ;;  %v5134_v28 = vld [vmem:[%s7436_s20 + $0x10] sm:$0xf]  ;;  %v5136_v33 = vld [vmem:[%s7436_s20 + $0x14] sm:$0xf]  ;;  %p5255_p11 = scmp.ge.s32.totalorder %s5254_s21, %s9128_s17 }
 0x3bf   : >> { %5133 = vst [vmem:[%s7432_s15 + $0xc] sm:$0xf] %v5132_v52  ;;  %5135 = vst [vmem:[%s7432_s15 + $0x10] sm:$0xf] %v5134_v28  ;;  %v5138_v10 = vld [vmem:[%s7436_s20 + $0x18] sm:$0xf] }
 0x3c0   : >> { %5137 = vst [vmem:[%s7432_s15 + $0x14] sm:$0xf] %v5136_v33  ;;  %v5140_v0 = vld [vmem:[%s7436_s20 + $0x1c] sm:$0xf]  ;;  %v5142_v6 = vld [vmem:[%s7436_s20 + $0x20] sm:$0xf] }
 0x3c1   : >> { %5139 = vst [vmem:[%s7432_s15 + $0x18] sm:$0xf] %v5138_v10  ;;  %5141 = vst [vmem:[%s7432_s15 + $0x1c] sm:$0xf] %v5140_v0  ;;  %v5144_v15 = vld [vmem:[%s7436_s20 + $0x24] sm:$0xf] }
 0x3c2   : >> { %5143 = vst [vmem:[%s7432_s15 + $0x20] sm:$0xf] %v5142_v6  ;;  %v5146_v61 = vld [vmem:[%s7436_s20 + $0x28] sm:$0xf]  ;;  %v5148_v30 = vld [vmem:[%s7436_s20 + $0x2c] sm:$0xf] }
 0x3c3   : >> { %5145 = vst [vmem:[%s7432_s15 + $0x24] sm:$0xf] %v5144_v15  ;;  %5147 = vst [vmem:[%s7432_s15 + $0x28] sm:$0xf] %v5146_v61  ;;  %v5150_v18 = vld [vmem:[%s7436_s20 + $0x30] sm:$0xf] }
 0x3c4   : >> { %5149 = vst [vmem:[%s7432_s15 + $0x2c] sm:$0xf] %v5148_v30  ;;  %v5152_v14 = vld [vmem:[%s7436_s20 + $0x34] sm:$0xf]  ;;  %v5154_v3 = vld [vmem:[%s7436_s20 + $0x38] sm:$0xf] }
 0x3c5   : >> { %5151 = vst [vmem:[%s7432_s15 + $0x30] sm:$0xf] %v5150_v18  ;;  %5153 = vst [vmem:[%s7432_s15 + $0x34] sm:$0xf] %v5152_v14  ;;  %v5156_v37 = vld [vmem:[%s7436_s20 + $0x3c] sm:$0xf] }
 0x3c6   : >> { %5155 = vst [vmem:[%s7432_s15 + $0x38] sm:$0xf] %v5154_v3  ;;  %v5158_v62 = vld [vmem:[%s7436_s20 + $0x40] sm:$0xf]  ;;  %v5160_v46 = vld [vmem:[%s7436_s20 + $0x44] sm:$0xf] }
 0x3c7   : >> { %5157 = vst [vmem:[%s7432_s15 + $0x3c] sm:$0xf] %v5156_v37  ;;  %5159 = vst [vmem:[%s7432_s15 + $0x40] sm:$0xf] %v5158_v62  ;;  %v5162_v19 = vld [vmem:[%s7436_s20 + $0x48] sm:$0xf] }
 0x3c8   : >> { %5161 = vst [vmem:[%s7432_s15 + $0x44] sm:$0xf] %v5160_v46  ;;  %v5164_v2 = vld [vmem:[%s7436_s20 + $0x4c] sm:$0xf]  ;;  %v5166_v56 = vld [vmem:[%s7436_s20 + $0x50] sm:$0xf] }
 0x3c9   : >> { %5163 = vst [vmem:[%s7432_s15 + $0x48] sm:$0xf] %v5162_v19  ;;  %5165 = vst [vmem:[%s7432_s15 + $0x4c] sm:$0xf] %v5164_v2  ;;  %v5168_v38 = vld [vmem:[%s7436_s20 + $0x54] sm:$0xf] }
 0x3ca   : >> { %5167 = vst [vmem:[%s7432_s15 + $0x50] sm:$0xf] %v5166_v56  ;;  %v5170_v43 = vld [vmem:[%s7436_s20 + $0x58] sm:$0xf]  ;;  %v5172_v53 = vld [vmem:[%s7436_s20 + $0x5c] sm:$0xf] }
 0x3cb   : >> { %5169 = vst [vmem:[%s7432_s15 + $0x54] sm:$0xf] %v5168_v38  ;;  %5171 = vst [vmem:[%s7432_s15 + $0x58] sm:$0xf] %v5170_v43  ;;  %v5174_v54 = vld [vmem:[%s7436_s20 + $0x60] sm:$0xf] }
 0x3cc   : >> { %5173 = vst [vmem:[%s7432_s15 + $0x5c] sm:$0xf] %v5172_v53  ;;  %v5176_v40 = vld [vmem:[%s7436_s20 + $0x64] sm:$0xf]  ;;  %v5178_v32 = vld [vmem:[%s7436_s20 + $0x68] sm:$0xf] }
 0x3cd   : >> { %5175 = vst [vmem:[%s7432_s15 + $0x60] sm:$0xf] %v5174_v54  ;;  %5177 = vst [vmem:[%s7432_s15 + $0x64] sm:$0xf] %v5176_v40  ;;  %v5180_v60 = vld [vmem:[%s7436_s20 + $0x6c] sm:$0xf] }
 0x3ce   : >> { %5179 = vst [vmem:[%s7432_s15 + $0x68] sm:$0xf] %v5178_v32  ;;  %v5182_v44 = vld [vmem:[%s7436_s20 + $0x70] sm:$0xf]  ;;  %v5184_v16 = vld [vmem:[%s7436_s20 + $0x74] sm:$0xf] }
 0x3cf   : >> { %5181 = vst [vmem:[%s7432_s15 + $0x6c] sm:$0xf] %v5180_v60  ;;  %5183 = vst [vmem:[%s7432_s15 + $0x70] sm:$0xf] %v5182_v44  ;;  %v5186_v4 = vld [vmem:[%s7436_s20 + $0x78] sm:$0xf] }
 0x3d0   : >> { %5185 = vst [vmem:[%s7432_s15 + $0x74] sm:$0xf] %v5184_v16  ;;  %v5188_v31 = vld [vmem:[%s7436_s20 + $0x7c] sm:$0xf]  ;;  %v5190_v29 = vld [vmem:[%s7436_s20 + $0x80] sm:$0xf] }
 0x3d1   : >> { %5187 = vst [vmem:[%s7432_s15 + $0x78] sm:$0xf] %v5186_v4  ;;  %5189 = vst [vmem:[%s7432_s15 + $0x7c] sm:$0xf] %v5188_v31  ;;  %v5192_v27 = vld [vmem:[%s7436_s20 + $0x84] sm:$0xf] }
 0x3d2   : >> { %5191 = vst [vmem:[%s7432_s15 + $0x80] sm:$0xf] %v5190_v29  ;;  %v5194_v50 = vld [vmem:[%s7436_s20 + $0x88] sm:$0xf]  ;;  %v5196_v34 = vld [vmem:[%s7436_s20 + $0x8c] sm:$0xf] }
 0x3d3   : >> { %5193 = vst [vmem:[%s7432_s15 + $0x84] sm:$0xf] %v5192_v27  ;;  %5195 = vst [vmem:[%s7432_s15 + $0x88] sm:$0xf] %v5194_v50  ;;  %v5198_v13 = vld [vmem:[%s7436_s20 + $0x90] sm:$0xf] }
 0x3d4   : >> { %5197 = vst [vmem:[%s7432_s15 + $0x8c] sm:$0xf] %v5196_v34  ;;  %v5200_v41 = vld [vmem:[%s7436_s20 + $0x94] sm:$0xf]  ;;  %v5202_v45 = vld [vmem:[%s7436_s20 + $0x98] sm:$0xf] }
 0x3d5   : >> { %5199 = vst [vmem:[%s7432_s15 + $0x90] sm:$0xf] %v5198_v13  ;;  %5201 = vst [vmem:[%s7432_s15 + $0x94] sm:$0xf] %v5200_v41  ;;  %v5204_v20 = vld [vmem:[%s7436_s20 + $0x9c] sm:$0xf] }
 0x3d6   : >> { %5203 = vst [vmem:[%s7432_s15 + $0x98] sm:$0xf] %v5202_v45  ;;  %v5206_v22 = vld [vmem:[%s7436_s20 + $0xa0] sm:$0xf]  ;;  %v5208_v55 = vld [vmem:[%s7436_s20 + $0xa4] sm:$0xf] }
 0x3d7   : >> { %5205 = vst [vmem:[%s7432_s15 + $0x9c] sm:$0xf] %v5204_v20  ;;  %5207 = vst [vmem:[%s7432_s15 + $0xa0] sm:$0xf] %v5206_v22  ;;  %v5210_v21 = vld [vmem:[%s7436_s20 + $0xa8] sm:$0xf] }
 0x3d8   : >> { %5209 = vst [vmem:[%s7432_s15 + $0xa4] sm:$0xf] %v5208_v55  ;;  %v5212_v39 = vld [vmem:[%s7436_s20 + $0xac] sm:$0xf]  ;;  %v5214_v48 = vld [vmem:[%s7436_s20 + $0xb0] sm:$0xf] }
 0x3d9   : >> { %5211 = vst [vmem:[%s7432_s15 + $0xa8] sm:$0xf] %v5210_v21  ;;  %5213 = vst [vmem:[%s7432_s15 + $0xac] sm:$0xf] %v5212_v39  ;;  %v5216_v8 = vld [vmem:[%s7436_s20 + $0xb4] sm:$0xf] }
 0x3da   : >> { %5215 = vst [vmem:[%s7432_s15 + $0xb0] sm:$0xf] %v5214_v48  ;;  %v5218_v23 = vld [vmem:[%s7436_s20 + $0xb8] sm:$0xf]  ;;  %v5220_v59 = vld [vmem:[%s7436_s20 + $0xbc] sm:$0xf] }
 0x3db   : >> { %5217 = vst [vmem:[%s7432_s15 + $0xb4] sm:$0xf] %v5216_v8  ;;  %5219 = vst [vmem:[%s7432_s15 + $0xb8] sm:$0xf] %v5218_v23  ;;  %v5222_v1 = vld [vmem:[%s7436_s20 + $0xc0] sm:$0xf] }
 0x3dc   : >> { %5221 = vst [vmem:[%s7432_s15 + $0xbc] sm:$0xf] %v5220_v59  ;;  %v5224_v5 = vld [vmem:[%s7436_s20 + $0xc4] sm:$0xf]  ;;  %v5226_v17 = vld [vmem:[%s7436_s20 + $0xc8] sm:$0xf] }
 0x3dd   : >> { %5223 = vst [vmem:[%s7432_s15 + $0xc0] sm:$0xf] %v5222_v1  ;;  %5225 = vst [vmem:[%s7432_s15 + $0xc4] sm:$0xf] %v5224_v5  ;;  %v5228_v47 = vld [vmem:[%s7436_s20 + $0xcc] sm:$0xf] }
 0x3de   : >> { %5227 = vst [vmem:[%s7432_s15 + $0xc8] sm:$0xf] %v5226_v17  ;;  %v5230_v63 = vld [vmem:[%s7436_s20 + $0xd0] sm:$0xf]  ;;  %v5232_v51 = vld [vmem:[%s7436_s20 + $0xd4] sm:$0xf] }
 0x3df   : >> { %5229 = vst [vmem:[%s7432_s15 + $0xcc] sm:$0xf] %v5228_v47  ;;  %5231 = vst [vmem:[%s7432_s15 + $0xd0] sm:$0xf] %v5230_v63  ;;  %v5234_v7 = vld [vmem:[%s7436_s20 + $0xd8] sm:$0xf] }
 0x3e0   : >> { %5233 = vst [vmem:[%s7432_s15 + $0xd4] sm:$0xf] %v5232_v51  ;;  %v5236_v36 = vld [vmem:[%s7436_s20 + $0xdc] sm:$0xf]  ;;  %v5238_v25 = vld [vmem:[%s7436_s20 + $0xe0] sm:$0xf] }
 0x3e1   : >> { %5235 = vst [vmem:[%s7432_s15 + $0xd8] sm:$0xf] %v5234_v7  ;;  %5237 = vst [vmem:[%s7432_s15 + $0xdc] sm:$0xf] %v5236_v36  ;;  %v5240_v42 = vld [vmem:[%s7436_s20 + $0xe4] sm:$0xf] }
 0x3e2   : >> { %5239 = vst [vmem:[%s7432_s15 + $0xe0] sm:$0xf] %v5238_v25  ;;  %v5242_v12 = vld [vmem:[%s7436_s20 + $0xe8] sm:$0xf]  ;;  %v5244_v24 = vld [vmem:[%s7436_s20 + $0xec] sm:$0xf] }
 0x3e3   : >> { %5241 = vst [vmem:[%s7432_s15 + $0xe4] sm:$0xf] %v5240_v42  ;;  %5243 = vst [vmem:[%s7432_s15 + $0xe8] sm:$0xf] %v5242_v12  ;;  %v5246_v11 = vld [vmem:[%s7436_s20 + $0xf0] sm:$0xf] }
 0x3e4   : >> { %5245 = vst [vmem:[%s7432_s15 + $0xec] sm:$0xf] %v5244_v24  ;;  %v5248_v26 = vld [vmem:[%s7436_s20 + $0xf4] sm:$0xf]  ;;  %v5250_v35 = vld [vmem:[%s7436_s20 + $0xf8] sm:$0xf] }
 0x3e5   : >> { %5247 = vst [vmem:[%s7432_s15 + $0xf0] sm:$0xf] %v5246_v11  ;;  %5249 = vst [vmem:[%s7432_s15 + $0xf4] sm:$0xf] %v5248_v26  ;;  %v5252_v9 = vld [vmem:[%s7436_s20 + $0xfc] sm:$0xf] }
 0x3e6   : >> { %5251 = vst [vmem:[%s7432_s15 + $0xf8] sm:$0xf] %v5250_v35  ;;  %5253 = vst [vmem:[%s7432_s15 + $0xfc] sm:$0xf] %v5252_v9  ;;  %s9496_s21 = smov (%p5255_p11, %s5254_s21), 0  ;;  %s5120_s18 = sadd.s32 1, %s7444_s18  }
 0x3e7   : >> { %s6124_s22 = sshll.u32 %s9496_s21, 8  ;;  %p5119_p12 = scmp.ge.s32.totalorder %s5120_s18, %s9128_s17 }
 0x3e8   : >> { %s5259_s20 = scalar_lea.vmem %s8460_s12, %s6124_s22 [#allocation2]   ;;  %s5260_s15 = scalar_lea.vmem %s9122_s11, %s6124_s22  }
 0x3e9   : >> { %s9489_s23 = smov %s9496_s21  ;;  %5122 = sbr.rel (!%p5119_p12) target bundleno = 956 (0x3bc), region = 118 }
 0x3f0 PF: > { %s9296_s24 = sand.u32 63, %s9494_s6   ;;  %s6263_s25 = sshll.u32 %s9128_s17, 8 }
 0x3f1   : > { %s5265_s26 = scalar_lea.vmem %s8460_s12, %s6263_s25 [#allocation2]   ;;  %s5267_s27 = scalar_lea.vmem %s9122_s11, %s6263_s25  }
 0x3f2   : > { %p6129_p13 = scmp.le.s32.totalorder %s9296_s24, 0 }
 0x3f3   : > { %s7446_s28 = smov (!%p6129_p13), %s5267_s27   ;;  %s7450_s29 = smov (!%p6129_p13), %s5265_s26  }
 0x3f4   : > { %5529 = sbr.rel (%p6129_p13) target bundleno = 1029 (0x405), region = 123  ;;  %s7454_s9 = smov (!%p6129_p13), 0  }
 0x3f5   : > { %s7458_s30 = smov (!%p6129_p13), 0  }
 0x3fb LB: >> { %v5277_v49 = vld [vmem:[%s7452_s29] sm:$0xf]  ;;  %s5279_s4 = sadd.s32 1, %s7456_s9  ;;  %s5271_s30 = sadd.s32 1, %s7460_s30   ;;  %s7460_s30 = sphi %s7458_s30, %s5271_s30   ;;  %s7456_s9 = sphi %s7454_s9, %s7455_s9   ;;  %s7452_s29 = sphi %s7450_s29, %s5284_s29   ;;  %s7448_s28 = sphi %s7446_s28, %s5285_s28  }
 0x3fc   : >> { %5278 = vst [vmem:[%s7448_s28] sm:$0xf] %v5277_v49  ;;  %p5280_p0 = scmp.ge.s32.totalorder %s5279_s4, %s9296_s24  ;;  %p5270_p1 = scmp.ge.s32.totalorder %s5271_s30, %s9296_s24 }
 0x3fe   : >> { %s9498_s4 = smov (%p5280_p0, %s5279_s4), 0  ;;  %5273 = sbr.rel (!%p5270_p1) target bundleno = 1019 (0x3fb), region = 129 }
 0x3ff   : >> { %s6130_s12 = sshll.u32 %s9498_s4, 2  ;;  %s7455_s9 = smov %s9498_s4  }
 0x400   : >> { %s5284_s29 = scalar_lea.vmem %s5265_s26, %s6130_s12 [#allocation2]   ;;  %s5285_s28 = scalar_lea.vmem %s5267_s27, %s6130_s12  }
 0x405 PF: > { %p10_p2 = scmp.ge.s32.totalorder %s7498_s16, 4   ;;  %s9490_s12 = smov %s7424_s13 }
 0x406   : > { %s9491_s13 = smov %s7506_s19  ;;  %s9492_s14 = smov %s7498_s16 }
 0x407   :  { %12 = sbr.rel (!%p10_p2) target bundleno = 2 (0x2), region = 140 }

// kernel: pilotnet_forward.6
= control target key start
LH: loop header
LB: loop body
LE: loop exit
PB: predicated region body
PF: predicated region fallthrough
CT: control target
= control target key end

     0   :  { %v2531_v42 = vmov 0   ;;  %vm1175_vm0 = vcmask 1041408   ;;  %vm1132_vm1 = vcmask 31744   ;;  %vm1899_vm2 = vcmask 388096   ;;  %s3310_s1 = inlined_call_operand.vmem [shape: bf16[900,48], index: 1, kind: input, shape index: {}]   ;;  %s3311_s0 = inlined_call_operand.vmem [shape: bf16[220,900], index: 0, kind: input, shape index: {}]   ;;  %s3312_s2 = inlined_call_operand.vmem [shape: f32[1,48], index: 2, kind: input, shape index: {}]   ;;  %s3313_s3 = inlined_call_operand.vmem [shape: bf16[220,48], index: 3, kind: output, shape index: {}]  }
   0x1   :  { %v2474_v0 = vld [vmem:[%s3310_s1 + $0x40] sm:$0xff]   ;;  %v2478_v4 = vld [vmem:[%s3310_s1 + $0x48] sm:$0xff]   ;;  %v2482_v8 = vld [vmem:[%s3310_s1 + $0x50] sm:$0xff]   ;;  %vm1927_vm3 = vcmask 386048  }
   0x2   :  { %v2475_v1 = vld [vmem:[%s3310_s1] sm:$0xff]   ;;  %2173 = vmatprep.subr.bf16.mxu0 %v2474_v0  ;;  %v2479_v5 = vld [vmem:[%s3310_s1 + $0x8] sm:$0xff]   ;;  %v2483_v9 = vld [vmem:[%s3310_s1 + $0x10] sm:$0xff]  }
   0x3   :  { %v2476_v2 = vld [vmem:[%s3310_s1 + $0xc0] sm:$0xff]   ;;  %2174 = vmatpush3.bf16.msra.mxu0 %v2475_v1  ;;  %v2480_v6 = vld [vmem:[%s3310_s1 + $0xc8] sm:$0xff]   ;;  %v2484_v10 = vld [vmem:[%s3310_s1 + $0xd0] sm:$0xff]  }
   0x4   :  { %v2477_v3 = vld [vmem:[%s3310_s1 + $0x80] sm:$0xff]   ;;  %2273 = vmatprep.subr.bf16.mxu1 %v2476_v2  ;;  %2175 = vmatprep.subr.bf16.mxu0 %v2478_v4  ;;  %v2481_v7 = vld [vmem:[%s3310_s1 + $0x88] sm:$0xff]   ;;  %v2485_v11 = vld [vmem:[%s3310_s1 + $0x90] sm:$0xff]  }
   0x5   :  { %2274 = vmatpush3.bf16.msra.mxu1 %v2477_v3  ;;  %v2486_v12 = vld [vmem:[%s3310_s1 + $0x58] sm:$0xff]   ;;  %v2490_v16 = vld [vmem:[%s3310_s1 + $0x60] sm:$0xff]   ;;  %v2494_v20 = vld [vmem:[%s3310_s1 + $0x68] sm:$0xff]  }
   0x6   :  { %2275 = vmatprep.subr.bf16.mxu1 %v2480_v6  ;;  %v2487_v13 = vld [vmem:[%s3310_s1 + $0x18] sm:$0xff]   ;;  %v2491_v17 = vld [vmem:[%s3310_s1 + $0x20] sm:$0xff]   ;;  %v2495_v21 = vld [vmem:[%s3310_s1 + $0x28] sm:$0xff]  }
   0x7   :  { %2176 = vmatpush3.bf16.msra.mxu0 %v2479_v5  ;;  %v2488_v14 = vld [vmem:[%s3310_s1 + $0xd8] sm:$0xff]   ;;  %v2492_v18 = vld [vmem:[%s3310_s1 + $0xe0] sm:$0xff]   ;;  %v2496_v22 = vld [vmem:[%s3310_s1 + $0xe8] sm:$0xff]  }
   0x8   :  { %2177 = vmatprep.subr.bf16.mxu0 %v2482_v8  ;;  %v2489_v15 = vld [vmem:[%s3310_s1 + $0x98] sm:$0xff]   ;;  %v2493_v19 = vld [vmem:[%s3310_s1 + $0xa0] sm:$0xff]   ;;  %v2497_v23 = vld [vmem:[%s3310_s1 + $0xa8] sm:$0xff]  }
   0x9   :  { %2276 = vmatpush3.bf16.msra.mxu1 %v2481_v7  ;;  %v2498_v24 = vld [vmem:[%s3310_s1 + $0x70] sm:$0xff]   ;;  %v2502_v28 = vld [vmem:[%s3310_s1 + $0x78] sm:$0xff]   ;;  %v15_v31 = vld [vmem:[%s3311_s0] sm:$0xff] }
   0xa   :  { %2277 = vmatprep.subr.bf16.mxu1 %v2484_v10  ;;  %v2499_v25 = vld [vmem:[%s3310_s1 + $0x30] sm:$0xff]   ;;  %v2503_v29 = vld [vmem:[%s3310_s1 + $0x38] sm:$0xff]   ;;  %v19_v32 = vld [vmem:[%s3311_s0 + $0x20] sm:$0xff] }
   0xb   :  { %2178 = vmatpush3.bf16.msra.mxu0 %v2483_v9  ;;  %v2500_v26 = vld [vmem:[%s3310_s1 + $0xf0] sm:$0xff]   ;;  %v2504_v30 = vld [vmem:[%s3310_s1 + $0xf8] sm:$0xff]   ;;  %v1934_v33 = vcombine.low %v15_v31, %v19_v32  ;;  %v1935_v34 = vcombine.high %v15_v31, %v19_v32  ;;  %v2506_v36 = vld [vmem:[%s3310_s1 + $0x140] sm:$0xff]  }
   0xc   :  { %2179 = vmatprep.subr.bf16.mxu0 %v2486_v12  ;;  %v2501_v27 = vld [vmem:[%s3310_s1 + $0xb0] sm:$0xff]   ;;  %v2505_v35 = vld [vmem:[%s3310_s1 + $0xb8] sm:$0xff]   ;;  %v16_v37 = vld [vmem:[%s3311_s0 + $0x8] sm:$0xff] }
   0xd   :  { %2278 = vmatpush3.bf16.msra.mxu1 %v2485_v11  ;;  %1211 = vmatprep.mubr.bf16.mxu0 %v1935_v34  ;;  %v20_v38 = vld [vmem:[%s3311_s0 + $0x28] sm:$0xff]  ;;  %v2507_v41 = vld [vmem:[%s3310_s1 + $0x100] sm:$0xff]   ;;  %v2512_v61 = vld [vmem:[%s3310_s1 + $0x150] sm:$0xff]  }
   0xe   :  { %2279 = vmatprep.subr.bf16.mxu1 %v2488_v14  ;;  %v1936_v39 = vcombine.low %v16_v37, %v20_v38  ;;  %v1937_v40 = vcombine.high %v16_v37, %v20_v38  ;;  %v2508_v43 = vld [vmem:[%s3310_s1 + $0x180] sm:$0xff]   ;;  %v24_v47 = vld [vmem:[%s3311_s0 + $0x48] sm:$0xff]  ;;  %v2513_v0 = vld [vmem:[%s3310_s1 + $0x110] sm:$0xff]  }
   0xf   :  { %2180 = vmatpush3.bf16.msra.mxu0 %v2487_v13  ;;  %v23_v44 = vld [vmem:[%s3311_s0 + $0x40] sm:$0xff]  ;;  %v28_v48 = vld [vmem:[%s3311_s0 + $0x68] sm:$0xff]  ;;  %v2514_v1 = vld [vmem:[%s3310_s1 + $0x190] sm:$0xff]  }
  0x10   :  { %2181 = vmatprep.subr.bf16.mxu0 %v2490_v16  ;;  %v27_v45 = vld [vmem:[%s3311_s0 + $0x60] sm:$0xff]  ;;  %1356 = vmatprep.mubr.bf16.mxu1 %v1937_v40  ;;  %v1945_v49 = vcombine.high %v24_v47, %v28_v48  ;;  %v2509_v50 = vld [vmem:[%s3310_s1 + $0x148] sm:$0xff]   ;;  %v1944_v59 = vcombine.low %v24_v47, %v28_v48  ;;  %v2515_v6 = vld [vmem:[%s3310_s1 + $0x158] sm:$0xff]  }
  0x11   :  { %2280 = vmatpush3.bf16.msra.mxu1 %v2489_v15  ;;  %v1943_v46 = vcombine.high %v23_v44, %v27_v45  ;;  %v31_v51 = vld [vmem:[%s3311_s0 + $0x80] sm:$0xff]  ;;  %v1942_v52 = vcombine.low %v23_v44, %v27_v45  ;;  %v2510_v55 = vld [vmem:[%s3310_s1 + $0x108] sm:$0xff]   ;;  %v2516_v8 = vld [vmem:[%s3310_s1 + $0x118] sm:$0xff]  }
  0x12   :  { %2281 = vmatprep.subr.bf16.mxu1 %v2492_v18  ;;  %v35_v53 = vld [vmem:[%s3311_s0 + $0xa0] sm:$0xff]  ;;  %v32_v56 = vld [vmem:[%s3311_s0 + $0x88] sm:$0xff]  ;;  %v2517_v10 = vld [vmem:[%s3310_s1 + $0x198] sm:$0xff]  }
  0x13   :  { %2182 = vmatpush3.bf16.msra.mxu0 %v2491_v17  ;;  %v1951_v54 = vcombine.high %v31_v51, %v35_v53  ;;  %v36_v57 = vld [vmem:[%s3311_s0 + $0xa8] sm:$0xff]  ;;  %v39_v62 = vld [vmem:[%s3311_s0 + $0xc0] sm:$0xff]  ;;  %v1950_v2 = vcombine.low %v31_v51, %v35_v53  ;;  %v2524_v31 = vld [vmem:[%s3310_s1 + $0x1b0] sm:$0xff]  }
  0x14   :  { %2183 = vmatprep.subr.bf16.mxu0 %v2494_v20  ;;  %v2511_v58 = vld [vmem:[%s3310_s1 + $0x188] sm:$0xff]   ;;  %v1953_v60 = vcombine.high %v32_v56, %v36_v57  ;;  %v43_v63 = vld [vmem:[%s3311_s0 + $0xe0] sm:$0xff]  ;;  %v1952_v7 = vcombine.low %v32_v56, %v36_v57  ;;  %v2527_v38 = vld [vmem:[%s3310_s1 + $0x1b8] sm:$0xff]  }
  0x15   :  { %2282 = vmatpush3.bf16.msra.mxu1 %v2493_v19  ;;  %v1959_v3 = vcombine.high %v39_v62, %v43_v63  ;;  %v40_v4 = vld [vmem:[%s3311_s0 + $0xc8] sm:$0xff]  ;;  %v47_v11 = vld [vmem:[%s3311_s0 + $0x100] sm:$0xff]  ;;  %v1958_v14 = vcombine.low %v39_v62, %v43_v63  ;;  %v2528_v44 = vld [vmem:[%s3310_s1 + $0x178] sm:$0xff]  }
  0x16   :  { %2283 = vmatprep.subr.bf16.mxu1 %v2496_v22  ;;  %v44_v5 = vld [vmem:[%s3311_s0 + $0xe8] sm:$0xff]  ;;  %v51_v12 = vld [vmem:[%s3311_s0 + $0x120] sm:$0xff]  ;;  %v2529_v45 = vld [vmem:[%s3310_s1 + $0x138] sm:$0xff]  }
  0x17   :  { %2184 = vmatpush3.bf16.msra.mxu0 %v2495_v21  ;;  %v1961_v9 = vcombine.high %v40_v4, %v44_v5  ;;  %v2518_v13 = vld [vmem:[%s3310_s1 + $0x160] sm:$0xff]   ;;  %v1967_v16 = vcombine.high %v47_v11, %v51_v12  ;;  %v48_v17 = vld [vmem:[%s3311_s0 + $0x108] sm:$0xff]  ;;  %v1960_v20 = vcombine.low %v40_v4, %v44_v5 }
  0x18   :  { %2185 = vmatprep.subr.bf16.mxu0 %v2498_v24  ;;  %v2519_v15 = vld [vmem:[%s3310_s1 + $0x1a0] sm:$0xff]   ;;  %v52_v18 = vld [vmem:[%s3311_s0 + $0x128] sm:$0xff] }
  0x19   :  { %2284 = vmatpush3.bf16.msra.mxu1 %v2497_v23  ;;  %v2520_v19 = vld [vmem:[%s3310_s1 + $0x120] sm:$0xff]   ;;  %v1969_v21 = vcombine.high %v48_v17, %v52_v18  ;;  %v2521_v22 = vld [vmem:[%s3310_s1 + $0x1a8] sm:$0xff]   ;;  %v1968_v32 = vcombine.low %v48_v17, %v52_v18 }
  0x1a   :  { %2285 = vmatprep.subr.bf16.mxu1 %v2500_v26  ;;  %v2522_v23 = vld [vmem:[%s3310_s1 + $0x168] sm:$0xff]   ;;  %v55_v24 = vld [vmem:[%s3311_s0 + $0x140] sm:$0xff] }
  0x1b   :  { %2186 = vmatpush3.bf16.msra.mxu0 %v2499_v25  ;;  %v59_v25 = vld [vmem:[%s3311_s0 + $0x160] sm:$0xff]  ;;  %v2523_v26 = vld [vmem:[%s3310_s1 + $0x128] sm:$0xff]  }
  0x1c   :  { %2187 = vmatprep.subr.bf16.mxu0 %v2502_v28  ;;  %v1975_v28 = vcombine.high %v55_v24, %v59_v25  ;;  %v67_v37 = vld [vmem:[%s3311_s0 + $0x1a0] sm:$0xff]  ;;  %v1974_v40 = vcombine.low %v55_v24, %v59_v25  ;;  %v72_v53 = vld [vmem:[%s3311_s0 + $0x1c8] sm:$0xff] }
  0x1d   :  { %2286 = vmatpush3.bf16.msra.mxu1 %v2501_v27  ;;  %v1966_v27 = vcombine.low %v47_v11, %v51_v12  ;;  %v2530_v48 = vld [vmem:[%s3310_s1 + $0x1c0] ss:$0 sps:$4 sm:$0x33]   ;;  %v84_v62 = vld [vmem:[%s3311_s0 + $0x228] sm:$0xff] }
  0x1e   :  { %2287 = vmatprep.subr.bf16.mxu1 %v2504_v30  ;;  %v60_v30 = vld [vmem:[%s3311_s0 + $0x168] sm:$0xff]  ;;  %v79_v57 = vld [vmem:[%s3311_s0 + $0x200] sm:$0xff] }
  0x1f   :  { %2188 = vmatpush3.bf16.msra.mxu0 %v2503_v29  ;;  %v56_v29 = vld [vmem:[%s3311_s0 + $0x148] sm:$0xff]  ;;  %v103_v17 = vld [vmem:[%s3311_s0 + $0x2c0] sm:$0xff] }
  0x20   :  { %2373 = vmatprep.subr.bf16.mxu0 %v2506_v36  ;;  %v1977_v34 = vcombine.high %v56_v29, %v60_v30  ;;  %v63_v36 = vld [vmem:[%s3311_s0 + $0x180] sm:$0xff]  ;;  %v88_v5 = vld [vmem:[%s3311_s0 + $0x248] sm:$0xff] }
  0x21   :  { %2288 = vmatpush3.bf16.msra.mxu1 %v2505_v35  ;;  %v2526_v35 = vld [vmem:[%s3310_s1 + $0x130] sm:$0xff]   ;;  %v1982_v51 = vcombine.low %v63_v36, %v67_v37  ;;  %v107_v18 = vld [vmem:[%s3311_s0 + $0x2e0] sm:$0xff] }
  0x22   :  { %1212 = vmatmul.mubr.bf16.vlgmr.msra.gmra.mrb[0].mxu0 %v1934_v33  ;;  %1614 = vmatprep.subr.bf16.mxu1 %v2531_v42  ;;  %v2525_v33 = vld [vmem:[%s3310_s1 + $0x170] sm:$0xff]   ;;  %v111_v25 = vld [vmem:[%s3311_s0 + $0x300] sm:$0xff] }
  0x23   :  { %2374 = vmatpush3.bf16.msra.mxu0 %v2507_v41  ;;  %1219 = vmatprep.mubr.bf16.mxu0 %v1943_v46  ;;  %v68_v41 = vld [vmem:[%s3311_s0 + $0x1a8] sm:$0xff]  ;;  %v1976_v46 = vcombine.low %v56_v29, %v60_v30 }
  0x24   :  { %1357 = vmatmul.mubr.bf16.vlgmr.msra.gmra.mrb[0].mxu1 %v1936_v39  ;;  %2375 = vmatprep.subr.bf16.mxu0 %v2509_v50  ;;  %v64_v39 = vld [vmem:[%s3311_s0 + $0x188] sm:$0xff]  ;;  %v1177_v50 = vsel %vm1175_vm0, %v2530_v48, 0 }
  0x25   :  { %1615 = vmatpush1.bf16.msra.mxu1 %v2508_v43  ;;  %1364 = vmatprep.mubr.bf16.mxu1 %v1945_v49  ;;  %v1983_v43 = vcombine.high %v63_v36, %v67_v37  ;;  %v1985_v47 = vcombine.high %v64_v39, %v68_v41  ;;  %v71_v49 = vld [vmem:[%s3311_s0 + $0x1c0] sm:$0xff]  ;;  %v112_v29 = vld [vmem:[%s3311_s0 + $0x308] sm:$0xff] }
  0x26   :  { %1616 = vmatprep.subr.bf16.mxu1 %v2531_v42  ;;  %v116_v30 = vld [vmem:[%s3311_s0 + $0x328] sm:$0xff] }
  0x27   :  { %2376 = vmatpush3.bf16.msra.mxu0 %v2510_v55  ;;  %v1984_v55 = vcombine.low %v64_v39, %v68_v41  ;;  %v120_v37 = vld [vmem:[%s3311_s0 + $0x348] sm:$0xff]  ;;  %v2032_v39 = vcombine.low %v112_v29, %v116_v30  ;;  %v17_v41 = vld [vmem:[%s3311_s0 + $0x10] sm:$0xff] }
  0x28   :  { %2377 = vmatprep.subr.bf16.mxu0 %v2512_v61  ;;  %v80_v61 = vld [vmem:[%s3311_s0 + $0x208] sm:$0xff] }
  0x29   :  { %1617 = vmatpush1.bf16.msra.mxu1 %v2511_v58  ;;  %v83_v58 = vld [vmem:[%s3311_s0 + $0x220] sm:$0xff] }
  0x2a   :  { %1220 = vmatmul.mubr.bf16.gmra.mrb[4].mxu0 %v1942_v52  ;;  %1618 = vmatprep.subr.bf16.mxu1 %v2531_v42 }
  0x2b   :  { %1227 = vmatprep.mubr.bf16.mxu0 %v1951_v54  ;;  %2378 = vmatpush3.bf16.msra.mxu0 %v2513_v0  ;;  %v76_v54 = vld [vmem:[%s3311_s0 + $0x1e8] sm:$0xff]  ;;  %v2001_v0 = vcombine.high %v80_v61, %v84_v62 }
  0x2c   :  { %1365 = vmatmul.mubr.bf16.gmra.mrb[4].mxu1 %v1944_v59  ;;  %2379 = vmatprep.subr.bf16.mxu0 %v2515_v6  ;;  %v1993_v56 = vcombine.high %v72_v53, %v76_v54  ;;  %v1992_v63 = vcombine.low %v72_v53, %v76_v54  ;;  %v92_v6 = vld [vmem:[%s3311_s0 + $0x268] sm:$0xff]  ;;  %v26_v53 = vld [vmem:[%s3311_s0 + $0x58] sm:$0xff] }
  0x2d   :  { %1372 = vmatprep.mubr.bf16.mxu1 %v1953_v60  ;;  %1619 = vmatpush1.bf16.msra.mxu1 %v2514_v1  ;;  %v1999_v60 = vcombine.high %v79_v57, %v83_v58  ;;  %v87_v1 = vld [vmem:[%s3311_s0 + $0x240] sm:$0xff]  ;;  %v30_v54 = vld [vmem:[%s3311_s0 + $0x78] sm:$0xff] }
  0x2e   :  { %1620 = vmatprep.subr.bf16.mxu1 %v2531_v42 }
  0x2f   :  { %2380 = vmatpush3.bf16.msra.mxu0 %v2516_v8  ;;  %v2009_v8 = vcombine.high %v88_v5, %v92_v6 }
  0x30   :  { %2381 = vmatprep.subr.bf16.mxu0 %v2518_v13  ;;  %v96_v13 = vld [vmem:[%s3311_s0 + $0x288] sm:$0xff] }
  0x31   :  { %1621 = vmatpush1.bf16.msra.mxu1 %v2517_v10  ;;  %v99_v10 = vld [vmem:[%s3311_s0 + $0x2a0] sm:$0xff] }
  0x32   :  { %1228 = vmatmul.mubr.bf16.gmra.mrb[8].mxu0 %v1950_v2  ;;  %1622 = vmatprep.subr.bf16.mxu1 %v2531_v42  ;;  %v91_v2 = vld [vmem:[%s3311_s0 + $0x260] sm:$0xff] }
  0x33   :  { %1235 = vmatprep.mubr.bf16.mxu0 %v1959_v3  ;;  %2382 = vmatpush3.bf16.msra.mxu0 %v2520_v19  ;;  %v1998_v3 = vcombine.low %v79_v57, %v83_v58  ;;  %v2007_v4 = vcombine.high %v87_v1, %v91_v2  ;;  %v2006_v11 = vcombine.low %v87_v1, %v91_v2  ;;  %v33_v57 = vld [vmem:[%s3311_s0 + $0x90] sm:$0xff] }
  0x34   :  { %1373 = vmatmul.mubr.bf16.gmra.mrb[8].mxu1 %v1952_v7  ;;  %2383 = vmatprep.subr.bf16.mxu0 %v2522_v23  ;;  %v2000_v7 = vcombine.low %v80_v61, %v84_v62  ;;  %v37_v58 = vld [vmem:[%s3311_s0 + $0xb0] sm:$0xff]  ;;  %v34_v61 = vld [vmem:[%s3311_s0 + $0x98] sm:$0xff] }
  0x35   :  { %1380 = vmatprep.mubr.bf16.mxu1 %v1961_v9  ;;  %1623 = vmatpush1.bf16.msra.mxu1 %v2519_v15  ;;  %v95_v9 = vld [vmem:[%s3311_s0 + $0x280] sm:$0xff]  ;;  %v2008_v15 = vcombine.low %v88_v5, %v92_v6  ;;  %v38_v62 = vld [vmem:[%s3311_s0 + $0xb8] sm:$0xff]  ;;  %v41_v1 = vld [vmem:[%s3311_s0 + $0xd0] sm:$0xff] }
  0x36   :  { %1624 = vmatprep.subr.bf16.mxu1 %v2531_v42  ;;  %v2015_v12 = vcombine.high %v95_v9, %v99_v10  ;;  %v2014_v19 = vcombine.low %v95_v9, %v99_v10  ;;  %v45_v2 = vld [vmem:[%s3311_s0 + $0xf0] sm:$0xff]  ;;  %v42_v5 = vld [vmem:[%s3311_s0 + $0xd8] sm:$0xff] }
  0x37   :  { %2384 = vmatpush3.bf16.msra.mxu0 %v2523_v26  ;;  %v115_v26 = vld [vmem:[%s3311_s0 + $0x320] sm:$0xff]  ;;  %v46_v6 = vld [vmem:[%s3311_s0 + $0xf8] sm:$0xff]  ;;  %v49_v9 = vld [vmem:[%s3311_s0 + $0x110] sm:$0xff] }
  0x38   :  { %2385 = vmatprep.subr.bf16.mxu0 %v2525_v33  ;;  %v119_v33 = vld [vmem:[%s3311_s0 + $0x340] sm:$0xff]  ;;  %v53_v10 = vld [vmem:[%s3311_s0 + $0x130] sm:$0xff] }
  0x39   :  { %1625 = vmatpush1.bf16.msra.mxu1 %v2521_v22  ;;  %v108_v22 = vld [vmem:[%s3311_s0 + $0x2e8] sm:$0xff] }
  0x3a   :  { %1236 = vmatmul.mubr.bf16.gmra.mrb[12].mxu0 %v1958_v14  ;;  %1626 = vmatprep.subr.bf16.mxu1 %v2531_v42  ;;  %v100_v14 = vld [vmem:[%s3311_s0 + $0x2a8] sm:$0xff] }
  0x3b   :  { %1243 = vmatprep.mubr.bf16.mxu0 %v1967_v16  ;;  %2386 = vmatpush3.bf16.msra.mxu0 %v2526_v35  ;;  %v2017_v16 = vcombine.high %v96_v13, %v100_v14  ;;  %v2016_v23 = vcombine.low %v96_v13, %v100_v14  ;;  %v2030_v35 = vcombine.low %v111_v25, %v115_v26  ;;  %v50_v13 = vld [vmem:[%s3311_s0 + $0x118] sm:$0xff] }
  0x3c   :  { %1381 = vmatmul.mubr.bf16.gmra.mrb[12].mxu1 %v1960_v20  ;;  %2387 = vmatprep.subr.bf16.mxu0 %v2528_v44  ;;  %v2023_v20 = vcombine.high %v103_v17, %v107_v18  ;;  %v54_v14 = vld [vmem:[%s3311_s0 + $0x138] sm:$0xff] }
  0x3d   :  { %1388 = vmatprep.mubr.bf16.mxu1 %v1969_v21  ;;  %1627 = vmatpush1.bf16.msra.mxu1 %v2524_v31  ;;  %v104_v21 = vld [vmem:[%s3311_s0 + $0x2c8] sm:$0xff] }
  0x3e   :  { %1628 = vmatprep.subr.bf16.mxu1 %v2531_v42  ;;  %v2025_v24 = vcombine.high %v104_v21, %v108_v22  ;;  %v2024_v31 = vcombine.low %v104_v21, %v108_v22  ;;  %v58_v21 = vld [vmem:[%s3311_s0 + $0x158] sm:$0xff] }
  0x3f   :  { %2388 = vmatpush3.bf16.msra.mxu0 %v2529_v45  ;;  %v62_v22 = vld [vmem:[%s3311_s0 + $0x178] sm:$0xff] }
  0x41   :  { %1629 = vmatpush1.bf16.msra.mxu1 %v2527_v38  ;;  %v124_v38 = vld [vmem:[%s3311_s0 + $0x368] sm:$0x33] }
  0x42   :  { %1244 = vmatmul.mubr.bf16.gmra.mrb[16].mxu0 %v1966_v27  ;;  %1630 = vmatprep.subr.bf16.mxu1 %v2531_v42  ;;  %v75_v42 = vld [vmem:[%s3311_s0 + $0x1e0] sm:$0xff]  ;;  %v2022_v27 = vcombine.low %v103_v17, %v107_v18  ;;  %v2040_v48 = vcombine.low %v120_v37, %v124_v38  ;;  %v57_v17 = vld [vmem:[%s3311_s0 + $0x150] sm:$0xff] }
  0x43   :  { %1251 = vmatprep.mubr.bf16.mxu0 %v1975_v28  ;;  %v1991_v52 = vcombine.high %v71_v49, %v75_v42  ;;  %v1990_v59 = vcombine.low %v71_v49, %v75_v42  ;;  %v2031_v28 = vcombine.high %v111_v25, %v115_v26  ;;  %v25_v42 = vld [vmem:[%s3311_s0 + $0x50] sm:$0xff] }
  0x44   :  { %1389 = vmatmul.mubr.bf16.gmra.mrb[16].mxu1 %v1968_v32  ;;  %v2033_v32 = vcombine.high %v112_v29, %v116_v30  ;;  %v61_v18 = vld [vmem:[%s3311_s0 + $0x170] sm:$0xff]  ;;  %v66_v29 = vld [vmem:[%s3311_s0 + $0x198] sm:$0xff] }
  0x45   :  { %1396 = vmatprep.mubr.bf16.mxu1 %v1977_v34  ;;  %1631 = vmatpush1.bf16.msra.mxu1 %v1177_v50  ;;  %v123_v34 = vld [vmem:[%s3311_s0 + $0x360] sm:$0x33]  ;;  %v29_v50 = vld [vmem:[%s3311_s0 + $0x70] sm:$0xff]  ;;  %v70_v30 = vld [vmem:[%s3311_s0 + $0x1b8] sm:$0xff] }
  0x46   :  { %v2039_v36 = vcombine.high %v119_v33, %v123_v34  ;;  %v2038_v44 = vcombine.low %v119_v33, %v123_v34  ;;  %v65_v25 = vld [vmem:[%s3311_s0 + $0x190] sm:$0xff] }
  0x47   :  { %v69_v26 = vld [vmem:[%s3311_s0 + $0x1b0] sm:$0xff] }
  0x48   :  { %v73_v33 = vld [vmem:[%s3311_s0 + $0x1d0] sm:$0xff] }
  0x49   :  { %v77_v34 = vld [vmem:[%s3311_s0 + $0x1f0] sm:$0xff] }
  0x4a   :  { %1252 = vmatmul.mubr.bf16.gmra.mrb[20].mxu0 %v1974_v40  ;;  %v2041_v40 = vcombine.high %v120_v37, %v124_v38  ;;  %v74_v37 = vld [vmem:[%s3311_s0 + $0x1d8] sm:$0xff] }
  0x4b   :  { %1259 = vmatprep.mubr.bf16.mxu0 %v1983_v43  ;;  %v21_v43 = vld [vmem:[%s3311_s0 + $0x30] sm:$0xff]  ;;  %v78_v38 = vld [vmem:[%s3311_s0 + $0x1f8] sm:$0xff] }
  0x4c   :  { %1397 = vmatmul.mubr.bf16.gmra.mrb[20].mxu1 %v1976_v46  ;;  %v1939_v45 = vcombine.high %v17_v41, %v21_v43  ;;  %v18_v46 = vld [vmem:[%s3311_s0 + $0x18] sm:$0xff] }
  0x4d   :  { %1404 = vmatprep.mubr.bf16.mxu1 %v1985_v47  ;;  %v22_v47 = vld [vmem:[%s3311_s0 + $0x38] sm:$0xff] }
  0x4e   :  { %v1941_v49 = vcombine.high %v18_v46, %v22_v47 }
  0x52   :  { %1260 = vmatmul.mubr.bf16.gmra.mrb[24].mxu0 %v1982_v51  ;;  %v1938_v51 = vcombine.low %v17_v41, %v21_v43  ;;  %v81_v41 = vld [vmem:[%s3311_s0 + $0x210] sm:$0xff] }
  0x53   :  { %1267 = vmatprep.mubr.bf16.mxu0 %v1991_v52  ;;  %v1947_v52 = vcombine.high %v25_v42, %v29_v50  ;;  %v85_v43 = vld [vmem:[%s3311_s0 + $0x230] sm:$0xff] }
  0x54   :  { %1405 = vmatmul.mubr.bf16.gmra.mrb[24].mxu1 %v1984_v55  ;;  %v1940_v55 = vcombine.low %v18_v46, %v22_v47  ;;  %v82_v46 = vld [vmem:[%s3311_s0 + $0x218] sm:$0xff] }
  0x55   :  { %1412 = vmatprep.mubr.bf16.mxu1 %v1993_v56  ;;  %v1949_v56 = vcombine.high %v26_v53, %v30_v54  ;;  %v86_v47 = vld [vmem:[%s3311_s0 + $0x238] sm:$0xff] }
  0x5a   :  { %1268 = vmatmul.mubr.bf16.gmra.mrb[28].mxu0 %v1990_v59  ;;  %v1946_v59 = vcombine.low %v25_v42, %v29_v50  ;;  %v89_v42 = vld [vmem:[%s3311_s0 + $0x250] sm:$0xff] }
  0x5b   :  { %1275 = vmatprep.mubr.bf16.mxu0 %v1999_v60  ;;  %v1955_v60 = vcombine.high %v33_v57, %v37_v58  ;;  %v93_v50 = vld [vmem:[%s3311_s0 + $0x270] sm:$0xff] }
  0x5c   :  { %1413 = vmatmul.mubr.bf16.gmra.mrb[28].mxu1 %v1992_v63  ;;  %v1948_v63 = vcombine.low %v26_v53, %v30_v54  ;;  %v90_v53 = vld [vmem:[%s3311_s0 + $0x258] sm:$0xff] }
  0x5d   :  { %1420 = vmatprep.mubr.bf16.mxu1 %v2001_v0  ;;  %v1957_v0 = vcombine.high %v34_v61, %v38_v62  ;;  %v94_v54 = vld [vmem:[%s3311_s0 + $0x278] sm:$0xff] }
  0x62   :  { %1276 = vmatmul.mubr.bf16.gmra.mrb[32].mxu0 %v1998_v3  ;;  %v1954_v3 = vcombine.low %v33_v57, %v37_v58  ;;  %v97_v57 = vld [vmem:[%s3311_s0 + $0x290] sm:$0xff] }
  0x63   :  { %1283 = vmatprep.mubr.bf16.mxu0 %v2007_v4  ;;  %v1963_v4 = vcombine.high %v41_v1, %v45_v2  ;;  %v101_v58 = vld [vmem:[%s3311_s0 + $0x2b0] sm:$0xff] }
  0x64   :  { %1421 = vmatmul.mubr.bf16.gmra.mrb[32].mxu1 %v2000_v7  ;;  %v1956_v7 = vcombine.low %v34_v61, %v38_v62  ;;  %v98_v61 = vld [vmem:[%s3311_s0 + $0x298] sm:$0xff] }
  0x65   :  { %1428 = vmatprep.mubr.bf16.mxu1 %v2009_v8  ;;  %v1965_v8 = vcombine.high %v42_v5, %v46_v6  ;;  %v102_v62 = vld [vmem:[%s3311_s0 + $0x2b8] sm:$0xff] }
  0x6a   :  { %1284 = vmatmul.mubr.bf16.gmra.mrb[36].mxu0 %v2006_v11  ;;  %v1962_v11 = vcombine.low %v41_v1, %v45_v2  ;;  %v105_v1 = vld [vmem:[%s3311_s0 + $0x2d0] sm:$0xff] }
  0x6b   :  { %1291 = vmatprep.mubr.bf16.mxu0 %v2015_v12  ;;  %v1971_v12 = vcombine.high %v49_v9, %v53_v10  ;;  %v109_v2 = vld [vmem:[%s3311_s0 + $0x2f0] sm:$0xff] }
  0x6c   :  { %1429 = vmatmul.mubr.bf16.gmra.mrb[36].mxu1 %v2008_v15  ;;  %v1964_v15 = vcombine.low %v42_v5, %v46_v6  ;;  %v106_v5 = vld [vmem:[%s3311_s0 + $0x2d8] sm:$0xff] }
  0x6d   :  { %1436 = vmatprep.mubr.bf16.mxu1 %v2017_v16  ;;  %v1973_v16 = vcombine.high %v50_v13, %v54_v14  ;;  %v110_v6 = vld [vmem:[%s3311_s0 + $0x2f8] sm:$0xff] }
  0x72   :  { %1292 = vmatmul.mubr.bf16.gmra.mrb[40].mxu0 %v2014_v19  ;;  %v1970_v19 = vcombine.low %v49_v9, %v53_v10  ;;  %v113_v9 = vld [vmem:[%s3311_s0 + $0x310] sm:$0xff] }
  0x73   :  { %1299 = vmatprep.mubr.bf16.mxu0 %v2023_v20  ;;  %v1979_v20 = vcombine.high %v57_v17, %v61_v18  ;;  %v117_v10 = vld [vmem:[%s3311_s0 + $0x330] sm:$0xff] }
  0x74   :  { %1437 = vmatmul.mubr.bf16.gmra.mrb[40].mxu1 %v2016_v23  ;;  %v1972_v23 = vcombine.low %v50_v13, %v54_v14  ;;  %v114_v13 = vld [vmem:[%s3311_s0 + $0x318] sm:$0xff] }
  0x75   :  { %1444 = vmatprep.mubr.bf16.mxu1 %v2025_v24  ;;  %v1981_v24 = vcombine.high %v58_v21, %v62_v22  ;;  %v118_v14 = vld [vmem:[%s3311_s0 + $0x338] sm:$0xff] }
  0x7a   :  { %1300 = vmatmul.mubr.bf16.gmra.mrb[44].mxu0 %v2022_v27  ;;  %v1978_v27 = vcombine.low %v57_v17, %v61_v18  ;;  %v121_v17 = vld [vmem:[%s3311_s0 + $0x350] sm:$0xff] }
  0x7b   :  { %1307 = vmatprep.mubr.bf16.mxu0 %v2031_v28  ;;  %v1987_v28 = vcombine.high %v65_v25, %v69_v26  ;;  %v125_v18 = vld [vmem:[%s3311_s0 + $0x370] sm:$0x33] }
  0x7c   :  { %1445 = vmatmul.mubr.bf16.gmra.mrb[44].mxu1 %v2024_v31  ;;  %v1980_v31 = vcombine.low %v58_v21, %v62_v22  ;;  %v122_v21 = vld [vmem:[%s3311_s0 + $0x358] sm:$0xff] }
  0x7d   :  { %1452 = vmatprep.mubr.bf16.mxu1 %v2033_v32  ;;  %v1989_v32 = vcombine.high %v66_v29, %v70_v30  ;;  %v126_v22 = vld [vmem:[%s3311_s0 + $0x378] sm:$0x33] }
  0x82   :  { %1308 = vmatmul.mubr.bf16.gmra.mrb[48].mxu0 %v2030_v35  ;;  %v1986_v35 = vcombine.low %v65_v25, %v69_v26  ;;  %v3084_v26 = vld [vmem:[%s3312_s2] ss:$0 sm:$0xff] }
  0x83   :  { %1315 = vmatprep.mubr.bf16.mxu0 %v2039_v36  ;;  %v1995_v36 = vcombine.high %v73_v33, %v77_v34 }
  0x84   :  { %1453 = vmatmul.mubr.bf16.gmra.mrb[48].mxu1 %v2032_v39  ;;  %v1988_v39 = vcombine.low %v66_v29, %v70_v30 }
  0x85   :  { %1460 = vmatprep.mubr.bf16.mxu1 %v2041_v40  ;;  %v1997_v40 = vcombine.high %v74_v37, %v78_v38 }
  0x8a   :  { %1316 = vmatmul.mubr.bf16.gmra.mrb[52].mxu0 %v2038_v44  ;;  %v1994_v44 = vcombine.low %v73_v33, %v77_v34 }
  0x8b   :  { %1501 = vmatprep.mubr.bf16.mxu0 %v1939_v45  ;;  %v2003_v45 = vcombine.high %v81_v41, %v85_v43 }
  0x8c   :  { %1461 = vmatmul.mubr.bf16.gmra.mrb[52].mxu1 %v2040_v48  ;;  %v1996_v48 = vcombine.low %v74_v37, %v78_v38 }
  0x8d   :  { %2103 = vmatprep.mubr.msk.bf16.mxu1 %vm1132_vm1, %v1941_v49  ;;  %v2005_v49 = vcombine.high %v82_v46, %v86_v47 }
  0x92   :  { %1502 = vmatmul.mubr.bf16.vlgmr.msra.gmra.mrb[56].mxu0 %v1938_v51  ;;  %v2002_v51 = vcombine.low %v81_v41, %v85_v43 }
  0x93   :  { %1509 = vmatprep.mubr.bf16.mxu0 %v1947_v52  ;;  %v2011_v52 = vcombine.high %v89_v42, %v93_v50 }
  0x94   :  { %1647 = vmatmul.mubr.bf16.vlgmr.msra.gmra.mrb[56].mxu1 %v1940_v55  ;;  %v2004_v55 = vcombine.low %v82_v46, %v86_v47 }
  0x95   :  { %2104 = vmatprep.mubr.msk.bf16.mxu1 %vm1132_vm1, %v1949_v56  ;;  %v2013_v56 = vcombine.high %v90_v53, %v94_v54 }
  0x9a   :  { %1510 = vmatmul.mubr.bf16.gmra.mrb[60].mxu0 %v1946_v59  ;;  %v2010_v59 = vcombine.low %v89_v42, %v93_v50 }
  0x9b   :  { %1517 = vmatprep.mubr.bf16.mxu0 %v1955_v60  ;;  %v2019_v60 = vcombine.high %v97_v57, %v101_v58 }
  0x9c   :  { %1655 = vmatmul.mubr.bf16.gmra.mrb[60].mxu1 %v1948_v63  ;;  %v2012_v63 = vcombine.low %v90_v53, %v94_v54 }
  0x9d   :  { %2105 = vmatprep.mubr.msk.bf16.mxu1 %vm1132_vm1, %v1957_v0  ;;  %v2021_v0 = vcombine.high %v98_v61, %v102_v62 }
  0xa2   :  { %1518 = vmatmul.mubr.bf16.gmra.mrb[64].mxu0 %v1954_v3  ;;  %v2018_v3 = vcombine.low %v97_v57, %v101_v58 }
  0xa3   :  { %1525 = vmatprep.mubr.bf16.mxu0 %v1963_v4  ;;  %v2027_v4 = vcombine.high %v105_v1, %v109_v2 }
  0xa4   :  { %1663 = vmatmul.mubr.bf16.gmra.mrb[64].mxu1 %v1956_v7  ;;  %v2020_v7 = vcombine.low %v98_v61, %v102_v62 }
  0xa5   :  { %2106 = vmatprep.mubr.msk.bf16.mxu1 %vm1132_vm1, %v1965_v8  ;;  %v2029_v8 = vcombine.high %v106_v5, %v110_v6 }
  0xaa   :  { %1526 = vmatmul.mubr.bf16.gmra.mrb[68].mxu0 %v1962_v11  ;;  %v2026_v11 = vcombine.low %v105_v1, %v109_v2 }
  0xab   :  { %1533 = vmatprep.mubr.bf16.mxu0 %v1971_v12  ;;  %v2035_v12 = vcombine.high %v113_v9, %v117_v10 }
  0xac   :  { %1671 = vmatmul.mubr.bf16.gmra.mrb[68].mxu1 %v1964_v15  ;;  %v2028_v15 = vcombine.low %v106_v5, %v110_v6 }
  0xad   :  { %2107 = vmatprep.mubr.msk.bf16.mxu1 %vm1132_vm1, %v1973_v16  ;;  %v2037_v16 = vcombine.high %v114_v13, %v118_v14 }
  0xb2   :  { %1534 = vmatmul.mubr.bf16.gmra.mrb[72].mxu0 %v1970_v19  ;;  %v2034_v19 = vcombine.low %v113_v9, %v117_v10 }
  0xb3   :  { %1541 = vmatprep.mubr.bf16.mxu0 %v1979_v20  ;;  %v2043_v20 = vcombine.high %v121_v17, %v125_v18 }
  0xb4   :  { %1679 = vmatmul.mubr.bf16.gmra.mrb[72].mxu1 %v1972_v23  ;;  %v2036_v23 = vcombine.low %v114_v13, %v118_v14 }
  0xb5   :  { %2108 = vmatprep.mubr.msk.bf16.mxu1 %vm1132_vm1, %v1981_v24  ;;  %v2045_v24 = vcombine.high %v122_v21, %v126_v22 }
  0xba   :  { %1542 = vmatmul.mubr.bf16.gmra.mrb[76].mxu0 %v1978_v27 }
  0xbb   :  { %1549 = vmatprep.mubr.bf16.mxu0 %v1987_v28  ;;  %v2042_v28 = vcombine.low %v121_v17, %v125_v18 }
  0xbc   :  { %1687 = vmatmul.mubr.bf16.gmra.mrb[76].mxu1 %v1980_v31 }
  0xbd   :  { %2109 = vmatprep.mubr.msk.bf16.mxu1 %vm1132_vm1, %v1989_v32 }
  0xc2   :  { %1550 = vmatmul.mubr.bf16.gmra.mrb[80].mxu0 %v1986_v35 }
  0xc3   :  { %1557 = vmatprep.mubr.bf16.mxu0 %v1995_v36  ;;  %v2044_v36 = vcombine.low %v122_v21, %v126_v22 }
  0xc4   :  { %1695 = vmatmul.mubr.bf16.gmra.mrb[80].mxu1 %v1988_v39 }
  0xc5   :  { %2110 = vmatprep.mubr.msk.bf16.mxu1 %vm1132_vm1, %v1997_v40 }
  0xca   :  { %1558 = vmatmul.mubr.bf16.gmra.mrb[84].mxu0 %v1994_v44 }
  0xcb   :  { %1565 = vmatprep.mubr.bf16.mxu0 %v2003_v45 }
  0xcc   :  { %1703 = vmatmul.mubr.bf16.gmra.mrb[84].mxu1 %v1996_v48 }
  0xcd   :  { %2111 = vmatprep.mubr.msk.bf16.mxu1 %vm1132_vm1, %v2005_v49 }
  0xd2   :  { %1566 = vmatmul.mubr.bf16.gmra.mrb[88].mxu0 %v2002_v51 }
  0xd3   :  { %1573 = vmatprep.mubr.bf16.mxu0 %v2011_v52 }
  0xd4   :  { %1711 = vmatmul.mubr.bf16.gmra.mrb[88].mxu1 %v2004_v55 }
  0xd5   :  { %2112 = vmatprep.mubr.msk.bf16.mxu1 %vm1132_vm1, %v2013_v56 }
  0xda   :  { %1574 = vmatmul.mubr.bf16.gmra.mrb[92].mxu0 %v2010_v59 }
  0xdb   :  { %1581 = vmatprep.mubr.bf16.mxu0 %v2019_v60 }
  0xdc   :  { %1719 = vmatmul.mubr.bf16.gmra.mrb[92].mxu1 %v2012_v63 }
  0xdd   :  { %2113 = vmatprep.mubr.msk.bf16.mxu1 %vm1132_vm1, %v2021_v0 }
  0xe2   :  { %1582 = vmatmul.mubr.bf16.gmra.mrb[96].mxu0 %v2018_v3 }
  0xe3   :  { %1589 = vmatprep.mubr.bf16.mxu0 %v2027_v4 }
  0xe4   :  { %1727 = vmatmul.mubr.bf16.gmra.mrb[96].mxu1 %v2020_v7 }
  0xe5   :  { %2114 = vmatprep.mubr.msk.bf16.mxu1 %vm1132_vm1, %v2029_v8 }
  0xea   :  { %1590 = vmatmul.mubr.bf16.gmra.mrb[100].mxu0 %v2026_v11 }
  0xeb   :  { %1597 = vmatprep.mubr.bf16.mxu0 %v2035_v12 }
  0xec   :  { %1735 = vmatmul.mubr.bf16.gmra.mrb[100].mxu1 %v2028_v15 }
  0xed   :  { %2115 = vmatprep.mubr.msk.bf16.mxu1 %vm1132_vm1, %v2037_v16 }
  0xf2   :  { %1598 = vmatmul.mubr.bf16.gmra.mrb[104].mxu0 %v2034_v19 }
  0xf3   :  { %1605 = vmatprep.mubr.bf16.mxu0 %v2043_v20 }
  0xf4   :  { %1743 = vmatmul.mubr.bf16.gmra.mrb[104].mxu1 %v2036_v23 }
  0xf5   :  { %v2189_v25 = vpop.f32.mrb[0].mxu0  ;;  %2116 = vmatprep.mubr.msk.bf16.mxu1 %vm1132_vm1, %v2045_v24 }
  0xf6   :  { %v2190_v27 = vpop.f32.mrb[1].mxu0 }
  0xf7   :  { %v2191_v29 = vadd.f32 %v2190_v27, %v2189_v25  ;;  %v2192_v30 = vpop.f32.mrb[2].mxu0  ;;  %v2289_v31 = vpop.f32.mrb[0].mxu1 }
  0xf8   :  { %v2193_v32 = vpop.f32.mrb[3].mxu0  ;;  %v2290_v35 = vpop.f32.mrb[1].mxu1 }
  0xf9   :  { %v1214_v33 = vadd.f32 %v2191_v29, %v3084_v26  ;;  %v2194_v34 = vadd.f32 %v2193_v32, %v2192_v30  ;;  %v2291_v37 = vadd.f32 %v2290_v35, %v2289_v31  ;;  %v2292_v38 = vpop.f32.mrb[2].mxu1 }
  0xfa   :  { %1606 = vmatmul.mubr.bf16.gmra.mrb[108].mxu0 %v2042_v28  ;;  %v2293_v40 = vpop.f32.mrb[3].mxu1 }
  0xfb   :  { %v1217_v39 = vadd.f32 %v2194_v34, %v3084_v26  ;;  %v3089_v41 = vadd.f32 %v2291_v37, %v1214_v33  ;;  %v2294_v43 = vadd.f32 %v2293_v40, %v2292_v38 }
  0xfc   :  { %1751 = vmatmul.mubr.bf16.gmra.mrb[108].mxu1 %v2044_v36 }
  0xfd   :  { %v2195_v44 = vpop.f32.mrb[4].mxu0  ;;  %v3091_v45 = vadd.f32 %v2294_v43, %v1217_v39 }
  0xfe   :  { %v2196_v46 = vpop.f32.mrb[5].mxu0 }
  0xff   :  { %v2197_v47 = vadd.f32 %v2196_v46, %v2195_v44  ;;  %v2198_v48 = vpop.f32.mrb[6].mxu0  ;;  %v2295_v49 = vpop.f32.mrb[4].mxu1 }
 0x100   :  { %v2199_v42 = vpop.f32.mrb[7].mxu0  ;;  %v2296_v52 = vpop.f32.mrb[5].mxu1 }
 0x101   :  { %v1222_v50 = vadd.f32 %v2197_v47, %v3084_v26  ;;  %v2200_v51 = vadd.f32 %v2199_v42, %v2198_v48  ;;  %v2297_v53 = vadd.f32 %v2296_v52, %v2295_v49  ;;  %v2298_v54 = vpop.f32.mrb[6].mxu1 }
 0x102   :  { %v2299_v56 = vpop.f32.mrb[7].mxu1 }
 0x103   :  { %v1225_v55 = vadd.f32 %v2200_v51, %v3084_v26  ;;  %v3095_v57 = vadd.f32 %v2297_v53, %v1222_v50  ;;  %v2300_v58 = vadd.f32 %v2299_v56, %v2298_v54 }
 0x105   :  { %v2201_v59 = vpop.f32.mrb[8].mxu0  ;;  %v3097_v60 = vadd.f32 %v2300_v58, %v1225_v55 }
 0x106   :  { %v2202_v61 = vpop.f32.mrb[9].mxu0 }
 0x107   :  { %v2203_v62 = vadd.f32 %v2202_v61, %v2201_v59  ;;  %v2204_v63 = vpop.f32.mrb[10].mxu0  ;;  %v2301_v0 = vpop.f32.mrb[8].mxu1 }
 0x108   :  { %v2205_v1 = vpop.f32.mrb[11].mxu0  ;;  %v2302_v4 = vpop.f32.mrb[9].mxu1 }
 0x109   :  { %v1230_v2 = vadd.f32 %v2203_v62, %v3084_v26  ;;  %v2206_v3 = vadd.f32 %v2205_v1, %v2204_v63  ;;  %v2303_v5 = vadd.f32 %v2302_v4, %v2301_v0  ;;  %v2304_v6 = vpop.f32.mrb[10].mxu1 }
 0x10a   :  { %v2305_v8 = vpop.f32.mrb[11].mxu1 }
 0x10b   :  { %v1233_v7 = vadd.f32 %v2206_v3, %v3084_v26  ;;  %v3101_v9 = vadd.f32 %v2303_v5, %v1230_v2  ;;  %v2306_v10 = vadd.f32 %v2305_v8, %v2304_v6 }
 0x10d   :  { %v2207_v11 = vpop.f32.mrb[12].mxu0  ;;  %v3103_v12 = vadd.f32 %v2306_v10, %v1233_v7 }
 0x10e   :  { %v2208_v13 = vpop.f32.mrb[13].mxu0 }
 0x10f   :  { %v2209_v14 = vadd.f32 %v2208_v13, %v2207_v11  ;;  %v2210_v15 = vpop.f32.mrb[14].mxu0  ;;  %v2307_v16 = vpop.f32.mrb[12].mxu1 }
 0x110   :  { %v2211_v17 = vpop.f32.mrb[15].mxu0  ;;  %v2308_v20 = vpop.f32.mrb[13].mxu1 }
 0x111   :  { %v1238_v18 = vadd.f32 %v2209_v14, %v3084_v26  ;;  %v2212_v19 = vadd.f32 %v2211_v17, %v2210_v15  ;;  %v2309_v21 = vadd.f32 %v2308_v20, %v2307_v16  ;;  %v2310_v22 = vpop.f32.mrb[14].mxu1 }
 0x112   :  { %v2311_v24 = vpop.f32.mrb[15].mxu1 }
 0x113   :  { %v1241_v23 = vadd.f32 %v2212_v19, %v3084_v26  ;;  %v3107_v25 = vadd.f32 %v2309_v21, %v1238_v18  ;;  %v2312_v27 = vadd.f32 %v2311_v24, %v2310_v22 }
 0x115   :  { %v2213_v28 = vpop.f32.mrb[16].mxu0  ;;  %v3109_v29 = vadd.f32 %v2312_v27, %v1241_v23 }
 0x116   :  { %v2214_v30 = vpop.f32.mrb[17].mxu0 }
 0x117   :  { %v2215_v31 = vadd.f32 %v2214_v30, %v2213_v28  ;;  %v2216_v32 = vpop.f32.mrb[18].mxu0  ;;  %v2313_v33 = vpop.f32.mrb[16].mxu1 }
 0x118   :  { %v2217_v34 = vpop.f32.mrb[19].mxu0  ;;  %v2314_v37 = vpop.f32.mrb[17].mxu1 }
 0x119   :  { %v1246_v35 = vadd.f32 %v2215_v31, %v3084_v26  ;;  %v2218_v36 = vadd.f32 %v2217_v34, %v2216_v32  ;;  %v2315_v38 = vadd.f32 %v2314_v37, %v2313_v33  ;;  %v2316_v39 = vpop.f32.mrb[18].mxu1 }
 0x11a   :  { %v2317_v43 = vpop.f32.mrb[19].mxu1 }
 0x11b   :  { %v1249_v40 = vadd.f32 %v2218_v36, %v3084_v26  ;;  %v3113_v44 = vadd.f32 %v2315_v38, %v1246_v35  ;;  %v2318_v46 = vadd.f32 %v2317_v43, %v2316_v39 }
 0x11d   :  { %v2219_v47 = vpop.f32.mrb[20].mxu0  ;;  %v3115_v48 = vadd.f32 %v2318_v46, %v1249_v40 }
 0x11e   :  { %v2220_v49 = vpop.f32.mrb[21].mxu0 }
 0x11f   :  { %v2221_v42 = vadd.f32 %v2220_v49, %v2219_v47  ;;  %v2222_v50 = vpop.f32.mrb[22].mxu0  ;;  %v2319_v51 = vpop.f32.mrb[20].mxu1 }
 0x120   :  { %v2223_v52 = vpop.f32.mrb[23].mxu0  ;;  %v2320_v55 = vpop.f32.mrb[21].mxu1 }
 0x121   :  { %v1254_v53 = vadd.f32 %v2221_v42, %v3084_v26  ;;  %v2224_v54 = vadd.f32 %v2223_v52, %v2222_v50  ;;  %v2321_v56 = vadd.f32 %v2320_v55, %v2319_v51  ;;  %v2322_v58 = vpop.f32.mrb[22].mxu1 }
 0x122   :  { %v2323_v61 = vpop.f32.mrb[23].mxu1 }
 0x123   :  { %v1257_v59 = vadd.f32 %v2224_v54, %v3084_v26  ;;  %v3119_v62 = vadd.f32 %v2321_v56, %v1254_v53  ;;  %v2324_v63 = vadd.f32 %v2323_v61, %v2322_v58 }
 0x125   :  { %v2225_v0 = vpop.f32.mrb[24].mxu0  ;;  %v3121_v1 = vadd.f32 %v2324_v63, %v1257_v59 }
 0x126   :  { %v2226_v2 = vpop.f32.mrb[25].mxu0 }
 0x127   :  { %v2227_v3 = vadd.f32 %v2226_v2, %v2225_v0  ;;  %v2228_v4 = vpop.f32.mrb[26].mxu0  ;;  %v2325_v5 = vpop.f32.mrb[24].mxu1 }
 0x128   :  { %v2229_v6 = vpop.f32.mrb[27].mxu0  ;;  %v2326_v10 = vpop.f32.mrb[25].mxu1 }
 0x129   :  { %v1262_v7 = vadd.f32 %v2227_v3, %v3084_v26  ;;  %v2230_v8 = vadd.f32 %v2229_v6, %v2228_v4  ;;  %v2327_v11 = vadd.f32 %v2326_v10, %v2325_v5  ;;  %v2328_v13 = vpop.f32.mrb[26].mxu1 }
 0x12a   :  { %v2329_v15 = vpop.f32.mrb[27].mxu1 }
 0x12b   :  { %v1265_v14 = vadd.f32 %v2230_v8, %v3084_v26  ;;  %v3125_v16 = vadd.f32 %v2327_v11, %v1262_v7  ;;  %v2330_v17 = vadd.f32 %v2329_v15, %v2328_v13 }
 0x12d   :  { %v2231_v18 = vpop.f32.mrb[28].mxu0  ;;  %v3127_v19 = vadd.f32 %v2330_v17, %v1265_v14 }
 0x12e   :  { %v2232_v20 = vpop.f32.mrb[29].mxu0 }
 0x12f   :  { %v2233_v21 = vadd.f32 %v2232_v20, %v2231_v18  ;;  %v2234_v22 = vpop.f32.mrb[30].mxu0  ;;  %v2331_v23 = vpop.f32.mrb[28].mxu1 }
 0x130   :  { %v2235_v24 = vpop.f32.mrb[31].mxu0  ;;  %v2332_v30 = vpop.f32.mrb[29].mxu1 }
 0x131   :  { %v1270_v27 = vadd.f32 %v2233_v21, %v3084_v26  ;;  %v2236_v28 = vadd.f32 %v2235_v24, %v2234_v22  ;;  %v2333_v31 = vadd.f32 %v2332_v30, %v2331_v23  ;;  %v2334_v32 = vpop.f32.mrb[30].mxu1 }
 0x132   :  { %v2335_v34 = vpop.f32.mrb[31].mxu1 }
 0x133   :  { %v1273_v33 = vadd.f32 %v2236_v28, %v3084_v26  ;;  %v3131_v35 = vadd.f32 %v2333_v31, %v1270_v27  ;;  %v2336_v36 = vadd.f32 %v2335_v34, %v2334_v32 }
 0x135   :  { %v2237_v37 = vpop.f32.mrb[32].mxu0  ;;  %v3133_v38 = vadd.f32 %v2336_v36, %v1273_v33 }
 0x136   :  { %v2238_v39 = vpop.f32.mrb[33].mxu0 }
 0x137   :  { %v2239_v40 = vadd.f32 %v2238_v39, %v2237_v37  ;;  %v2240_v43 = vpop.f32.mrb[34].mxu0  ;;  %v2337_v46 = vpop.f32.mrb[32].mxu1 }
 0x138   :  { %v2241_v47 = vpop.f32.mrb[35].mxu0  ;;  %v2338_v50 = vpop.f32.mrb[33].mxu1 }
 0x139   :  { %v1278_v49 = vadd.f32 %v2239_v40, %v3084_v26  ;;  %v2242_v42 = vadd.f32 %v2241_v47, %v2240_v43  ;;  %v2339_v51 = vadd.f32 %v2338_v50, %v2337_v46  ;;  %v2340_v52 = vpop.f32.mrb[34].mxu1 }
 0x13a   :  { %v2341_v54 = vpop.f32.mrb[35].mxu1 }
 0x13b   :  { %v1281_v53 = vadd.f32 %v2242_v42, %v3084_v26  ;;  %v3137_v55 = vadd.f32 %v2339_v51, %v1278_v49  ;;  %v2342_v56 = vadd.f32 %v2341_v54, %v2340_v52 }
 0x13d   :  { %v2243_v58 = vpop.f32.mrb[36].mxu0  ;;  %v3139_v59 = vadd.f32 %v2342_v56, %v1281_v53 }
 0x13e   :  { %v2244_v61 = vpop.f32.mrb[37].mxu0 }
 0x13f   :  { %v2245_v63 = vadd.f32 %v2244_v61, %v2243_v58  ;;  %v2246_v0 = vpop.f32.mrb[38].mxu0  ;;  %v2343_v2 = vpop.f32.mrb[36].mxu1 }
 0x140   :  { %v2247_v3 = vpop.f32.mrb[39].mxu0  ;;  %v2344_v6 = vpop.f32.mrb[37].mxu1 }
 0x141   :  { %v1286_v4 = vadd.f32 %v2245_v63, %v3084_v26  ;;  %v2248_v5 = vadd.f32 %v2247_v3, %v2246_v0  ;;  %v2345_v7 = vadd.f32 %v2344_v6, %v2343_v2  ;;  %v2346_v8 = vpop.f32.mrb[38].mxu1 }
 0x142   :  { %v2347_v11 = vpop.f32.mrb[39].mxu1 }
 0x143   :  { %v1289_v10 = vadd.f32 %v2248_v5, %v3084_v26  ;;  %v3143_v13 = vadd.f32 %v2345_v7, %v1286_v4  ;;  %v2348_v14 = vadd.f32 %v2347_v11, %v2346_v8 }
 0x145   :  { %v2249_v15 = vpop.f32.mrb[40].mxu0  ;;  %v3145_v17 = vadd.f32 %v2348_v14, %v1289_v10 }
 0x146   :  { %v2250_v18 = vpop.f32.mrb[41].mxu0 }
 0x147   :  { %v2251_v20 = vadd.f32 %v2250_v18, %v2249_v15  ;;  %v2252_v21 = vpop.f32.mrb[42].mxu0  ;;  %v2349_v22 = vpop.f32.mrb[40].mxu1 }
 0x148   :  { %v2253_v23 = vpop.f32.mrb[43].mxu0  ;;  %v2350_v28 = vpop.f32.mrb[41].mxu1 }
 0x149   :  { %v1294_v24 = vadd.f32 %v2251_v20, %v3084_v26  ;;  %v2254_v27 = vadd.f32 %v2253_v23, %v2252_v21  ;;  %v2351_v30 = vadd.f32 %v2350_v28, %v2349_v22  ;;  %v2352_v31 = vpop.f32.mrb[42].mxu1 }
 0x14a   :  { %v2353_v33 = vpop.f32.mrb[43].mxu1 }
 0x14b   :  { %v1297_v32 = vadd.f32 %v2254_v27, %v3084_v26  ;;  %v3149_v34 = vadd.f32 %v2351_v30, %v1294_v24  ;;  %v2354_v36 = vadd.f32 %v2353_v33, %v2352_v31 }
 0x14d   :  { %v2255_v37 = vpop.f32.mrb[44].mxu0  ;;  %v3151_v39 = vadd.f32 %v2354_v36, %v1297_v32 }
 0x14e   :  { %v2256_v40 = vpop.f32.mrb[45].mxu0 }
 0x14f   :  { %v2257_v43 = vadd.f32 %v2256_v40, %v2255_v37  ;;  %v2258_v46 = vpop.f32.mrb[46].mxu0  ;;  %v2355_v47 = vpop.f32.mrb[44].mxu1 }
 0x150   :  { %v2259_v49 = vpop.f32.mrb[47].mxu0  ;;  %v2356_v51 = vpop.f32.mrb[45].mxu1 }
 0x151   :  { %v1302_v42 = vadd.f32 %v2257_v43, %v3084_v26  ;;  %v2260_v50 = vadd.f32 %v2259_v49, %v2258_v46  ;;  %v2357_v52 = vadd.f32 %v2356_v51, %v2355_v47  ;;  %v2358_v53 = vpop.f32.mrb[46].mxu1 }
 0x152   :  { %v2359_v56 = vpop.f32.mrb[47].mxu1 }
 0x153   :  { %v1305_v54 = vadd.f32 %v2260_v50, %v3084_v26  ;;  %v3155_v58 = vadd.f32 %v2357_v52, %v1302_v42  ;;  %v2360_v61 = vadd.f32 %v2359_v56, %v2358_v53 }
 0x155   :  { %v2261_v63 = vpop.f32.mrb[48].mxu0  ;;  %v3157_v0 = vadd.f32 %v2360_v61, %v1305_v54 }
 0x156   :  { %v2262_v2 = vpop.f32.mrb[49].mxu0 }
 0x157   :  { %v2263_v3 = vadd.f32 %v2262_v2, %v2261_v63  ;;  %v2264_v4 = vpop.f32.mrb[50].mxu0  ;;  %v2361_v5 = vpop.f32.mrb[48].mxu1 }
 0x158   :  { %v2265_v6 = vpop.f32.mrb[51].mxu0  ;;  %v2362_v10 = vpop.f32.mrb[49].mxu1 }
 0x159   :  { %v1310_v7 = vadd.f32 %v2263_v3, %v3084_v26  ;;  %v2266_v8 = vadd.f32 %v2265_v6, %v2264_v4  ;;  %v2363_v11 = vadd.f32 %v2362_v10, %v2361_v5  ;;  %v2364_v14 = vpop.f32.mrb[50].mxu1 }
 0x15a   :  { %v2365_v18 = vpop.f32.mrb[51].mxu1 }
 0x15b   :  { %v1313_v15 = vadd.f32 %v2266_v8, %v3084_v26  ;;  %v3161_v20 = vadd.f32 %v2363_v11, %v1310_v7  ;;  %v2366_v21 = vadd.f32 %v2365_v18, %v2364_v14 }
 0x15d   :  { %v2267_v22 = vpop.f32.mrb[52].mxu0  ;;  %v3163_v23 = vadd.f32 %v2366_v21, %v1313_v15 }
 0x15e   :  { %v2268_v24 = vpop.f32.mrb[53].mxu0 }
 0x15f   :  { %v2269_v27 = vadd.f32 %v2268_v24, %v2267_v22  ;;  %v2270_v28 = vpop.f32.mrb[54].mxu0  ;;  %v2367_v30 = vpop.f32.mrb[52].mxu1 }
 0x160   :  { %v2271_v31 = vpop.f32.mrb[55].mxu0  ;;  %v2368_v36 = vpop.f32.mrb[53].mxu1 }
 0x161   :  { %v1318_v32 = vadd.f32 %v2269_v27, %v3084_v26  ;;  %v2272_v33 = vadd.f32 %v2271_v31, %v2270_v28  ;;  %v2369_v37 = vadd.f32 %v2368_v36, %v2367_v30  ;;  %v2370_v40 = vpop.f32.mrb[54].mxu1 }
 0x162   :  { %v2371_v46 = vpop.f32.mrb[55].mxu1 }
 0x163   :  { %v1321_v43 = vadd.f32 %v2272_v33, %v3084_v26  ;;  %v3167_v47 = vadd.f32 %v2369_v37, %v1318_v32  ;;  %v2372_v49 = vadd.f32 %v2371_v46, %v2370_v40 }
 0x165   :  { %v2389_v42 = vpop.f32.mrb[56].mxu0  ;;  %v3169_v50 = vadd.f32 %v2372_v49, %v1321_v43 }
 0x166   :  { %v2390_v51 = vpop.f32.mrb[57].mxu0 }
 0x167   :  { %v2391_v52 = vadd.f32 %v2390_v51, %v2389_v42  ;;  %v2392_v53 = vpop.f32.mrb[58].mxu0  ;;  %v1648_v56 = vpop.f32.mrb[56].mxu1 }
 0x168   :  { %v2393_v54 = vpop.f32.mrb[59].mxu0  ;;  %v1650_v2 = vpop.f32.mrb[57].mxu1 }
 0x169   :  { %v2394_v61 = vadd.f32 %v2393_v54, %v2392_v53  ;;  %v1504_v63 = vadd.f32 %v2391_v52, %v3089_v41  ;;  %v1651_v3 = vpop.f32.mrb[58].mxu1 }
 0x16a   :  { %v1653_v5 = vpop.f32.mrb[59].mxu1 }
 0x16b   :  { %v1649_v4 = vadd.f32 %v1648_v56, %v1504_v63  ;;  %v1507_v26 = vadd.f32 %v2394_v61, %v3091_v45 }
 0x16d   :  { %v1759_v6 = vmax.f32 %v1649_v4, 0.0  ;;  %v1652_v7 = vadd.f32 %v1651_v3, %v1507_v26  ;;  %v2395_v8 = vpop.f32.mrb[60].mxu0 }
 0x16e   :  { %v2396_v10 = vpop.f32.mrb[61].mxu0 }
 0x16f   :  { %v2145_v11 = vpack.c.bf16 %v1759_v6, %v1759_v6  ;;  %v1760_v14 = vmax.f32 %v1652_v7, 0.0  ;;  %v2397_v15 = vadd.f32 %v2396_v10, %v2395_v8  ;;  %v2398_v18 = vpop.f32.mrb[62].mxu0  ;;  %v1656_v22 = vpop.f32.mrb[60].mxu1 }
 0x170   :  { %v2399_v21 = vpop.f32.mrb[63].mxu0  ;;  %v1658_v27 = vpop.f32.mrb[61].mxu1 }
 0x171   :  { %1900 = vst.msk [vmem:[%s3313_s3] sm:$0xf] %vm1899_vm2, %v2145_v11  ;;  %v2146_v41 = vpack.c.bf16 %v1760_v14, %v1760_v14  ;;  %v2400_v24 = vadd.f32 %v2399_v21, %v2398_v18  ;;  %v1512_v45 = vadd.f32 %v2397_v15, %v3095_v57  ;;  %v1659_v28 = vpop.f32.mrb[62].mxu1 }
 0x172   :  { %v1661_v32 = vpop.f32.mrb[63].mxu1 }
 0x173   :  { %1901 = vst.msk [vmem:[%s3313_s3 + $0x4] sm:$0xf] %vm1899_vm2, %v2146_v41  ;;  %v1657_v30 = vadd.f32 %v1656_v22, %v1512_v45  ;;  %v1515_v31 = vadd.f32 %v2400_v24, %v3097_v60 }
 0x175   :  { %v1761_v33 = vmax.f32 %v1657_v30, 0.0  ;;  %v1660_v36 = vadd.f32 %v1659_v28, %v1515_v31  ;;  %v2401_v37 = vpop.f32.mrb[64].mxu0 }
 0x176   :  { %v2402_v40 = vpop.f32.mrb[65].mxu0 }
 0x177   :  { %v2147_v43 = vpack.c.bf16 %v1761_v33, %v1761_v33  ;;  %v1762_v46 = vmax.f32 %v1660_v36, 0.0  ;;  %v2403_v49 = vadd.f32 %v2402_v40, %v2401_v37  ;;  %v2404_v42 = vpop.f32.mrb[66].mxu0  ;;  %v1664_v51 = vpop.f32.mrb[64].mxu1 }
 0x178   :  { %v2405_v57 = vpop.f32.mrb[67].mxu0  ;;  %v1666_v54 = vpop.f32.mrb[65].mxu1 }
 0x179   :  { %1902 = vst.msk [vmem:[%s3313_s3 + $0x8] sm:$0xf] %vm1899_vm2, %v2147_v43  ;;  %v2148_v52 = vpack.c.bf16 %v1762_v46, %v1762_v46  ;;  %v2406_v53 = vadd.f32 %v2405_v57, %v2404_v42  ;;  %v1520_v60 = vadd.f32 %v2403_v49, %v3101_v9  ;;  %v1667_v56 = vpop.f32.mrb[66].mxu1 }
 0x17a   :  { %v1669_v2 = vpop.f32.mrb[67].mxu1 }
 0x17b   :  { %1903 = vst.msk [vmem:[%s3313_s3 + $0xc] sm:$0xf] %vm1899_vm2, %v2148_v52  ;;  %v1665_v61 = vadd.f32 %v1664_v51, %v1520_v60  ;;  %v1523_v63 = vadd.f32 %v2406_v53, %v3103_v12 }
 0x17d   :  { %v1763_v3 = vmax.f32 %v1665_v61, 0.0  ;;  %v1668_v4 = vadd.f32 %v1667_v56, %v1523_v63  ;;  %v2407_v26 = vpop.f32.mrb[68].mxu0 }
 0x17e   :  { %v2408_v5 = vpop.f32.mrb[69].mxu0 }
 0x17f   :  { %v2149_v6 = vpack.c.bf16 %v1763_v3, %v1763_v3  ;;  %v1764_v7 = vmax.f32 %v1668_v4, 0.0  ;;  %v2409_v8 = vadd.f32 %v2408_v5, %v2407_v26  ;;  %v2410_v10 = vpop.f32.mrb[70].mxu0  ;;  %v1672_v11 = vpop.f32.mrb[68].mxu1 }
 0x180   :  { %v2411_v9 = vpop.f32.mrb[71].mxu0  ;;  %v1674_v18 = vpop.f32.mrb[69].mxu1 }
 0x181   :  { %1904 = vst.msk [vmem:[%s3313_s3 + $0x10] sm:$0xf] %vm1899_vm2, %v2149_v6  ;;  %v2150_v14 = vpack.c.bf16 %v1764_v7, %v1764_v7  ;;  %v2412_v15 = vadd.f32 %v2411_v9, %v2410_v10  ;;  %v1528_v12 = vadd.f32 %v2409_v8, %v3107_v25  ;;  %v1675_v21 = vpop.f32.mrb[70].mxu1 }
 0x182   :  { %v1677_v24 = vpop.f32.mrb[71].mxu1 }
 0x183   :  { %1905 = vst.msk [vmem:[%s3313_s3 + $0x14] sm:$0xf] %vm1899_vm2, %v2150_v14  ;;  %v1673_v22 = vadd.f32 %v1672_v11, %v1528_v12  ;;  %v1531_v41 = vadd.f32 %v2412_v15, %v3109_v29 }
 0x185   :  { %v1765_v45 = vmax.f32 %v1673_v22, 0.0  ;;  %v1676_v27 = vadd.f32 %v1675_v21, %v1531_v41  ;;  %v2413_v28 = vpop.f32.mrb[72].mxu0 }
 0x186   :  { %v2414_v30 = vpop.f32.mrb[73].mxu0 }
 0x187   :  { %v2151_v31 = vpack.c.bf16 %v1765_v45, %v1765_v45  ;;  %v1766_v32 = vmax.f32 %v1676_v27, 0.0  ;;  %v2415_v33 = vadd.f32 %v2414_v30, %v2413_v28  ;;  %v2416_v36 = vpop.f32.mrb[74].mxu0  ;;  %v1680_v37 = vpop.f32.mrb[72].mxu1 }
 0x188   :  { %v2417_v25 = vpop.f32.mrb[75].mxu0  ;;  %v1682_v46 = vpop.f32.mrb[73].mxu1 }
 0x189   :  { %1906 = vst.msk [vmem:[%s3313_s3 + $0x18] sm:$0xf] %vm1899_vm2, %v2151_v31  ;;  %v2152_v40 = vpack.c.bf16 %v1766_v32, %v1766_v32  ;;  %v2418_v43 = vadd.f32 %v2417_v25, %v2416_v36  ;;  %v1536_v29 = vadd.f32 %v2415_v33, %v3113_v44  ;;  %v1683_v49 = vpop.f32.mrb[74].mxu1 }
 0x18a   :  { %v1685_v51 = vpop.f32.mrb[75].mxu1 }
 0x18b   :  { %1907 = vst.msk [vmem:[%s3313_s3 + $0x1c] sm:$0xf] %vm1899_vm2, %v2152_v40  ;;  %v1681_v42 = vadd.f32 %v1680_v37, %v1536_v29  ;;  %v1539_v57 = vadd.f32 %v2418_v43, %v3115_v48 }
 0x18d   :  { %v1767_v52 = vmax.f32 %v1681_v42, 0.0  ;;  %v1684_v53 = vadd.f32 %v1683_v49, %v1539_v57  ;;  %v2419_v60 = vpop.f32.mrb[76].mxu0 }
 0x18e   :  { %v2420_v54 = vpop.f32.mrb[77].mxu0 }
 0x18f   :  { %v2153_v56 = vpack.c.bf16 %v1767_v52, %v1767_v52  ;;  %v1768_v61 = vmax.f32 %v1684_v53, 0.0  ;;  %v2421_v63 = vadd.f32 %v2420_v54, %v2419_v60  ;;  %v2422_v2 = vpop.f32.mrb[78].mxu0  ;;  %v1688_v3 = vpop.f32.mrb[76].mxu1 }
 0x190   :  { %v2423_v44 = vpop.f32.mrb[79].mxu0  ;;  %v1690_v5 = vpop.f32.mrb[77].mxu1 }
 0x191   :  { %1908 = vst.msk [vmem:[%s3313_s3 + $0x20] sm:$0xf] %vm1899_vm2, %v2153_v56  ;;  %v2154_v4 = vpack.c.bf16 %v1768_v61, %v1768_v61  ;;  %v2424_v26 = vadd.f32 %v2423_v44, %v2422_v2  ;;  %v1544_v48 = vadd.f32 %v2421_v63, %v3119_v62  ;;  %v1691_v6 = vpop.f32.mrb[78].mxu1 }
 0x192   :  { %v1693_v10 = vpop.f32.mrb[79].mxu1 }
 0x193   :  { %1909 = vst.msk [vmem:[%s3313_s3 + $0x24] sm:$0xf] %vm1899_vm2, %v2154_v4  ;;  %v1689_v7 = vadd.f32 %v1688_v3, %v1544_v48  ;;  %v1547_v8 = vadd.f32 %v2424_v26, %v3121_v1 }
 0x195   :  { %v1769_v9 = vmax.f32 %v1689_v7, 0.0  ;;  %v1692_v11 = vadd.f32 %v1691_v6, %v1547_v8  ;;  %v2425_v14 = vpop.f32.mrb[80].mxu0 }
 0x196   :  { %v2426_v15 = vpop.f32.mrb[81].mxu0 }
 0x197   :  { %v2155_v12 = vpack.c.bf16 %v1769_v9, %v1769_v9  ;;  %v1770_v18 = vmax.f32 %v1692_v11, 0.0  ;;  %v2427_v21 = vadd.f32 %v2426_v15, %v2425_v14  ;;  %v2428_v22 = vpop.f32.mrb[82].mxu0  ;;  %v1696_v41 = vpop.f32.mrb[80].mxu1 }
 0x198   :  { %v2429_v62 = vpop.f32.mrb[83].mxu0  ;;  %v1698_v27 = vpop.f32.mrb[81].mxu1 }
 0x199   :  { %1910 = vst.msk [vmem:[%s3313_s3 + $0x28] sm:$0xf] %vm1899_vm2, %v2155_v12  ;;  %v2156_v24 = vpack.c.bf16 %v1770_v18, %v1770_v18  ;;  %v2430_v45 = vadd.f32 %v2429_v62, %v2428_v22  ;;  %v1552_v1 = vadd.f32 %v2427_v21, %v3125_v16  ;;  %v1699_v28 = vpop.f32.mrb[82].mxu1 }
 0x19a   :  { %v1701_v32 = vpop.f32.mrb[83].mxu1 }
 0x19b   :  { %1911 = vst.msk [vmem:[%s3313_s3 + $0x2c] sm:$0xf] %vm1899_vm2, %v2156_v24  ;;  %v1697_v30 = vadd.f32 %v1696_v41, %v1552_v1  ;;  %v1555_v31 = vadd.f32 %v2430_v45, %v3127_v19 }
 0x19d   :  { %v1771_v33 = vmax.f32 %v1697_v30, 0.0  ;;  %v1700_v36 = vadd.f32 %v1699_v28, %v1555_v31  ;;  %v2431_v25 = vpop.f32.mrb[84].mxu0 }
 0x19e   :  { %v2432_v37 = vpop.f32.mrb[85].mxu0 }
 0x19f   :  { %v2157_v40 = vpack.c.bf16 %v1771_v33, %v1771_v33  ;;  %v1772_v43 = vmax.f32 %v1700_v36, 0.0  ;;  %v2433_v29 = vadd.f32 %v2432_v37, %v2431_v25  ;;  %v2434_v46 = vpop.f32.mrb[86].mxu0  ;;  %v1704_v49 = vpop.f32.mrb[84].mxu1 }
 0x1a0   :  { %v2435_v16 = vpop.f32.mrb[87].mxu0  ;;  %v1706_v51 = vpop.f32.mrb[85].mxu1 }
 0x1a1   :  { %1912 = vst.msk [vmem:[%s3313_s3 + $0x30] sm:$0xf] %vm1899_vm2, %v2157_v40  ;;  %v2158_v42 = vpack.c.bf16 %v1772_v43, %v1772_v43  ;;  %v2436_v57 = vadd.f32 %v2435_v16, %v2434_v46  ;;  %v1560_v19 = vadd.f32 %v2433_v29, %v3131_v35  ;;  %v1707_v52 = vpop.f32.mrb[86].mxu1 }
 0x1a2   :  { %v1709_v54 = vpop.f32.mrb[87].mxu1 }
 0x1a3   :  { %1913 = vst.msk [vmem:[%s3313_s3 + $0x34] sm:$0xf] %vm1899_vm2, %v2158_v42  ;;  %v1705_v53 = vadd.f32 %v1704_v49, %v1560_v19  ;;  %v1563_v60 = vadd.f32 %v2436_v57, %v3133_v38 }
 0x1a5   :  { %v1773_v56 = vmax.f32 %v1705_v53, 0.0  ;;  %v1708_v61 = vadd.f32 %v1707_v52, %v1563_v60  ;;  %v2437_v63 = vpop.f32.mrb[88].mxu0 }
 0x1a6   :  { %v2438_v2 = vpop.f32.mrb[89].mxu0 }
 0x1a7   :  { %v2159_v44 = vpack.c.bf16 %v1773_v56, %v1773_v56  ;;  %v1774_v3 = vmax.f32 %v1708_v61, 0.0  ;;  %v2439_v4 = vadd.f32 %v2438_v2, %v2437_v63  ;;  %v2440_v26 = vpop.f32.mrb[90].mxu0  ;;  %v1712_v48 = vpop.f32.mrb[88].mxu1 }
 0x1a8   :  { %v2441_v35 = vpop.f32.mrb[91].mxu0  ;;  %v1714_v7 = vpop.f32.mrb[89].mxu1 }
 0x1a9   :  { %1914 = vst.msk [vmem:[%s3313_s3 + $0x38] sm:$0xf] %vm1899_vm2, %v2159_v44  ;;  %v2160_v5 = vpack.c.bf16 %v1774_v3, %v1774_v3  ;;  %v2442_v6 = vadd.f32 %v2441_v35, %v2440_v26  ;;  %v1568_v38 = vadd.f32 %v2439_v4, %v3137_v55  ;;  %v1715_v8 = vpop.f32.mrb[90].mxu1 }
 0x1aa   :  { %v1717_v11 = vpop.f32.mrb[91].mxu1 }
 0x1ab   :  { %1915 = vst.msk [vmem:[%s3313_s3 + $0x3c] sm:$0xf] %vm1899_vm2, %v2160_v5  ;;  %v1713_v10 = vadd.f32 %v1712_v48, %v1568_v38  ;;  %v1571_v9 = vadd.f32 %v2442_v6, %v3139_v59 }
 0x1ad   :  { %v1775_v14 = vmax.f32 %v1713_v10, 0.0  ;;  %v1716_v15 = vadd.f32 %v1715_v8, %v1571_v9  ;;  %v2443_v12 = vpop.f32.mrb[92].mxu0 }
 0x1ae   :  { %v2444_v18 = vpop.f32.mrb[93].mxu0 }
 0x1af   :  { %v2161_v21 = vpack.c.bf16 %v1775_v14, %v1775_v14  ;;  %v1776_v22 = vmax.f32 %v1716_v15, 0.0  ;;  %v2445_v62 = vadd.f32 %v2444_v18, %v2443_v12  ;;  %v2446_v41 = vpop.f32.mrb[94].mxu0  ;;  %v1720_v24 = vpop.f32.mrb[92].mxu1 }
 0x1b0   :  { %v2447_v55 = vpop.f32.mrb[95].mxu0  ;;  %v1722_v27 = vpop.f32.mrb[93].mxu1 }
 0x1b1   :  { %1916 = vst.msk [vmem:[%s3313_s3 + $0x40] sm:$0xf] %vm1899_vm2, %v2161_v21  ;;  %v2162_v45 = vpack.c.bf16 %v1776_v22, %v1776_v22  ;;  %v2448_v1 = vadd.f32 %v2447_v55, %v2446_v41  ;;  %v1576_v59 = vadd.f32 %v2445_v62, %v3143_v13  ;;  %v1723_v28 = vpop.f32.mrb[94].mxu1 }
 0x1b2   :  { %v1725_v32 = vpop.f32.mrb[95].mxu1 }
 0x1b3   :  { %1917 = vst.msk [vmem:[%s3313_s3 + $0x44] sm:$0xf] %vm1899_vm2, %v2162_v45  ;;  %v1721_v30 = vadd.f32 %v1720_v24, %v1576_v59  ;;  %v1579_v31 = vadd.f32 %v2448_v1, %v3145_v17 }
 0x1b5   :  { %v1777_v33 = vmax.f32 %v1721_v30, 0.0  ;;  %v1724_v36 = vadd.f32 %v1723_v28, %v1579_v31  ;;  %v2449_v25 = vpop.f32.mrb[96].mxu0 }
 0x1b6   :  { %v2450_v37 = vpop.f32.mrb[97].mxu0 }
 0x1b7   :  { %v2163_v40 = vpack.c.bf16 %v1777_v33, %v1777_v33  ;;  %v1778_v43 = vmax.f32 %v1724_v36, 0.0  ;;  %v2451_v29 = vadd.f32 %v2450_v37, %v2449_v25  ;;  %v2452_v46 = vpop.f32.mrb[98].mxu0  ;;  %v1728_v16 = vpop.f32.mrb[96].mxu1 }
 0x1b8   :  { %v2453_v13 = vpop.f32.mrb[99].mxu0  ;;  %v1730_v57 = vpop.f32.mrb[97].mxu1 }
 0x1b9   :  { %1918 = vst.msk [vmem:[%s3313_s3 + $0x48] sm:$0xf] %vm1899_vm2, %v2163_v40  ;;  %v2164_v49 = vpack.c.bf16 %v1778_v43, %v1778_v43  ;;  %v2454_v42 = vadd.f32 %v2453_v13, %v2452_v46  ;;  %v1584_v17 = vadd.f32 %v2451_v29, %v3149_v34  ;;  %v1731_v19 = vpop.f32.mrb[98].mxu1 }
 0x1ba   :  { %v1733_v53 = vpop.f32.mrb[99].mxu1 }
 0x1bb   :  { %1919 = vst.msk [vmem:[%s3313_s3 + $0x4c] sm:$0xf] %vm1899_vm2, %v2164_v49  ;;  %v1729_v51 = vadd.f32 %v1728_v16, %v1584_v17  ;;  %v1587_v52 = vadd.f32 %v2454_v42, %v3151_v39 }
 0x1bd   :  { %v1779_v60 = vmax.f32 %v1729_v51, 0.0  ;;  %v1732_v54 = vadd.f32 %v1731_v19, %v1587_v52  ;;  %v2455_v56 = vpop.f32.mrb[100].mxu0 }
 0x1be   :  { %v2456_v61 = vpop.f32.mrb[101].mxu0 }
 0x1bf   :  { %v2165_v63 = vpack.c.bf16 %v1779_v60, %v1779_v60  ;;  %v1780_v2 = vmax.f32 %v1732_v54, 0.0  ;;  %v2457_v44 = vadd.f32 %v2456_v61, %v2455_v56  ;;  %v2458_v3 = vpop.f32.mrb[102].mxu0  ;;  %v1736_v4 = vpop.f32.mrb[100].mxu1 }
 0x1c0   :  { %v2459_v34 = vpop.f32.mrb[103].mxu0  ;;  %v1738_v48 = vpop.f32.mrb[101].mxu1 }
 0x1c1   :  { %1920 = vst.msk [vmem:[%s3313_s3 + $0x50] sm:$0xf] %vm1899_vm2, %v2165_v63  ;;  %v2166_v26 = vpack.c.bf16 %v1780_v2, %v1780_v2  ;;  %v2460_v35 = vadd.f32 %v2459_v34, %v2458_v3  ;;  %v1592_v39 = vadd.f32 %v2457_v44, %v3155_v58  ;;  %v1739_v5 = vpop.f32.mrb[102].mxu1 }
 0x1c2   :  { %v1741_v7 = vpop.f32.mrb[103].mxu1 }
 0x1c3   :  { %1921 = vst.msk [vmem:[%s3313_s3 + $0x54] sm:$0xf] %vm1899_vm2, %v2166_v26  ;;  %v1737_v6 = vadd.f32 %v1736_v4, %v1592_v39  ;;  %v1595_v38 = vadd.f32 %v2460_v35, %v3157_v0 }
 0x1c5   :  { %v1781_v8 = vmax.f32 %v1737_v6, 0.0  ;;  %v1740_v10 = vadd.f32 %v1739_v5, %v1595_v38  ;;  %v2461_v9 = vpop.f32.mrb[104].mxu0 }
 0x1c6   :  { %v2462_v11 = vpop.f32.mrb[105].mxu0 }
 0x1c7   :  { %v2167_v14 = vpack.c.bf16 %v1781_v8, %v1781_v8  ;;  %v1782_v15 = vmax.f32 %v1740_v10, 0.0  ;;  %v2463_v12 = vadd.f32 %v2462_v11, %v2461_v9  ;;  %v2464_v18 = vpop.f32.mrb[106].mxu0  ;;  %v1744_v21 = vpop.f32.mrb[104].mxu1 }
 0x1c8   :  { %v2465_v58 = vpop.f32.mrb[107].mxu0  ;;  %v1746_v41 = vpop.f32.mrb[105].mxu1 }
 0x1c9   :  { %1922 = vst.msk [vmem:[%s3313_s3 + $0x58] sm:$0xf] %vm1899_vm2, %v2167_v14  ;;  %v2168_v22 = vpack.c.bf16 %v1782_v15, %v1782_v15  ;;  %v2466_v62 = vadd.f32 %v2465_v58, %v2464_v18  ;;  %v1600_v0 = vadd.f32 %v2463_v12, %v3161_v20  ;;  %v1747_v55 = vpop.f32.mrb[106].mxu1 }
 0x1ca   :  { %v1749_v1 = vpop.f32.mrb[107].mxu1 }
 0x1cb   :  { %1923 = vst.msk [vmem:[%s3313_s3 + $0x5c] sm:$0xf] %vm1899_vm2, %v2168_v22  ;;  %v1745_v24 = vadd.f32 %v1744_v21, %v1600_v0  ;;  %v1603_v45 = vadd.f32 %v2466_v62, %v3163_v23 }
 0x1cd   :  { %v1783_v59 = vmax.f32 %v1745_v24, 0.0  ;;  %v1748_v27 = vadd.f32 %v1747_v55, %v1603_v45  ;;  %v2467_v28 = vpop.f32.mrb[108].mxu0 }
 0x1ce   :  { %v2468_v30 = vpop.f32.mrb[109].mxu0 }
 0x1cf   :  { %v2169_v31 = vpack.c.bf16 %v1783_v59, %v1783_v59  ;;  %v1784_v32 = vmax.f32 %v1748_v27, 0.0  ;;  %v2469_v33 = vadd.f32 %v2468_v30, %v2467_v28  ;;  %v2470_v36 = vpop.f32.mrb[110].mxu0  ;;  %v1752_v25 = vpop.f32.mrb[108].mxu1 }
 0x1d0   :  { %v2471_v20 = vpop.f32.mrb[111].mxu0  ;;  %v1754_v43 = vpop.f32.mrb[109].mxu1 }
 0x1d1   :  { %1924 = vst.msk [vmem:[%s3313_s3 + $0x60] sm:$0xf] %vm1899_vm2, %v2169_v31  ;;  %v2170_v37 = vpack.c.bf16 %v1784_v32, %v1784_v32  ;;  %v2472_v40 = vadd.f32 %v2471_v20, %v2470_v36  ;;  %v1608_v23 = vadd.f32 %v2469_v33, %v3167_v47  ;;  %v1755_v29 = vpop.f32.mrb[110].mxu1 }
 0x1d2   :  { %v1757_v16 = vpop.f32.mrb[111].mxu1 }
 0x1d3   :  { %1925 = vst.msk [vmem:[%s3313_s3 + $0x64] sm:$0xf] %vm1899_vm2, %v2170_v37  ;;  %v1753_v46 = vadd.f32 %v1752_v25, %v1608_v23  ;;  %v1611_v13 = vadd.f32 %v2472_v40, %v3169_v50 }
 0x1d5   :  { %v1785_v49 = vmax.f32 %v1753_v46, 0.0  ;;  %v1756_v42 = vadd.f32 %v1755_v29, %v1611_v13 }
 0x1d7   :  { %v2171_v17 = vpack.c.bf16 %v1785_v49, %v1785_v49  ;;  %v1786_v57 = vmax.f32 %v1756_v42, 0.0 }
 0x1d9   :  { %1926 = vst.msk [vmem:[%s3313_s3 + $0x68] sm:$0xf] %vm1899_vm2, %v2171_v17  ;;  %v2172_v47 = vpack.c.bf16 %v1786_v57, %v1786_v57 }
 0x1db   :  { %1928 = vst.msk [vmem:[%s3313_s3 + $0x6c] sm:$0x3] %vm1927_vm3, %v2172_v47 }

// kernel: pilotnet_forward.7
= control target key start
LH: loop header
LB: loop body
LE: loop exit
PB: predicated region body
PF: predicated region fallthrough
CT: control target
= control target key end

     0   :  { %s6990_s25 = smov 0   ;;  %s8150_s0 = inlined_call_operand.vmem [shape: bf16[2,110,48], index: 0, kind: input, shape index: {}]   ;;  %s8151_s1 = inlined_call_operand.vmem [shape: bf16[9,48,64], index: 1, kind: input, shape index: {}]   ;;  %s8152_s2 = inlined_call_operand.vmem [shape: f32[1,64], index: 2, kind: input, shape index: {}]   ;;  %s8153_s3 = inlined_call_operand.vmem [shape: bf16[9,64,64], index: 3, kind: input, shape index: {}]   ;;  %s8154_s4 = inlined_call_operand.vmem [shape: f32[1,64], index: 4, kind: input, shape index: {}]   ;;  %s8155_s5 = inlined_call_operand.vmem [shape: bf16[18,64,128], index: 5, kind: input, shape index: {}]   ;;  %s8156_s6 = inlined_call_operand.vmem [shape: f32[1,128], index: 6, kind: input, shape index: {}]   ;;  %s8157_s7 = inlined_call_operand.vmem [shape: bf16[128,128], index: 7, kind: input, shape index: {}]   ;;  %s8158_s8 = inlined_call_operand.vmem [shape: f32[1,128], index: 8, kind: input, shape index: {}]   ;;  %s8159_s9 = inlined_call_operand.vmem [shape: bf16[128,128], index: 9, kind: input, shape index: {}]   ;;  %s8160_s10 = inlined_call_operand.vmem [shape: f32[1,128], index: 10, kind: input, shape index: {}]   ;;  %s8161_s11 = inlined_call_operand.vmem [shape: bf16[128,128], index: 11, kind: input, shape index: {}]   ;;  %s8162_s12 = inlined_call_operand.vmem [shape: f32[1,128], index: 12, kind: input, shape index: {}]   ;;  %s8163_s13 = inlined_call_operand.vmem [shape: f32[2,1,128], index: 13, kind: output, shape index: {}]  }
   0x1 LB: > { %s5018_s26 = sadd.s32 4294967295, %s6916_s25   ;;  %p5022_p0 = scmp.ge.s32.totalorder %s6916_s25, 1  ;;  %s6916_s25 = sphi %s6990_s25, %s23_s25  }
   0x2   : > { %p387_p1 = scmp.lt.s32.totalorder %s6916_s25, 3 }
   0x4   : > { %p388_p2 = pnand %p5022_p0, %p387_p1 }
   0x5   : > { %v7001_v0 = vld [vmem:[%s8151_s1] sm:$0xff] (!%p388_p2)   ;;  %p429_p3 = scmp.lt.s32.totalorder (!%p388_p2), %s5018_s26, 1  ;;  %v7006_v1 = vld [vmem:[%s8151_s1 + $0x18] sm:$0xff] (!%p388_p2)   ;;  %v7012_v2 = vld [vmem:[%s8151_s1 + $0x8] sm:$0xff] (!%p388_p2)   ;;  %vm481_vm0 = vcmask (!%p388_p2), 392192   ;;  %vm751_vm2 = vcmask (!%p388_p2), 1044480  }
   0x6   : > { %391 = sbr.rel (%p388_p2) target bundleno = 1774 (0x6ee), region = 72  ;;  %5853 = vmatprep.subr.bf16.mxu1 (!%p388_p2), %v7001_v0  ;;  %5863 = vmatprep.subr.bf16.mxu0 (!%p388_p2), %v7006_v1  ;;  %v7021_v3 = vld [vmem:[%s8151_s1 + $0x20] sm:$0xff] (!%p388_p2)   ;;  %v7028_v4 = vld [vmem:[%s8151_s1 + $0x10] sm:$0xff] (!%p388_p2)   ;;  %v7035_v5 = vld [vmem:[%s8151_s1 + $0x28] sm:$0xff] (!%p388_p2)   ;;  %vm550_vm1 = vsmask.f32 (!%p388_p2), 7424 }
   0x7   : > { %5854 = vmatpush3.bf16.msra.mxu1 (!%p388_p2), %v7001_v0  ;;  %5864 = vmatpush3.bf16.msra.mxu0 (!%p388_p2), %v7006_v1  ;;  %v7056_v13 = vld [vmem:[%s8151_s1 + $0x30] sm:$0xff] (!%p388_p2)   ;;  %vm651_vm3 = vcmask (!%p388_p2), 1046528   ;;  %v7083_v31 = vld [vmem:[%s8151_s1 + $0x38] sm:$0xff] (!%p388_p2)   ;;  %v7104_v41 = vld [vmem:[%s8151_s1 + $0x40] sm:$0xff] (!%p388_p2)   ;;  %vm841_vm4 = vsmask.f32 (!%p388_p2), 4352 }
   0x8   : > { %5855 = vmatprep.subr.bf16.mxu1 (!%p388_p2), %v7012_v2  ;;  %5865 = vmatprep.subr.bf16.mxu0 (!%p388_p2), %v7021_v3  ;;  %v7115_v48 = vld [vmem:[%s8151_s1 + $0x48] sm:$0xff] (!%p388_p2)   ;;  %v7129_v51 = vld [vmem:[%s8151_s1 + $0x50] sm:$0xff] (!%p388_p2)   ;;  %v7140_v52 = vld [vmem:[%s8151_s1 + $0x58] sm:$0xff] (!%p388_p2)   ;;  %vm1036_vm5 = vcmask (!%p388_p2), 1045504   ;;  %vm1136_vm6 = vsmask.f32 (!%p388_p2), 5376 }
   0x9   : > { %v7150_v53 = vld [vmem:[%s8151_s1 + $0x60] sm:$0xff] (!%p388_p2)   ;;  %v7167_v57 = vld [vmem:[%s8151_s1 + $0x68] sm:$0xff] (!%p388_p2)   ;;  %v7181_v62 = vld [vmem:[%s8151_s1 + $0x70] sm:$0xff] (!%p388_p2)   ;;  %vm1704_vm7 = vsmask.f32 (!%p388_p2), 6400  ;;  %vm2406_vm8 = vcmask (!%p388_p2), 523264  }
   0xa   : > { %vm6919_vm9 = vmmov (!%p388_p2), 0  }
   0xb   : > { %5856 = vmatpush3.bf16.msra.mxu1 (!%p388_p2), %v7012_v2  ;;  %5866 = vmatpush3.bf16.msra.mxu0 (!%p388_p2), %v7021_v3 }
   0xc   : > { %5857 = vmatprep.subr.bf16.mxu1 (!%p388_p2), %v7028_v4  ;;  %5867 = vmatprep.subr.bf16.mxu0 (!%p388_p2), %v7035_v5 }
   0xd   : > { %s8165_s26 = smov (!%p429_p3, %s5018_s26), 1 }
   0xe   : > { %s6712_s20 = smul.u32 56, %s8165_s26 }
   0xf   : > { %5858 = vmatpush3.bf16.msra.mxu1 %v7028_v4  ;;  %5868 = vmatpush3.bf16.msra.mxu0 %v7035_v5 }
  0x10   : > { %s7040_s27 = scalar_lea.vmem %s8150_s0, %s6712_s20  ;;  %5943 = vmatprep.subr.bf16.mxu1 %v7001_v0  ;;  %5873 = vmatprep.subr.bf16.mxu0 %v7056_v13 }
  0x11   : > { %v446_v6 = vld [vmem:[%s7040_s27] sm:$0xf]  ;;  %v447_v7 = vld [vmem:[%s7040_s27 + $0x4] sm:$0xf]  ;;  %v730_v20 = vld [vmem:[%s7040_s27 + $0x8] sm:$0x8] }
  0x12   : > { %v640_v8 = vld [vmem:[%s7040_s27] sm:$0xe]  ;;  %v5025_v9 = vcombine.low %v446_v6, %v447_v7  ;;  %v6731_v11 = vld [vmem:[%s7040_s27 + $0x8] ss:$0 sps:$4 sm:$0x33]  }
  0x13   : > { %v5050_v10 = vcombine.low %v640_v8, %v447_v7  ;;  %v7051_v12 = vld [vmem:[%s7040_s27 + $0x8] ss:$0 sps:$4 sm:$0x77]   ;;  %v7067_v22 = vld [vmem:[%s7040_s27 + $0xc] sm:$0xf] }
  0x14   : > { %5859 = vmatprep.mubr.msk.bf16.mxu1 %vm481_vm0, %v5025_v9  ;;  %v551_v14 = vshrl.u32 %v5025_v9, 16  ;;  %v553_v15 = vshll.u32 %v5025_v9, 16  ;;  %v558_v16 = vshll.u32 %v7051_v12, 16  ;;  %v562_v17 = vshrl.u32 %v7051_v12, 16  ;;  %v7070_v23 = vld [vmem:[%s7040_s27 + $0x10] sm:$0xf] }
  0x15   : > { %v652_v18 = vrot.slane %v5050_v10, 1  ;;  %v653_v24 = vrot.slane %v7051_v12, 1  ;;  %5860 = vmatmul.mubr.msk.bf16.vlgmr.msra.gmra.mrb[0].mxu1 %vm481_vm0, %v6731_v11  ;;  %v733_v26 = vld [vmem:[%s7040_s27 + $0x14] sm:$0x1]  ;;  %v5062_v27 = vcombine.low %v730_v20, %v7067_v22  ;;  %v5087_v54 = vcombine.low %v7067_v22, %v7070_v23  ;;  %v1115_v55 = vld [vmem:[%s7040_s27 + $0x14] sm:$0xc] }
  0x16   : > { %v555_v19 = vrot.slane %v553_v15, 1  ;;  %v560_v21 = vrot.slane %v558_v16, 1  ;;  %5944 = vmatpush3.bf16.msra.mxu1 %v7001_v0  ;;  %v5063_v29 = vcombine.low %v7070_v23, %v733_v26  ;;  %v7089_v34 = vld [vmem:[%s7040_s27 + $0x14] sm:$0x3]  ;;  %v7158_v56 = vld [vmem:[%s7040_s27 + $0x18] sm:$0xf] }
  0x17   : > { %5945 = vmatprep.subr.bf16.mxu1 %v7012_v2  ;;  %v752_v32 = vrot.slane %v5062_v27, 3  ;;  %v843_v35 = vshrl.u32 %v5062_v27, 16  ;;  %v654_v36 = vsel %vm651_vm3, %v652_v18, %v653_v24  ;;  %v5075_v37 = vcombine.low %v7070_v23, %v7089_v34  ;;  %v6750_v58 = vld [vmem:[%s7040_s27 + $0x14] sm:$0xfc]   ;;  %v6751_v59 = vld [vmem:[%s7040_s27 + $0x1c] ss:$0 sps:$4 sm:$0xff]  }
  0x18   : > { %v556_v25 = vor.u32 %v555_v19, %v551_v14  ;;  %v564_v28 = vor.u32 %v562_v17, %v560_v21  ;;  %v7086_v33 = vrot.slane %v5063_v29, 3  ;;  %v846_v38 = vshll.u32 %v5062_v27, 16  ;;  %v6756_v61 = vld [vmem:[%s7040_s27 + $0x1c] sm:$0x1f]   ;;  %v7220_v12 = vld [vmem:[%s8151_s1 + $0x88] sm:$0xff]   ;;  %v7235_v20 = vld [vmem:[%s8151_s1 + $0x90] sm:$0xff]  }
  0x19   : > { %v845_v40 = vrot.slane %v843_v35, 3  ;;  %v851_v43 = vshrl.u32 %v5075_v37, 16  ;;  %v854_v44 = vshll.u32 %v5075_v37, 16  ;;  %v5113_v60 = vcombine.low %v1115_v55, %v7158_v56  ;;  %v7193_v9 = vld [vmem:[%s8151_s1 + $0x78] sm:$0xff]   ;;  %v7203_v10 = vld [vmem:[%s8151_s1 + $0x80] sm:$0xff]   ;;  %v7296_v37 = vld [vmem:[%s8151_s1 + $0xb0] sm:$0xff]  }
  0x1a   : > { %v561_v30 = vsel %vm550_vm1, %v556_v25, %v560_v21  ;;  %5946 = vmatpush3.bf16.msra.mxu1 %v7012_v2  ;;  %v754_v39 = vsel %vm751_vm2, %v752_v32, %v7086_v33  ;;  %v848_v42 = vrot.slane %v846_v38, 4  ;;  %v1037_v63 = vrot.slane %v6750_v58, 2  ;;  %v1229_v17 = vld [vmem:[%s7040_s27 + $0x14] sm:$0x8]  ;;  %v1629_v18 = vld [vmem:[%s7040_s27 + $0x20] sm:$0xe] }
  0x1b   : > { %5869 = vmatprep.mubr.msk.bf16.mxu0 %vm481_vm0, %v561_v30  ;;  %5947 = vmatprep.subr.bf16.mxu1 %v7028_v4  ;;  %v853_v46 = vrot.slane %v851_v43, 3  ;;  %v856_v47 = vrot.slane %v854_v44, 4  ;;  %v1146_v6 = vshrl.u32 %v6756_v61, 16  ;;  %v1149_v7 = vshll.u32 %v6756_v61, 16  ;;  %v7227_v19 = vld [vmem:[%s7040_s27 + $0x24] sm:$0xf] }
  0x1c   : > { %5870 = vmatmul.mubr.msk.bf16.vlgmr.msra.gmra.mrb[0].mxu0 %vm481_vm0, %v564_v28  ;;  %5949 = vmatprep.mubr.msk.bf16.mxu1 %vm481_vm0, %v754_v39  ;;  %v849_v45 = vor.u32 %v848_v42, %v845_v40  ;;  %v5088_v8 = vcombine.low %v7089_v34, %v7089_v34  ;;  %v6765_v23 = vld [vmem:[%s7040_s27 + $0x28] ss:$0 sps:$4 sm:$0x77]   ;;  %v5144_v25 = vcombine.low %v1629_v18, %v7227_v19  ;;  %v7251_v26 = vld [vmem:[%s8151_s1 + $0x98] sm:$0xff]   ;;  %v7261_v29 = vrot.slane %v6756_v61, 3  ;;  %v7271_v32 = vld [vmem:[%s8151_s1 + $0xa0] sm:$0xff]  }
  0x1d   : > { %5874 = vmatpush3.bf16.msra.mxu0 %v7056_v13  ;;  %5879 = vmatprep.mubr.msk.bf16.mxu0 %vm481_vm0, %v654_v36  ;;  %v7117_v49 = vor.u32 %v856_v47, %v853_v46  ;;  %v1148_v15 = vrot.slane %v1146_v6, 2  ;;  %v1151_v16 = vrot.slane %v1149_v7, 3  ;;  %v7280_v35 = vld [vmem:[%s7040_s27 + $0x28] ss:$0 sps:$4 sm:$0xff]   ;;  %v7326_v44 = vld [vmem:[%s8151_s1 + $0xc0] sm:$0xff]   ;;  %v6908_v6 = vld [vmem:[%s8151_s1 + $0x38] sm:$0xff]  }
  0x1e   : > { %5875 = vmatprep.subr.bf16.mxu0 %v7083_v31  ;;  %5948 = vmatpush3.bf16.msra.mxu1 %v7028_v4  ;;  %v1640_v30 = vrot.slane %v5144_v25, 1  ;;  %v1709_v34 = vshll.u32 %v5144_v25, 16  ;;  %v7285_v36 = vld [vmem:[%s8151_s1 + $0xa8] sm:$0xff]   ;;  %v1717_v40 = vshll.u32 %v7280_v35, 16  ;;  %v7383_v61 = vrot.slane %v7280_v35, 2  ;;  %v6909_v7 = vld [vmem:[%s8151_s1 + $0x40] sm:$0xff]  }
  0x1f   : > { %5953 = vmatprep.subr.bf16.mxu1 %v7006_v1  ;;  %v858_v50 = vsel %vm841_vm4, %v849_v45, %v7117_v49  ;;  %v7237_v22 = vor.u32 %v1151_v16, %v1148_v15  ;;  %v7337_v47 = vld [vmem:[%s8151_s1 + $0xc8] sm:$0xff]   ;;  %v6774_v15 = vld [vmem:[%s8153_s3 + $0x10] sm:$0xff]   ;;  %v6775_v18 = vld [vmem:[%s8153_s3 + $0x18] sm:$0xff]  }
  0x20   : > { %v1711_v43 = vrot.slane %v1709_v34, 2  ;;  %v1719_v46 = vrot.slane %v1717_v40, 2 }
  0x21   : > { %5876 = vmatpush3.bf16.msra.mxu0 %v7083_v31  ;;  %5950 = vmatmul.mubr.msk.bf16.vlgmr.msra.gmra.mrb[4].mxu1 %vm481_vm0, %v7086_v33 }
  0x22   : > { %5877 = vmatprep.subr.bf16.mxu0 %v7104_v41  ;;  %5954 = vmatpush3.bf16.msra.mxu1 %v7006_v1  ;;  %v7185_v1 = vrot.slane %v6751_v59, 2 }
  0x23   : > { %5955 = vmatprep.subr.bf16.mxu1 %v7021_v3  ;;  %5959 = vmatprep.mubr.msk.bf16.mxu1 %vm481_vm0, %v858_v50 }
  0x24   : > { %v7207_v11 = vsel %vm1036_vm5, %v1037_v63, %v7185_v1  ;;  %v6772_v63 = vld [vmem:[%s8153_s3] sm:$0xff]  }
  0x25   : > { %5878 = vmatpush3.bf16.msra.mxu0 %v7104_v41 }
  0x26   : > { %5883 = vmatprep.subr.bf16.mxu0 %v7115_v48  ;;  %5956 = vmatpush3.bf16.msra.mxu1 %v7021_v3  ;;  %v1138_v3 = vshrl.u32 %v5113_v60, 16 }
  0x27   : > { %5957 = vmatprep.subr.bf16.mxu1 %v7035_v5 }
  0x28   : > { %5880 = vmatmul.mubr.msk.bf16.vlgmr.msra.gmra.mrb[0].mxu0 %vm481_vm0, %v653_v24  ;;  %v5126_v24 = vcombine.low %v1229_v17, %v7158_v56 }
  0x29   : > { %5884 = vmatpush3.bf16.msra.mxu0 %v7115_v48  ;;  %5889 = vmatprep.mubr.msk.bf16.mxu0 %vm481_vm0, %v754_v39  ;;  %v1714_v39 = vshrl.u32 %v7280_v35, 16 }
  0x2a   : > { %5885 = vmatprep.subr.bf16.mxu0 %v7129_v51  ;;  %5958 = vmatpush3.bf16.msra.mxu1 %v7035_v5  ;;  %v1141_v5 = vshll.u32 %v5113_v60, 16  ;;  %v1240_v28 = vrot.slane %v5126_v24, 3 }
  0x2b   : > { %5963 = vmatprep.subr.bf16.mxu1 %v7056_v13  ;;  %v1716_v45 = vrot.slane %v1714_v39, 1 }
  0x2c   : > { %v1143_v14 = vrot.slane %v1141_v5, 3  ;;  %v7300_v38 = vsel %vm751_vm2, %v1240_v28, %v7261_v29  ;;  %v6907_v5 = vld [vmem:[%s8151_s1 + $0x30] sm:$0xff]   ;;  %v7516_v28 = vld [vmem:[%s8152_s2] ss:$0 sm:$0xff] }
  0x2d   : > { %5886 = vmatpush3.bf16.msra.mxu0 %v7129_v51  ;;  %5960 = vmatmul.mubr.msk.bf16.vlgmr.msra.gmra.mrb[4].mxu1 %vm481_vm0, %v7117_v49  ;;  %v7363_v56 = vor.u32 %v1719_v46, %v1716_v45 }
  0x2e   : > { %5887 = vmatprep.subr.bf16.mxu0 %v7140_v52  ;;  %5964 = vmatpush3.bf16.msra.mxu1 %v7056_v13  ;;  %v1140_v13 = vrot.slane %v1138_v3, 2  ;;  %v6906_v3 = vld [vmem:[%s8151_s1 + $0x28] sm:$0xff]  }
  0x2f   : > { %5965 = vmatprep.subr.bf16.mxu1 %v7083_v31  ;;  %5969 = vmatprep.mubr.msk.bf16.mxu1 %vm481_vm0, %v5087_v54 }
  0x30   : > { %v1144_v21 = vor.u32 %v1143_v14, %v1140_v13  ;;  %v2297_v14 = vld [vmem:[%s7040_s27 + $0x2c] sm:$0xe] }
  0x31   : > { %5888 = vmatpush3.bf16.msra.mxu0 %v7140_v52 }
  0x32   : > { %5893 = vmatprep.subr.bf16.mxu0 %v7150_v53  ;;  %5966 = vmatpush3.bf16.msra.mxu1 %v7083_v31  ;;  %v7255_v27 = vsel %vm1136_vm6, %v1144_v21, %v7237_v22  ;;  %v7263_v31 = vrot.slane %v6765_v23, 1 }
  0x33   : > { %5967 = vmatprep.subr.bf16.mxu1 %v7104_v41 }
  0x34   : > { %5890 = vmatmul.mubr.msk.bf16.vlgmr.msra.gmra.mrb[0].mxu0 %vm481_vm0, %v7086_v33  ;;  %v1706_v33 = vshrl.u32 %v5144_v25, 16 }
  0x35   : > { %5894 = vmatpush3.bf16.msra.mxu0 %v7150_v53  ;;  %5899 = vmatprep.mubr.msk.bf16.mxu0 %vm481_vm0, %v858_v50  ;;  %v7354_v50 = vld [vmem:[%s8151_s1 + $0xd0] sm:$0xff]  }
  0x36   : > { %5895 = vmatprep.subr.bf16.mxu0 %v7167_v57  ;;  %5968 = vmatpush3.bf16.msra.mxu1 %v7104_v41  ;;  %v7315_v41 = vld [vmem:[%s8151_s1 + $0xb8] sm:$0xff]   ;;  %v1708_v42 = vrot.slane %v1706_v33, 1 }
  0x37   : > { %5973 = vmatprep.subr.bf16.mxu1 %v7115_v48 }
  0x38   : > { %v1712_v55 = vor.u32 %v1711_v43, %v1708_v42 }
  0x39   : > { %5896 = vmatpush3.bf16.msra.mxu0 %v7167_v57  ;;  %5970 = vmatmul.mubr.msk.bf16.vlgmr.msra.gmra.mrb[4].mxu1 %vm481_vm0, %v5088_v8 }
  0x3a   : > { %5897 = vmatprep.subr.bf16.mxu0 %v7181_v62  ;;  %5974 = vmatpush3.bf16.msra.mxu1 %v7115_v48  ;;  %v7374_v59 = vsel %vm1704_vm7, %v1712_v55, %v7363_v56 }
  0x3b   : > { %5975 = vmatprep.subr.bf16.mxu1 %v7129_v51  ;;  %5979 = vmatprep.mubr.msk.bf16.mxu1 %vm481_vm0, %v7207_v11 }
  0x3d   : > { %5898 = vmatpush3.bf16.msra.mxu0 %v7181_v62 }
  0x3e   : > { %5903 = vmatprep.subr.bf16.mxu0 %v7193_v9  ;;  %5976 = vmatpush3.bf16.msra.mxu1 %v7129_v51 }
  0x3f   : > { %5977 = vmatprep.subr.bf16.mxu1 %v7140_v52 }
  0x40   : > { %5900 = vmatmul.mubr.msk.bf16.vlgmr.msra.gmra.mrb[0].mxu0 %vm481_vm0, %v7117_v49  ;;  %v7341_v49 = vsel %vm651_vm3, %v1640_v30, %v7263_v31 }
  0x41   : > { %5904 = vmatpush3.bf16.msra.mxu0 %v7193_v9  ;;  %5909 = vmatprep.mubr.msk.bf16.mxu0 %vm481_vm0, %v5087_v54  ;;  %v1779_v54 = vld [vmem:[%s7040_s27 + $0x20] sm:$0xc] }
  0x42   : > { %5905 = vmatprep.subr.bf16.mxu0 %v7203_v10  ;;  %5978 = vmatpush3.bf16.msra.mxu1 %v7140_v52  ;;  %v5151_v58 = vcombine.low %v1779_v54, %v7227_v19 }
  0x43   : > { %5983 = vmatprep.subr.bf16.mxu1 %v7150_v53 }
  0x44   : > { %v1783_v60 = vrot.slane %v5151_v58, 2 }
  0x45   : > { %5906 = vmatpush3.bf16.msra.mxu0 %v7203_v10  ;;  %5980 = vmatmul.mubr.msk.bf16.vlgmr.msra.gmra.mrb[4].mxu1 %vm481_vm0, %v7185_v1 }
  0x46   : > { %5907 = vmatprep.subr.bf16.mxu0 %v7220_v12  ;;  %5984 = vmatpush3.bf16.msra.mxu1 %v7150_v53 }
  0x47   : > { %5985 = vmatprep.subr.bf16.mxu1 %v7167_v57  ;;  %5989 = vmatprep.mubr.msk.bf16.mxu1 %vm481_vm0, %v7255_v27 }
  0x49   : > { %5908 = vmatpush3.bf16.msra.mxu0 %v7220_v12 }
  0x4a   : > { %5913 = vmatprep.subr.bf16.mxu0 %v7235_v20  ;;  %5986 = vmatpush3.bf16.msra.mxu1 %v7167_v57 }
  0x4b   : > { %5987 = vmatprep.subr.bf16.mxu1 %v7181_v62 }
  0x4c   : > { %5910 = vmatmul.mubr.msk.bf16.vlgmr.msra.gmra.mrb[0].mxu0 %vm481_vm0, %v5088_v8 }
  0x4d   : > { %5914 = vmatpush3.bf16.msra.mxu0 %v7235_v20  ;;  %5919 = vmatprep.mubr.msk.bf16.mxu0 %vm481_vm0, %v7207_v11 }
  0x4e   : > { %5915 = vmatprep.subr.bf16.mxu0 %v7251_v26  ;;  %5988 = vmatpush3.bf16.msra.mxu1 %v7181_v62 }
  0x4f   : > { %5993 = vmatprep.subr.bf16.mxu1 %v7193_v9 }
  0x51   : > { %5916 = vmatpush3.bf16.msra.mxu0 %v7251_v26  ;;  %5990 = vmatmul.mubr.msk.bf16.vlgmr.msra.gmra.mrb[4].mxu1 %vm481_vm0, %v7237_v22 }
  0x52   : > { %5917 = vmatprep.subr.bf16.mxu0 %v7271_v32  ;;  %5994 = vmatpush3.bf16.msra.mxu1 %v7193_v9 }
  0x53   : > { %5995 = vmatprep.subr.bf16.mxu1 %v7203_v10  ;;  %5999 = vmatprep.mubr.msk.bf16.mxu1 %vm481_vm0, %v7300_v38 }
  0x55   : > { %5918 = vmatpush3.bf16.msra.mxu0 %v7271_v32 }
  0x56   : > { %5923 = vmatprep.subr.bf16.mxu0 %v7285_v36  ;;  %5996 = vmatpush3.bf16.msra.mxu1 %v7203_v10 }
  0x57   : > { %5997 = vmatprep.subr.bf16.mxu1 %v7220_v12 }
  0x58   : > { %5920 = vmatmul.mubr.msk.bf16.vlgmr.msra.gmra.mrb[0].mxu0 %vm481_vm0, %v7185_v1 }
  0x59   : > { %5924 = vmatpush3.bf16.msra.mxu0 %v7285_v36  ;;  %5929 = vmatprep.mubr.msk.bf16.mxu0 %vm481_vm0, %v7255_v27 }
  0x5a   : > { %5925 = vmatprep.subr.bf16.mxu0 %v7296_v37  ;;  %5998 = vmatpush3.bf16.msra.mxu1 %v7220_v12 }
  0x5b   : > { %6003 = vmatprep.subr.bf16.mxu1 %v7235_v20 }
  0x5d   : > { %5926 = vmatpush3.bf16.msra.mxu0 %v7296_v37  ;;  %6000 = vmatmul.mubr.msk.bf16.vlgmr.msra.gmra.mrb[4].mxu1 %vm481_vm0, %v7261_v29 }
  0x5e   : > { %5927 = vmatprep.subr.bf16.mxu0 %v7315_v41  ;;  %6004 = vmatpush3.bf16.msra.mxu1 %v7235_v20 }
  0x5f   : > { %6005 = vmatprep.subr.bf16.mxu1 %v7251_v26  ;;  %6009 = vmatprep.mubr.msk.bf16.mxu1 %vm481_vm0, %v7341_v49 }
  0x61   : > { %5928 = vmatpush3.bf16.msra.mxu0 %v7315_v41 }
  0x62   : > { %5933 = vmatprep.subr.bf16.mxu0 %v7326_v44  ;;  %6006 = vmatpush3.bf16.msra.mxu1 %v7251_v26 }
  0x63   : > { %6007 = vmatprep.subr.bf16.mxu1 %v7271_v32 }
  0x64   : > { %5930 = vmatmul.mubr.msk.bf16.vlgmr.msra.gmra.mrb[0].mxu0 %vm481_vm0, %v7237_v22 }
  0x65   : > { %5934 = vmatpush3.bf16.msra.mxu0 %v7326_v44  ;;  %5939 = vmatprep.mubr.msk.bf16.mxu0 %vm481_vm0, %v7300_v38 }
  0x66   : > { %5935 = vmatprep.subr.bf16.mxu0 %v7337_v47  ;;  %6008 = vmatpush3.bf16.msra.mxu1 %v7271_v32 }
  0x67   : > { %6013 = vmatprep.subr.bf16.mxu1 %v7285_v36 }
  0x69   : > { %5936 = vmatpush3.bf16.msra.mxu0 %v7337_v47  ;;  %6010 = vmatmul.mubr.msk.bf16.vlgmr.msra.gmra.mrb[4].mxu1 %vm481_vm0, %v7263_v31 }
  0x6a   : > { %5937 = vmatprep.subr.bf16.mxu0 %v7354_v50  ;;  %6014 = vmatpush3.bf16.msra.mxu1 %v7285_v36 }
  0x6b   : > { %6015 = vmatprep.subr.bf16.mxu1 %v7296_v37  ;;  %6019 = vmatprep.mubr.msk.bf16.mxu1 %vm481_vm0, %v7374_v59 }
  0x6d   : > { %5938 = vmatpush3.bf16.msra.mxu0 %v7354_v50 }
  0x6e   : > { %6033 = vmatprep.subr.bf16.mxu0 %v7001_v0  ;;  %6016 = vmatpush3.bf16.msra.mxu1 %v7296_v37 }
  0x6f   : > { %6017 = vmatprep.subr.bf16.mxu1 %v7315_v41 }
  0x70   : > { %5940 = vmatmul.mubr.msk.bf16.vlgmr.msra.gmra.mrb[0].mxu0 %vm481_vm0, %v7261_v29 }
  0x71   : > { %6034 = vmatpush3.bf16.msra.mxu0 %v7001_v0  ;;  %6039 = vmatprep.mubr.msk.bf16.mxu0 %vm481_vm0, %v7207_v11  ;;  %v1785_v0 = vsel %vm1036_vm5, %v1783_v60, %v7383_v61 }
  0x72   : > { %6035 = vmatprep.subr.bf16.mxu0 %v7012_v2  ;;  %6018 = vmatpush3.bf16.msra.mxu1 %v7315_v41 }
  0x73   : > { %6023 = vmatprep.subr.bf16.mxu1 %v7326_v44 }
  0x75   : > { %6036 = vmatpush3.bf16.msra.mxu0 %v7012_v2  ;;  %6020 = vmatmul.mubr.msk.bf16.vlgmr.msra.gmra.mrb[4].mxu1 %vm481_vm0, %v7363_v56  ;;  %v6904_v2 = vld [vmem:[%s8151_s1 + $0x18] sm:$0xff]  }
  0x76   : > { %6037 = vmatprep.subr.bf16.mxu0 %v7028_v4  ;;  %6024 = vmatpush3.bf16.msra.mxu1 %v7326_v44 }
  0x77   : > { %6025 = vmatprep.subr.bf16.mxu1 %v7337_v47  ;;  %6029 = vmatprep.mubr.msk.bf16.mxu1 %vm481_vm0, %v1785_v0 }
  0x79   : > { %6038 = vmatpush3.bf16.msra.mxu0 %v7028_v4  ;;  %v6905_v4 = vld [vmem:[%s8151_s1 + $0x20] sm:$0xff]  }
  0x7a   : > { %6043 = vmatprep.subr.bf16.mxu0 %v6904_v2  ;;  %6026 = vmatpush3.bf16.msra.mxu1 %v7337_v47 }
  0x7b   : > { %6027 = vmatprep.subr.bf16.mxu1 %v7354_v50 }
  0x7c   : > { %6040 = vmatmul.mubr.msk.bf16.vlgmr.msra.gmra.mrb[4].mxu0 %vm481_vm0, %v7185_v1  ;;  %v6773_v1 = vld [vmem:[%s8153_s3 + $0x8] sm:$0xff]  }
  0x7d   : > { %6044 = vmatpush3.bf16.msra.mxu0 %v6904_v2  ;;  %6049 = vmatprep.mubr.msk.bf16.mxu0 %vm481_vm0, %v7255_v27 }
  0x7e   : > { %6045 = vmatprep.subr.bf16.mxu0 %v6905_v4  ;;  %6028 = vmatpush3.bf16.msra.mxu1 %v7354_v50 }
  0x7f   : > { %6123 = vmatprep.subr.bf16.mxu1 %v6772_v63 }
  0x81   : > { %6046 = vmatpush3.bf16.msra.mxu0 %v6905_v4  ;;  %6030 = vmatmul.mubr.msk.bf16.vlgmr.msra.gmra.mrb[4].mxu1 %vm481_vm0, %v7383_v61  ;;  %v6780_v4 = vld [vmem:[%s8153_s3 + $0x40] sm:$0xff]  }
  0x82   : > { %6047 = vmatprep.subr.bf16.mxu0 %v6906_v3  ;;  %6124 = vmatpush3.bf16.msra.mxu1 %v6772_v63 }
  0x83   : > { %6125 = vmatprep.subr.bf16.mxu1 %v6773_v1 }
  0x85   : > { %6048 = vmatpush3.bf16.msra.mxu0 %v6906_v3 }
  0x86   : > { %6053 = vmatprep.subr.bf16.mxu0 %v6907_v5  ;;  %6126 = vmatpush3.bf16.msra.mxu1 %v6773_v1 }
  0x87   : > { %6127 = vmatprep.subr.bf16.mxu1 %v6774_v15 }
  0x88   : > { %6050 = vmatmul.mubr.msk.bf16.vlgmr.msra.gmra.mrb[4].mxu0 %vm481_vm0, %v7237_v22  ;;  %v6776_v22 = vld [vmem:[%s8153_s3 + $0x20] sm:$0xff]  }
  0x89   : > { %6054 = vmatpush3.bf16.msra.mxu0 %v6907_v5  ;;  %6059 = vmatprep.mubr.msk.bf16.mxu0 %vm481_vm0, %v7300_v38 }
  0x8a   : > { %6055 = vmatprep.subr.bf16.mxu0 %v6908_v6  ;;  %6128 = vmatpush3.bf16.msra.mxu1 %v6774_v15 }
  0x8b   : > { %6129 = vmatprep.subr.bf16.mxu1 %v6775_v18 }
  0x8d   : > { %6056 = vmatpush3.bf16.msra.mxu0 %v6908_v6 }
  0x8e   : > { %6057 = vmatprep.subr.bf16.mxu0 %v6909_v7  ;;  %6130 = vmatpush3.bf16.msra.mxu1 %v6775_v18 }
  0x8f   : > { %6135 = vmatprep.subr.bf16.mxu1 %v6776_v22 }
  0x91   : > { %6058 = vmatpush3.bf16.msra.mxu0 %v6909_v7 }
  0x92   : > { %6063 = vmatprep.subr.bf16.mxu0 %v7115_v48 }
  0x94   : > { %6060 = vmatmul.mubr.msk.bf16.vlgmr.msra.gmra.mrb[4].mxu0 %vm481_vm0, %v7261_v29 }
  0x95   : > { %6064 = vmatpush3.bf16.msra.mxu0 %v7115_v48  ;;  %6069 = vmatprep.mubr.msk.bf16.mxu0 %vm481_vm0, %v7341_v49  ;;  %v2154_v48 = vld [vmem:[%s7040_s27 + $0x2c] sm:$0xf] }
  0x96   : > { %6065 = vmatprep.subr.bf16.mxu0 %v7129_v51 }
  0x99   : > { %6066 = vmatpush3.bf16.msra.mxu0 %v7129_v51  ;;  %v2155_v51 = vld [vmem:[%s7040_s27 + $0x30] sm:$0xf] }
  0x9a   : > { %6067 = vmatprep.subr.bf16.mxu0 %v7140_v52  ;;  %v5173_v16 = vcombine.low %v2297_v14, %v2155_v51 }
  0x9c   : > { %v2301_v19 = vrot.slane %v5173_v16, 1 }
  0x9d   : > { %6068 = vmatpush3.bf16.msra.mxu0 %v7140_v52  ;;  %v5166_v52 = vcombine.low %v2154_v48, %v2155_v51  ;;  %v6918_v51 = vmov 0.0  }
  0x9e   : > { %6073 = vmatprep.subr.bf16.mxu0 %v7150_v53 }
  0xa0   : > { %6070 = vmatmul.mubr.msk.bf16.vlgmr.msra.gmra.mrb[4].mxu0 %vm481_vm0, %v7263_v31 }
  0xa1   : > { %6074 = vmatpush3.bf16.msra.mxu0 %v7150_v53  ;;  %6079 = vmatprep.mubr.msk.bf16.mxu0 %vm481_vm0, %v7374_v59  ;;  %v6770_v53 = vld [vmem:[%s7040_s27 + $0x34] ss:$0 sps:$4 sm:$0x77]  }
  0xa2   : > { %6075 = vmatprep.subr.bf16.mxu0 %v7167_v57  ;;  %v2237_v17 = vshrl.u32 %v6770_v53, 16 }
  0xa5   : > { %6076 = vmatpush3.bf16.msra.mxu0 %v7167_v57  ;;  %v2228_v57 = vshll.u32 %v5166_v52, 16 }
  0xa6   : > { %6077 = vmatprep.subr.bf16.mxu0 %v7181_v62 }
  0xa7   : > { %v2230_v8 = vrot.slane %v2228_v57, 1  ;;  %v6781_v57 = vld [vmem:[%s8153_s3 + $0x48] sm:$0xff]  }
  0xa9   : > { %6078 = vmatpush3.bf16.msra.mxu0 %v7181_v62  ;;  %v2226_v62 = vshrl.u32 %v5166_v52, 16 }
  0xaa   : > { %6083 = vmatprep.subr.bf16.mxu0 %v7193_v9 }
  0xac   : > { %6080 = vmatmul.mubr.msk.bf16.vlgmr.msra.gmra.mrb[4].mxu0 %vm481_vm0, %v7363_v56  ;;  %v6778_v56 = vld [vmem:[%s8153_s3 + $0x30] sm:$0xff]  }
  0xad   : > { %6084 = vmatpush3.bf16.msra.mxu0 %v7193_v9  ;;  %6089 = vmatprep.mubr.msk.bf16.mxu0 %vm481_vm0, %v1785_v0  ;;  %v2233_v9 = vshll.u32 %v6770_v53, 16 }
  0xae   : > { %6085 = vmatprep.subr.bf16.mxu0 %v7203_v10 }
  0xaf   : > { %v2235_v11 = vrot.slane %v2233_v9, 1 }
  0xb1   : > { %6086 = vmatpush3.bf16.msra.mxu0 %v7203_v10  ;;  %v2231_v10 = vor.u32 %v2230_v8, %v2226_v62  ;;  %v2239_v21 = vor.u32 %v2237_v17, %v2235_v11 }
  0xb2   : > { %6087 = vmatprep.subr.bf16.mxu0 %v7220_v12 }
  0xb3   : > { %v2236_v13 = vsel %vm550_vm1, %v2231_v10, %v2235_v11  ;;  %v6782_v11 = vld [vmem:[%s8153_s3 + $0x50] sm:$0xff]  }
  0xb5   : > { %6088 = vmatpush3.bf16.msra.mxu0 %v7220_v12  ;;  %v6769_v12 = vld [vmem:[%s7040_s27 + $0x34] ss:$0 sps:$4 sm:$0x33]   ;;  %s436_s27 = scalar_lea.vmem %s8163_s13, %s8165_s26 }
  0xb6   : > { %6093 = vmatprep.subr.bf16.mxu0 %v7235_v20 }
  0xb8   : > { %6090 = vmatmul.mubr.msk.bf16.vlgmr.msra.gmra.mrb[4].mxu0 %vm481_vm0, %v7383_v61  ;;  %v6779_v61 = vld [vmem:[%s8153_s3 + $0x38] sm:$0xff]  }
  0xb9   : > { %6094 = vmatpush3.bf16.msra.mxu0 %v7235_v20  ;;  %6099 = vmatprep.mubr.msk.bf16.mxu0 %vm481_vm0, %v5166_v52  ;;  %v2302_v20 = vrot.slane %v6770_v53, 1  ;;  %v6809_v52 = vld [vmem:[%s8155_s5 + $0x80] sm:$0xff]  }
  0xba   : > { %6095 = vmatprep.subr.bf16.mxu0 %v7251_v26 }
  0xbb   : > { %v2303_v23 = vsel %vm651_vm3, %v2301_v19, %v2302_v20  ;;  %v6783_v19 = vld [vmem:[%s8153_s3 + $0x58] sm:$0xff]  }
  0xbd   : > { %6096 = vmatpush3.bf16.msra.mxu0 %v7251_v26 }
  0xbe   : > { %6097 = vmatprep.subr.bf16.mxu0 %v7271_v32 }
  0xc1   : > { %6098 = vmatpush3.bf16.msra.mxu0 %v7271_v32 }
  0xc2   : > { %6103 = vmatprep.subr.bf16.mxu0 %v7285_v36 }
  0xc4   : > { %6100 = vmatmul.mubr.msk.bf16.vlgmr.msra.gmra.mrb[4].mxu0 %vm481_vm0, %v6769_v12 }
  0xc5   : > { %6104 = vmatpush3.bf16.msra.mxu0 %v7285_v36  ;;  %6109 = vmatprep.mubr.msk.bf16.mxu0 %vm481_vm0, %v2236_v13 }
  0xc6   : > { %6105 = vmatprep.subr.bf16.mxu0 %v7296_v37 }
  0xc9   : > { %6106 = vmatpush3.bf16.msra.mxu0 %v7296_v37 }
  0xca   : > { %6107 = vmatprep.subr.bf16.mxu0 %v7315_v41 }
  0xcd   : > { %6108 = vmatpush3.bf16.msra.mxu0 %v7315_v41 }
  0xce   : > { %6113 = vmatprep.subr.bf16.mxu0 %v7326_v44 }
  0xd0   : > { %6110 = vmatmul.mubr.msk.bf16.vlgmr.msra.gmra.mrb[4].mxu0 %vm481_vm0, %v2239_v21 }
  0xd1   : > { %6114 = vmatpush3.bf16.msra.mxu0 %v7326_v44  ;;  %6119 = vmatprep.mubr.msk.bf16.mxu0 %vm481_vm0, %v2303_v23  ;;  %v6777_v44 = vld [vmem:[%s8153_s3 + $0x28] sm:$0xff]   ;;  %v6784_v23 = vld [vmem:[%s8153_s3 + $0x60] sm:$0xff]  }
  0xd2   : > { %6115 = vmatprep.subr.bf16.mxu0 %v7337_v47 }
  0xd5   : > { %6116 = vmatpush3.bf16.msra.mxu0 %v7337_v47 }
  0xd6   : > { %6117 = vmatprep.subr.bf16.mxu0 %v7354_v50 }
  0xd9   : > { %6118 = vmatpush3.bf16.msra.mxu0 %v7354_v50 }
  0xda   : > { %6279 = vmatprep.subr.bf16.mxu0 %v6918_v51 }
  0xdc   : > { %6120 = vmatmul.mubr.msk.bf16.vlgmr.msra.gmra.mrb[4].mxu0 %vm481_vm0, %v2302_v20 }
  0xdd   : > { %6280 = vmatpush3.bf16.msra.mxu0 %v6809_v52  ;;  %v6804_v52 = vld [vmem:[%s8153_s3 + $0x100] sm:$0xff]   ;;  %6287 = vmatprep.mubr.msk.bf16.mxu0 %vm6919_vm9, %v6918_v51 }
  0xde   : > { %6281 = vmatprep.subr.bf16.mxu0 %v6918_v51 }
  0xe8   : > { %v5861_v24 = vpop.f32.mrb[0].mxu1 }
  0xe9   : > { %v522_v25 = vpop.f32.mrb[1].mxu1  ;;  %v538_v29 = vadd.f32 %v5861_v24, %v7516_v28  ;;  %v6785_v24 = vld [vmem:[%s8153_s3 + $0x68] sm:$0xff]  }
  0xea   : > { %v5862_v26 = vpop.f32.mrb[2].mxu1  ;;  %v536_v30 = vadd.f32 %v7516_v28, %v522_v25  ;;  %v6786_v25 = vld [vmem:[%s8153_s3 + $0x70] sm:$0xff]  }
  0xeb   : > { %v525_v27 = vpop.f32.mrb[3].mxu1  ;;  %v6787_v26 = vld [vmem:[%s8153_s3 + $0x78] sm:$0xff]  }
  0xec   : > { %v537_v34 = vadd.f32 %v7516_v28, %v525_v27  ;;  %v6788_v27 = vld [vmem:[%s8153_s3 + $0x80] sm:$0xff]  }
 0x143   : > { %v5941_v31 = vpop.f32.mrb[0].mxu0 }
 0x144   : > { %v6508_v32 = vadd.f32 %v5941_v31, %v538_v29  ;;  %v1301_v33 = vpop.f32.mrb[1].mxu0  ;;  %v6789_v29 = vld [vmem:[%s8153_s3 + $0x88] sm:$0xff]   ;;  %v6791_v31 = vld [vmem:[%s8153_s3 + $0x98] sm:$0xff]  }
 0x145   : > { %v6510_v35 = vadd.f32 %v1301_v33, %v536_v30  ;;  %v5942_v36 = vpop.f32.mrb[2].mxu0  ;;  %v6790_v30 = vld [vmem:[%s8153_s3 + $0x90] sm:$0xff]  }
 0x146   : > { %v1320_v37 = vmax.f32 %v6508_v32, 0.0  ;;  %v1304_v38 = vpop.f32.mrb[3].mxu0  ;;  %v6792_v32 = vld [vmem:[%s8153_s3 + $0xa0] sm:$0xff]   ;;  %v6794_v36 = vld [vmem:[%s8153_s3 + $0xb0] sm:$0xff]  }
 0x147   : > { %v6512_v39 = vadd.f32 %v1304_v38, %v537_v34  ;;  %v1318_v41 = vmax.f32 %v6510_v35, 0.0  ;;  %v6793_v35 = vld [vmem:[%s8153_s3 + $0xa8] sm:$0xff]   ;;  %v6796_v38 = vld [vmem:[%s8153_s3 + $0xc0] sm:$0xff]  }
 0x148   : > { %v7521_v40 = vpack.c.bf16 %v1320_v37, %v1320_v37  ;;  %v6795_v37 = vld [vmem:[%s8153_s3 + $0xb8] sm:$0xff]  }
 0x149   : > { %v1319_v42 = vmax.f32 %v6512_v39, 0.0  ;;  %v6797_v39 = vld [vmem:[%s8153_s3 + $0xc8] sm:$0xff]  }
 0x14a   : > { %v2479_v46 = vshll.u32 %v7521_v40, 16  ;;  %v2579_v49 = vrot.slane %v7521_v40, 1  ;;  %v2483_v5 = vshrl.u32 %v7521_v40, 16 }
 0x14b   : > { %v1321_v43 = vpack.c.bf16 %v1319_v42, %v1318_v41  ;;  %v6799_v41 = vld [vmem:[%s8153_s3 + $0xd8] sm:$0xff]   ;;  %v6800_v42 = vld [vmem:[%s8153_s3 + $0xe0] sm:$0xff]  }
 0x14c   : > { %v2481_v59 = vrot.slane %v2479_v46, 1 }
 0x14d   : > { %6131 = vmatprep.mubr.msk.bf16.mxu1 %vm2406_vm8, %v1321_v43  ;;  %v2475_v45 = vshll.u32 %v1321_v43, 16  ;;  %v2578_v47 = vrot.slane %v1321_v43, 1  ;;  %v2473_v50 = vshrl.u32 %v1321_v43, 16 }
 0x14e   : > { %6132 = vmatmul.mubr.msk.bf16.vlgmr.msra.gmra.mrb[8].mxu1 %vm2406_vm8, %v7521_v40  ;;  %v2485_v53 = vor.u32 %v2483_v5, %v2481_v59  ;;  %v6798_v40 = vld [vmem:[%s8153_s3 + $0xd0] sm:$0xff]  }
 0x14f   : > { %6136 = vmatpush3.bf16.msra.mxu1 %v6776_v22  ;;  %v2477_v54 = vrot.slane %v2475_v45, 1  ;;  %v2580_v55 = vsel %vm651_vm3, %v2578_v47, %v2579_v49 }
 0x150   : > { %6137 = vmatprep.subr.bf16.mxu1 %v6777_v44 }
 0x151   : > { %v2478_v58 = vor.u32 %v2477_v54, %v2473_v50 }
 0x153   : > { %6138 = vmatpush3.bf16.msra.mxu1 %v6777_v44  ;;  %v2482_v60 = vsel %vm550_vm1, %v2478_v58, %v2481_v59 }
 0x154   : > { %6143 = vmatprep.mubr.msk.bf16.mxu1 %vm2406_vm8, %v2482_v60  ;;  %6139 = vmatprep.subr.bf16.mxu1 %v6778_v56  ;;  %v6031_v0 = vpop.f32.mrb[4].mxu1  ;;  %v6801_v60 = vld [vmem:[%s8153_s3 + $0xe8] sm:$0xff]  }
 0x155   : > { %v6513_v2 = vadd.f32 %v6031_v0, %v7516_v28  ;;  %v1826_v63 = vpop.f32.mrb[5].mxu1 }
 0x156   : > { %v6514_v1 = vadd.f32 %v7516_v28, %v1826_v63  ;;  %v6032_v3 = vpop.f32.mrb[6].mxu1 }
 0x157   : > { %6140 = vmatpush3.bf16.msra.mxu1 %v6778_v56  ;;  %v1845_v6 = vmax.f32 %v6513_v2, 0.0  ;;  %v1829_v7 = vpop.f32.mrb[7].mxu1  ;;  %v6802_v3 = vld [vmem:[%s8153_s3 + $0xf0] sm:$0xff]  }
 0x158   : > { %6141 = vmatprep.subr.bf16.mxu1 %v6779_v61  ;;  %v6515_v48 = vadd.f32 %v7516_v28, %v1829_v7  ;;  %v1843_v8 = vmax.f32 %v6514_v1, 0.0 }
 0x159   : > { %v7556_v62 = vpack.c.bf16 %v1845_v6, %v1845_v6 }
 0x15a   : > { %v1844_v9 = vmax.f32 %v6515_v48, 0.0  ;;  %v6803_v48 = vld [vmem:[%s8153_s3 + $0xf8] sm:$0xff]  }
 0x15b   : > { %6142 = vmatpush3.bf16.msra.mxu1 %v6779_v61  ;;  %v2767_v13 = vshll.u32 %v7556_v62, 16  ;;  %v2867_v15 = vrot.slane %v7556_v62, 1  ;;  %v2771_v33 = vshrl.u32 %v7556_v62, 16 }
 0x15c   : > { %6147 = vmatprep.subr.bf16.mxu1 %v6780_v4  ;;  %v1846_v10 = vpack.c.bf16 %v1844_v9, %v1843_v8  ;;  %v6806_v8 = vld [vmem:[%s8153_s3 + $0x110] sm:$0xff]   ;;  %v6807_v9 = vld [vmem:[%s8153_s3 + $0x118] sm:$0xff]  }
 0x15d   : > { %v2769_v21 = vrot.slane %v2767_v13, 1  ;;  %v6812_v13 = vld [vmem:[%s8155_s5 + $0x10] sm:$0xff]  }
 0x15e   : > { %6144 = vmatmul.mubr.msk.bf16.vlgmr.msra.gmra.mrb[8].mxu1 %vm2406_vm8, %v2485_v53  ;;  %v2763_v12 = vshll.u32 %v1846_v10, 16  ;;  %v2866_v14 = vrot.slane %v1846_v10, 1  ;;  %v2761_v16 = vshrl.u32 %v1846_v10, 16 }
 0x15f   : > { %6148 = vmatpush3.bf16.msra.mxu1 %v6780_v4  ;;  %6155 = vmatprep.mubr.msk.bf16.mxu1 %vm2406_vm8, %v2580_v55  ;;  %v2773_v34 = vor.u32 %v2771_v33, %v2769_v21  ;;  %v6819_v33 = vld [vmem:[%s8155_s5 + $0xa8] sm:$0xff]  }
 0x160   : > { %6149 = vmatprep.subr.bf16.mxu1 %v6781_v57  ;;  %v2765_v17 = vrot.slane %v2763_v12, 1  ;;  %v2868_v18 = vsel %vm651_vm3, %v2866_v14, %v2867_v15  ;;  %v6811_v12 = vld [vmem:[%s8155_s5 + $0x88] sm:$0xff]   ;;  %v6813_v14 = vld [vmem:[%s8155_s5 + $0x90] sm:$0xff]  }
 0x161   : > { %6282 = vmatpush3.bf16.msra.mxu0 %v6811_v12  ;;  %v6853_v12 = vld [vmem:[%s8155_s5 + $0x168] sm:$0xff]  }
 0x162   : > { %v2766_v20 = vor.u32 %v2765_v17, %v2761_v16  ;;  %6283 = vmatprep.subr.bf16.mxu0 %v6918_v51  ;;  %v6815_v16 = vld [vmem:[%s8155_s5 + $0x98] sm:$0xff]   ;;  %v5176_v17 = vld [vmem:[%s8154_s4] ss:$0 sm:$0xff] }
 0x163   : > { %6150 = vmatpush3.bf16.msra.mxu1 %v6781_v57 }
 0x164   : > { %6151 = vmatprep.subr.bf16.mxu1 %v6782_v11  ;;  %v2770_v22 = vsel %vm550_vm1, %v2766_v20, %v2769_v21 }
 0x165   : > { %6284 = vmatpush3.bf16.msra.mxu0 %v6813_v14  ;;  %v6855_v14 = vld [vmem:[%s8155_s5 + $0x178] sm:$0xff]  }
 0x166   : > { %6285 = vmatprep.subr.bf16.mxu0 %v6918_v51 }
 0x167   : > { %6152 = vmatpush3.bf16.msra.mxu1 %v6782_v11  ;;  %v6810_v11 = vld [vmem:[%s8155_s5 + $0x8] sm:$0xff]  }
 0x168   : > { %6153 = vmatprep.subr.bf16.mxu1 %v6783_v19 }
 0x169   : > { %6286 = vmatpush3.bf16.msra.mxu0 %v6815_v16 }
 0x16a   : > { %6291 = vmatprep.subr.bf16.mxu0 %v6918_v51 }
 0x16b   : > { %6154 = vmatpush3.bf16.msra.mxu1 %v6783_v19 }
 0x16c   : > { %6159 = vmatprep.subr.bf16.mxu1 %v6784_v23 }
 0x16e   : > { %6156 = vmatmul.mubr.msk.bf16.vlgmr.msra.gmra.mrb[8].mxu1 %vm2406_vm8, %v2579_v49 }
 0x16f   : > { %6160 = vmatpush3.bf16.msra.mxu1 %v6784_v23  ;;  %6167 = vmatprep.mubr.msk.bf16.mxu1 %vm2406_vm8, %v1846_v10  ;;  %v6808_v10 = vld [vmem:[%s8155_s5] sm:$0xff]  }
 0x170   : > { %6161 = vmatprep.subr.bf16.mxu1 %v6785_v24 }
 0x173   : > { %6162 = vmatpush3.bf16.msra.mxu1 %v6785_v24 }
 0x174   : > { %6163 = vmatprep.subr.bf16.mxu1 %v6786_v25 }
 0x177   : > { %6164 = vmatpush3.bf16.msra.mxu1 %v6786_v25 }
 0x178   : > { %6165 = vmatprep.subr.bf16.mxu1 %v6787_v26 }
 0x17b   : > { %6166 = vmatpush3.bf16.msra.mxu1 %v6787_v26 }
 0x17c   : > { %6171 = vmatprep.subr.bf16.mxu1 %v6788_v27 }
 0x17e   : > { %6168 = vmatmul.mubr.msk.bf16.vlgmr.msra.gmra.mrb[8].mxu1 %vm2406_vm8, %v7556_v62  ;;  %v6805_v62 = vld [vmem:[%s8153_s3 + $0x108] sm:$0xff]  }
 0x17f   : > { %6172 = vmatpush3.bf16.msra.mxu1 %v6788_v27  ;;  %6179 = vmatprep.mubr.msk.bf16.mxu1 %vm2406_vm8, %v2770_v22  ;;  %v6816_v27 = vld [vmem:[%s8155_s5 + $0x20] sm:$0xff]  }
 0x180   : > { %6173 = vmatprep.subr.bf16.mxu1 %v6789_v29 }
 0x183   : > { %6174 = vmatpush3.bf16.msra.mxu1 %v6789_v29 }
 0x184   : > { %6175 = vmatprep.subr.bf16.mxu1 %v6790_v30 }
 0x187   : > { %6176 = vmatpush3.bf16.msra.mxu1 %v6790_v30  ;;  %v6817_v30 = vld [vmem:[%s8155_s5 + $0xa0] sm:$0xff]  }
 0x188   : > { %6177 = vmatprep.subr.bf16.mxu1 %v6791_v31 }
 0x18b   : > { %6178 = vmatpush3.bf16.msra.mxu1 %v6791_v31 }
 0x18c   : > { %6183 = vmatprep.subr.bf16.mxu1 %v6792_v32 }
 0x18e   : > { %6180 = vmatmul.mubr.msk.bf16.vlgmr.msra.gmra.mrb[8].mxu1 %vm2406_vm8, %v2773_v34  ;;  %v6820_v34 = vld [vmem:[%s8155_s5 + $0x30] sm:$0xff]  }
 0x18f   : > { %6184 = vmatpush3.bf16.msra.mxu1 %v6792_v32  ;;  %6191 = vmatprep.mubr.msk.bf16.mxu1 %vm2406_vm8, %v2868_v18  ;;  %v6818_v32 = vld [vmem:[%s8155_s5 + $0x28] sm:$0xff]  }
 0x190   : > { %6185 = vmatprep.subr.bf16.mxu1 %v6793_v35 }
 0x193   : > { %6186 = vmatpush3.bf16.msra.mxu1 %v6793_v35  ;;  %v6821_v35 = vld [vmem:[%s8155_s5 + $0xb0] sm:$0xff]  }
 0x194   : > { %6187 = vmatprep.subr.bf16.mxu1 %v6794_v36 }
 0x197   : > { %6188 = vmatpush3.bf16.msra.mxu1 %v6794_v36  ;;  %v6822_v36 = vld [vmem:[%s8155_s5 + $0x38] sm:$0xff]  }
 0x198   : > { %6189 = vmatprep.subr.bf16.mxu1 %v6795_v37 }
 0x19b   : > { %6190 = vmatpush3.bf16.msra.mxu1 %v6795_v37  ;;  %v6823_v37 = vld [vmem:[%s8155_s5 + $0xb8] sm:$0xff]  }
 0x19c   : > { %6195 = vmatprep.subr.bf16.mxu1 %v6796_v38 }
 0x19e   : > { %6192 = vmatmul.mubr.msk.bf16.vlgmr.msra.gmra.mrb[8].mxu1 %vm2406_vm8, %v2867_v15  ;;  %v6814_v15 = vld [vmem:[%s8155_s5 + $0x18] sm:$0xff]  }
 0x19f   : > { %6196 = vmatpush3.bf16.msra.mxu1 %v6796_v38 }
 0x1a0   : > { %6197 = vmatprep.subr.bf16.mxu1 %v6797_v39 }
 0x1a3   : > { %6198 = vmatpush3.bf16.msra.mxu1 %v6797_v39  ;;  %v6824_v39 = vld [vmem:[%s8155_s5 + $0x40] sm:$0xff]  }
 0x1a4   : > { %6199 = vmatprep.subr.bf16.mxu1 %v6798_v40 }
 0x1a7   : > { %6200 = vmatpush3.bf16.msra.mxu1 %v6798_v40  ;;  %v6825_v40 = vld [vmem:[%s8155_s5 + $0xc0] sm:$0xff]  }
 0x1a8   : > { %6201 = vmatprep.subr.bf16.mxu1 %v6799_v41 }
 0x1ab   : > { %6202 = vmatpush3.bf16.msra.mxu1 %v6799_v41 }
 0x1ac   : > { %6207 = vmatprep.subr.bf16.mxu1 %v6800_v42 }
 0x1af   : > { %v6121_v43 = vpop.f32.mrb[4].mxu0 }
 0x1b0   : > { %v6516_v44 = vadd.f32 %v6121_v43, %v7516_v28  ;;  %v2344_v45 = vpop.f32.mrb[5].mxu0  ;;  %v6827_v43 = vld [vmem:[%s8155_s5 + $0xc8] sm:$0xff]  }
 0x1b1   : > { %v6517_v46 = vadd.f32 %v7516_v28, %v2344_v45  ;;  %v6122_v47 = vpop.f32.mrb[6].mxu0  ;;  %v6829_v45 = vld [vmem:[%s8155_s5 + $0xd0] sm:$0xff]  }
 0x1b2   : > { %v2363_v49 = vmax.f32 %v6516_v44, 0.0  ;;  %v2347_v50 = vpop.f32.mrb[7].mxu0  ;;  %v6828_v44 = vld [vmem:[%s8155_s5 + $0x50] sm:$0xff]   ;;  %v6831_v47 = vld [vmem:[%s8155_s5 + $0xd8] sm:$0xff]  }
 0x1b3   : > { %v6518_v54 = vadd.f32 %v7516_v28, %v2347_v50  ;;  %v2361_v56 = vmax.f32 %v6517_v46, 0.0  ;;  %v6830_v46 = vld [vmem:[%s8155_s5 + $0x58] sm:$0xff]  }
 0x1b4   : > { %v2365_v55 = vpack.c.bf16 %v2363_v49, %v2363_v49  ;;  %v6832_v49 = vld [vmem:[%s8155_s5 + $0x60] sm:$0xff]  }
 0x1b5   : > { %v2362_v58 = vmax.f32 %v6518_v54, 0.0  ;;  %v6833_v54 = vld [vmem:[%s8155_s5 + $0xe0] sm:$0xff]  }
 0x1b6   : > { %v3055_v0 = vshll.u32 %v2365_v55, 16  ;;  %v3155_v63 = vrot.slane %v2365_v55, 1  ;;  %v3059_v53 = vshrl.u32 %v2365_v55, 16 }
 0x1b7   : > { %v2364_v59 = vpack.c.bf16 %v2362_v58, %v2361_v56  ;;  %v6834_v56 = vld [vmem:[%s8155_s5 + $0x68] sm:$0xff]  }
 0x1b8   : > { %v3057_v6 = vrot.slane %v3055_v0, 1  ;;  %v6835_v58 = vld [vmem:[%s8155_s5 + $0xe8] sm:$0xff]   ;;  %v6839_v0 = vld [vmem:[%s8155_s5 + $0xf8] sm:$0xff]  }
 0x1b9   : > { %6203 = vmatprep.mubr.msk.bf16.mxu1 %vm2406_vm8, %v2364_v59  ;;  %v3051_v61 = vshll.u32 %v2364_v59, 16  ;;  %v3154_v2 = vrot.slane %v2364_v59, 1  ;;  %v3049_v4 = vshrl.u32 %v2364_v59, 16  ;;  %v6836_v59 = vld [vmem:[%s8155_s5 + $0x70] sm:$0xff]  }
 0x1ba   : > { %6204 = vmatmul.mubr.msk.bf16.vlgmr.msra.gmra.mrb[8].mxu1 %vm2406_vm8, %v2365_v55  ;;  %v3061_v57 = vor.u32 %v3059_v53, %v3057_v6  ;;  %v6848_v53 = vld [vmem:[%s8155_s5 + $0x140] sm:$0xff]  }
 0x1bb   : > { %6208 = vmatpush3.bf16.msra.mxu1 %v6800_v42  ;;  %v3053_v1 = vrot.slane %v3051_v61, 1  ;;  %v3156_v28 = vsel %vm651_vm3, %v3154_v2, %v3155_v63  ;;  %v6826_v42 = vld [vmem:[%s8155_s5 + $0x48] sm:$0xff]   ;;  %v6838_v61 = vld [vmem:[%s8155_s5 + $0x78] sm:$0xff]  }
 0x1bc   : > { %6209 = vmatprep.subr.bf16.mxu1 %v6801_v60 }
 0x1bd   : > { %v3054_v5 = vor.u32 %v3053_v1, %v3049_v4  ;;  %v6841_v1 = vld [vmem:[%s8155_s5 + $0x108] sm:$0xff]  }
 0x1bf   : > { %6210 = vmatpush3.bf16.msra.mxu1 %v6801_v60  ;;  %v3058_v7 = vsel %vm550_vm1, %v3054_v5, %v3057_v6  ;;  %v6837_v60 = vld [vmem:[%s8155_s5 + $0xf0] sm:$0xff]   ;;  %v6844_v5 = vld [vmem:[%s8155_s5 + $0x120] sm:$0xff]  }
 0x1c0   : > { %6215 = vmatprep.mubr.msk.bf16.mxu1 %vm2406_vm8, %v3058_v7  ;;  %6211 = vmatprep.subr.bf16.mxu1 %v6802_v3  ;;  %v6845_v7 = vld [vmem:[%s8155_s5 + $0x128] sm:$0xff]  }
 0x1c3   : > { %6212 = vmatpush3.bf16.msra.mxu1 %v6802_v3  ;;  %v6843_v3 = vld [vmem:[%s8155_s5 + $0x118] sm:$0xff]  }
 0x1c4   : > { %6213 = vmatprep.subr.bf16.mxu1 %v6803_v48 }
 0x1c7   : > { %6214 = vmatpush3.bf16.msra.mxu1 %v6803_v48  ;;  %v6846_v48 = vld [vmem:[%s8155_s5 + $0x130] sm:$0xff]  }
 0x1c8   : > { %6219 = vmatprep.subr.bf16.mxu1 %v6804_v52 }
 0x1ca   : > { %6216 = vmatmul.mubr.msk.bf16.vlgmr.msra.gmra.mrb[8].mxu1 %vm2406_vm8, %v3061_v57 }
 0x1cb   : > { %6220 = vmatpush3.bf16.msra.mxu1 %v6804_v52  ;;  %6227 = vmatprep.mubr.msk.bf16.mxu1 %vm2406_vm8, %v3156_v28  ;;  %v6842_v28 = vld [vmem:[%s8155_s5 + $0x110] sm:$0xff]   ;;  %v6847_v52 = vld [vmem:[%s8155_s5 + $0x138] sm:$0xff]  }
 0x1cc   : > { %6221 = vmatprep.subr.bf16.mxu1 %v6805_v62 }
 0x1cf   : > { %6222 = vmatpush3.bf16.msra.mxu1 %v6805_v62  ;;  %v6849_v62 = vld [vmem:[%s8155_s5 + $0x148] sm:$0xff]  }
 0x1d0   : > { %6223 = vmatprep.subr.bf16.mxu1 %v6806_v8 }
 0x1d3   : > { %6224 = vmatpush3.bf16.msra.mxu1 %v6806_v8  ;;  %v6850_v8 = vld [vmem:[%s8155_s5 + $0x150] sm:$0xff]  }
 0x1d4   : > { %6225 = vmatprep.subr.bf16.mxu1 %v6807_v9 }
 0x1d7   : > { %6226 = vmatpush3.bf16.msra.mxu1 %v6807_v9  ;;  %v6851_v9 = vld [vmem:[%s8155_s5 + $0x158] sm:$0xff]  }
 0x1d8   : > { %6231 = vmatprep.subr.bf16.mxu1 %v6918_v51 }
 0x1da   : > { %6228 = vmatmul.mubr.msk.bf16.vlgmr.msra.gmra.mrb[8].mxu1 %vm2406_vm8, %v3155_v63  ;;  %v6840_v63 = vld [vmem:[%s8155_s5 + $0x100] sm:$0xff]  }
 0x1db   : > { %6232 = vmatpush3.bf16.msra.mxu1 %v6808_v10  ;;  %6239 = vmatprep.mubr.msk.bf16.mxu1 %vm6919_vm9, %v6918_v51  ;;  %v6852_v10 = vld [vmem:[%s8155_s5 + $0x160] sm:$0xff]  }
 0x1dc   : > { %6233 = vmatprep.subr.bf16.mxu1 %v6918_v51 }
 0x1df   : > { %6234 = vmatpush3.bf16.msra.mxu1 %v6810_v11 }
 0x1e0   : > { %6235 = vmatprep.subr.bf16.mxu1 %v6918_v51 }
 0x1e3   : > { %6236 = vmatpush3.bf16.msra.mxu1 %v6812_v13  ;;  %v6854_v13 = vld [vmem:[%s8155_s5 + $0x170] sm:$0xff]  }
 0x1e4   : > { %6237 = vmatprep.subr.bf16.mxu1 %v6918_v51 }
 0x1e7   : > { %6238 = vmatpush3.bf16.msra.mxu1 %v6814_v15  ;;  %v6856_v15 = vld [vmem:[%s8155_s5 + $0x180] sm:$0xff]  }
 0x1e8   : > { %6243 = vmatprep.subr.bf16.mxu1 %v6918_v51 }
 0x2ad   : > { %v6229_v18 = vpop.f32.mrb[8].mxu1 }
 0x2ae   : > { %v7701_v19 = vadd.f32 %v6229_v18, %v5176_v17  ;;  %v3221_v20 = vpop.f32.mrb[9].mxu1  ;;  %v6858_v18 = vld [vmem:[%s8155_s5 + $0x190] sm:$0xff]  }
 0x2af   : > { %v6520_v21 = vadd.f32 %v5176_v17, %v3221_v20  ;;  %v6230_v22 = vpop.f32.mrb[10].mxu1  ;;  %v6859_v20 = vld [vmem:[%s8155_s5 + $0x198] sm:$0xff]  }
 0x2b0   : > { %v3224_v23 = vpop.f32.mrb[11].mxu1 }
 0x2b1   : > { %v6521_v24 = vadd.f32 %v5176_v17, %v3224_v23  ;;  %v3238_v25 = vmax.f32 %v6520_v21, 0.0  ;;  %v6857_v17 = vld [vmem:[%s8155_s5 + $0x188] sm:$0xff]   ;;  %v6860_v21 = vld [vmem:[%s8155_s5 + $0x1a0] sm:$0xff]  }
 0x2b2   : > { %v6861_v23 = vld [vmem:[%s8155_s5 + $0x1a8] sm:$0xff]  }
 0x2b3   : > { %v3239_v26 = vmax.f32 %v6521_v24, 0.0  ;;  %v6880_v24 = vld [vmem:[%s8157_s7] sm:$0xff]  }
 0x2b5   : > { %v7706_v29 = vpack.c.bf16 %v3239_v26, %v3238_v25  ;;  %v6862_v25 = vld [vmem:[%s8155_s5 + $0x1b0] sm:$0xff]   ;;  %v6881_v26 = vld [vmem:[%s8157_s7 + $0x8] sm:$0xff]  }
 0x2b7   : > { %6240 = vmatmul.mubr.msk.bf16.vlgmr.msra.gmra.mrb[12].mxu1 %vm2406_vm8, %v7706_v29  ;;  %v3566_v31 = vrot.slane %v7706_v29, 2  ;;  %v7744_v38 = vshrl.u32 %v7706_v29, 16  ;;  %v3410_v50 = vrot.slane %v7706_v29, 1  ;;  %v3722_v55 = vrot.slane %v7706_v29, 3 }
 0x2b8   : > { %6244 = vmatpush3.bf16.msra.mxu1 %v6816_v27  ;;  %6251 = vmatprep.mubr.msk.bf16.mxu1 %vm6919_vm9, %v6918_v51  ;;  %v3878_v6 = vrot.slane %v7706_v29, 4  ;;  %v4034_v11 = vrot.slane %v7706_v29, 5  ;;  %v4190_v22 = vrot.slane %v7706_v29, 6  ;;  %v6863_v27 = vld [vmem:[%s8155_s5 + $0x1b8] sm:$0xff]  }
 0x2b9   : > { %6288 = vmatmul.mubr.msk.bf16.vlgmr.msra.gmra.mrb[8].mxu0 %vm2406_vm8, %v3566_v31  ;;  %6245 = vmatprep.subr.bf16.mxu1 %v6918_v51  ;;  %v3644_v41 = vrot.slane %v7744_v38, 2  ;;  %v3488_v2 = vrot.slane %v7744_v38, 1  ;;  %v3800_v4 = vrot.slane %v7744_v38, 3  ;;  %v3956_v57 = vrot.slane %v7744_v38, 4  ;;  %v6864_v31 = vld [vmem:[%s8155_s5 + $0x1c0] sm:$0xff]  }
 0x2ba   : > { %6292 = vmatpush3.bf16.msra.mxu0 %v6817_v30  ;;  %6299 = vmatprep.mubr.msk.bf16.mxu0 %vm6919_vm9, %v6918_v51  ;;  %v4112_v16 = vrot.slane %v7744_v38, 5  ;;  %v6882_v30 = vld [vmem:[%s8157_s7 + $0x10] sm:$0xff]  }
 0x2bb   : > { %6293 = vmatprep.subr.bf16.mxu0 %v6918_v51 }
 0x2bc   : > { %6246 = vmatpush3.bf16.msra.mxu1 %v6818_v32  ;;  %v4268_v32 = vrot.slane %v7744_v38, 6 }
 0x2bd   : > { %6247 = vmatprep.subr.bf16.mxu1 %v6918_v51 }
 0x2be   : > { %6294 = vmatpush3.bf16.msra.mxu0 %v6819_v33  ;;  %v6883_v33 = vld [vmem:[%s8157_s7 + $0x18] sm:$0xff]  }
 0x2bf   : > { %6295 = vmatprep.subr.bf16.mxu0 %v6918_v51 }
 0x2c0   : > { %6248 = vmatpush3.bf16.msra.mxu1 %v6820_v34  ;;  %v6865_v34 = vld [vmem:[%s8155_s5 + $0x1c8] sm:$0xff]  }
 0x2c1   : > { %6249 = vmatprep.subr.bf16.mxu1 %v6918_v51 }
 0x2c2   : > { %6296 = vmatpush3.bf16.msra.mxu0 %v6821_v35  ;;  %v6884_v35 = vld [vmem:[%s8157_s7 + $0x20] sm:$0xff]  }
 0x2c3   : > { %6297 = vmatprep.subr.bf16.mxu0 %v6918_v51 }
 0x2c4   : > { %6250 = vmatpush3.bf16.msra.mxu1 %v6822_v36  ;;  %v6866_v36 = vld [vmem:[%s8155_s5 + $0x1d0] sm:$0xff]  }
 0x2c5   : > { %6255 = vmatprep.subr.bf16.mxu1 %v6918_v51 }
 0x2c6   : > { %6298 = vmatpush3.bf16.msra.mxu0 %v6823_v37  ;;  %v6885_v37 = vld [vmem:[%s8157_s7 + $0x28] sm:$0xff]  }
 0x2c7   : > { %6252 = vmatmul.mubr.msk.bf16.vlgmr.msra.gmra.mrb[12].mxu1 %vm2406_vm8, %v7744_v38  ;;  %6303 = vmatprep.subr.bf16.mxu0 %v6918_v51 }
 0x2c8   : > { %6256 = vmatpush3.bf16.msra.mxu1 %v6824_v39  ;;  %6263 = vmatprep.mubr.msk.bf16.mxu1 %vm6919_vm9, %v6918_v51  ;;  %v6867_v39 = vld [vmem:[%s8155_s5 + $0x1d8] sm:$0xff]  }
 0x2c9   : > { %6300 = vmatmul.mubr.msk.bf16.vlgmr.msra.gmra.mrb[8].mxu0 %vm2406_vm8, %v3644_v41  ;;  %6257 = vmatprep.subr.bf16.mxu1 %v6918_v51  ;;  %v4346_v41 = vrot.slane %v7706_v29, 7  ;;  %v6871_v29 = vld [vmem:[%s8155_s5 + $0x1f8] sm:$0xff]  }
 0x2ca   : > { %6304 = vmatpush3.bf16.msra.mxu0 %v6825_v40  ;;  %6311 = vmatprep.mubr.msk.bf16.mxu0 %vm6919_vm9, %v6918_v51  ;;  %v6868_v40 = vld [vmem:[%s8155_s5 + $0x1e0] sm:$0xff]  }
 0x2cb   : > { %6305 = vmatprep.subr.bf16.mxu0 %v6918_v51 }
 0x2cc   : > { %6258 = vmatpush3.bf16.msra.mxu1 %v6826_v42  ;;  %v6869_v42 = vld [vmem:[%s8155_s5 + $0x1e8] sm:$0xff]  }
 0x2cd   : > { %6259 = vmatprep.subr.bf16.mxu1 %v6918_v51 }
 0x2ce   : > { %6306 = vmatpush3.bf16.msra.mxu0 %v6827_v43  ;;  %v6870_v43 = vld [vmem:[%s8155_s5 + $0x1f0] sm:$0xff]  }
 0x2cf   : > { %6307 = vmatprep.subr.bf16.mxu0 %v6918_v51 }
 0x2d0   : > { %6260 = vmatpush3.bf16.msra.mxu1 %v6828_v44  ;;  %v6872_v44 = vld [vmem:[%s8155_s5 + $0x200] sm:$0xff]  }
 0x2d1   : > { %6261 = vmatprep.subr.bf16.mxu1 %v6918_v51 }
 0x2d2   : > { %6308 = vmatpush3.bf16.msra.mxu0 %v6829_v45  ;;  %v4424_v45 = vrot.slane %v7744_v38, 7  ;;  %v6875_v38 = vld [vmem:[%s8155_s5 + $0x218] sm:$0xff]  }
 0x2d3   : > { %6309 = vmatprep.subr.bf16.mxu0 %v6918_v51 }
 0x2d4   : > { %6262 = vmatpush3.bf16.msra.mxu1 %v6830_v46  ;;  %v6873_v46 = vld [vmem:[%s8155_s5 + $0x208] sm:$0xff]  }
 0x2d5   : > { %6267 = vmatprep.subr.bf16.mxu1 %v6918_v51 }
 0x2d6   : > { %6310 = vmatpush3.bf16.msra.mxu0 %v6831_v47  ;;  %v6874_v47 = vld [vmem:[%s8155_s5 + $0x210] sm:$0xff]  }
 0x2d7   : > { %6264 = vmatmul.mubr.msk.bf16.vlgmr.msra.gmra.mrb[12].mxu1 %vm2406_vm8, %v3410_v50  ;;  %6315 = vmatprep.subr.bf16.mxu0 %v6918_v51  ;;  %v6876_v50 = vld [vmem:[%s8155_s5 + $0x220] sm:$0xff]  }
 0x2d8   : > { %6268 = vmatpush3.bf16.msra.mxu1 %v6832_v49  ;;  %6275 = vmatprep.mubr.msk.bf16.mxu1 %vm6919_vm9, %v6918_v51  ;;  %v3240_v49 = vmax.f32 %v7701_v19, 0.0  ;;  %v6878_v19 = vld [vmem:[%s8155_s5 + $0x230] sm:$0xff]  }
 0x2d9   : > { %6312 = vmatmul.mubr.msk.bf16.vlgmr.msra.gmra.mrb[8].mxu0 %vm2406_vm8, %v3722_v55  ;;  %6269 = vmatprep.subr.bf16.mxu1 %v6918_v51  ;;  %v6877_v55 = vld [vmem:[%s8155_s5 + $0x228] sm:$0xff]  }
 0x2da   : > { %6316 = vmatpush3.bf16.msra.mxu0 %v6833_v54  ;;  %6323 = vmatprep.mubr.msk.bf16.mxu0 %vm6919_vm9, %v6918_v51  ;;  %v3242_v54 = vpack.c.bf16 %v3240_v49, %v3240_v49 }
 0x2db   : > { %6317 = vmatprep.subr.bf16.mxu0 %v6918_v51 }
 0x2dc   : > { %6270 = vmatpush3.bf16.msra.mxu1 %v6834_v56  ;;  %v6879_v56 = vld [vmem:[%s8155_s5 + $0x238] sm:$0xff]  }
 0x2dd   : > { %6271 = vmatprep.subr.bf16.mxu1 %v6918_v51 }
 0x2de   : > { %6318 = vmatpush3.bf16.msra.mxu0 %v6835_v58  ;;  %v4579_v58 = vshrl.u32 %v3242_v54, 16 }
 0x2df   : > { %6319 = vmatprep.subr.bf16.mxu0 %v6918_v51 }
 0x2e0   : > { %6272 = vmatpush3.bf16.msra.mxu1 %v6836_v59 }
 0x2e1   : > { %6273 = vmatprep.subr.bf16.mxu1 %v6918_v51 }
 0x2e2   : > { %6320 = vmatpush3.bf16.msra.mxu0 %v6837_v60 }
 0x2e3   : > { %6321 = vmatprep.subr.bf16.mxu0 %v6918_v51 }
 0x2e4   : > { %6274 = vmatpush3.bf16.msra.mxu1 %v6838_v61 }
 0x2e5   : > { %6447 = vmatprep.subr.bf16.mxu1 %v6918_v51 }
 0x2e6   : > { %6322 = vmatpush3.bf16.msra.mxu0 %v6839_v0 }
 0x2e7   : > { %6276 = vmatmul.mubr.msk.bf16.vlgmr.msra.gmra.mrb[12].mxu1 %vm2406_vm8, %v3488_v2  ;;  %6327 = vmatprep.subr.bf16.mxu0 %v6918_v51  ;;  %v6886_v2 = vld [vmem:[%s8157_s7 + $0x30] sm:$0xff]  }
 0x2e8   : > { %6463 = vmatprep.mubr.msk.bf16.mxu1 %vm6919_vm9, %v6918_v51  ;;  %6448 = vmatpush3.bf16.msra.mxu1 %v6880_v24  ;;  %v6898_v24 = vld [vmem:[%s8161_s11 + $0x10] sm:$0xff]  }
 0x2e9   : > { %6324 = vmatmul.mubr.msk.bf16.vlgmr.msra.gmra.mrb[8].mxu0 %vm2406_vm8, %v3800_v4  ;;  %6449 = vmatprep.subr.bf16.mxu1 %v6918_v51  ;;  %v3243_v4 = vld [vmem:[%s8156_s6] sm:$0x1] }
 0x2ea   : > { %6328 = vmatpush3.bf16.msra.mxu0 %v6840_v63  ;;  %6335 = vmatprep.mubr.msk.bf16.mxu0 %vm6919_vm9, %v6918_v51  ;;  %v6887_v63 = vld [vmem:[%s8157_s7 + $0x38] sm:$0xff]  }
 0x2eb   : > { %6329 = vmatprep.subr.bf16.mxu0 %v6918_v51 }
 0x2ec   : > { %6450 = vmatpush3.bf16.msra.mxu1 %v6881_v26  ;;  %v6900_v26 = vld [vmem:[%s8161_s11 + $0x20] sm:$0xff]  }
 0x2ed   : > { %6451 = vmatprep.subr.bf16.mxu1 %v6918_v51 }
 0x2ee   : > { %6330 = vmatpush3.bf16.msra.mxu0 %v6841_v1 }
 0x2ef   : > { %6331 = vmatprep.subr.bf16.mxu0 %v6918_v51 }
 0x2f0   : > { %6452 = vmatpush3.bf16.msra.mxu1 %v6882_v30  ;;  %v6902_v30 = vld [vmem:[%s8161_s11 + $0x30] sm:$0xff]  }
 0x2f1   : > { %6453 = vmatprep.subr.bf16.mxu1 %v6918_v51 }
 0x2f2   : > { %6332 = vmatpush3.bf16.msra.mxu0 %v6842_v28 }
 0x2f3   : > { %6333 = vmatprep.subr.bf16.mxu0 %v6918_v51 }
 0x2f4   : > { %6454 = vmatpush3.bf16.msra.mxu1 %v6883_v33 }
 0x2f5   : > { %6455 = vmatprep.subr.bf16.mxu1 %v6918_v51 }
 0x2f6   : > { %6334 = vmatpush3.bf16.msra.mxu0 %v6843_v3 }
 0x2f7   : > { %6339 = vmatprep.subr.bf16.mxu0 %v6918_v51 }
 0x2f8   : > { %6456 = vmatpush3.bf16.msra.mxu1 %v6884_v35 }
 0x2f9   : > { %6336 = vmatmul.mubr.msk.bf16.vlgmr.msra.gmra.mrb[8].mxu0 %vm2406_vm8, %v3878_v6  ;;  %6457 = vmatprep.subr.bf16.mxu1 %v6918_v51 }
 0x2fa   : > { %6340 = vmatpush3.bf16.msra.mxu0 %v6844_v5  ;;  %6347 = vmatprep.mubr.msk.bf16.mxu0 %vm6919_vm9, %v6918_v51 }
 0x2fb   : > { %6341 = vmatprep.subr.bf16.mxu0 %v6918_v51 }
 0x2fc   : > { %6458 = vmatpush3.bf16.msra.mxu1 %v6885_v37 }
 0x2fd   : > { %6459 = vmatprep.subr.bf16.mxu1 %v6918_v51 }
 0x2fe   : > { %6342 = vmatpush3.bf16.msra.mxu0 %v6845_v7 }
 0x2ff   : > { %6343 = vmatprep.subr.bf16.mxu0 %v6918_v51 }
 0x300   : > { %6460 = vmatpush3.bf16.msra.mxu1 %v6886_v2 }
 0x301   : > { %6461 = vmatprep.subr.bf16.mxu1 %v6918_v51 }
 0x302   : > { %6344 = vmatpush3.bf16.msra.mxu0 %v6846_v48 }
 0x303   : > { %6345 = vmatprep.subr.bf16.mxu0 %v6918_v51 }
 0x304   : > { %6462 = vmatpush3.bf16.msra.mxu1 %v6887_v63 }
 0x305   : > { %6467 = vmatprep.subr.bf16.mxu1 %v6918_v51 }
 0x306   : > { %6346 = vmatpush3.bf16.msra.mxu0 %v6847_v52  ;;  %v6888_v52 = vld [vmem:[%s8159_s9] sm:$0xff]  }
 0x307   : > { %6351 = vmatprep.subr.bf16.mxu0 %v6918_v51 }
 0x309   : > { %6348 = vmatmul.mubr.msk.bf16.vlgmr.msra.gmra.mrb[8].mxu0 %vm2406_vm8, %v3956_v57  ;;  %v6889_v57 = vld [vmem:[%s8159_s9 + $0x8] sm:$0xff]  }
 0x30a   : > { %6352 = vmatpush3.bf16.msra.mxu0 %v6848_v53  ;;  %6359 = vmatprep.mubr.msk.bf16.mxu0 %vm6919_vm9, %v6918_v51 }
 0x30b   : > { %6353 = vmatprep.subr.bf16.mxu0 %v6918_v51 }
 0x30e   : > { %6354 = vmatpush3.bf16.msra.mxu0 %v6849_v62  ;;  %v6890_v62 = vld [vmem:[%s8159_s9 + $0x10] sm:$0xff]  }
 0x30f   : > { %6355 = vmatprep.subr.bf16.mxu0 %v6918_v51 }
 0x312   : > { %6356 = vmatpush3.bf16.msra.mxu0 %v6850_v8  ;;  %v6891_v8 = vld [vmem:[%s8159_s9 + $0x18] sm:$0xff]  }
 0x313   : > { %6357 = vmatprep.subr.bf16.mxu0 %v6918_v51 }
 0x316   : > { %6358 = vmatpush3.bf16.msra.mxu0 %v6851_v9  ;;  %v6892_v9 = vld [vmem:[%s8159_s9 + $0x20] sm:$0xff]  }
 0x317   : > { %6363 = vmatprep.subr.bf16.mxu0 %v6918_v51 }
 0x319   : > { %6360 = vmatmul.mubr.msk.bf16.vlgmr.msra.gmra.mrb[8].mxu0 %vm2406_vm8, %v4034_v11  ;;  %v6894_v11 = vld [vmem:[%s8159_s9 + $0x30] sm:$0xff]  }
 0x31a   : > { %6364 = vmatpush3.bf16.msra.mxu0 %v6852_v10  ;;  %6371 = vmatprep.mubr.msk.bf16.mxu0 %vm6919_vm9, %v6918_v51  ;;  %v6893_v10 = vld [vmem:[%s8159_s9 + $0x28] sm:$0xff]  }
 0x31b   : > { %6365 = vmatprep.subr.bf16.mxu0 %v6918_v51 }
 0x31e   : > { %6366 = vmatpush3.bf16.msra.mxu0 %v6853_v12  ;;  %v6895_v12 = vld [vmem:[%s8159_s9 + $0x38] sm:$0xff]  }
 0x31f   : > { %6367 = vmatprep.subr.bf16.mxu0 %v6918_v51 }
 0x322   : > { %6368 = vmatpush3.bf16.msra.mxu0 %v6854_v13  ;;  %v4667_v13 = vld [vmem:[%s8158_s8] sm:$0x1] }
 0x323   : > { %6369 = vmatprep.subr.bf16.mxu0 %v6918_v51 }
 0x326   : > { %6370 = vmatpush3.bf16.msra.mxu0 %v6855_v14 }
 0x327   : > { %6375 = vmatprep.subr.bf16.mxu0 %v6918_v51 }
 0x329   : > { %6372 = vmatmul.mubr.msk.bf16.vlgmr.msra.gmra.mrb[8].mxu0 %vm2406_vm8, %v4112_v16 }
 0x32a   : > { %6376 = vmatpush3.bf16.msra.mxu0 %v6856_v15  ;;  %6383 = vmatprep.mubr.msk.bf16.mxu0 %vm6919_vm9, %v6918_v51 }
 0x32b   : > { %6377 = vmatprep.subr.bf16.mxu0 %v6918_v51 }
 0x32e   : > { %6378 = vmatpush3.bf16.msra.mxu0 %v6857_v17 }
 0x32f   : > { %6379 = vmatprep.subr.bf16.mxu0 %v6918_v51 }
 0x332   : > { %6380 = vmatpush3.bf16.msra.mxu0 %v6858_v18 }
 0x333   : > { %6381 = vmatprep.subr.bf16.mxu0 %v6918_v51 }
 0x336   : > { %6382 = vmatpush3.bf16.msra.mxu0 %v6859_v20 }
 0x337   : > { %6387 = vmatprep.subr.bf16.mxu0 %v6918_v51 }
 0x339   : > { %6384 = vmatmul.mubr.msk.bf16.vlgmr.msra.gmra.mrb[8].mxu0 %vm2406_vm8, %v4190_v22 }
 0x33a   : > { %6388 = vmatpush3.bf16.msra.mxu0 %v6860_v21  ;;  %6395 = vmatprep.mubr.msk.bf16.mxu0 %vm6919_vm9, %v6918_v51  ;;  %v6896_v21 = vld [vmem:[%s8161_s11] sm:$0xff]  }
 0x33b   : > { %6389 = vmatprep.subr.bf16.mxu0 %v6918_v51 }
 0x33e   : > { %6390 = vmatpush3.bf16.msra.mxu0 %v6861_v23  ;;  %v6897_v23 = vld [vmem:[%s8161_s11 + $0x8] sm:$0xff]  }
 0x33f   : > { %6391 = vmatprep.subr.bf16.mxu0 %v6918_v51 }
 0x342   : > { %6392 = vmatpush3.bf16.msra.mxu0 %v6862_v25  ;;  %v6899_v25 = vld [vmem:[%s8161_s11 + $0x18] sm:$0xff]  }
 0x343   : > { %6393 = vmatprep.subr.bf16.mxu0 %v6918_v51 }
 0x346   : > { %6394 = vmatpush3.bf16.msra.mxu0 %v6863_v27  ;;  %v6901_v27 = vld [vmem:[%s8161_s11 + $0x28] sm:$0xff]  }
 0x347   : > { %6399 = vmatprep.subr.bf16.mxu0 %v6918_v51 }
 0x349   : > { %6396 = vmatmul.mubr.msk.bf16.vlgmr.msra.gmra.mrb[8].mxu0 %vm2406_vm8, %v4268_v32  ;;  %v4774_v32 = vld [vmem:[%s8160_s10] sm:$0x1] }
 0x34a   : > { %6400 = vmatpush3.bf16.msra.mxu0 %v6864_v31  ;;  %6407 = vmatprep.mubr.msk.bf16.mxu0 %vm6919_vm9, %v6918_v51  ;;  %v6903_v31 = vld [vmem:[%s8161_s11 + $0x38] sm:$0xff]  }
 0x34b   : > { %6401 = vmatprep.subr.bf16.mxu0 %v6918_v51 }
 0x34e   : > { %6402 = vmatpush3.bf16.msra.mxu0 %v6865_v34 }
 0x34f   : > { %6403 = vmatprep.subr.bf16.mxu0 %v6918_v51 }
 0x352   : > { %6404 = vmatpush3.bf16.msra.mxu0 %v6866_v36 }
 0x353   : > { %6405 = vmatprep.subr.bf16.mxu0 %v6918_v51 }
 0x356   : > { %6406 = vmatpush3.bf16.msra.mxu0 %v6867_v39 }
 0x357   : > { %6411 = vmatprep.subr.bf16.mxu0 %v6918_v51 }
 0x359   : > { %6408 = vmatmul.mubr.msk.bf16.vlgmr.msra.gmra.mrb[8].mxu0 %vm2406_vm8, %v4346_v41 }
 0x35a   : > { %6412 = vmatpush3.bf16.msra.mxu0 %v6868_v40  ;;  %6419 = vmatprep.mubr.msk.bf16.mxu0 %vm6919_vm9, %v6918_v51 }
 0x35b   : > { %6413 = vmatprep.subr.bf16.mxu0 %v6918_v51 }
 0x35e   : > { %6414 = vmatpush3.bf16.msra.mxu0 %v6869_v42 }
 0x35f   : > { %6415 = vmatprep.subr.bf16.mxu0 %v6918_v51 }
 0x362   : > { %6416 = vmatpush3.bf16.msra.mxu0 %v6870_v43 }
 0x363   : > { %6417 = vmatprep.subr.bf16.mxu0 %v6918_v51 }
 0x366   : > { %6418 = vmatpush3.bf16.msra.mxu0 %v6871_v29 }
 0x367   : > { %6423 = vmatprep.subr.bf16.mxu0 %v6918_v51 }
 0x369   : > { %6420 = vmatmul.mubr.msk.bf16.vlgmr.msra.gmra.mrb[8].mxu0 %vm2406_vm8, %v4424_v45 }
 0x36a   : > { %6424 = vmatpush3.bf16.msra.mxu0 %v6872_v44  ;;  %6431 = vmatprep.mubr.msk.bf16.mxu0 %vm6919_vm9, %v6918_v51 }
 0x36b   : > { %6425 = vmatprep.subr.bf16.mxu0 %v6918_v51 }
 0x36e   : > { %6426 = vmatpush3.bf16.msra.mxu0 %v6873_v46 }
 0x36f   : > { %6427 = vmatprep.subr.bf16.mxu0 %v6918_v51 }
 0x372   : > { %6428 = vmatpush3.bf16.msra.mxu0 %v6874_v47 }
 0x373   : > { %6429 = vmatprep.subr.bf16.mxu0 %v6918_v51 }
 0x376   : > { %6430 = vmatpush3.bf16.msra.mxu0 %v6875_v38 }
 0x377   : > { %6435 = vmatprep.subr.bf16.mxu0 %v6918_v51 }
 0x379   : > { %6432 = vmatmul.mubr.msk.bf16.vlgmr.msra.gmra.mrb[8].mxu0 %vm2406_vm8, %v3242_v54 }
 0x37a   : > { %6436 = vmatpush3.bf16.msra.mxu0 %v6876_v50  ;;  %6443 = vmatprep.mubr.msk.bf16.mxu0 %vm6919_vm9, %v6918_v51 }
 0x37b   : > { %6437 = vmatprep.subr.bf16.mxu0 %v6918_v51 }
 0x37e   : > { %6438 = vmatpush3.bf16.msra.mxu0 %v6877_v55 }
 0x37f   : > { %6439 = vmatprep.subr.bf16.mxu0 %v6918_v51 }
 0x382   : > { %6440 = vmatpush3.bf16.msra.mxu0 %v6878_v19 }
 0x383   : > { %6441 = vmatprep.subr.bf16.mxu0 %v6918_v51 }
 0x386   : > { %6442 = vmatpush3.bf16.msra.mxu0 %v6879_v56 }
 0x389   : > { %6444 = vmatmul.mubr.msk.bf16.vlgmr.msra.gmra.mrb[8].mxu0 %vm2406_vm8, %v4579_v58 }
 0x3ba   : > { %v3550_v59 = vpop.f32.mrb[12].mxu1 }
 0x3bb   : > { %v6277_v60 = vpop.f32.mrb[13].mxu1  ;;  %v6522_v1 = vadd.f32 %v3550_v59, %v3243_v4 }
 0x3bc   : > { %v3553_v61 = vpop.f32.mrb[14].mxu1 }
 0x3bd   : > { %v6278_v0 = vpop.f32.mrb[15].mxu1 }
 0x45c   : > { %v4642_v28 = vpop.f32.mrb[8].mxu0 }
 0x45d   : > { %v6523_v3 = vadd.f32 %v6522_v1, %v4642_v28  ;;  %v6445_v5 = vpop.f32.mrb[9].mxu0 }
 0x45e   : > { %v4645_v6 = vpop.f32.mrb[10].mxu0 }
 0x45f   : > { %v4649_v7 = vmax.f32 %v6523_v3, 0.0  ;;  %v6446_v48 = vpop.f32.mrb[11].mxu0 }
 0x461   : > { %v4650_v53 = vpack.c.bf16 %v4649_v7, %v4649_v7 }
 0x463   : > { %6464 = vmatmul.mubr.bf16.vlgmr.msra.gmra.mrb[16].mxu1 %v4650_v53 }
 0x464   : > { %6468 = vmatpush3.bf16.msra.mxu1 %v6888_v52  ;;  %6483 = vmatprep.mubr.msk.bf16.mxu1 %vm6919_vm9, %v6918_v51 }
 0x465   : > { %6469 = vmatprep.subr.bf16.mxu1 %v6918_v51 }
 0x468   : > { %6470 = vmatpush3.bf16.msra.mxu1 %v6889_v57 }
 0x469   : > { %6471 = vmatprep.subr.bf16.mxu1 %v6918_v51 }
 0x46c   : > { %6472 = vmatpush3.bf16.msra.mxu1 %v6890_v62 }
 0x46d   : > { %6473 = vmatprep.subr.bf16.mxu1 %v6918_v51 }
 0x470   : > { %6474 = vmatpush3.bf16.msra.mxu1 %v6891_v8 }
 0x471   : > { %6475 = vmatprep.subr.bf16.mxu1 %v6918_v51 }
 0x474   : > { %6476 = vmatpush3.bf16.msra.mxu1 %v6892_v9 }
 0x475   : > { %6477 = vmatprep.subr.bf16.mxu1 %v6918_v51 }
 0x478   : > { %6478 = vmatpush3.bf16.msra.mxu1 %v6893_v10 }
 0x479   : > { %6479 = vmatprep.subr.bf16.mxu1 %v6918_v51 }
 0x47c   : > { %6480 = vmatpush3.bf16.msra.mxu1 %v6894_v11 }
 0x47d   : > { %6481 = vmatprep.subr.bf16.mxu1 %v6918_v51 }
 0x480   : > { %6482 = vmatpush3.bf16.msra.mxu1 %v6895_v12 }
 0x481   : > { %6487 = vmatprep.subr.bf16.mxu1 %v6918_v51 }
 0x536   : > { %v4750_v14 = vpop.f32.mrb[16].mxu1 }
 0x537   : > { %v4751_v15 = vadd.f32 %v4750_v14, %v4667_v13  ;;  %v6465_v16 = vpop.f32.mrb[17].mxu1 }
 0x538   : > { %v4753_v17 = vpop.f32.mrb[18].mxu1 }
 0x539   : > { %v4756_v18 = vmax.f32 %v4751_v15, 0.0  ;;  %v6466_v20 = vpop.f32.mrb[19].mxu1 }
 0x53b   : > { %v4757_v22 = vpack.c.bf16 %v4756_v18, %v4756_v18 }
 0x53d   : > { %6484 = vmatmul.mubr.bf16.vlgmr.msra.gmra.mrb[20].mxu1 %v4757_v22 }
 0x53e   : > { %6488 = vmatpush3.bf16.msra.mxu1 %v6896_v21  ;;  %6503 = vmatprep.mubr.msk.bf16.mxu1 %vm6919_vm9, %v6918_v51 }
 0x53f   : > { %6489 = vmatprep.subr.bf16.mxu1 %v6918_v51 }
 0x542   : > { %6490 = vmatpush3.bf16.msra.mxu1 %v6897_v23 }
 0x543   : > { %6491 = vmatprep.subr.bf16.mxu1 %v6918_v51 }
 0x546   : > { %6492 = vmatpush3.bf16.msra.mxu1 %v6898_v24 }
 0x547   : > { %6493 = vmatprep.subr.bf16.mxu1 %v6918_v51 }
 0x54a   : > { %6494 = vmatpush3.bf16.msra.mxu1 %v6899_v25 }
 0x54b   : > { %6495 = vmatprep.subr.bf16.mxu1 %v6918_v51 }
 0x54e   : > { %6496 = vmatpush3.bf16.msra.mxu1 %v6900_v26 }
 0x54f   : > { %6497 = vmatprep.subr.bf16.mxu1 %v6918_v51 }
 0x552   : > { %6498 = vmatpush3.bf16.msra.mxu1 %v6901_v27 }
 0x553   : > { %6499 = vmatprep.subr.bf16.mxu1 %v6918_v51 }
 0x556   : > { %6500 = vmatpush3.bf16.msra.mxu1 %v6902_v30 }
 0x557   : > { %6501 = vmatprep.subr.bf16.mxu1 %v6918_v51  ;;  %v4881_v51 = vld [vmem:[%s8162_s12] sm:$0x1] }
 0x55a   : > { %6502 = vmatpush3.bf16.msra.mxu1 %v6903_v31 }
 0x610   : > { %v4857_v33 = vpop.f32.mrb[20].mxu1 }
 0x611   : > { %v4858_v34 = vadd.f32 %v4857_v33, %v4774_v32  ;;  %v6485_v35 = vpop.f32.mrb[21].mxu1 }
 0x612   : > { %v4860_v36 = vpop.f32.mrb[22].mxu1 }
 0x613   : > { %v4863_v37 = vmax.f32 %v4858_v34, 0.0  ;;  %v6486_v39 = vpop.f32.mrb[23].mxu1 }
 0x615   : > { %v4864_v40 = vpack.c.bf16 %v4863_v37, %v4863_v37 }
 0x617   : > { %6504 = vmatmul.mubr.bf16.vlgmr.msra.gmra.mrb[24].mxu1 %v4864_v40 }
 0x6ea   : > { %v4964_v41 = vpop.f32.mrb[24].mxu1 }
 0x6eb   : > { %v4965_v42 = vadd.f32 %v4964_v41, %v4881_v51  ;;  %v6505_v43 = vpop.f32.mrb[25].mxu1 }
 0x6ec   : > { %v4967_v29 = vpop.f32.mrb[26].mxu1 }
 0x6ed   : > { %4970 = vst [vmem:[%s436_s27] sm:$0x1] %v4965_v42  ;;  %v6506_v44 = vpop.f32.mrb[27].mxu1 }
 0x6ee PF: > { %s23_s25 = sadd.s32 1, %s6916_s25  }
 0x6ef   : > { %p20_p4 = scmp.ge.s32.totalorder %s23_s25, 4  }
 0x6f1   :  { %22 = sbr.rel (!%p20_p4) target bundleno = 1 (0x1), region = 135 }

</bundles_post_ra>
